<compile_context>
chip_gen: v7x
topology: tpu7x:2x2x1
jax: 0.10.0
libtpu: 0.0.40
codegen_flags: <defaults>
</compile_context>

<pallas_src>
import jax
import jax.numpy as jnp
import numpy as np
from jax import lax
from jax.experimental import pallas as pl
from jax.experimental.pallas import tpu as pltpu


def _lenet_feature_kernel(x_ref, w1_ref, b1_ref, w2_ref, b2_ref, r0_ref,
                          cmap_ref, o_ref):
    x = x_ref[...]                       # (n, 28): Bt images stacked on sublanes
    n = x.shape[0]

    # ---- conv1 (1 -> 6 ch, 5x5, VALID) as 5 banded matmuls on the MXU ------
    # acc1[b*28 + i, c*24 + j] = conv1[b, c, i, j]   (valid for i < 24)
    acc1 = jnp.dot(x[0:n - 4, :], w1_ref[0], preferred_element_type=jnp.float32)
    for ki in range(1, 5):
        acc1 = acc1 + jnp.dot(x[ki:ki + n - 4, :], w1_ref[ki],
                              preferred_element_type=jnp.float32)
    acc1 = jnp.maximum(acc1 + b1_ref[...], 0.0)          # (n-4, 144)

    # ---- maxpool1 2x2/2: overlapping max only (no decimation) --------------
    # po1[b*28 + 2p, c*24 + 2q] = pooled1[b, c, p, q]; odd rows/lanes = garbage
    prow = jnp.maximum(acc1[0:n - 5, :], acc1[1:n - 4, :])
    po1 = jnp.maximum(prow[:, 0:143], prow[:, 1:144])    # (n-5, 143)

    # ---- conv2 (6 -> 16 ch, 5x5, VALID) as 5 banded matmuls -----------------
    # Lane decimation of pool1 is folded into w2 (nonzeros only at even lanes);
    # row decimation is folded into the 2*ki banded row offsets.
    # acc2[b*28 + 2*i2, o*8 + j2] = conv2[b, o, i2, j2]  (valid for i2 < 8)
    m = n - 13
    acc2 = jnp.dot(po1[0:m, :], w2_ref[0], preferred_element_type=jnp.float32)
    for ki in range(1, 5):
        acc2 = acc2 + jnp.dot(po1[2 * ki:2 * ki + m, :], w2_ref[ki],
                              preferred_element_type=jnp.float32)
    acc2 = jnp.maximum(acc2 + b2_ref[...], 0.0)          # (n-13, 128)

    # ---- maxpool2 2x2/2: overlapping max only -------------------------------
    # m2[b*28 + 4*p2, o*8 + 2*q2] = features[b, o, p2, q2]
    qrow = jnp.maximum(acc2[0:n - 15, :], acc2[2:n - 13, :])
    m2 = jnp.maximum(qrow[:, 0:127], qrow[:, 1:128])     # (n-15, 127)

    # ---- epilogue: lane-dense (Bt, 256) output in PyTorch flatten order -----
    # out[b, o*16 + p2*4 + q2] = m2[b*28 + 4*p2, o*8 + 2*q2], built from exact
    # 0/1 row-pick and lane-scatter matmuls (disjoint output lanes per p2).
    e = n - 27
    out = jnp.zeros(o_ref.shape, jnp.float32)
    for p2 in range(4):
        sel = jnp.dot(r0_ref[...], m2[4 * p2:4 * p2 + e, :],
                      preferred_element_type=jnp.float32)        # (Bt, 127)
        out = out + jnp.dot(sel, cmap_ref[p2],
                            preferred_element_type=jnp.float32)  # (Bt, 256)
    o_ref[...] = out


def feature_extractor_pallas(x, packed):
    """x: (B, 1, 28, 28) float32 -> (B, 256) features (PyTorch flatten order)."""
    w1c, b1r, w2c, b2r, r0, cmap = packed
    bt = r0.shape[0]                     # images per grid step
    n = bt * 28
    B = x.shape[0]
    assert x.shape[1:] == (1, 28, 28), x.shape

    bp = ((B + bt - 1) // bt) * bt       # pad batch to a multiple of bt
    xs = x.reshape(B, 28, 28).astype(jnp.float32)
    if bp != B:
        xs = jnp.concatenate([xs, jnp.zeros((bp - B, 28, 28), jnp.float32)], 0)
    x2d = xs.reshape(bp * 28, 28)        # image rows stacked along sublanes

    out = pl.pallas_call(
        _lenet_feature_kernel,
        out_shape=jax.ShapeDtypeStruct((bp, 256), jnp.float32),
        grid=(bp // bt,),
        in_specs=[
            pl.BlockSpec((n, 28), lambda b: (b, 0)),            # x slab
            pl.BlockSpec((5, 28, 144), lambda b: (0, 0, 0)),    # banded conv1 W
            pl.BlockSpec((1, 144), lambda b: (0, 0)),           # conv1 bias row
            pl.BlockSpec((5, 143, 128), lambda b: (0, 0, 0)),   # banded conv2 W
            pl.BlockSpec((1, 128), lambda b: (0, 0)),           # conv2 bias row
            pl.BlockSpec((bt, n - 27), lambda b: (0, 0)),       # row picker
            pl.BlockSpec((4, 127, 256), lambda b: (0, 0, 0)),   # lane scatter
        ],
        out_specs=pl.BlockSpec((bt, 256), lambda b: (b, 0)),    # lane-dense out
        compiler_params=pltpu.CompilerParams(
            dimension_semantics=("parallel",)),
    )(x2d, w1c, b1r, w2c, b2r, r0, cmap)
    return out[:B]


def make_params(key):
    k1, k2, k3, k4 = jax.random.split(key, 4)
    w1 = jax.random.uniform(k1, (6, 1, 5, 5), jnp.float32, -0.2, 0.2)
    b1 = jax.random.uniform(k2, (6,), jnp.float32, -0.2, 0.2)
    w2 = jax.random.uniform(k3, (16, 6, 5, 5), jnp.float32, -0.1, 0.1)
    b2 = jax.random.uniform(k4, (16,), jnp.float32, -0.1, 0.1)
    return w1, b1, w2, b2


def pack_params(w1, b1, w2, b2, block_b=16):
    """Pack weights into banded/selection matrices for the slab layout."""
    w1 = np.asarray(w1); b1 = np.asarray(b1)
    w2 = np.asarray(w2); b2 = np.asarray(b2)

    # conv1 banded weights: w1c[ki, j+kj, c*24+j] = w1[c, 0, ki, kj]
    w1c = np.zeros((5, 28, 144), np.float32)
    for ki in range(5):
        for c in range(6):
            for j in range(24):
                for kj in range(5):
                    w1c[ki, j + kj, c * 24 + j] = w1[c, 0, ki, kj]
    b1r = np.repeat(b1, 24)[None, :].astype(np.float32)            # (1, 144)

    # conv2 banded weights with pool1 lane-decimation folded in:
    # w2c[ki, c*24 + 2*(j2+kj), o*8 + j2] = w2[o, c, ki, kj]
    w2c = np.zeros((5, 143, 128), np.float32)
    for ki in range(5):
        for o in range(16):
            for c in range(6):
                for j2 in range(8):
                    for kj in range(5):
                        w2c[ki, c * 24 + 2 * (j2 + kj), o * 8 + j2] = w2[o, c, ki, kj]
    b2r = np.repeat(b2, 8)[None, :].astype(np.float32)             # (1, 128)

    # epilogue selectors (depend on the batch tile)
    n = block_b * 28
    r0 = np.zeros((block_b, n - 27), np.float32)
    r0[np.arange(block_b), np.arange(block_b) * 28] = 1.0
    cmap = np.zeros((4, 127, 256), np.float32)
    for p2 in range(4):
        for o in range(16):
            for q2 in range(4):
                cmap[p2, o * 8 + 2 * q2, o * 16 + 4 * p2 + q2] = 1.0

    return tuple(jnp.asarray(a) for a in (w1c, b1r, w2c, b2r, r0, cmap))


def reference(x, w1, b1, w2, b2):
    dn = ('NCHW', 'OIHW', 'NCHW')
    a = lax.conv_general_dilated(x, w1, (1, 1), 'VALID', dimension_numbers=dn,
                                 precision=lax.Precision.HIGHEST)
    a = jnp.maximum(a + b1[None, :, None, None], 0.0)
    a = lax.reduce_window(a, -jnp.inf, lax.max, (1, 1, 2, 2), (1, 1, 2, 2), 'VALID')
    a = lax.conv_general_dilated(a, w2, (1, 1), 'VALID', dimension_numbers=dn,
                                 precision=lax.Precision.HIGHEST)
    a = jnp.maximum(a + b2[None, :, None, None], 0.0)
    a = lax.reduce_window(a, -jnp.inf, lax.max, (1, 1, 2, 2), (1, 1, 2, 2), 'VALID')
    return a.reshape(a.shape[0], -1)


if __name__ == "__main__":
    key = jax.random.PRNGKey(0)
    kx, kp = jax.random.split(key)
    # MNIST-like input: (B=32, C=1, H=28, W=28) -> features (B, 16*4*4) = (B, 256)
    x = jax.random.normal(kx, (32, 1, 28, 28), jnp.float32)
    w1, b1, w2, b2 = make_params(kp)
    packed = pack_params(w1, b1, w2, b2, block_b=16)   # 16 images / grid step

    out = feature_extractor_pallas(x, packed)
    out = jax.block_until_ready(out)

    ref = reference(x, w1, b1, w2, b2)
    assert out.shape == (32, 256), out.shape
    if not bool(jnp.allclose(out, ref, atol=1e-4, rtol=1e-4)):
        raise AssertionError(
            f"mismatch: max abs err = {float(jnp.max(jnp.abs(out - ref)))}")
    print("KERNEL_OK")
</pallas_src>

<mosaic_0001>
module attributes {stable_mosaic.version = 11 : i64} {
  func.func @_lenet_feature_kernel(%arg0: i32, %arg1: memref<448x28xf32, #tpu.memory_space<vmem>>, %arg2: memref<5x28x144xf32, #tpu.memory_space<vmem>>, %arg3: memref<1x144xf32, #tpu.memory_space<vmem>>, %arg4: memref<5x143x128xf32, #tpu.memory_space<vmem>>, %arg5: memref<1x128xf32, #tpu.memory_space<vmem>>, %arg6: memref<16x421xf32, #tpu.memory_space<vmem>>, %arg7: memref<4x127x256xf32, #tpu.memory_space<vmem>>, %arg8: memref<16x256xf32, #tpu.memory_space<vmem>>) attributes {dimension_semantics = [#tpu.dimension_semantics<parallel>], iteration_bounds = array<i64: 2>, scalar_prefetch = 0 : i64, scratch_operands = 0 : i64, tpu.core_type = #tpu.core_type<tc>, window_params = [{transform_indices = @transform_0, window_bounds = array<i64: 448, 28>}, {pipeline_mode = #tpu.pipeline_mode<synchronous>, transform_indices = @transform_1, window_bounds = array<i64: 5, 28, 144>}, {pipeline_mode = #tpu.pipeline_mode<synchronous>, transform_indices = @transform_2, window_bounds = array<i64: 1, 144>}, {pipeline_mode = #tpu.pipeline_mode<synchronous>, transform_indices = @transform_3, window_bounds = array<i64: 5, 143, 128>}, {pipeline_mode = #tpu.pipeline_mode<synchronous>, transform_indices = @transform_4, window_bounds = array<i64: 1, 128>}, {pipeline_mode = #tpu.pipeline_mode<synchronous>, transform_indices = @transform_5, window_bounds = array<i64: 16, 421>}, {pipeline_mode = #tpu.pipeline_mode<synchronous>, transform_indices = @transform_6, window_bounds = array<i64: 4, 127, 256>}, {transform_indices = @transform_7, window_bounds = array<i64: 16, 256>}]} {
    %c0 = arith.constant 0 : index
    %c0_0 = arith.constant 0 : index
    %0 = vector.load %arg1[%c0, %c0_0] : memref<448x28xf32, #tpu.memory_space<vmem>>, vector<448x28xf32>
    %1 = vector.extract_strided_slice %0 {offsets = [0, 0], sizes = [444, 28], strides = [1, 1]} : vector<448x28xf32> to vector<444x28xf32>
    %c0_1 = arith.constant 0 : index
    %c0_2 = arith.constant 0 : index
    %c0_3 = arith.constant 0 : index
    %2 = vector.load %arg2[%c0_1, %c0_2, %c0_3] : memref<5x28x144xf32, #tpu.memory_space<vmem>>, vector<1x28x144xf32>
    %3 = vector.shape_cast %2 : vector<1x28x144xf32> to vector<28x144xf32>
    %cst = arith.constant dense<0.000000e+00> : vector<444x144xf32>
    %4 = tpu.matmul %1, %3, %cst {dimension_numbers = #tpu.dot_dimension_numbers<[1], [0], [0], [1], [0, 0, 1, 1], [], []>} : vector<444x28xf32>, vector<28x144xf32>, vector<444x144xf32> -> vector<444x144xf32>
    %5 = vector.extract_strided_slice %0 {offsets = [1, 0], sizes = [444, 28], strides = [1, 1]} : vector<448x28xf32> to vector<444x28xf32>
    %c1 = arith.constant 1 : index
    %c0_4 = arith.constant 0 : index
    %c0_5 = arith.constant 0 : index
    %6 = vector.load %arg2[%c1, %c0_4, %c0_5] : memref<5x28x144xf32, #tpu.memory_space<vmem>>, vector<1x28x144xf32>
    %7 = vector.shape_cast %6 : vector<1x28x144xf32> to vector<28x144xf32>
    %cst_6 = arith.constant dense<0.000000e+00> : vector<444x144xf32>
    %8 = tpu.matmul %5, %7, %cst_6 {dimension_numbers = #tpu.dot_dimension_numbers<[1], [0], [0], [1], [0, 0, 1, 1], [], []>} : vector<444x28xf32>, vector<28x144xf32>, vector<444x144xf32> -> vector<444x144xf32>
    %9 = arith.addf %4, %8 : vector<444x144xf32>
    %10 = vector.extract_strided_slice %0 {offsets = [2, 0], sizes = [444, 28], strides = [1, 1]} : vector<448x28xf32> to vector<444x28xf32>
    %c2 = arith.constant 2 : index
    %c0_7 = arith.constant 0 : index
    %c0_8 = arith.constant 0 : index
    %11 = vector.load %arg2[%c2, %c0_7, %c0_8] : memref<5x28x144xf32, #tpu.memory_space<vmem>>, vector<1x28x144xf32>
    %12 = vector.shape_cast %11 : vector<1x28x144xf32> to vector<28x144xf32>
    %cst_9 = arith.constant dense<0.000000e+00> : vector<444x144xf32>
    %13 = tpu.matmul %10, %12, %cst_9 {dimension_numbers = #tpu.dot_dimension_numbers<[1], [0], [0], [1], [0, 0, 1, 1], [], []>} : vector<444x28xf32>, vector<28x144xf32>, vector<444x144xf32> -> vector<444x144xf32>
    %14 = arith.addf %9, %13 : vector<444x144xf32>
    %15 = vector.extract_strided_slice %0 {offsets = [3, 0], sizes = [444, 28], strides = [1, 1]} : vector<448x28xf32> to vector<444x28xf32>
    %c3 = arith.constant 3 : index
    %c0_10 = arith.constant 0 : index
    %c0_11 = arith.constant 0 : index
    %16 = vector.load %arg2[%c3, %c0_10, %c0_11] : memref<5x28x144xf32, #tpu.memory_space<vmem>>, vector<1x28x144xf32>
    %17 = vector.shape_cast %16 : vector<1x28x144xf32> to vector<28x144xf32>
    %cst_12 = arith.constant dense<0.000000e+00> : vector<444x144xf32>
    %18 = tpu.matmul %15, %17, %cst_12 {dimension_numbers = #tpu.dot_dimension_numbers<[1], [0], [0], [1], [0, 0, 1, 1], [], []>} : vector<444x28xf32>, vector<28x144xf32>, vector<444x144xf32> -> vector<444x144xf32>
    %19 = arith.addf %14, %18 : vector<444x144xf32>
    %20 = vector.extract_strided_slice %0 {offsets = [4, 0], sizes = [444, 28], strides = [1, 1]} : vector<448x28xf32> to vector<444x28xf32>
    %c4 = arith.constant 4 : index
    %c0_13 = arith.constant 0 : index
    %c0_14 = arith.constant 0 : index
    %21 = vector.load %arg2[%c4, %c0_13, %c0_14] : memref<5x28x144xf32, #tpu.memory_space<vmem>>, vector<1x28x144xf32>
    %22 = vector.shape_cast %21 : vector<1x28x144xf32> to vector<28x144xf32>
    %cst_15 = arith.constant dense<0.000000e+00> : vector<444x144xf32>
    %23 = tpu.matmul %20, %22, %cst_15 {dimension_numbers = #tpu.dot_dimension_numbers<[1], [0], [0], [1], [0, 0, 1, 1], [], []>} : vector<444x28xf32>, vector<28x144xf32>, vector<444x144xf32> -> vector<444x144xf32>
    %24 = arith.addf %19, %23 : vector<444x144xf32>
    %c0_16 = arith.constant 0 : index
    %c0_17 = arith.constant 0 : index
    %25 = vector.load %arg3[%c0_16, %c0_17] : memref<1x144xf32, #tpu.memory_space<vmem>>, vector<1x144xf32>
    %26 = vector.broadcast %25 : vector<1x144xf32> to vector<444x144xf32>
    %27 = arith.addf %24, %26 : vector<444x144xf32>
    %cst_18 = arith.constant 0.000000e+00 : f32
    %28 = vector.broadcast %cst_18 : f32 to vector<444x144xf32>
    %29 = arith.maximumf %27, %28 : vector<444x144xf32>
    %30 = vector.extract_strided_slice %29 {offsets = [0, 0], sizes = [443, 144], strides = [1, 1]} : vector<444x144xf32> to vector<443x144xf32>
    %31 = vector.extract_strided_slice %29 {offsets = [1, 0], sizes = [443, 144], strides = [1, 1]} : vector<444x144xf32> to vector<443x144xf32>
    %32 = arith.maximumf %30, %31 : vector<443x144xf32>
    %33 = vector.extract_strided_slice %32 {offsets = [0, 0], sizes = [443, 143], strides = [1, 1]} : vector<443x144xf32> to vector<443x143xf32>
    %34 = vector.extract_strided_slice %32 {offsets = [0, 1], sizes = [443, 143], strides = [1, 1]} : vector<443x144xf32> to vector<443x143xf32>
    %35 = arith.maximumf %33, %34 : vector<443x143xf32>
    %36 = vector.extract_strided_slice %35 {offsets = [0, 0], sizes = [435, 143], strides = [1, 1]} : vector<443x143xf32> to vector<435x143xf32>
    %c0_19 = arith.constant 0 : index
    %c0_20 = arith.constant 0 : index
    %c0_21 = arith.constant 0 : index
    %37 = vector.load %arg4[%c0_19, %c0_20, %c0_21] : memref<5x143x128xf32, #tpu.memory_space<vmem>>, vector<1x143x128xf32>
    %38 = vector.shape_cast %37 : vector<1x143x128xf32> to vector<143x128xf32>
    %cst_22 = arith.constant dense<0.000000e+00> : vector<435x128xf32>
    %39 = tpu.matmul %36, %38, %cst_22 {dimension_numbers = #tpu.dot_dimension_numbers<[1], [0], [0], [1], [0, 0, 1, 1], [], []>} : vector<435x143xf32>, vector<143x128xf32>, vector<435x128xf32> -> vector<435x128xf32>
    %40 = vector.extract_strided_slice %35 {offsets = [2, 0], sizes = [435, 143], strides = [1, 1]} : vector<443x143xf32> to vector<435x143xf32>
    %c1_23 = arith.constant 1 : index
    %c0_24 = arith.constant 0 : index
    %c0_25 = arith.constant 0 : index
    %41 = vector.load %arg4[%c1_23, %c0_24, %c0_25] : memref<5x143x128xf32, #tpu.memory_space<vmem>>, vector<1x143x128xf32>
    %42 = vector.shape_cast %41 : vector<1x143x128xf32> to vector<143x128xf32>
    %cst_26 = arith.constant dense<0.000000e+00> : vector<435x128xf32>
    %43 = tpu.matmul %40, %42, %cst_26 {dimension_numbers = #tpu.dot_dimension_numbers<[1], [0], [0], [1], [0, 0, 1, 1], [], []>} : vector<435x143xf32>, vector<143x128xf32>, vector<435x128xf32> -> vector<435x128xf32>
    %44 = arith.addf %39, %43 : vector<435x128xf32>
    %45 = vector.extract_strided_slice %35 {offsets = [4, 0], sizes = [435, 143], strides = [1, 1]} : vector<443x143xf32> to vector<435x143xf32>
    %c2_27 = arith.constant 2 : index
    %c0_28 = arith.constant 0 : index
    %c0_29 = arith.constant 0 : index
    %46 = vector.load %arg4[%c2_27, %c0_28, %c0_29] : memref<5x143x128xf32, #tpu.memory_space<vmem>>, vector<1x143x128xf32>
    %47 = vector.shape_cast %46 : vector<1x143x128xf32> to vector<143x128xf32>
    %cst_30 = arith.constant dense<0.000000e+00> : vector<435x128xf32>
    %48 = tpu.matmul %45, %47, %cst_30 {dimension_numbers = #tpu.dot_dimension_numbers<[1], [0], [0], [1], [0, 0, 1, 1], [], []>} : vector<435x143xf32>, vector<143x128xf32>, vector<435x128xf32> -> vector<435x128xf32>
    %49 = arith.addf %44, %48 : vector<435x128xf32>
    %50 = vector.extract_strided_slice %35 {offsets = [6, 0], sizes = [435, 143], strides = [1, 1]} : vector<443x143xf32> to vector<435x143xf32>
    %c3_31 = arith.constant 3 : index
    %c0_32 = arith.constant 0 : index
    %c0_33 = arith.constant 0 : index
    %51 = vector.load %arg4[%c3_31, %c0_32, %c0_33] : memref<5x143x128xf32, #tpu.memory_space<vmem>>, vector<1x143x128xf32>
    %52 = vector.shape_cast %51 : vector<1x143x128xf32> to vector<143x128xf32>
    %cst_34 = arith.constant dense<0.000000e+00> : vector<435x128xf32>
    %53 = tpu.matmul %50, %52, %cst_34 {dimension_numbers = #tpu.dot_dimension_numbers<[1], [0], [0], [1], [0, 0, 1, 1], [], []>} : vector<435x143xf32>, vector<143x128xf32>, vector<435x128xf32> -> vector<435x128xf32>
    %54 = arith.addf %49, %53 : vector<435x128xf32>
    %55 = vector.extract_strided_slice %35 {offsets = [8, 0], sizes = [435, 143], strides = [1, 1]} : vector<443x143xf32> to vector<435x143xf32>
    %c4_35 = arith.constant 4 : index
    %c0_36 = arith.constant 0 : index
    %c0_37 = arith.constant 0 : index
    %56 = vector.load %arg4[%c4_35, %c0_36, %c0_37] : memref<5x143x128xf32, #tpu.memory_space<vmem>>, vector<1x143x128xf32>
    %57 = vector.shape_cast %56 : vector<1x143x128xf32> to vector<143x128xf32>
    %cst_38 = arith.constant dense<0.000000e+00> : vector<435x128xf32>
    %58 = tpu.matmul %55, %57, %cst_38 {dimension_numbers = #tpu.dot_dimension_numbers<[1], [0], [0], [1], [0, 0, 1, 1], [], []>} : vector<435x143xf32>, vector<143x128xf32>, vector<435x128xf32> -> vector<435x128xf32>
    %59 = arith.addf %54, %58 : vector<435x128xf32>
    %c0_39 = arith.constant 0 : index
    %c0_40 = arith.constant 0 : index
    %60 = vector.load %arg5[%c0_39, %c0_40] : memref<1x128xf32, #tpu.memory_space<vmem>>, vector<1x128xf32>
    %61 = vector.broadcast %60 : vector<1x128xf32> to vector<435x128xf32>
    %62 = arith.addf %59, %61 : vector<435x128xf32>
    %cst_41 = arith.constant 0.000000e+00 : f32
    %63 = vector.broadcast %cst_41 : f32 to vector<435x128xf32>
    %64 = arith.maximumf %62, %63 : vector<435x128xf32>
    %65 = vector.extract_strided_slice %64 {offsets = [0, 0], sizes = [433, 128], strides = [1, 1]} : vector<435x128xf32> to vector<433x128xf32>
    %66 = vector.extract_strided_slice %64 {offsets = [2, 0], sizes = [433, 128], strides = [1, 1]} : vector<435x128xf32> to vector<433x128xf32>
    %67 = arith.maximumf %65, %66 : vector<433x128xf32>
    %68 = vector.extract_strided_slice %67 {offsets = [0, 0], sizes = [433, 127], strides = [1, 1]} : vector<433x128xf32> to vector<433x127xf32>
    %69 = vector.extract_strided_slice %67 {offsets = [0, 1], sizes = [433, 127], strides = [1, 1]} : vector<433x128xf32> to vector<433x127xf32>
    %70 = arith.maximumf %68, %69 : vector<433x127xf32>
    %cst_42 = arith.constant 0.000000e+00 : f32
    %71 = vector.broadcast %cst_42 : f32 to vector<16x256xf32>
    %c0_43 = arith.constant 0 : index
    %c0_44 = arith.constant 0 : index
    %72 = vector.load %arg6[%c0_43, %c0_44] : memref<16x421xf32, #tpu.memory_space<vmem>>, vector<16x421xf32>
    %73 = vector.extract_strided_slice %70 {offsets = [0, 0], sizes = [421, 127], strides = [1, 1]} : vector<433x127xf32> to vector<421x127xf32>
    %cst_45 = arith.constant dense<0.000000e+00> : vector<16x127xf32>
    %74 = tpu.matmul %72, %73, %cst_45 {dimension_numbers = #tpu.dot_dimension_numbers<[1], [0], [0], [1], [0, 0, 1, 1], [], []>} : vector<16x421xf32>, vector<421x127xf32>, vector<16x127xf32> -> vector<16x127xf32>
    %c0_46 = arith.constant 0 : index
    %c0_47 = arith.constant 0 : index
    %c0_48 = arith.constant 0 : index
    %75 = vector.load %arg7[%c0_46, %c0_47, %c0_48] : memref<4x127x256xf32, #tpu.memory_space<vmem>>, vector<1x127x256xf32>
    %76 = vector.shape_cast %75 : vector<1x127x256xf32> to vector<127x256xf32>
    %cst_49 = arith.constant dense<0.000000e+00> : vector<16x256xf32>
    %77 = tpu.matmul %74, %76, %cst_49 {dimension_numbers = #tpu.dot_dimension_numbers<[1], [0], [0], [1], [0, 0, 1, 1], [], []>} : vector<16x127xf32>, vector<127x256xf32>, vector<16x256xf32> -> vector<16x256xf32>
    %78 = arith.addf %71, %77 : vector<16x256xf32>
    %c0_50 = arith.constant 0 : index
    %c0_51 = arith.constant 0 : index
    %79 = vector.load %arg6[%c0_50, %c0_51] : memref<16x421xf32, #tpu.memory_space<vmem>>, vector<16x421xf32>
    %80 = vector.extract_strided_slice %70 {offsets = [4, 0], sizes = [421, 127], strides = [1, 1]} : vector<433x127xf32> to vector<421x127xf32>
    %cst_52 = arith.constant dense<0.000000e+00> : vector<16x127xf32>
    %81 = tpu.matmul %79, %80, %cst_52 {dimension_numbers = #tpu.dot_dimension_numbers<[1], [0], [0], [1], [0, 0, 1, 1], [], []>} : vector<16x421xf32>, vector<421x127xf32>, vector<16x127xf32> -> vector<16x127xf32>
    %c1_53 = arith.constant 1 : index
    %c0_54 = arith.constant 0 : index
    %c0_55 = arith.constant 0 : index
    %82 = vector.load %arg7[%c1_53, %c0_54, %c0_55] : memref<4x127x256xf32, #tpu.memory_space<vmem>>, vector<1x127x256xf32>
    %83 = vector.shape_cast %82 : vector<1x127x256xf32> to vector<127x256xf32>
    %cst_56 = arith.constant dense<0.000000e+00> : vector<16x256xf32>
    %84 = tpu.matmul %81, %83, %cst_56 {dimension_numbers = #tpu.dot_dimension_numbers<[1], [0], [0], [1], [0, 0, 1, 1], [], []>} : vector<16x127xf32>, vector<127x256xf32>, vector<16x256xf32> -> vector<16x256xf32>
    %85 = arith.addf %78, %84 : vector<16x256xf32>
    %c0_57 = arith.constant 0 : index
    %c0_58 = arith.constant 0 : index
    %86 = vector.load %arg6[%c0_57, %c0_58] : memref<16x421xf32, #tpu.memory_space<vmem>>, vector<16x421xf32>
    %87 = vector.extract_strided_slice %70 {offsets = [8, 0], sizes = [421, 127], strides = [1, 1]} : vector<433x127xf32> to vector<421x127xf32>
    %cst_59 = arith.constant dense<0.000000e+00> : vector<16x127xf32>
    %88 = tpu.matmul %86, %87, %cst_59 {dimension_numbers = #tpu.dot_dimension_numbers<[1], [0], [0], [1], [0, 0, 1, 1], [], []>} : vector<16x421xf32>, vector<421x127xf32>, vector<16x127xf32> -> vector<16x127xf32>
    %c2_60 = arith.constant 2 : index
    %c0_61 = arith.constant 0 : index
    %c0_62 = arith.constant 0 : index
    %89 = vector.load %arg7[%c2_60, %c0_61, %c0_62] : memref<4x127x256xf32, #tpu.memory_space<vmem>>, vector<1x127x256xf32>
    %90 = vector.shape_cast %89 : vector<1x127x256xf32> to vector<127x256xf32>
    %cst_63 = arith.constant dense<0.000000e+00> : vector<16x256xf32>
    %91 = tpu.matmul %88, %90, %cst_63 {dimension_numbers = #tpu.dot_dimension_numbers<[1], [0], [0], [1], [0, 0, 1, 1], [], []>} : vector<16x127xf32>, vector<127x256xf32>, vector<16x256xf32> -> vector<16x256xf32>
    %92 = arith.addf %85, %91 : vector<16x256xf32>
    %c0_64 = arith.constant 0 : index
    %c0_65 = arith.constant 0 : index
    %93 = vector.load %arg6[%c0_64, %c0_65] : memref<16x421xf32, #tpu.memory_space<vmem>>, vector<16x421xf32>
    %94 = vector.extract_strided_slice %70 {offsets = [12, 0], sizes = [421, 127], strides = [1, 1]} : vector<433x127xf32> to vector<421x127xf32>
    %cst_66 = arith.constant dense<0.000000e+00> : vector<16x127xf32>
    %95 = tpu.matmul %93, %94, %cst_66 {dimension_numbers = #tpu.dot_dimension_numbers<[1], [0], [0], [1], [0, 0, 1, 1], [], []>} : vector<16x421xf32>, vector<421x127xf32>, vector<16x127xf32> -> vector<16x127xf32>
    %c3_67 = arith.constant 3 : index
    %c0_68 = arith.constant 0 : index
    %c0_69 = arith.constant 0 : index
    %96 = vector.load %arg7[%c3_67, %c0_68, %c0_69] : memref<4x127x256xf32, #tpu.memory_space<vmem>>, vector<1x127x256xf32>
    %97 = vector.shape_cast %96 : vector<1x127x256xf32> to vector<127x256xf32>
    %cst_70 = arith.constant dense<0.000000e+00> : vector<16x256xf32>
    %98 = tpu.matmul %95, %97, %cst_70 {dimension_numbers = #tpu.dot_dimension_numbers<[1], [0], [0], [1], [0, 0, 1, 1], [], []>} : vector<16x127xf32>, vector<127x256xf32>, vector<16x256xf32> -> vector<16x256xf32>
    %99 = arith.addf %92, %98 : vector<16x256xf32>
    %c0_71 = arith.constant 0 : index
    %c0_72 = arith.constant 0 : index
    %100 = vector.load %arg8[%c0_71, %c0_72] : memref<16x256xf32, #tpu.memory_space<vmem>>, vector<16x256xf32>
    tpu.vector_store %arg8[%c0_71, %c0_72], %99 {strides = array<i32>} : memref<16x256xf32, #tpu.memory_space<vmem>>, vector<16x256xf32>,
    return
  }
  func.func @transform_0(%arg0: i32) -> (i32, i32) {
    %c0_i32 = arith.constant 0 : i32
    %c0_i32_0 = arith.constant 0 : i32
    return %arg0, %c0_i32 : i32, i32
  }
  func.func @transform_1(%arg0: i32) -> (i32, i32, i32) {
    %c0_i32 = arith.constant 0 : i32
    %c0_i32_0 = arith.constant 0 : i32
    %c0_i32_1 = arith.constant 0 : i32
    %c0_i32_2 = arith.constant 0 : i32
    return %c0_i32, %c0_i32_0, %c0_i32_1 : i32, i32, i32
  }
  func.func @transform_2(%arg0: i32) -> (i32, i32) {
    %c0_i32 = arith.constant 0 : i32
    %c0_i32_0 = arith.constant 0 : i32
    %c0_i32_1 = arith.constant 0 : i32
    return %c0_i32, %c0_i32_0 : i32, i32
  }
  func.func @transform_3(%arg0: i32) -> (i32, i32, i32) {
    %c0_i32 = arith.constant 0 : i32
    %c0_i32_0 = arith.constant 0 : i32
    %c0_i32_1 = arith.constant 0 : i32
    %c0_i32_2 = arith.constant 0 : i32
    return %c0_i32, %c0_i32_0, %c0_i32_1 : i32, i32, i32
  }
  func.func @transform_4(%arg0: i32) -> (i32, i32) {
    %c0_i32 = arith.constant 0 : i32
    %c0_i32_0 = arith.constant 0 : i32
    %c0_i32_1 = arith.constant 0 : i32
    return %c0_i32, %c0_i32_0 : i32, i32
  }
  func.func @transform_5(%arg0: i32) -> (i32, i32) {
    %c0_i32 = arith.constant 0 : i32
    %c0_i32_0 = arith.constant 0 : i32
    %c0_i32_1 = arith.constant 0 : i32
    return %c0_i32, %c0_i32_0 : i32, i32
  }
  func.func @transform_6(%arg0: i32) -> (i32, i32, i32) {
    %c0_i32 = arith.constant 0 : i32
    %c0_i32_0 = arith.constant 0 : i32
    %c0_i32_1 = arith.constant 0 : i32
    %c0_i32_2 = arith.constant 0 : i32
    return %c0_i32, %c0_i32_0, %c0_i32_1 : i32, i32, i32
  }
  func.func @transform_7(%arg0: i32) -> (i32, i32) {
    %c0_i32 = arith.constant 0 : i32
    %c0_i32_0 = arith.constant 0 : i32
    return %arg0, %c0_i32 : i32, i32
  }
}

</mosaic_0001>

<bundles_post_ra>
// kernel: tpu_custom_call.1
= control target key start
LH: loop header
LB: loop body
LE: loop exit
PB: predicated region body
PF: predicated region fallthrough
CT: control target
= control target key end

     0   :  { %12 = vsyncpa [#allocation3], 0  ;;  %s20376_s0 = inlined_call_operand.vmem [shape: f32[896,28], index: 0, kind: input, shape index: {}]   ;;  %s20377_s1 = inlined_call_operand.vmem [shape: f32[5,28,144], index: 1, kind: input, shape index: {}]   ;;  %s20378_s2 = inlined_call_operand.vmem [shape: f32[1,144], index: 2, kind: input, shape index: {}]   ;;  %s20379_s3 = inlined_call_operand.vmem [shape: f32[5,143,128], index: 3, kind: input, shape index: {}]   ;;  %s20380_s4 = inlined_call_operand.vmem [shape: f32[1,128], index: 4, kind: input, shape index: {}]   ;;  %s20381_s5 = inlined_call_operand.vmem [shape: f32[16,421], index: 5, kind: input, shape index: {}]   ;;  %s20382_s6 = inlined_call_operand.vmem [shape: f32[4,127,256], index: 6, kind: input, shape index: {}]   ;;  %s20383_s7 = inlined_call_operand.hbm [shape: f32[32,256], index: 7, kind: output, shape index: {}]  }
   0x1   :  { %14 = vsyncpa [#allocation3 + $0x1], 0  ;;  %s13017_s24 = smov 0   ;;  %s13019_s25 = smov 0  }
   0x2   :  { %s13021_s26 = smov 0   ;;  %s13023_s27 = smov 0  }
   0x3 LB: > { %s13038_s28 = sadd.s32 4294967295, %s12968_s27   ;;  %s10662_s29 = sadd.s32 4294967294, %s12968_s27   ;;  %s12968_s27 = sphi %s13023_s27, %s21978_s27   ;;  %s12964_s26 = sphi %s13021_s26, %s21977_s26   ;;  %s12960_s25 = sphi %s13019_s25, %s21976_s25   ;;  %s12956_s24 = sphi %s13017_s24, %s21975_s24  }
   0x4   : > { %s13042_s30 = sadd.s32 1, %s12968_s27   ;;  %s179_s8 = sadd.s32 1, %s12964_s26 }
   0x5   : > { %s176_s9 = ssub.s32 %s12968_s27, %s13042_s30  ;;  %p189_p0 = scmp.ne.s32.totalorder %s12964_s26, %s12960_s25 }
   0x6   : > { %p177_p1 = scmp.eq.s32.totalorder %s176_s9, 0  ;;  %p190_p2 = scmp.eq.s32.totalorder %s13038_s28, 1 }
   0x7   : > { %p195_p3 = scmp.ne.s32.totalorder %s12960_s25, %s12956_s24  ;;  %p196_p4 = scmp.eq.s32.totalorder %s10662_s29, 1 }
   0x8   : > { %s13053_s10 = scalar_select %p177_p1, %s12964_s26, %s179_s8  }
   0x9   : > { %p13055_p5 = por %p190_p2, %p189_p0  ;;  %p13059_p6 = por %p196_p4, %p195_p3 }
   0xa   : > { %p10665_p7 = scmp.ge.s32.totalorder %s12968_s27, 1  ;;  %p241_p8 = scmp.lt.s32.totalorder %s12968_s27, 3 }
   0xc   : > { %p242_p9 = pnand %p10665_p7, %p241_p8 }
   0xe   : > { %245 = sbr.rel (%p242_p9) target bundleno = 3531 (0xdcb), region = 48 }
  0x15   : > { %v10669_v0 = vld [vmem:[%s20377_s1 + $0x48] sm:$0xff]  ;;  %v10671_v1 = vld [vmem:[%s20377_s1 + $0x58] sm:$0xff]  ;;  %v10668_v2 = vld [vmem:[%s20377_s1 + $0x40] sm:$0xff]  ;;  %vm634_vm0 = vcmask 1043456   ;;  %s273_s8 = smul.u32 56, %s13038_s28  ;;  %vm12970_vm1 = vmmov 1  }
  0x16   : > { %v11627_v3 = vpack.c.bf16 %v10671_v1, %v10669_v0  ;;  %v10670_v4 = vld [vmem:[%s20377_s1 + $0x50] sm:$0xff]  ;;  %v10673_v5 = vld [vmem:[%s20377_s1 + $0x68] sm:$0xff]  ;;  %v10675_v6 = vld [vmem:[%s20377_s1 + $0x78] sm:$0xf]  ;;  %v20387_v12 = vmov 0.0   ;;  %vm409_vm3 = vcmask 1046528  }
  0x17   : > { %v11629_v7 = vpack.c.bf16 %v10670_v4, %v10668_v2  ;;  %v11631_v8 = vpack.c.bf16 %v10675_v6, %v10673_v5  ;;  %vm13086_vm2 = vmpackc.low %vm634_vm0, %vm12970_vm1  ;;  %v10672_v10 = vld [vmem:[%s20377_s1 + $0x60] sm:$0xff]  ;;  %v10674_v11 = vld [vmem:[%s20377_s1 + $0x70] sm:$0xf]  ;;  %705 = vmatprep.mubr.f32.mxu0 %v20387_v12  ;;  %987 = vmatprep.mubr.f32.mxu1 %v20387_v12  ;;  %p274_p10 = scmp.lt.s32.totalorder %s273_s8, 111  ;;  %vm521_vm4 = vcmask 228352   ;;  %vm1570_vm5 = vcmask 1045504  }
  0x18   : > { %11628 = vmatprep.subr.bf16.mxu0 %v11627_v3  ;;  %12201 = vmatprep.subr.bf16.mxu1 %v11627_v3  ;;  %v11634_v13 = vpack.c.bf16 %v10674_v11, %v10672_v10  ;;  %v337_v42 = vld [vmem:[%s20377_s1 + $0x8] sm:$0xff]  ;;  %v339_v43 = vld [vmem:[%s20377_s1 + $0x18] sm:$0xff]  ;;  %v336_v46 = vld [vmem:[%s20377_s1] sm:$0xff]  ;;  %vm2322_vm6 = vcmask 1044480   ;;  %s12973_s14 = smov 127   ;;  %vm4946_vm8 = vcmask 1039360  }
  0x19   : > { %11630 = vmatpush1.bf16.msra.mxu0 %v11629_v7  ;;  %12203 = vmatpush1.bf16.msra.mxu1 %v11629_v7  ;;  %s21980_s8 = smov (!%p274_p10, %s273_s8), 111  ;;  %v11637_v45 = vpack.c.bf16 %v339_v43, %v337_v42  ;;  %v338_v47 = vld [vmem:[%s20377_s1 + $0x10] sm:$0xff]  ;;  %v341_v5 = vld [vmem:[%s20377_s1 + $0x28] sm:$0xff]  ;;  %v343_v6 = vld [vmem:[%s20377_s1 + $0x38] sm:$0xf]  ;;  %vm5647_vm9 = vcmask 121856  }
  0x1a   : > { %11633 = vmatprep.subr.msk.bf16.mxu0 %vm13086_vm2, %v11631_v8  ;;  %12202 = vmatprep.subr.msk.bf16.mxu1 %vm13086_vm2, %v11631_v8  ;;  %s10667_s16 = sshll.u32 %s21980_s8, 3  ;;  %v11639_v50 = vpack.c.bf16 %v338_v47, %v336_v46  ;;  %v11641_v8 = vpack.c.bf16 %v343_v6, %v341_v5  ;;  %v340_v10 = vld [vmem:[%s20377_s1 + $0x20] sm:$0xff]  ;;  %v342_v11 = vld [vmem:[%s20377_s1 + $0x30] sm:$0xf]  ;;  %vm14692_vm7 = vmpackc.low %vm409_vm3, %vm12970_vm1  ;;  %vm7375_vm10 = vcmask 1041408   ;;  %vm9254_vm11 = vcmask 302080  }
  0x1b   : > { %s13107_s19 = scalar_lea.vmem %s20376_s0, %s10667_s16  ;;  %s270_s20 = sand.u32 1, %s12960_s25  }
  0x1c   : > { %v13112_v14 = vld [vmem:[%s13107_s19] sm:$0xff]  ;;  %v13115_v15 = vld [vmem:[%s13107_s19 + $0x8] sm:$0xff]  ;;  %v13118_v16 = vld [vmem:[%s13107_s19 + $0x10] sm:$0xff]  ;;  %s10666_s21 = sshll.u32 %s270_s20, 5  ;;  %s11474_s23 = sshll.u32 %s13038_s28, 9 }
  0x1d   : > { %11636 = vmatpush1.bf16.msk.msra.mxu0 %vm13086_vm2, %v11634_v13  ;;  %12204 = vmatpush1.bf16.msk.msra.mxu1 %vm13086_vm2, %v11634_v13  ;;  %v410_v17 = vrot.slane %v13112_v14, 1  ;;  %v411_v18 = vrot.slane %v13115_v15, 1  ;;  %v413_v19 = vrot.slane %v13118_v16, 1  ;;  %v13124_v20 = vld [vmem:[%s13107_s19 + $0x18] sm:$0xff]  ;;  %v13132_v24 = vld [vmem:[%s13107_s19 + $0x20] sm:$0xff]  ;;  %v13139_v27 = vld [vmem:[%s13107_s19 + $0x28] sm:$0xff]  ;;  %v11644_v13 = vpack.c.bf16 %v342_v11, %v340_v10  ;;  %s20333_s9 = scalar_lea.hbm %s20383_s7, %s11474_s23 }
  0x1e   : > { %v415_v23 = vrot.slane %v13124_v20, 1  ;;  %v417_v26 = vrot.slane %v13132_v24, 1  ;;  %v419_v29 = vrot.slane %v13139_v27, 1  ;;  %v13146_v30 = vld [vmem:[%s13107_s19 + $0x30] sm:$0xff]  ;;  %v13153_v33 = vld [vmem:[%s13107_s19 + $0x38] sm:$0xff]  ;;  %v13160_v36 = vld [vmem:[%s13107_s19 + $0x40] sm:$0xff]  ;;  %11638 = vmatprep.subr.bf16.mxu0 %v11637_v45 }
  0x1f   : > { %v412_v21 = vsel %vm409_vm3, %v410_v17, %v411_v18  ;;  %v414_v22 = vsel %vm409_vm3, %v411_v18, %v413_v19  ;;  %v421_v32 = vrot.slane %v13146_v30, 1  ;;  %v423_v35 = vrot.slane %v13153_v33, 1  ;;  %v13167_v39 = vld [vmem:[%s13107_s19 + $0x48] sm:$0xff]  ;;  %v13180_v44 = vld [vmem:[%s13107_s19 + $0x50] sm:$0xff]  ;;  %v13193_v51 = vld [vmem:[%s13107_s19 + $0x58] sm:$0xff]  ;;  %s20335_s13 = scalar_lea.sflag [#allocation3], %s270_s20 }
  0x20   : > { %10678 = vmatmul.mubr.msk.f32.vlgmr.msra.gmra.mrb[0].mxu0 %vm521_vm4, %v412_v21  ;;  %v416_v25 = vsel %vm409_vm3, %v413_v19, %v415_v23  ;;  %v418_v28 = vsel %vm409_vm3, %v415_v23, %v417_v26  ;;  %v420_v31 = vsel %vm409_vm3, %v417_v26, %v419_v29  ;;  %v425_v38 = vrot.slane %v13160_v36, 1  ;;  %v13200_v54 = vld [vmem:[%s13107_s19 + $0x60] sm:$0xff]  ;;  %v13207_v57 = vld [vmem:[%s13107_s19 + $0x68] sm:$0xff]  ;;  %v13214_v60 = vld [vmem:[%s13107_s19 + $0x70] sm:$0xff]  ;;  %s12974_s28 = smov [#allocation2]  }
  0x21   : > { %711 = vmatprep.mubr.f32.mxu0 %v20387_v12  ;;  %v422_v34 = vsel %vm409_vm3, %v419_v29, %v421_v32  ;;  %v424_v37 = vsel %vm409_vm3, %v421_v32, %v423_v35  ;;  %v427_v41 = vrot.slane %v13167_v39, 1  ;;  %v429_v49 = vrot.slane %v13180_v44, 1  ;;  %11640 = vmatpush1.bf16.msra.mxu0 %v11639_v50  ;;  %v13221_v63 = vld [vmem:[%s13107_s19 + $0x78] sm:$0xff]  ;;  %v13228_v2 = vld [vmem:[%s13107_s19 + $0x80] sm:$0xff]  ;;  %v13241_v7 = vld [vmem:[%s13107_s19 + $0x88] sm:$0xff]  ;;  %s12910_s16 = sshll.u32 %s12974_s28, 4  ;;  %s12911_s16 = int_to_ptr.vmem [resolvable:$false] %s12910_s16 }
  0x22   : > { %v426_v40 = vsel %vm409_vm3, %v423_v35, %v425_v38  ;;  %v431_v53 = vrot.slane %v13193_v51, 1  ;;  %v433_v56 = vrot.slane %v13200_v54, 1  ;;  %v435_v59 = vrot.slane %v13207_v57, 1  ;;  %11643 = vmatprep.subr.msk.bf16.mxu0 %vm13086_vm2, %v11641_v8  ;;  %v13258_v19 = vld [vmem:[%s13107_s19 + $0x90] sm:$0xff]  ;;  %v13265_v23 = vld [vmem:[%s13107_s19 + $0x98] sm:$0xff]  ;;  %v13279_v32 = vld [vmem:[%s13107_s19 + $0xa8] sm:$0xff] }
  0x23   : > { %v428_v48 = vsel %vm409_vm3, %v425_v38, %v427_v41  ;;  %v430_v52 = vsel %vm409_vm3, %v427_v41, %v429_v49  ;;  %v437_v62 = vrot.slane %v13214_v60, 1  ;;  %v439_v1 = vrot.slane %v13221_v63, 1  ;;  %v13293_v41 = vld [vmem:[%s13107_s19 + $0xb8] sm:$0xff]  ;;  %v13300_v45 = vld [vmem:[%s13107_s19 + $0xc0] sm:$0xff]  ;;  %v13342_v5 = vld [vmem:[%s13107_s19 + $0xf0] sm:$0xff]  ;;  %s12912_s17 = scalar_lea.vmem %s12911_s16, 1024 }
  0x24   : > { %10679 = vmatmul.mubr.msk.f32.gmra.mrb[2].mxu0 %vm521_vm4, %v414_v22  ;;  %v432_v55 = vsel %vm409_vm3, %v429_v49, %v431_v53  ;;  %v434_v58 = vsel %vm409_vm3, %v431_v53, %v433_v56  ;;  %v436_v61 = vsel %vm409_vm3, %v433_v56, %v435_v59  ;;  %v441_v4 = vrot.slane %v13228_v2, 1  ;;  %v13321_v56 = vld [vmem:[%s13107_s19 + $0xd8] sm:$0xff]  ;;  %v14165_v9 = vld [vmem:[%s13107_s19 + $0xe0] sm:$0xff] }
  0x25   : > { %717 = vmatprep.mubr.f32.mxu0 %v20387_v12  ;;  %v438_v0 = vsel %vm409_vm3, %v435_v59, %v437_v62  ;;  %v440_v3 = vsel %vm409_vm3, %v437_v62, %v439_v1  ;;  %v443_v18 = vrot.slane %v13241_v7, 1  ;;  %11646 = vmatpush1.bf16.msk.msra.mxu0 %vm13086_vm2, %v11644_v13  ;;  %v445_v22 = vrot.slane %v13258_v19, 1  ;;  %v13349_v10 = vld [vmem:[%s13107_s19 + $0xf8] sm:$0xff] }
  0x26   : > { %v442_v17 = vsel %vm409_vm3, %v439_v1, %v441_v4  ;;  %v447_v26 = vrot.slane %v13265_v23, 1  ;;  %v451_v35 = vrot.slane %v13279_v32, 1  ;;  %v455_v43 = vrot.slane %v13293_v41, 1  ;;  %v13335_v1 = vld [vmem:[%s13107_s19 + $0xe8] sm:$0xff] }
  0x27   : > { %v444_v21 = vsel %vm409_vm3, %v441_v4, %v443_v18  ;;  %v457_v47 = vrot.slane %v13300_v45, 1  ;;  %v463_v59 = vrot.slane %v13321_v56, 1  ;;  %v467_v4 = vrot.slane %v13335_v1, 1 }
  0x28   : > { %10680 = vmatmul.mubr.msk.f32.gmra.mrb[4].mxu0 %vm521_vm4, %v416_v25  ;;  %v446_v25 = vsel %vm409_vm3, %v443_v18, %v445_v22  ;;  %v448_v29 = vsel %vm409_vm3, %v445_v22, %v447_v26  ;;  %v469_v8 = vrot.slane %v13342_v5, 1  ;;  %v471_v13 = vrot.slane %v13349_v10, 1  ;;  %v13363_v22 = vld [vmem:[%s13107_s19 + $0x108] sm:$0xff] }
  0x29   : > { %723 = vmatprep.mubr.f32.mxu0 %v20387_v12  ;;  %v458_v49 = vsel %vm409_vm3, %v455_v43, %v457_v47 }
  0x2a   : > { %v470_v11 = vsel %vm409_vm3, %v467_v4, %v469_v8  ;;  %v472_v18 = vsel %vm409_vm3, %v469_v8, %v471_v13  ;;  %v13419_v8 = vld [vmem:[%s13107_s19 + $0x148] sm:$0xff] }
  0x2c   : > { %10681 = vmatmul.mubr.msk.f32.gmra.mrb[6].mxu0 %vm521_vm4, %v418_v28  ;;  %v13272_v28 = vld [vmem:[%s13107_s19 + $0xa0] sm:$0xff] }
  0x2d   : > { %729 = vmatprep.mubr.f32.mxu0 %v20387_v12 }
  0x30   : > { %10682 = vmatmul.mubr.msk.f32.gmra.mrb[8].mxu0 %vm521_vm4, %v420_v31  ;;  %v449_v31 = vrot.slane %v13272_v28, 1 }
  0x31   : > { %735 = vmatprep.mubr.f32.mxu0 %v20387_v12 }
  0x32   : > { %v452_v38 = vsel %vm409_vm3, %v449_v31, %v451_v35 }
  0x34   : > { %10683 = vmatmul.mubr.msk.f32.gmra.mrb[10].mxu0 %vm521_vm4, %v422_v34  ;;  %v450_v34 = vsel %vm409_vm3, %v447_v26, %v449_v31  ;;  %v475_v26 = vrot.slane %v13363_v22, 1 }
  0x35   : > { %741 = vmatprep.mubr.f32.mxu0 %v20387_v12 }
  0x38   : > { %10684 = vmatmul.mubr.msk.f32.gmra.mrb[12].mxu0 %vm521_vm4, %v424_v37  ;;  %v13286_v37 = vld [vmem:[%s13107_s19 + $0xb0] sm:$0xff] }
  0x39   : > { %747 = vmatprep.mubr.f32.mxu0 %v20387_v12 }
  0x3c   : > { %10685 = vmatmul.mubr.msk.f32.gmra.mrb[14].mxu0 %vm521_vm4, %v426_v40  ;;  %v453_v40 = vrot.slane %v13286_v37, 1 }
  0x3d   : > { %753 = vmatprep.mubr.f32.mxu0 %v20387_v12 }
  0x3e   : > { %v454_v42 = vsel %vm409_vm3, %v451_v35, %v453_v40  ;;  %v456_v46 = vsel %vm409_vm3, %v453_v40, %v455_v43  ;;  %v13377_v35 = vld [vmem:[%s13107_s19 + $0x118] sm:$0xff] }
  0x3f   : > { %v479_v40 = vrot.slane %v13377_v35, 1 }
  0x40   : > { %10686 = vmatmul.mubr.msk.f32.gmra.mrb[16].mxu0 %vm521_vm4, %v428_v48  ;;  %v13307_v48 = vld [vmem:[%s13107_s19 + $0xc8] sm:$0xff] }
  0x41   : > { %759 = vmatprep.mubr.f32.mxu0 %v20387_v12  ;;  %v459_v50 = vrot.slane %v13307_v48, 1 }
  0x43   : > { %v460_v53 = vsel %vm409_vm3, %v457_v47, %v459_v50  ;;  %v13391_v47 = vld [vmem:[%s13107_s19 + $0x128] sm:$0xff] }
  0x44   : > { %10687 = vmatmul.mubr.msk.f32.gmra.mrb[18].mxu0 %vm521_vm4, %v430_v52  ;;  %v13314_v52 = vld [vmem:[%s13107_s19 + $0xd0] sm:$0xff] }
  0x45   : > { %765 = vmatprep.mubr.f32.mxu0 %v20387_v12 }
  0x48   : > { %10688 = vmatmul.mubr.msk.f32.gmra.mrb[20].mxu0 %vm521_vm4, %v432_v55  ;;  %v461_v55 = vrot.slane %v13314_v52, 1 }
  0x49   : > { %771 = vmatprep.mubr.f32.mxu0 %v20387_v12 }
  0x4a   : > { %v464_v62 = vsel %vm409_vm3, %v461_v55, %v463_v59 }
  0x4c   : > { %10689 = vmatmul.mubr.msk.f32.gmra.mrb[22].mxu0 %vm521_vm4, %v434_v58  ;;  %v462_v58 = vsel %vm409_vm3, %v459_v50, %v461_v55  ;;  %v483_v50 = vrot.slane %v13391_v47, 1 }
  0x4d   : > { %777 = vmatprep.mubr.f32.mxu0 %v20387_v12 }
  0x50   : > { %10690 = vmatmul.mubr.msk.f32.gmra.mrb[24].mxu0 %vm521_vm4, %v436_v61  ;;  %v13328_v61 = vld [vmem:[%s13107_s19 + $0xe0] sm:$0xff] }
  0x51   : > { %783 = vmatprep.mubr.f32.mxu0 %v20387_v12 }
  0x54   : > { %10691 = vmatmul.mubr.msk.f32.gmra.mrb[26].mxu0 %vm521_vm4, %v438_v0  ;;  %v465_v0 = vrot.slane %v13328_v61, 1 }
  0x55   : > { %789 = vmatprep.mubr.f32.mxu0 %v20387_v12 }
  0x56   : > { %v468_v6 = vsel %vm409_vm3, %v465_v0, %v467_v4 }
  0x58   : > { %10692 = vmatmul.mubr.msk.f32.gmra.mrb[28].mxu0 %vm521_vm4, %v440_v3  ;;  %v466_v3 = vsel %vm409_vm3, %v463_v59, %v465_v0  ;;  %v13405_v59 = vld [vmem:[%s13107_s19 + $0x138] sm:$0xff] }
  0x59   : > { %795 = vmatprep.mubr.f32.mxu0 %v20387_v12  ;;  %v487_v0 = vrot.slane %v13405_v59, 1 }
  0x5c   : > { %10693 = vmatmul.mubr.msk.f32.gmra.mrb[30].mxu0 %vm521_vm4, %v442_v17  ;;  %v13356_v17 = vld [vmem:[%s13107_s19 + $0x100] sm:$0xff] }
  0x5d   : > { %801 = vmatprep.mubr.f32.mxu0 %v20387_v12 }
  0x60   : > { %10694 = vmatmul.mubr.msk.f32.gmra.mrb[32].mxu0 %vm521_vm4, %v444_v21  ;;  %v473_v21 = vrot.slane %v13356_v17, 1 }
  0x61   : > { %807 = vmatprep.mubr.f32.mxu0 %v20387_v12 }
  0x62   : > { %v476_v31 = vsel %vm409_vm3, %v473_v21, %v475_v26 }
  0x64   : > { %10695 = vmatmul.mubr.msk.f32.gmra.mrb[34].mxu0 %vm521_vm4, %v446_v25  ;;  %v474_v25 = vsel %vm409_vm3, %v471_v13, %v473_v21  ;;  %v491_v13 = vrot.slane %v13419_v8, 1 }
  0x65   : > { %813 = vmatprep.mubr.f32.mxu0 %v20387_v12 }
  0x68   : > { %10696 = vmatmul.mubr.msk.f32.gmra.mrb[36].mxu0 %vm521_vm4, %v448_v29  ;;  %v13370_v29 = vld [vmem:[%s13107_s19 + $0x110] sm:$0xff] }
  0x69   : > { %819 = vmatprep.mubr.f32.mxu0 %v20387_v12 }
  0x6c   : > { %10697 = vmatmul.mubr.msk.f32.gmra.mrb[38].mxu0 %vm521_vm4, %v450_v34  ;;  %v477_v34 = vrot.slane %v13370_v29, 1 }
  0x6d   : > { %825 = vmatprep.mubr.f32.mxu0 %v20387_v12 }
  0x6e   : > { %v480_v43 = vsel %vm409_vm3, %v477_v34, %v479_v40 }
  0x70   : > { %10698 = vmatmul.mubr.msk.f32.gmra.mrb[40].mxu0 %vm521_vm4, %v452_v38  ;;  %v478_v38 = vsel %vm409_vm3, %v475_v26, %v477_v34  ;;  %v13433_v26 = vld [vmem:[%s13107_s19 + $0x158] sm:$0xff] }
  0x71   : > { %831 = vmatprep.mubr.f32.mxu0 %v20387_v12  ;;  %v495_v34 = vrot.slane %v13433_v26, 1 }
  0x74   : > { %10699 = vmatmul.mubr.msk.f32.gmra.mrb[42].mxu0 %vm521_vm4, %v454_v42  ;;  %v13384_v42 = vld [vmem:[%s13107_s19 + $0x120] sm:$0xff] }
  0x75   : > { %837 = vmatprep.mubr.f32.mxu0 %v20387_v12 }
  0x78   : > { %10700 = vmatmul.mubr.msk.f32.gmra.mrb[44].mxu0 %vm521_vm4, %v456_v46  ;;  %v481_v46 = vrot.slane %v13384_v42, 1 }
  0x79   : > { %843 = vmatprep.mubr.f32.mxu0 %v20387_v12 }
  0x7a   : > { %v484_v55 = vsel %vm409_vm3, %v481_v46, %v483_v50 }
  0x7c   : > { %10701 = vmatmul.mubr.msk.f32.gmra.mrb[46].mxu0 %vm521_vm4, %v458_v49  ;;  %v482_v49 = vsel %vm409_vm3, %v479_v40, %v481_v46  ;;  %v13447_v46 = vld [vmem:[%s13107_s19 + $0x168] sm:$0xff] }
  0x7d   : > { %849 = vmatprep.mubr.f32.mxu0 %v20387_v12 }
  0x80   : > { %10702 = vmatmul.mubr.msk.f32.gmra.mrb[48].mxu0 %vm521_vm4, %v460_v53  ;;  %v13398_v53 = vld [vmem:[%s13107_s19 + $0x130] sm:$0xff] }
  0x81   : > { %855 = vmatprep.mubr.f32.mxu0 %v20387_v12 }
  0x84   : > { %10703 = vmatmul.mubr.msk.f32.gmra.mrb[50].mxu0 %vm521_vm4, %v462_v58  ;;  %v485_v58 = vrot.slane %v13398_v53, 1 }
  0x85   : > { %861 = vmatprep.mubr.f32.mxu0 %v20387_v12 }
  0x86   : > { %v488_v4 = vsel %vm409_vm3, %v485_v58, %v487_v0 }
  0x88   : > { %10704 = vmatmul.mubr.msk.f32.gmra.mrb[52].mxu0 %vm521_vm4, %v464_v62  ;;  %v486_v62 = vsel %vm409_vm3, %v483_v50, %v485_v58  ;;  %v499_v50 = vrot.slane %v13447_v46, 1 }
  0x89   : > { %867 = vmatprep.mubr.f32.mxu0 %v20387_v12 }
  0x8c   : > { %10705 = vmatmul.mubr.msk.f32.gmra.mrb[54].mxu0 %vm521_vm4, %v466_v3  ;;  %v13412_v3 = vld [vmem:[%s13107_s19 + $0x140] sm:$0xff] }
  0x8d   : > { %873 = vmatprep.mubr.f32.mxu0 %v20387_v12 }
  0x90   : > { %10706 = vmatmul.mubr.msk.f32.gmra.mrb[56].mxu0 %vm521_vm4, %v468_v6  ;;  %v489_v6 = vrot.slane %v13412_v3, 1 }
  0x91   : > { %879 = vmatprep.mubr.f32.mxu0 %v20387_v12 }
  0x92   : > { %v492_v21 = vsel %vm409_vm3, %v489_v6, %v491_v13 }
  0x94   : > { %10707 = vmatmul.mubr.msk.f32.gmra.mrb[58].mxu0 %vm521_vm4, %v470_v11  ;;  %v490_v11 = vsel %vm409_vm3, %v487_v0, %v489_v6  ;;  %v13461_v0 = vld [vmem:[%s13107_s19 + $0x178] sm:$0xff] }
  0x95   : > { %885 = vmatprep.mubr.f32.mxu0 %v20387_v12  ;;  %v20384_v6 = vrot.slane %v13461_v0, 1 }
  0x98   : > { %10708 = vmatmul.mubr.msk.f32.gmra.mrb[60].mxu0 %vm521_vm4, %v472_v18  ;;  %v13426_v18 = vld [vmem:[%s13107_s19 + $0x150] sm:$0xff] }
  0x99   : > { %891 = vmatprep.mubr.f32.mxu0 %v20387_v12 }
  0x9c   : > { %10709 = vmatmul.mubr.msk.f32.gmra.mrb[62].mxu0 %vm521_vm4, %v474_v25  ;;  %v493_v25 = vrot.slane %v13426_v18, 1 }
  0x9d   : > { %897 = vmatprep.mubr.f32.mxu0 %v20387_v12 }
  0x9e   : > { %v496_v40 = vsel %vm409_vm3, %v493_v25, %v495_v34 }
  0xa0   : > { %10710 = vmatmul.mubr.msk.f32.gmra.mrb[64].mxu0 %vm521_vm4, %v476_v31  ;;  %v494_v31 = vsel %vm409_vm3, %v491_v13, %v493_v25  ;;  %v10793_v13 = vld [vmem:[%s20377_s1 + $0x88] sm:$0xff] }
  0xa1   : > { %903 = vmatprep.mubr.f32.mxu0 %v20387_v12 }
  0xa4   : > { %10711 = vmatmul.mubr.msk.f32.gmra.mrb[66].mxu0 %vm521_vm4, %v478_v38  ;;  %v13440_v38 = vld [vmem:[%s13107_s19 + $0x160] sm:$0xff] }
  0xa5   : > { %909 = vmatprep.mubr.f32.mxu0 %v20387_v12 }
  0xa8   : > { %10712 = vmatmul.mubr.msk.f32.gmra.mrb[68].mxu0 %vm521_vm4, %v480_v43  ;;  %v497_v43 = vrot.slane %v13440_v38, 1 }
  0xa9   : > { %915 = vmatprep.mubr.f32.mxu0 %v20387_v12 }
  0xaa   : > { %v500_v58 = vsel %vm409_vm3, %v497_v43, %v499_v50 }
  0xac   : > { %10713 = vmatmul.mubr.msk.f32.gmra.mrb[70].mxu0 %vm521_vm4, %v482_v49  ;;  %v498_v49 = vsel %vm409_vm3, %v495_v34, %v497_v43  ;;  %v10794_v34 = vld [vmem:[%s20377_s1 + $0x90] sm:$0xff]  ;;  %v10797_v43 = vld [vmem:[%s20377_s1 + $0xa8] sm:$0xff] }
  0xad   : > { %921 = vmatprep.mubr.f32.mxu0 %v20387_v12 }
  0xb0   : > { %10714 = vmatmul.mubr.msk.f32.gmra.mrb[72].mxu0 %vm521_vm4, %v484_v55  ;;  %v13454_v55 = vld [vmem:[%s13107_s19 + $0x170] sm:$0xff] }
  0xb1   : > { %927 = vmatprep.mubr.f32.mxu0 %v20387_v12 }
  0xb4   : > { %10715 = vmatmul.mubr.msk.f32.gmra.mrb[74].mxu0 %vm521_vm4, %v486_v62  ;;  %v501_v62 = vrot.slane %v13454_v55, 1 }
  0xb5   : > { %933 = vmatprep.mubr.f32.mxu0 %v20387_v12 }
  0xb8   : > { %10716 = vmatmul.mubr.msk.f32.gmra.mrb[76].mxu0 %vm521_vm4, %v488_v4  ;;  %v502_v4 = vsel %vm409_vm3, %v499_v50, %v501_v62 }
  0xb9   : > { %939 = vmatprep.mubr.f32.mxu0 %v20387_v12 }
  0xbc   : > { %10717 = vmatmul.mubr.msk.f32.gmra.mrb[78].mxu0 %vm521_vm4, %v490_v11  ;;  %v504_v11 = vsel %vm409_vm3, %v501_v62, %v20384_v6  ;;  %v10798_v62 = vld [vmem:[%s20377_s1 + $0xb0] sm:$0xf]  ;;  %v1578_v6 = vrot.slane %v13132_v24, 2 }
  0xbd   : > { %945 = vmatprep.mubr.f32.mxu0 %v20387_v12 }
  0xc0   : > { %10718 = vmatmul.mubr.msk.f32.gmra.mrb[80].mxu0 %vm521_vm4, %v492_v21  ;;  %v10795_v21 = vld [vmem:[%s20377_s1 + $0x98] sm:$0xff] }
  0xc1   : > { %951 = vmatprep.mubr.f32.mxu0 %v20387_v12  ;;  %v11647_v25 = vpack.c.bf16 %v10795_v21, %v10793_v13  ;;  %v13653_v13 = vld [vmem:[%s13107_s19 + $0x188] sm:$0xff]  ;;  %v13659_v21 = vld [vmem:[%s13107_s19 + $0x190] sm:$0xff] }
  0xc3   : > { %11648 = vmatprep.subr.bf16.mxu0 %v11647_v25  ;;  %v13665_v25 = vld [vmem:[%s13107_s19 + $0x198] sm:$0xff] }
  0xc4   : > { %10719 = vmatmul.mubr.msk.f32.gmra.mrb[82].mxu0 %vm521_vm4, %v494_v31  ;;  %v10792_v31 = vld [vmem:[%s20377_s1 + $0x80] sm:$0xff] }
  0xc5   : > { %957 = vmatprep.mubr.f32.mxu0 %v20387_v12 }
  0xc8   : > { %10720 = vmatmul.mubr.msk.f32.gmra.mrb[84].mxu0 %vm521_vm4, %v496_v40  ;;  %v11649_v40 = vpack.c.bf16 %v10794_v34, %v10792_v31  ;;  %v13671_v31 = vld [vmem:[%s13107_s19 + $0x1a0] sm:$0xff]  ;;  %v13677_v34 = vld [vmem:[%s13107_s19 + $0x1a8] sm:$0xff] }
  0xc9   : > { %963 = vmatprep.mubr.f32.mxu0 %v20387_v12 }
  0xcc   : > { %10721 = vmatmul.mubr.msk.f32.gmra.mrb[86].mxu0 %vm521_vm4, %v498_v49  ;;  %v10799_v49 = vld [vmem:[%s20377_s1 + $0xb8] sm:$0xf] }
  0xcd   : > { %969 = vmatprep.mubr.f32.mxu0 %v20387_v12  ;;  %v11651_v50 = vpack.c.bf16 %v10799_v49, %v10797_v43  ;;  %v13689_v43 = vld [vmem:[%s13107_s19 + $0x1b8] sm:$0xff]  ;;  %v1571_v49 = vrot.slane %v13112_v14, 2 }
  0xd0   : > { %10722 = vmatmul.mubr.msk.f32.gmra.mrb[88].mxu0 %vm521_vm4, %v500_v58  ;;  %v10796_v58 = vld [vmem:[%s20377_s1 + $0xa0] sm:$0xff] }
  0xd1   : > { %975 = vmatprep.mubr.f32.mxu0 %v20387_v12 }
  0xd4   : > { %10723 = vmatmul.mubr.msk.f32.gmra.mrb[90].mxu0 %vm521_vm4, %v502_v4  ;;  %v11654_v4 = vpack.c.bf16 %v10798_v62, %v10796_v58  ;;  %v1574_v62 = vrot.slane %v13118_v16, 2 }
  0xd5   : > { %981 = vmatprep.mubr.f32.mxu0 %v20387_v12 }
  0xd8   : > { %10724 = vmatmul.mubr.msk.f32.gmra.mrb[92].mxu0 %vm521_vm4, %v504_v11  ;;  %v13647_v11 = vld [vmem:[%s13107_s19 + $0x180] sm:$0xff] }
  0xd9   : > { %1224 = vmatprep.mubr.f32.mxu0 %v20387_v12 }
  0xdc   : > { %10736 = vmatmul.mubr.msk.f32.vlgmr.msra.gmra.mrb[0].mxu0 %vm521_vm4, %v13112_v14  ;;  %v1576_v14 = vrot.slane %v13124_v20, 2 }
  0xdd   : > { %1230 = vmatprep.mubr.f32.mxu0 %v20387_v12  ;;  %11650 = vmatpush1.bf16.msra.mxu0 %v11649_v40  ;;  %v13683_v40 = vld [vmem:[%s13107_s19 + $0x1b0] sm:$0xff] }
  0xde   : > { %11653 = vmatprep.subr.msk.bf16.mxu0 %vm13086_vm2, %v11651_v50  ;;  %v1572_v50 = vrot.slane %v13115_v15, 2 }
  0xe0   : > { %10737 = vmatmul.mubr.msk.f32.gmra.mrb[2].mxu0 %vm521_vm4, %v13115_v15  ;;  %v1573_v58 = vsel %vm1570_vm5, %v1571_v49, %v1572_v50  ;;  %v1577_v15 = vsel %vm1570_vm5, %v1574_v62, %v1576_v14  ;;  %v1580_v49 = vrot.slane %v13139_v27, 2 }
  0xe1   : > { %1236 = vmatprep.mubr.f32.mxu0 %v20387_v12  ;;  %11656 = vmatpush1.bf16.msk.msra.mxu0 %vm13086_vm2, %v11654_v4  ;;  %v1575_v4 = vsel %vm1570_vm5, %v1572_v50, %v1574_v62  ;;  %v1582_v50 = vrot.slane %v13146_v30, 2  ;;  %v1586_v62 = vrot.slane %v13160_v36, 2 }
  0xe4   : > { %10738 = vmatmul.mubr.msk.f32.gmra.mrb[4].mxu0 %vm521_vm4, %v13118_v16  ;;  %v1579_v16 = vsel %vm1570_vm5, %v1576_v14, %v1578_v6 }
  0xe5   : > { %1242 = vmatprep.mubr.f32.mxu0 %v20387_v12 }
  0xe8   : > { %10739 = vmatmul.mubr.msk.f32.gmra.mrb[6].mxu0 %vm521_vm4, %v13124_v20  ;;  %v1581_v20 = vsel %vm1570_vm5, %v1578_v6, %v1580_v49  ;;  %v1588_v6 = vrot.slane %v13167_v39, 2 }
  0xe9   : > { %1248 = vmatprep.mubr.f32.mxu0 %v20387_v12 }
  0xec   : > { %10740 = vmatmul.mubr.msk.f32.gmra.mrb[8].mxu0 %vm521_vm4, %v13132_v24  ;;  %v1583_v24 = vsel %vm1570_vm5, %v1580_v49, %v1582_v50 }
  0xed   : > { %1254 = vmatprep.mubr.f32.mxu0 %v20387_v12 }
  0xf0   : > { %10741 = vmatmul.mubr.msk.f32.gmra.mrb[10].mxu0 %vm521_vm4, %v13139_v27 }
  0xf1   : > { %1260 = vmatprep.mubr.f32.mxu0 %v20387_v12 }
  0xf4   : > { %10742 = vmatmul.mubr.msk.f32.gmra.mrb[12].mxu0 %vm521_vm4, %v13146_v30 }
  0xf5   : > { %1266 = vmatprep.mubr.f32.mxu0 %v20387_v12 }
  0xf8   : > { %10743 = vmatmul.mubr.msk.f32.gmra.mrb[14].mxu0 %vm521_vm4, %v13153_v33 }
  0xf9   : > { %1272 = vmatprep.mubr.f32.mxu0 %v20387_v12 }
  0xfc   : > { %10744 = vmatmul.mubr.msk.f32.gmra.mrb[16].mxu0 %vm521_vm4, %v13160_v36  ;;  %v10858_v36 = vld [vmem:[%s20377_s1 + $0xc0] sm:$0xff] }
  0xfd   : > { %1278 = vmatprep.mubr.f32.mxu0 %v20387_v12 }
 0x100   : > { %10745 = vmatmul.mubr.msk.f32.gmra.mrb[18].mxu0 %vm521_vm4, %v13167_v39  ;;  %v10860_v39 = vld [vmem:[%s20377_s1 + $0xd0] sm:$0xff] }
 0x101   : > { %1284 = vmatprep.mubr.f32.mxu0 %v20387_v12  ;;  %v11659_v49 = vpack.c.bf16 %v10860_v39, %v10858_v36  ;;  %v1610_v36 = vrot.slane %v13272_v28, 2  ;;  %v1612_v39 = vrot.slane %v13279_v32, 2 }
 0x104   : > { %10746 = vmatmul.mubr.msk.f32.gmra.mrb[20].mxu0 %vm521_vm4, %v13180_v44 }
 0x105   : > { %1290 = vmatprep.mubr.f32.mxu0 %v20387_v12 }
 0x108   : > { %10747 = vmatmul.mubr.msk.f32.gmra.mrb[22].mxu0 %vm521_vm4, %v13193_v51 }
 0x109   : > { %1296 = vmatprep.mubr.f32.mxu0 %v20387_v12 }
 0x10c   : > { %10748 = vmatmul.mubr.msk.f32.gmra.mrb[24].mxu0 %vm521_vm4, %v13200_v54 }
 0x10d   : > { %1302 = vmatprep.mubr.f32.mxu0 %v20387_v12 }
 0x110   : > { %10749 = vmatmul.mubr.msk.f32.gmra.mrb[26].mxu0 %vm521_vm4, %v13207_v57 }
 0x111   : > { %1308 = vmatprep.mubr.f32.mxu0 %v20387_v12 }
 0x114   : > { %10750 = vmatmul.mubr.msk.f32.gmra.mrb[28].mxu0 %vm521_vm4, %v13214_v60 }
 0x115   : > { %1314 = vmatprep.mubr.f32.mxu0 %v20387_v12 }
 0x118   : > { %10751 = vmatmul.mubr.msk.f32.gmra.mrb[30].mxu0 %vm521_vm4, %v13221_v63 }
 0x119   : > { %1320 = vmatprep.mubr.f32.mxu0 %v20387_v12 }
 0x11c   : > { %10752 = vmatmul.mubr.msk.f32.gmra.mrb[32].mxu0 %vm521_vm4, %v13228_v2 }
 0x11d   : > { %1326 = vmatprep.mubr.f32.mxu0 %v20387_v12 }
 0x120   : > { %10753 = vmatmul.mubr.msk.f32.gmra.mrb[34].mxu0 %vm521_vm4, %v13241_v7 }
 0x121   : > { %1332 = vmatprep.mubr.f32.mxu0 %v20387_v12 }
 0x124   : > { %10754 = vmatmul.mubr.msk.f32.gmra.mrb[36].mxu0 %vm521_vm4, %v13258_v19 }
 0x125   : > { %1338 = vmatprep.mubr.f32.mxu0 %v20387_v12 }
 0x128   : > { %10755 = vmatmul.mubr.msk.f32.gmra.mrb[38].mxu0 %vm521_vm4, %v13265_v23 }
 0x129   : > { %1344 = vmatprep.mubr.f32.mxu0 %v20387_v12 }
 0x12c   : > { %10756 = vmatmul.mubr.msk.f32.gmra.mrb[40].mxu0 %vm521_vm4, %v13272_v28 }
 0x12d   : > { %1350 = vmatprep.mubr.f32.mxu0 %v20387_v12 }
 0x130   : > { %10757 = vmatmul.mubr.msk.f32.gmra.mrb[42].mxu0 %vm521_vm4, %v13279_v32 }
 0x131   : > { %1356 = vmatprep.mubr.f32.mxu0 %v20387_v12 }
 0x134   : > { %10758 = vmatmul.mubr.msk.f32.gmra.mrb[44].mxu0 %vm521_vm4, %v13286_v37 }
 0x135   : > { %1362 = vmatprep.mubr.f32.mxu0 %v20387_v12 }
 0x138   : > { %10759 = vmatmul.mubr.msk.f32.gmra.mrb[46].mxu0 %vm521_vm4, %v13293_v41 }
 0x139   : > { %1368 = vmatprep.mubr.f32.mxu0 %v20387_v12 }
 0x13c   : > { %10760 = vmatmul.mubr.msk.f32.gmra.mrb[48].mxu0 %vm521_vm4, %v13300_v45 }
 0x13d   : > { %1374 = vmatprep.mubr.f32.mxu0 %v20387_v12 }
 0x140   : > { %10761 = vmatmul.mubr.msk.f32.gmra.mrb[50].mxu0 %vm521_vm4, %v13307_v48 }
 0x141   : > { %1380 = vmatprep.mubr.f32.mxu0 %v20387_v12 }
 0x144   : > { %10762 = vmatmul.mubr.msk.f32.gmra.mrb[52].mxu0 %vm521_vm4, %v13314_v52 }
 0x145   : > { %1386 = vmatprep.mubr.f32.mxu0 %v20387_v12 }
 0x148   : > { %10763 = vmatmul.mubr.msk.f32.gmra.mrb[54].mxu0 %vm521_vm4, %v13321_v56 }
 0x149   : > { %1392 = vmatprep.mubr.f32.mxu0 %v20387_v12 }
 0x14c   : > { %10764 = vmatmul.mubr.msk.f32.gmra.mrb[56].mxu0 %vm521_vm4, %v13328_v61 }
 0x14d   : > { %1398 = vmatprep.mubr.f32.mxu0 %v20387_v12 }
 0x150   : > { %10765 = vmatmul.mubr.msk.f32.gmra.mrb[58].mxu0 %vm521_vm4, %v13335_v1 }
 0x151   : > { %1404 = vmatprep.mubr.f32.mxu0 %v20387_v12 }
 0x154   : > { %10766 = vmatmul.mubr.msk.f32.gmra.mrb[60].mxu0 %vm521_vm4, %v13342_v5 }
 0x155   : > { %1410 = vmatprep.mubr.f32.mxu0 %v20387_v12 }
 0x158   : > { %10767 = vmatmul.mubr.msk.f32.gmra.mrb[62].mxu0 %vm521_vm4, %v13349_v10 }
 0x159   : > { %1416 = vmatprep.mubr.f32.mxu0 %v20387_v12 }
 0x15c   : > { %10768 = vmatmul.mubr.msk.f32.gmra.mrb[64].mxu0 %vm521_vm4, %v13356_v17 }
 0x15d   : > { %1422 = vmatprep.mubr.f32.mxu0 %v20387_v12 }
 0x160   : > { %10769 = vmatmul.mubr.msk.f32.gmra.mrb[66].mxu0 %vm521_vm4, %v13363_v22 }
 0x161   : > { %1428 = vmatprep.mubr.f32.mxu0 %v20387_v12 }
 0x164   : > { %10770 = vmatmul.mubr.msk.f32.gmra.mrb[68].mxu0 %vm521_vm4, %v13370_v29 }
 0x165   : > { %1434 = vmatprep.mubr.f32.mxu0 %v20387_v12 }
 0x168   : > { %10771 = vmatmul.mubr.msk.f32.gmra.mrb[70].mxu0 %vm521_vm4, %v13377_v35 }
 0x169   : > { %1440 = vmatprep.mubr.f32.mxu0 %v20387_v12 }
 0x16c   : > { %10772 = vmatmul.mubr.msk.f32.gmra.mrb[72].mxu0 %vm521_vm4, %v13384_v42 }
 0x16d   : > { %1446 = vmatprep.mubr.f32.mxu0 %v20387_v12 }
 0x170   : > { %10773 = vmatmul.mubr.msk.f32.gmra.mrb[74].mxu0 %vm521_vm4, %v13391_v47 }
 0x171   : > { %1452 = vmatprep.mubr.f32.mxu0 %v20387_v12 }
 0x174   : > { %10774 = vmatmul.mubr.msk.f32.gmra.mrb[76].mxu0 %vm521_vm4, %v13398_v53 }
 0x175   : > { %1458 = vmatprep.mubr.f32.mxu0 %v20387_v12 }
 0x178   : > { %10775 = vmatmul.mubr.msk.f32.gmra.mrb[78].mxu0 %vm521_vm4, %v13405_v59 }
 0x179   : > { %1464 = vmatprep.mubr.f32.mxu0 %v20387_v12 }
 0x17c   : > { %10776 = vmatmul.mubr.msk.f32.gmra.mrb[80].mxu0 %vm521_vm4, %v13412_v3 }
 0x17d   : > { %1470 = vmatprep.mubr.f32.mxu0 %v20387_v12 }
 0x180   : > { %10777 = vmatmul.mubr.msk.f32.gmra.mrb[82].mxu0 %vm521_vm4, %v13419_v8 }
 0x181   : > { %1476 = vmatprep.mubr.f32.mxu0 %v20387_v12 }
 0x184   : > { %10778 = vmatmul.mubr.msk.f32.gmra.mrb[84].mxu0 %vm521_vm4, %v13426_v18 }
 0x185   : > { %1482 = vmatprep.mubr.f32.mxu0 %v20387_v12 }
 0x188   : > { %10779 = vmatmul.mubr.msk.f32.gmra.mrb[86].mxu0 %vm521_vm4, %v13433_v26 }
 0x189   : > { %1488 = vmatprep.mubr.f32.mxu0 %v20387_v12 }
 0x18c   : > { %10780 = vmatmul.mubr.msk.f32.gmra.mrb[88].mxu0 %vm521_vm4, %v13440_v38 }
 0x18d   : > { %1494 = vmatprep.mubr.f32.mxu0 %v20387_v12 }
 0x190   : > { %10781 = vmatmul.mubr.msk.f32.gmra.mrb[90].mxu0 %vm521_vm4, %v13447_v46 }
 0x191   : > { %1500 = vmatprep.mubr.f32.mxu0 %v20387_v12 }
 0x194   : > { %10782 = vmatmul.mubr.msk.f32.gmra.mrb[92].mxu0 %vm521_vm4, %v13454_v55 }
 0x195   : > { %1506 = vmatprep.mubr.f32.mxu0 %v20387_v12 }
 0x198   : > { %10783 = vmatmul.mubr.msk.f32.gmra.mrb[94].mxu0 %vm521_vm4, %v13461_v0 }
 0x199   : > { %1512 = vmatprep.mubr.f32.mxu0 %v20387_v12 }
 0x19c   : > { %10784 = vmatmul.mubr.msk.f32.gmra.mrb[96].mxu0 %vm521_vm4, %v13647_v11 }
 0x19d   : > { %1518 = vmatprep.mubr.f32.mxu0 %v20387_v12 }
 0x1a0   : > { %10785 = vmatmul.mubr.msk.f32.gmra.mrb[98].mxu0 %vm521_vm4, %v13653_v13 }
 0x1a1   : > { %1524 = vmatprep.mubr.f32.mxu0 %v20387_v12 }
 0x1a4   : > { %10786 = vmatmul.mubr.msk.f32.gmra.mrb[100].mxu0 %vm521_vm4, %v13659_v21 }
 0x1a5   : > { %1530 = vmatprep.mubr.f32.mxu0 %v20387_v12 }
 0x1a8   : > { %10787 = vmatmul.mubr.msk.f32.gmra.mrb[102].mxu0 %vm521_vm4, %v13665_v25 }
 0x1a9   : > { %1536 = vmatprep.mubr.f32.mxu0 %v20387_v12 }
 0x1ac   : > { %10788 = vmatmul.mubr.msk.f32.gmra.mrb[104].mxu0 %vm521_vm4, %v13671_v31 }
 0x1ad   : > { %1542 = vmatprep.mubr.f32.mxu0 %v20387_v12 }
 0x1b0   : > { %10789 = vmatmul.mubr.msk.f32.gmra.mrb[106].mxu0 %vm521_vm4, %v13677_v34 }
 0x1b1   : > { %1548 = vmatprep.mubr.f32.mxu0 %v20387_v12 }
 0x1b4   : > { %10790 = vmatmul.mubr.msk.f32.gmra.mrb[108].mxu0 %vm521_vm4, %v13683_v40 }
 0x1b5   : > { %1554 = vmatprep.mubr.f32.mxu0 %v20387_v12 }
 0x1b8   : > { %10791 = vmatmul.mubr.msk.f32.gmra.mrb[110].mxu0 %vm521_vm4, %v13689_v43 }
 0x1b9   : > { %1864 = vmatprep.mubr.f32.mxu0 %v20387_v12 }
 0x1bc   : > { %10802 = vmatmul.mubr.msk.f32.vlgmr.msra.gmra.mrb[0].mxu0 %vm521_vm4, %v1573_v58  ;;  %v1584_v58 = vrot.slane %v13153_v33, 2  ;;  %v10859_v33 = vld [vmem:[%s20377_s1 + $0xc8] sm:$0xff] }
 0x1bd   : > { %1870 = vmatprep.mubr.f32.mxu0 %v20387_v12 }
 0x1be   : > { %v1585_v27 = vsel %vm1570_vm5, %v1582_v50, %v1584_v58  ;;  %v1587_v30 = vsel %vm1570_vm5, %v1584_v58, %v1586_v62  ;;  %v1592_v50 = vrot.slane %v13193_v51, 2  ;;  %v1594_v58 = vrot.slane %v13200_v54, 2 }
 0x1c0   : > { %10803 = vmatmul.mubr.msk.f32.gmra.mrb[2].mxu0 %vm521_vm4, %v1575_v4  ;;  %v10861_v4 = vld [vmem:[%s20377_s1 + $0xd8] sm:$0xff] }
 0x1c1   : > { %1876 = vmatprep.mubr.f32.mxu0 %v20387_v12  ;;  %v11657_v14 = vpack.c.bf16 %v10861_v4, %v10859_v33  ;;  %v1604_v33 = vrot.slane %v13241_v7, 2  ;;  %v1606_v4 = vrot.slane %v13258_v19, 2 }
 0x1c3   : > { %11658 = vmatprep.subr.bf16.mxu0 %v11657_v14  ;;  %v1608_v14 = vrot.slane %v13265_v23, 2  ;;  %v1613_v23 = vsel %vm1570_vm5, %v1610_v36, %v1612_v39 }
 0x1c4   : > { %10804 = vmatmul.mubr.msk.f32.gmra.mrb[4].mxu0 %vm521_vm4, %v1577_v15  ;;  %v1589_v15 = vsel %vm1570_vm5, %v1586_v62, %v1588_v6  ;;  %v1598_v62 = vrot.slane %v13214_v60, 2 }
 0x1c5   : > { %1882 = vmatprep.mubr.f32.mxu0 %v20387_v12  ;;  %11660 = vmatpush1.bf16.msra.mxu0 %v11659_v49  ;;  %v1609_v7 = vsel %vm1570_vm5, %v1606_v4, %v1608_v14  ;;  %v1611_v19 = vsel %vm1570_vm5, %v1608_v14, %v1610_v36  ;;  %v1618_v49 = vrot.slane %v13300_v45, 2  ;;  %v10862_v45 = vld [vmem:[%s20377_s1 + $0xe0] sm:$0xff]  ;;  %v1642_v14 = vrot.slane %v13384_v42, 2 }
 0x1c6   : > { %v1646_v36 = vrot.slane %v13398_v53, 2 }
 0x1c8   : > { %10805 = vmatmul.mubr.msk.f32.gmra.mrb[6].mxu0 %vm521_vm4, %v1579_v16  ;;  %v1590_v16 = vrot.slane %v13180_v44, 2  ;;  %v1595_v44 = vsel %vm1570_vm5, %v1592_v50, %v1594_v58 }
 0x1c9   : > { %1888 = vmatprep.mubr.f32.mxu0 %v20387_v12 }
 0x1cc   : > { %10806 = vmatmul.mubr.msk.f32.gmra.mrb[8].mxu0 %vm521_vm4, %v1581_v20  ;;  %v1591_v20 = vsel %vm1570_vm5, %v1588_v6, %v1590_v16  ;;  %v1602_v6 = vrot.slane %v13228_v2, 2  ;;  %v1607_v2 = vsel %vm1570_vm5, %v1604_v33, %v1606_v4  ;;  %v1638_v4 = vrot.slane %v13370_v29, 2 }
 0x1cd   : > { %1894 = vmatprep.mubr.f32.mxu0 %v20387_v12 }
 0x1d0   : > { %10807 = vmatmul.mubr.msk.f32.gmra.mrb[10].mxu0 %vm521_vm4, %v1583_v24  ;;  %v1593_v24 = vsel %vm1570_vm5, %v1590_v16, %v1592_v50  ;;  %v1616_v16 = vrot.slane %v13293_v41, 2  ;;  %v10863_v41 = vld [vmem:[%s20377_s1 + $0xe8] sm:$0xff]  ;;  %v10865_v50 = vld [vmem:[%s20377_s1 + $0xf8] sm:$0xf] }
 0x1d1   : > { %1900 = vmatprep.mubr.f32.mxu0 %v20387_v12 }
 0x1d4   : > { %10808 = vmatmul.mubr.msk.f32.gmra.mrb[12].mxu0 %vm521_vm4, %v1585_v27  ;;  %v1596_v27 = vrot.slane %v13207_v57, 2 }
 0x1d5   : > { %1906 = vmatprep.mubr.f32.mxu0 %v20387_v12 }
 0x1d6   : > { %v1597_v51 = vsel %vm1570_vm5, %v1594_v58, %v1596_v27  ;;  %v1599_v54 = vsel %vm1570_vm5, %v1596_v27, %v1598_v62  ;;  %v10864_v58 = vld [vmem:[%s20377_s1 + $0xf0] sm:$0xf]  ;;  %v1622_v27 = vrot.slane %v13314_v52, 2 }
 0x1d8   : > { %10809 = vmatmul.mubr.msk.f32.gmra.mrb[14].mxu0 %vm521_vm4, %v1587_v30  ;;  %v1600_v30 = vrot.slane %v13221_v63, 2  ;;  %v1605_v63 = vsel %vm1570_vm5, %v1602_v6, %v1604_v33  ;;  %v1634_v33 = vrot.slane %v13356_v17, 2 }
 0x1d9   : > { %1912 = vmatprep.mubr.f32.mxu0 %v20387_v12 }
 0x1da   : > { %v1601_v57 = vsel %vm1570_vm5, %v1598_v62, %v1600_v30  ;;  %v1603_v60 = vsel %vm1570_vm5, %v1600_v30, %v1602_v6  ;;  %v1624_v62 = vrot.slane %v13321_v56, 2  ;;  %v1626_v30 = vrot.slane %v13328_v61, 2 }
 0x1db   : > { %v1630_v6 = vrot.slane %v13342_v5, 2 }
 0x1dc   : > { %10810 = vmatmul.mubr.msk.f32.gmra.mrb[16].mxu0 %vm521_vm4, %v1589_v15  ;;  %v1614_v15 = vrot.slane %v13286_v37, 2  ;;  %v1619_v37 = vsel %vm1570_vm5, %v1616_v16, %v1618_v49  ;;  %v1627_v52 = vsel %vm1570_vm5, %v1624_v62, %v1626_v30 }
 0x1dd   : > { %1918 = vmatprep.mubr.f32.mxu0 %v20387_v12 }
 0x1de   : > { %v1615_v28 = vsel %vm1570_vm5, %v1612_v39, %v1614_v15  ;;  %v1617_v32 = vsel %vm1570_vm5, %v1614_v15, %v1616_v16  ;;  %v1650_v39 = vrot.slane %v13412_v3, 2  ;;  %v1654_v15 = vrot.slane %v13426_v18, 2 }
 0x1df   : > { %v1658_v16 = vrot.slane %v13440_v38, 2 }
 0x1e0   : > { %10811 = vmatmul.mubr.msk.f32.gmra.mrb[18].mxu0 %vm521_vm4, %v1591_v20  ;;  %v1620_v20 = vrot.slane %v13307_v48, 2 }
 0x1e1   : > { %1924 = vmatprep.mubr.f32.mxu0 %v20387_v12 }
 0x1e2   : > { %v1621_v48 = vsel %vm1570_vm5, %v1618_v49, %v1620_v20  ;;  %v1662_v49 = vrot.slane %v13454_v55, 2 }
 0x1e4   : > { %10812 = vmatmul.mubr.msk.f32.gmra.mrb[20].mxu0 %vm521_vm4, %v1593_v24  ;;  %v11661_v24 = vpack.c.bf16 %v10865_v50, %v10863_v41  ;;  %v1668_v41 = vrot.slane %v13653_v13, 2 }
 0x1e5   : > { %1930 = vmatprep.mubr.f32.mxu0 %v20387_v12 }
 0x1e6   : > { %11663 = vmatprep.subr.msk.bf16.mxu0 %vm13086_vm2, %v11661_v24  ;;  %v1670_v24 = vrot.slane %v13659_v21, 2 }
 0x1e8   : > { %10813 = vmatmul.mubr.msk.f32.gmra.mrb[22].mxu0 %vm521_vm4, %v1595_v44  ;;  %v11664_v44 = vpack.c.bf16 %v10864_v58, %v10862_v45  ;;  %v1671_v45 = vsel %vm1570_vm5, %v1668_v41, %v1670_v24  ;;  %v1672_v58 = vrot.slane %v13665_v25, 2 }
 0x1e9   : > { %1936 = vmatprep.mubr.f32.mxu0 %v20387_v12 }
 0x1ea   : > { %11666 = vmatpush1.bf16.msk.msra.mxu0 %vm13086_vm2, %v11664_v44  ;;  %v1673_v44 = vsel %vm1570_vm5, %v1670_v24, %v1672_v58  ;;  %v14037_v24 = vld [vmem:[%s13107_s19 + $0x60] sm:$0xff] }
 0x1ec   : > { %10814 = vmatmul.mubr.msk.f32.gmra.mrb[24].mxu0 %vm521_vm4, %v1597_v51  ;;  %v1623_v51 = vsel %vm1570_vm5, %v1620_v20, %v1622_v27  ;;  %v1666_v20 = vrot.slane %v13647_v11, 2 }
 0x1ed   : > { %1942 = vmatprep.mubr.f32.mxu0 %v20387_v12 }
 0x1ee   : > { %v1669_v50 = vsel %vm1570_vm5, %v1666_v20, %v1668_v41 }
 0x1f0   : > { %10815 = vmatmul.mubr.msk.f32.gmra.mrb[26].mxu0 %vm521_vm4, %v1599_v54  ;;  %v1625_v54 = vsel %vm1570_vm5, %v1622_v27, %v1624_v62 }
 0x1f1   : > { %1948 = vmatprep.mubr.f32.mxu0 %v20387_v12 }
 0x1f4   : > { %10816 = vmatmul.mubr.msk.f32.gmra.mrb[28].mxu0 %vm521_vm4, %v1601_v57  ;;  %v1628_v57 = vrot.slane %v13335_v1, 2 }
 0x1f5   : > { %1954 = vmatprep.mubr.f32.mxu0 %v20387_v12 }
 0x1f6   : > { %v1629_v56 = vsel %vm1570_vm5, %v1626_v30, %v1628_v57  ;;  %v1631_v61 = vsel %vm1570_vm5, %v1628_v57, %v1630_v6 }
 0x1f8   : > { %10817 = vmatmul.mubr.msk.f32.gmra.mrb[30].mxu0 %vm521_vm4, %v1603_v60  ;;  %v1632_v60 = vrot.slane %v13349_v10, 2 }
 0x1f9   : > { %1960 = vmatprep.mubr.f32.mxu0 %v20387_v12 }
 0x1fa   : > { %v1633_v1 = vsel %vm1570_vm5, %v1630_v6, %v1632_v60  ;;  %v1635_v5 = vsel %vm1570_vm5, %v1632_v60, %v1634_v33 }
 0x1fc   : > { %10818 = vmatmul.mubr.msk.f32.gmra.mrb[32].mxu0 %vm521_vm4, %v1605_v63  ;;  %v1636_v63 = vrot.slane %v13363_v22, 2 }
 0x1fd   : > { %1966 = vmatprep.mubr.f32.mxu0 %v20387_v12 }
 0x1fe   : > { %v1637_v10 = vsel %vm1570_vm5, %v1634_v33, %v1636_v63  ;;  %v1639_v17 = vsel %vm1570_vm5, %v1636_v63, %v1638_v4  ;;  %v13955_v33 = vld [vmem:[%s13107_s19 + $0x10] sm:$0xff] }
 0x200   : > { %10819 = vmatmul.mubr.msk.f32.gmra.mrb[34].mxu0 %vm521_vm4, %v1607_v2  ;;  %v1640_v2 = vrot.slane %v13377_v35, 2 }
 0x201   : > { %1972 = vmatprep.mubr.f32.mxu0 %v20387_v12 }
 0x202   : > { %v1641_v22 = vsel %vm1570_vm5, %v1638_v4, %v1640_v2  ;;  %v1643_v29 = vsel %vm1570_vm5, %v1640_v2, %v1642_v14  ;;  %v13969_v2 = vld [vmem:[%s13107_s19 + $0x20] sm:$0xff] }
 0x204   : > { %10820 = vmatmul.mubr.msk.f32.gmra.mrb[36].mxu0 %vm521_vm4, %v1609_v7  ;;  %v1644_v7 = vrot.slane %v13391_v47, 2 }
 0x205   : > { %1978 = vmatprep.mubr.f32.mxu0 %v20387_v12 }
 0x206   : > { %v1645_v35 = vsel %vm1570_vm5, %v1642_v14, %v1644_v7  ;;  %v1647_v42 = vsel %vm1570_vm5, %v1644_v7, %v1646_v36 }
 0x208   : > { %10821 = vmatmul.mubr.msk.f32.gmra.mrb[38].mxu0 %vm521_vm4, %v1611_v19  ;;  %v1648_v19 = vrot.slane %v13405_v59, 2 }
 0x209   : > { %1984 = vmatprep.mubr.f32.mxu0 %v20387_v12 }
 0x20a   : > { %v1649_v47 = vsel %vm1570_vm5, %v1646_v36, %v1648_v19  ;;  %v1651_v53 = vsel %vm1570_vm5, %v1648_v19, %v1650_v39  ;;  %v13983_v36 = vld [vmem:[%s13107_s19 + $0x30] sm:$0xff] }
 0x20c   : > { %10822 = vmatmul.mubr.msk.f32.gmra.mrb[40].mxu0 %vm521_vm4, %v1613_v23  ;;  %v1652_v23 = vrot.slane %v13419_v8, 2 }
 0x20d   : > { %1990 = vmatprep.mubr.f32.mxu0 %v20387_v12 }
 0x20e   : > { %v1653_v59 = vsel %vm1570_vm5, %v1650_v39, %v1652_v23  ;;  %v1655_v3 = vsel %vm1570_vm5, %v1652_v23, %v1654_v15  ;;  %v13997_v23 = vld [vmem:[%s13107_s19 + $0x40] sm:$0xff] }
 0x210   : > { %10823 = vmatmul.mubr.msk.f32.gmra.mrb[42].mxu0 %vm521_vm4, %v1615_v28  ;;  %v1656_v28 = vrot.slane %v13433_v26, 2 }
 0x211   : > { %1996 = vmatprep.mubr.f32.mxu0 %v20387_v12 }
 0x212   : > { %v1657_v8 = vsel %vm1570_vm5, %v1654_v15, %v1656_v28  ;;  %v1659_v18 = vsel %vm1570_vm5, %v1656_v28, %v1658_v16 }
 0x214   : > { %10824 = vmatmul.mubr.msk.f32.gmra.mrb[44].mxu0 %vm521_vm4, %v1617_v32  ;;  %v1660_v32 = vrot.slane %v13447_v46, 2 }
 0x215   : > { %2002 = vmatprep.mubr.f32.mxu0 %v20387_v12 }
 0x216   : > { %v1661_v26 = vsel %vm1570_vm5, %v1658_v16, %v1660_v32  ;;  %v1663_v38 = vsel %vm1570_vm5, %v1660_v32, %v1662_v49  ;;  %v10927_v16 = vld [vmem:[%s20377_s1 + $0x118] sm:$0xff]  ;;  %v10924_v32 = vld [vmem:[%s20377_s1 + $0x100] sm:$0xff] }
 0x218   : > { %10825 = vmatmul.mubr.msk.f32.gmra.mrb[46].mxu0 %vm521_vm4, %v1619_v37  ;;  %v1664_v37 = vrot.slane %v13461_v0, 2 }
 0x219   : > { %2008 = vmatprep.mubr.f32.mxu0 %v20387_v12 }
 0x21a   : > { %v1665_v46 = vsel %vm1570_vm5, %v1662_v49, %v1664_v37  ;;  %v1667_v55 = vsel %vm1570_vm5, %v1664_v37, %v1666_v20 }
 0x21c   : > { %10826 = vmatmul.mubr.msk.f32.gmra.mrb[48].mxu0 %vm521_vm4, %v1621_v48  ;;  %v1674_v48 = vrot.slane %v13671_v31, 2 }
 0x21d   : > { %2014 = vmatprep.mubr.f32.mxu0 %v20387_v12 }
 0x21e   : > { %v1675_v27 = vsel %vm1570_vm5, %v1672_v58, %v1674_v48 }
 0x220   : > { %10827 = vmatmul.mubr.msk.f32.gmra.mrb[50].mxu0 %vm521_vm4, %v1623_v51  ;;  %v1676_v51 = vrot.slane %v13677_v34, 2 }
 0x221   : > { %2020 = vmatprep.mubr.f32.mxu0 %v20387_v12 }
 0x222   : > { %v1677_v62 = vsel %vm1570_vm5, %v1674_v48, %v1676_v51 }
 0x224   : > { %10828 = vmatmul.mubr.msk.f32.gmra.mrb[52].mxu0 %vm521_vm4, %v1625_v54  ;;  %v1678_v54 = vrot.slane %v13683_v40, 2 }
 0x225   : > { %2026 = vmatprep.mubr.f32.mxu0 %v20387_v12 }
 0x226   : > { %v1679_v30 = vsel %vm1570_vm5, %v1676_v51, %v1678_v54  ;;  %v14051_v51 = vld [vmem:[%s13107_s19 + $0x70] sm:$0xff] }
 0x228   : > { %10829 = vmatmul.mubr.msk.f32.gmra.mrb[54].mxu0 %vm521_vm4, %v1627_v52  ;;  %v1680_v52 = vrot.slane %v13689_v43, 2 }
 0x229   : > { %2032 = vmatprep.mubr.f32.mxu0 %v20387_v12 }
 0x22a   : > { %v1681_v57 = vsel %vm1570_vm5, %v1678_v54, %v1680_v52 }
 0x22c   : > { %10830 = vmatmul.mubr.msk.f32.gmra.mrb[56].mxu0 %vm521_vm4, %v1629_v56  ;;  %v13944_v56 = vld [vmem:[%s13107_s19] sm:$0xff] }
 0x22d   : > { %2038 = vmatprep.mubr.f32.mxu0 %v20387_v12  ;;  %v2323_v6 = vrot.slane %v13944_v56, 3 }
 0x230   : > { %10831 = vmatmul.mubr.msk.f32.gmra.mrb[58].mxu0 %vm521_vm4, %v1631_v61  ;;  %v13948_v61 = vld [vmem:[%s13107_s19 + $0x8] sm:$0xff] }
 0x231   : > { %2044 = vmatprep.mubr.f32.mxu0 %v20387_v12  ;;  %v2324_v60 = vrot.slane %v13948_v61, 3 }
 0x234   : > { %10832 = vmatmul.mubr.msk.f32.gmra.mrb[60].mxu0 %vm521_vm4, %v1633_v1  ;;  %v2325_v1 = vsel %vm2322_vm6, %v2323_v6, %v2324_v60  ;;  %v14065_v6 = vld [vmem:[%s13107_s19 + $0x80] sm:$0xff] }
 0x235   : > { %2050 = vmatprep.mubr.f32.mxu0 %v20387_v12 }
 0x238   : > { %10833 = vmatmul.mubr.msk.f32.gmra.mrb[62].mxu0 %vm521_vm4, %v1635_v5  ;;  %v2326_v5 = vrot.slane %v13955_v33, 3 }
 0x239   : > { %2056 = vmatprep.mubr.f32.mxu0 %v20387_v12 }
 0x23a   : > { %v2327_v63 = vsel %vm2322_vm6, %v2324_v60, %v2326_v5  ;;  %v2354_v60 = vrot.slane %v14065_v6, 3 }
 0x23c   : > { %10834 = vmatmul.mubr.msk.f32.gmra.mrb[64].mxu0 %vm521_vm4, %v1637_v10  ;;  %v13962_v10 = vld [vmem:[%s13107_s19 + $0x18] sm:$0xff] }
 0x23d   : > { %2062 = vmatprep.mubr.f32.mxu0 %v20387_v12  ;;  %v2328_v4 = vrot.slane %v13962_v10, 3 }
 0x240   : > { %10835 = vmatmul.mubr.msk.f32.gmra.mrb[66].mxu0 %vm521_vm4, %v1639_v17  ;;  %v2329_v17 = vsel %vm2322_vm6, %v2326_v5, %v2328_v4  ;;  %v14072_v5 = vld [vmem:[%s13107_s19 + $0x88] sm:$0xff] }
 0x241   : > { %2068 = vmatprep.mubr.f32.mxu0 %v20387_v12 }
 0x244   : > { %10836 = vmatmul.mubr.msk.f32.gmra.mrb[68].mxu0 %vm521_vm4, %v1641_v22  ;;  %v2330_v22 = vrot.slane %v13969_v2, 3 }
 0x245   : > { %2074 = vmatprep.mubr.f32.mxu0 %v20387_v12 }
 0x246   : > { %v2331_v14 = vsel %vm2322_vm6, %v2328_v4, %v2330_v22 }
 0x248   : > { %10837 = vmatmul.mubr.msk.f32.gmra.mrb[70].mxu0 %vm521_vm4, %v1643_v29  ;;  %v13976_v29 = vld [vmem:[%s13107_s19 + $0x28] sm:$0xff] }
 0x249   : > { %2080 = vmatprep.mubr.f32.mxu0 %v20387_v12  ;;  %v2332_v7 = vrot.slane %v13976_v29, 3 }
 0x24c   : > { %10838 = vmatmul.mubr.msk.f32.gmra.mrb[72].mxu0 %vm521_vm4, %v1645_v35  ;;  %v2333_v35 = vsel %vm2322_vm6, %v2330_v22, %v2332_v7 }
 0x24d   : > { %2086 = vmatprep.mubr.f32.mxu0 %v20387_v12 }
 0x250   : > { %10839 = vmatmul.mubr.msk.f32.gmra.mrb[74].mxu0 %vm521_vm4, %v1647_v42  ;;  %v2334_v42 = vrot.slane %v13983_v36, 3 }
 0x251   : > { %2092 = vmatprep.mubr.f32.mxu0 %v20387_v12 }
 0x252   : > { %v2335_v19 = vsel %vm2322_vm6, %v2332_v7, %v2334_v42  ;;  %v14086_v7 = vld [vmem:[%s13107_s19 + $0x98] sm:$0xff] }
 0x254   : > { %10840 = vmatmul.mubr.msk.f32.gmra.mrb[76].mxu0 %vm521_vm4, %v1649_v47  ;;  %v13990_v47 = vld [vmem:[%s13107_s19 + $0x38] sm:$0xff] }
 0x255   : > { %2098 = vmatprep.mubr.f32.mxu0 %v20387_v12  ;;  %v2336_v39 = vrot.slane %v13990_v47, 3 }
 0x258   : > { %10841 = vmatmul.mubr.msk.f32.gmra.mrb[78].mxu0 %vm521_vm4, %v1651_v53  ;;  %v2337_v53 = vsel %vm2322_vm6, %v2334_v42, %v2336_v39 }
 0x259   : > { %2104 = vmatprep.mubr.f32.mxu0 %v20387_v12 }
 0x25c   : > { %10842 = vmatmul.mubr.msk.f32.gmra.mrb[80].mxu0 %vm521_vm4, %v1653_v59  ;;  %v2338_v59 = vrot.slane %v13997_v23, 3 }
 0x25d   : > { %2110 = vmatprep.mubr.f32.mxu0 %v20387_v12 }
 0x25e   : > { %v2339_v15 = vsel %vm2322_vm6, %v2336_v39, %v2338_v59 }
 0x260   : > { %10843 = vmatmul.mubr.msk.f32.gmra.mrb[82].mxu0 %vm521_vm4, %v1655_v3  ;;  %v14004_v3 = vld [vmem:[%s13107_s19 + $0x48] sm:$0xff] }
 0x261   : > { %2116 = vmatprep.mubr.f32.mxu0 %v20387_v12  ;;  %v2340_v28 = vrot.slane %v14004_v3, 3 }
 0x263   : > { %v2341_v49 = vsel %vm2322_vm6, %v2338_v59, %v2340_v28  ;;  %v14100_v59 = vld [vmem:[%s13107_s19 + $0xa8] sm:$0xff] }
 0x264   : > { %10844 = vmatmul.mubr.msk.f32.gmra.mrb[84].mxu0 %vm521_vm4, %v1657_v8  ;;  %v10925_v8 = vld [vmem:[%s20377_s1 + $0x108] sm:$0xff] }
 0x265   : > { %2122 = vmatprep.mubr.f32.mxu0 %v20387_v12 }
 0x268   : > { %10845 = vmatmul.mubr.msk.f32.gmra.mrb[86].mxu0 %vm521_vm4, %v1659_v18  ;;  %v11667_v18 = vpack.c.bf16 %v10927_v16, %v10925_v8  ;;  %v14107_v8 = vld [vmem:[%s13107_s19 + $0xb0] sm:$0xff] }
 0x269   : > { %2128 = vmatprep.mubr.f32.mxu0 %v20387_v12  ;;  %v2366_v16 = vrot.slane %v14107_v8, 3 }
 0x26a   : > { %11668 = vmatprep.subr.bf16.mxu0 %v11667_v18 }
 0x26c   : > { %10846 = vmatmul.mubr.msk.f32.gmra.mrb[88].mxu0 %vm521_vm4, %v1661_v26  ;;  %v10926_v26 = vld [vmem:[%s20377_s1 + $0x110] sm:$0xff] }
 0x26d   : > { %2134 = vmatprep.mubr.f32.mxu0 %v20387_v12 }
 0x270   : > { %10847 = vmatmul.mubr.msk.f32.gmra.mrb[90].mxu0 %vm521_vm4, %v1663_v38  ;;  %v14023_v38 = vld [vmem:[%s13107_s19 + $0x50] sm:$0xff] }
 0x271   : > { %2140 = vmatprep.mubr.f32.mxu0 %v20387_v12  ;;  %v2342_v37 = vrot.slane %v14023_v38, 3 }
 0x273   : > { %v2343_v20 = vsel %vm2322_vm6, %v2340_v28, %v2342_v37 }
 0x274   : > { %10848 = vmatmul.mubr.msk.f32.gmra.mrb[92].mxu0 %vm521_vm4, %v1665_v46  ;;  %v11669_v46 = vpack.c.bf16 %v10926_v26, %v10924_v32  ;;  %v14114_v32 = vld [vmem:[%s13107_s19 + $0xb8] sm:$0xff] }
 0x275   : > { %2146 = vmatprep.mubr.f32.mxu0 %v20387_v12  ;;  %v2368_v26 = vrot.slane %v14114_v32, 3 }
 0x278   : > { %10849 = vmatmul.mubr.msk.f32.gmra.mrb[94].mxu0 %vm521_vm4, %v1667_v55  ;;  %v14030_v55 = vld [vmem:[%s13107_s19 + $0x58] sm:$0xff] }
 0x279   : > { %2152 = vmatprep.mubr.f32.mxu0 %v20387_v12  ;;  %v2344_v41 = vrot.slane %v14030_v55, 3 }
 0x27c   : > { %10850 = vmatmul.mubr.msk.f32.gmra.mrb[96].mxu0 %vm521_vm4, %v1669_v50  ;;  %v2345_v50 = vsel %vm2322_vm6, %v2342_v37, %v2344_v41  ;;  %v14121_v37 = vld [vmem:[%s13107_s19 + $0xc0] sm:$0xff] }
 0x27d   : > { %2158 = vmatprep.mubr.f32.mxu0 %v20387_v12 }
 0x280   : > { %10851 = vmatmul.mubr.msk.f32.gmra.mrb[98].mxu0 %vm521_vm4, %v1671_v45  ;;  %v2346_v45 = vrot.slane %v14037_v24, 3 }
 0x281   : > { %2164 = vmatprep.mubr.f32.mxu0 %v20387_v12 }
 0x282   : > { %v2347_v58 = vsel %vm2322_vm6, %v2344_v41, %v2346_v45  ;;  %v14128_v41 = vld [vmem:[%s13107_s19 + $0xc8] sm:$0xff] }
 0x284   : > { %10852 = vmatmul.mubr.msk.f32.gmra.mrb[100].mxu0 %vm521_vm4, %v1673_v44  ;;  %v14044_v44 = vld [vmem:[%s13107_s19 + $0x68] sm:$0xff] }
 0x285   : > { %2170 = vmatprep.mubr.f32.mxu0 %v20387_v12  ;;  %v2348_v48 = vrot.slane %v14044_v44, 3 }
 0x288   : > { %10853 = vmatmul.mubr.msk.f32.gmra.mrb[102].mxu0 %vm521_vm4, %v1675_v27  ;;  %v2349_v27 = vsel %vm2322_vm6, %v2346_v45, %v2348_v48  ;;  %v10929_v45 = vld [vmem:[%s20377_s1 + $0x128] sm:$0xff] }
 0x289   : > { %2176 = vmatprep.mubr.f32.mxu0 %v20387_v12 }
 0x28c   : > { %10854 = vmatmul.mubr.msk.f32.gmra.mrb[104].mxu0 %vm521_vm4, %v1677_v62  ;;  %v2350_v62 = vrot.slane %v14051_v51, 3 }
 0x28d   : > { %2182 = vmatprep.mubr.f32.mxu0 %v20387_v12 }
 0x28e   : > { %v2351_v54 = vsel %vm2322_vm6, %v2348_v48, %v2350_v62 }
 0x290   : > { %10855 = vmatmul.mubr.msk.f32.gmra.mrb[106].mxu0 %vm521_vm4, %v1679_v30  ;;  %v14058_v30 = vld [vmem:[%s13107_s19 + $0x78] sm:$0xff] }
 0x291   : > { %2188 = vmatprep.mubr.f32.mxu0 %v20387_v12 }
 0x294   : > { %10856 = vmatmul.mubr.msk.f32.gmra.mrb[108].mxu0 %vm521_vm4, %v1681_v57 }
 0x295   : > { %2194 = vmatprep.mubr.f32.mxu0 %v20387_v12 }
 0x298   : > { %10857 = vmatmul.mubr.msk.f32.gmra.mrb[110].mxu0 %vm521_vm4, %v1680_v52  ;;  %v2352_v52 = vrot.slane %v14058_v30, 3 }
 0x299   : > { %2616 = vmatprep.mubr.f32.mxu0 %v20387_v12 }
 0x29a   : > { %v2353_v57 = vsel %vm2322_vm6, %v2350_v62, %v2352_v52  ;;  %v10930_v62 = vld [vmem:[%s20377_s1 + $0x130] sm:$0xf] }
 0x29c   : > { %10868 = vmatmul.mubr.msk.f32.vlgmr.msra.gmra.mrb[0].mxu0 %vm521_vm4, %v2325_v1  ;;  %v2355_v1 = vsel %vm2322_vm6, %v2352_v52, %v2354_v60 }
 0x29d   : > { %2622 = vmatprep.mubr.f32.mxu0 %v20387_v12  ;;  %11670 = vmatpush1.bf16.msra.mxu0 %v11669_v46  ;;  %v2370_v46 = vrot.slane %v14121_v37, 3 }
 0x2a0   : > { %10869 = vmatmul.mubr.msk.f32.gmra.mrb[2].mxu0 %vm521_vm4, %v2327_v63  ;;  %v2356_v63 = vrot.slane %v14072_v5, 3 }
 0x2a1   : > { %2628 = vmatprep.mubr.f32.mxu0 %v20387_v12 }
 0x2a2   : > { %v2357_v4 = vsel %vm2322_vm6, %v2354_v60, %v2356_v63 }
 0x2a4   : > { %10870 = vmatmul.mubr.msk.f32.gmra.mrb[4].mxu0 %vm521_vm4, %v2329_v17  ;;  %v14079_v17 = vld [vmem:[%s13107_s19 + $0x90] sm:$0xff] }
 0x2a5   : > { %2634 = vmatprep.mubr.f32.mxu0 %v20387_v12  ;;  %v2358_v22 = vrot.slane %v14079_v17, 3 }
 0x2a8   : > { %10871 = vmatmul.mubr.msk.f32.gmra.mrb[6].mxu0 %vm521_vm4, %v2331_v14  ;;  %v2359_v14 = vsel %vm2322_vm6, %v2356_v63, %v2358_v22  ;;  %v14158_v63 = vld [vmem:[%s13107_s19 + $0xd8] sm:$0xff] }
 0x2a9   : > { %2640 = vmatprep.mubr.f32.mxu0 %v20387_v12 }
 0x2ac   : > { %10872 = vmatmul.mubr.msk.f32.gmra.mrb[8].mxu0 %vm521_vm4, %v2333_v35  ;;  %v2360_v35 = vrot.slane %v14086_v7, 3 }
 0x2ad   : > { %2646 = vmatprep.mubr.f32.mxu0 %v20387_v12 }
 0x2ae   : > { %v2361_v42 = vsel %vm2322_vm6, %v2358_v22, %v2360_v35 }
 0x2b0   : > { %10873 = vmatmul.mubr.msk.f32.gmra.mrb[10].mxu0 %vm521_vm4, %v2335_v19  ;;  %v14093_v19 = vld [vmem:[%s13107_s19 + $0xa0] sm:$0xff] }
 0x2b1   : > { %2652 = vmatprep.mubr.f32.mxu0 %v20387_v12  ;;  %v2362_v39 = vrot.slane %v14093_v19, 3 }
 0x2b4   : > { %10874 = vmatmul.mubr.msk.f32.gmra.mrb[12].mxu0 %vm521_vm4, %v2337_v53  ;;  %v2363_v53 = vsel %vm2322_vm6, %v2360_v35, %v2362_v39 }
 0x2b5   : > { %2658 = vmatprep.mubr.f32.mxu0 %v20387_v12 }
 0x2b8   : > { %10875 = vmatmul.mubr.msk.f32.gmra.mrb[14].mxu0 %vm521_vm4, %v2339_v15  ;;  %v2364_v15 = vrot.slane %v14100_v59, 3 }
 0x2b9   : > { %2664 = vmatprep.mubr.f32.mxu0 %v20387_v12 }
 0x2ba   : > { %v2365_v28 = vsel %vm2322_vm6, %v2362_v39, %v2364_v15  ;;  %v2367_v18 = vsel %vm2322_vm6, %v2364_v15, %v2366_v16  ;;  %v14179_v15 = vld [vmem:[%s13107_s19 + $0xf0] sm:$0xff] }
 0x2bc   : > { %10876 = vmatmul.mubr.msk.f32.gmra.mrb[16].mxu0 %vm521_vm4, %v2341_v49  ;;  %v2369_v49 = vsel %vm2322_vm6, %v2366_v16, %v2368_v26 }
 0x2bd   : > { %2670 = vmatprep.mubr.f32.mxu0 %v20387_v12 }
 0x2c0   : > { %10877 = vmatmul.mubr.msk.f32.gmra.mrb[18].mxu0 %vm521_vm4, %v2343_v20  ;;  %v2371_v20 = vsel %vm2322_vm6, %v2368_v26, %v2370_v46 }
 0x2c1   : > { %2676 = vmatprep.mubr.f32.mxu0 %v20387_v12 }
 0x2c4   : > { %10878 = vmatmul.mubr.msk.f32.gmra.mrb[20].mxu0 %vm521_vm4, %v2345_v50  ;;  %v2372_v50 = vrot.slane %v14128_v41, 3 }
 0x2c5   : > { %2682 = vmatprep.mubr.f32.mxu0 %v20387_v12 }
 0x2c6   : > { %v2373_v52 = vsel %vm2322_vm6, %v2370_v46, %v2372_v50  ;;  %v14193_v46 = vld [vmem:[%s13107_s19 + $0x100] sm:$0xff] }
 0x2c8   : > { %10879 = vmatmul.mubr.msk.f32.gmra.mrb[22].mxu0 %vm521_vm4, %v2347_v58  ;;  %v10931_v58 = vld [vmem:[%s20377_s1 + $0x138] sm:$0xf] }
 0x2c9   : > { %2688 = vmatprep.mubr.f32.mxu0 %v20387_v12  ;;  %v11671_v48 = vpack.c.bf16 %v10931_v58, %v10929_v45  ;;  %v14200_v45 = vld [vmem:[%s13107_s19 + $0x108] sm:$0xff] }
 0x2ca   : > { %v2388_v58 = vrot.slane %v14200_v45, 3 }
 0x2cb   : > { %11673 = vmatprep.subr.msk.bf16.mxu0 %vm13086_vm2, %v11671_v48 }
 0x2cc   : > { %10880 = vmatmul.mubr.msk.f32.gmra.mrb[24].mxu0 %vm521_vm4, %v2349_v27  ;;  %v10928_v27 = vld [vmem:[%s20377_s1 + $0x120] sm:$0xff] }
 0x2cd   : > { %2694 = vmatprep.mubr.f32.mxu0 %v20387_v12 }
 0x2d0   : > { %10881 = vmatmul.mubr.msk.f32.gmra.mrb[26].mxu0 %vm521_vm4, %v2351_v54  ;;  %v11674_v54 = vpack.c.bf16 %v10930_v62, %v10928_v27  ;;  %v14207_v27 = vld [vmem:[%s13107_s19 + $0x110] sm:$0xff] }
 0x2d1   : > { %2700 = vmatprep.mubr.f32.mxu0 %v20387_v12  ;;  %v2390_v62 = vrot.slane %v14207_v27, 3 }
 0x2d2   : > { %11676 = vmatpush1.bf16.msk.msra.mxu0 %vm13086_vm2, %v11674_v54 }
 0x2d3   : > { %v2391_v54 = vsel %vm2322_vm6, %v2388_v58, %v2390_v62 }
 0x2d4   : > { %10882 = vmatmul.mubr.msk.f32.gmra.mrb[28].mxu0 %vm521_vm4, %v2353_v57  ;;  %v14149_v57 = vld [vmem:[%s13107_s19 + $0xd0] sm:$0xff] }
 0x2d5   : > { %2706 = vmatprep.mubr.f32.mxu0 %v20387_v12  ;;  %v2374_v60 = vrot.slane %v14149_v57, 3 }
 0x2d8   : > { %10883 = vmatmul.mubr.msk.f32.gmra.mrb[30].mxu0 %vm521_vm4, %v2355_v1  ;;  %v2375_v1 = vsel %vm2322_vm6, %v2372_v50, %v2374_v60 }
 0x2d9   : > { %2712 = vmatprep.mubr.f32.mxu0 %v20387_v12 }
 0x2dc   : > { %10884 = vmatmul.mubr.msk.f32.gmra.mrb[32].mxu0 %vm521_vm4, %v2357_v4  ;;  %v2376_v4 = vrot.slane %v14158_v63, 3 }
 0x2dd   : > { %2718 = vmatprep.mubr.f32.mxu0 %v20387_v12 }
 0x2de   : > { %v2377_v22 = vsel %vm2322_vm6, %v2374_v60, %v2376_v4 }
 0x2e0   : > { %10885 = vmatmul.mubr.msk.f32.gmra.mrb[34].mxu0 %vm521_vm4, %v2359_v14  ;;  %v2378_v14 = vrot.slane %v14165_v9, 3 }
 0x2e1   : > { %2724 = vmatprep.mubr.f32.mxu0 %v20387_v12 }
 0x2e2   : > { %v2379_v35 = vsel %vm2322_vm6, %v2376_v4, %v2378_v14  ;;  %v14221_v4 = vld [vmem:[%s13107_s19 + $0x120] sm:$0xff] }
 0x2e4   : > { %10886 = vmatmul.mubr.msk.f32.gmra.mrb[36].mxu0 %vm521_vm4, %v2361_v42  ;;  %v14172_v42 = vld [vmem:[%s13107_s19 + $0xe8] sm:$0xff] }
 0x2e5   : > { %2730 = vmatprep.mubr.f32.mxu0 %v20387_v12  ;;  %v2380_v39 = vrot.slane %v14172_v42, 3 }
 0x2e8   : > { %10887 = vmatmul.mubr.msk.f32.gmra.mrb[38].mxu0 %vm521_vm4, %v2363_v53  ;;  %v2381_v53 = vsel %vm2322_vm6, %v2378_v14, %v2380_v39 }
 0x2e9   : > { %2736 = vmatprep.mubr.f32.mxu0 %v20387_v12 }
 0x2ec   : > { %10888 = vmatmul.mubr.msk.f32.gmra.mrb[40].mxu0 %vm521_vm4, %v2365_v28  ;;  %v2382_v28 = vrot.slane %v14179_v15, 3 }
 0x2ed   : > { %2742 = vmatprep.mubr.f32.mxu0 %v20387_v12 }
 0x2ee   : > { %v2383_v16 = vsel %vm2322_vm6, %v2380_v39, %v2382_v28 }
 0x2f0   : > { %10889 = vmatmul.mubr.msk.f32.gmra.mrb[42].mxu0 %vm521_vm4, %v2367_v18  ;;  %v14186_v18 = vld [vmem:[%s13107_s19 + $0xf8] sm:$0xff] }
 0x2f1   : > { %2748 = vmatprep.mubr.f32.mxu0 %v20387_v12  ;;  %v2384_v26 = vrot.slane %v14186_v18, 3 }
 0x2f4   : > { %10890 = vmatmul.mubr.msk.f32.gmra.mrb[44].mxu0 %vm521_vm4, %v2369_v49  ;;  %v2385_v49 = vsel %vm2322_vm6, %v2382_v28, %v2384_v26  ;;  %v14235_v28 = vld [vmem:[%s13107_s19 + $0x130] sm:$0xff] }
 0x2f5   : > { %2754 = vmatprep.mubr.f32.mxu0 %v20387_v12 }
 0x2f8   : > { %10891 = vmatmul.mubr.msk.f32.gmra.mrb[46].mxu0 %vm521_vm4, %v2371_v20  ;;  %v2386_v20 = vrot.slane %v14193_v46, 3 }
 0x2f9   : > { %2760 = vmatprep.mubr.f32.mxu0 %v20387_v12 }
 0x2fa   : > { %v2387_v50 = vsel %vm2322_vm6, %v2384_v26, %v2386_v20  ;;  %v2389_v48 = vsel %vm2322_vm6, %v2386_v20, %v2388_v58  ;;  %v14249_v58 = vld [vmem:[%s13107_s19 + $0x140] sm:$0xff] }
 0x2fc   : > { %10892 = vmatmul.mubr.msk.f32.gmra.mrb[48].mxu0 %vm521_vm4, %v2373_v52  ;;  %v14214_v52 = vld [vmem:[%s13107_s19 + $0x118] sm:$0xff] }
 0x2fd   : > { %2766 = vmatprep.mubr.f32.mxu0 %v20387_v12  ;;  %v2392_v60 = vrot.slane %v14214_v52, 3 }
 0x300   : > { %10893 = vmatmul.mubr.msk.f32.gmra.mrb[50].mxu0 %vm521_vm4, %v2375_v1  ;;  %v2393_v1 = vsel %vm2322_vm6, %v2390_v62, %v2392_v60 }
 0x301   : > { %2772 = vmatprep.mubr.f32.mxu0 %v20387_v12 }
 0x304   : > { %10894 = vmatmul.mubr.msk.f32.gmra.mrb[52].mxu0 %vm521_vm4, %v2377_v22  ;;  %v2394_v22 = vrot.slane %v14221_v4, 3 }
 0x305   : > { %2778 = vmatprep.mubr.f32.mxu0 %v20387_v12 }
 0x306   : > { %v2395_v14 = vsel %vm2322_vm6, %v2392_v60, %v2394_v22 }
 0x308   : > { %10895 = vmatmul.mubr.msk.f32.gmra.mrb[54].mxu0 %vm521_vm4, %v2379_v35  ;;  %v14228_v35 = vld [vmem:[%s13107_s19 + $0x128] sm:$0xff] }
 0x309   : > { %2784 = vmatprep.mubr.f32.mxu0 %v20387_v12  ;;  %v2396_v39 = vrot.slane %v14228_v35, 3 }
 0x30c   : > { %10896 = vmatmul.mubr.msk.f32.gmra.mrb[56].mxu0 %vm521_vm4, %v2381_v53  ;;  %v2397_v53 = vsel %vm2322_vm6, %v2394_v22, %v2396_v39  ;;  %v14263_v22 = vld [vmem:[%s13107_s19 + $0x150] sm:$0xff] }
 0x30d   : > { %2790 = vmatprep.mubr.f32.mxu0 %v20387_v12 }
 0x310   : > { %10897 = vmatmul.mubr.msk.f32.gmra.mrb[58].mxu0 %vm521_vm4, %v2383_v16  ;;  %v2398_v16 = vrot.slane %v14235_v28, 3 }
 0x311   : > { %2796 = vmatprep.mubr.f32.mxu0 %v20387_v12 }
 0x312   : > { %v2399_v26 = vsel %vm2322_vm6, %v2396_v39, %v2398_v16 }
 0x314   : > { %10898 = vmatmul.mubr.msk.f32.gmra.mrb[60].mxu0 %vm521_vm4, %v2385_v49  ;;  %v14242_v49 = vld [vmem:[%s13107_s19 + $0x138] sm:$0xff] }
 0x315   : > { %2802 = vmatprep.mubr.f32.mxu0 %v20387_v12  ;;  %v2400_v20 = vrot.slane %v14242_v49, 3 }
 0x318   : > { %10899 = vmatmul.mubr.msk.f32.gmra.mrb[62].mxu0 %vm521_vm4, %v2387_v50  ;;  %v2401_v50 = vsel %vm2322_vm6, %v2398_v16, %v2400_v20 }
 0x319   : > { %2808 = vmatprep.mubr.f32.mxu0 %v20387_v12 }
 0x31c   : > { %10900 = vmatmul.mubr.msk.f32.gmra.mrb[64].mxu0 %vm521_vm4, %v2389_v48  ;;  %v2402_v48 = vrot.slane %v14249_v58, 3 }
 0x31d   : > { %2814 = vmatprep.mubr.f32.mxu0 %v20387_v12 }
 0x31e   : > { %v2403_v62 = vsel %vm2322_vm6, %v2400_v20, %v2402_v48  ;;  %v14277_v20 = vld [vmem:[%s13107_s19 + $0x160] sm:$0xff] }
 0x320   : > { %10901 = vmatmul.mubr.msk.f32.gmra.mrb[66].mxu0 %vm521_vm4, %v2391_v54  ;;  %v14256_v54 = vld [vmem:[%s13107_s19 + $0x148] sm:$0xff] }
 0x321   : > { %2820 = vmatprep.mubr.f32.mxu0 %v20387_v12  ;;  %v2404_v60 = vrot.slane %v14256_v54, 3 }
 0x324   : > { %10902 = vmatmul.mubr.msk.f32.gmra.mrb[68].mxu0 %vm521_vm4, %v2393_v1  ;;  %v2405_v1 = vsel %vm2322_vm6, %v2402_v48, %v2404_v60 }
 0x325   : > { %2826 = vmatprep.mubr.f32.mxu0 %v20387_v12 }
 0x328   : > { %10903 = vmatmul.mubr.msk.f32.gmra.mrb[70].mxu0 %vm521_vm4, %v2395_v14  ;;  %v2406_v14 = vrot.slane %v14263_v22, 3 }
 0x329   : > { %2832 = vmatprep.mubr.f32.mxu0 %v20387_v12 }
 0x32a   : > { %v2407_v39 = vsel %vm2322_vm6, %v2404_v60, %v2406_v14 }
 0x32c   : > { %10904 = vmatmul.mubr.msk.f32.gmra.mrb[72].mxu0 %vm521_vm4, %v2397_v53  ;;  %v14270_v53 = vld [vmem:[%s13107_s19 + $0x158] sm:$0xff] }
 0x32d   : > { %2838 = vmatprep.mubr.f32.mxu0 %v20387_v12  ;;  %v2408_v16 = vrot.slane %v14270_v53, 3 }
 0x330   : > { %10905 = vmatmul.mubr.msk.f32.gmra.mrb[74].mxu0 %vm521_vm4, %v2399_v26  ;;  %v2409_v26 = vsel %vm2322_vm6, %v2406_v14, %v2408_v16  ;;  %v14291_v14 = vld [vmem:[%s13107_s19 + $0x170] sm:$0xff] }
 0x331   : > { %2844 = vmatprep.mubr.f32.mxu0 %v20387_v12 }
 0x334   : > { %10906 = vmatmul.mubr.msk.f32.gmra.mrb[76].mxu0 %vm521_vm4, %v2401_v50  ;;  %v2410_v50 = vrot.slane %v14277_v20, 3 }
 0x335   : > { %2850 = vmatprep.mubr.f32.mxu0 %v20387_v12 }
 0x336   : > { %v2411_v48 = vsel %vm2322_vm6, %v2408_v16, %v2410_v50 }
 0x338   : > { %10907 = vmatmul.mubr.msk.f32.gmra.mrb[78].mxu0 %vm521_vm4, %v2403_v62  ;;  %v14284_v62 = vld [vmem:[%s13107_s19 + $0x168] sm:$0xff] }
 0x339   : > { %2856 = vmatprep.mubr.f32.mxu0 %v20387_v12  ;;  %20807 = vst [vmem:[#allocation5_spill] sm:$0xff] %v14284_v62  ;;  %v2412_v60 = vrot.slane %v14284_v62, 3 }
 0x33c   : > { %10908 = vmatmul.mubr.msk.f32.gmra.mrb[80].mxu0 %vm521_vm4, %v2405_v1  ;;  %v2413_v1 = vsel %vm2322_vm6, %v2410_v50, %v2412_v60 }
 0x33d   : > { %2862 = vmatprep.mubr.f32.mxu0 %v20387_v12 }
 0x340   : > { %10909 = vmatmul.mubr.msk.f32.gmra.mrb[82].mxu0 %vm521_vm4, %v2407_v39  ;;  %v2414_v39 = vrot.slane %v14291_v14, 3 }
 0x341   : > { %2868 = vmatprep.mubr.f32.mxu0 %v20387_v12 }
 0x342   : > { %v2415_v16 = vsel %vm2322_vm6, %v2412_v60, %v2414_v39  ;;  %v2420_v60 = vrot.slane %v13653_v13, 3 }
 0x344   : > { %10910 = vmatmul.mubr.msk.f32.gmra.mrb[84].mxu0 %vm521_vm4, %v2409_v26  ;;  %v14298_v26 = vld [vmem:[%s13107_s19 + $0x178] sm:$0xff] }
 0x345   : > { %2874 = vmatprep.mubr.f32.mxu0 %v20387_v12  ;;  %20808 = vst [vmem:[#allocation6_spill] sm:$0xff] %v14298_v26  ;;  %v2416_v62 = vrot.slane %v14298_v26, 3  ;;  %v2422_v26 = vrot.slane %v13659_v21, 3 }
 0x347   : > { %v2417_v50 = vsel %vm2322_vm6, %v2414_v39, %v2416_v62  ;;  %v2424_v39 = vrot.slane %v13665_v25, 3 }
 0x348   : > { %10911 = vmatmul.mubr.msk.f32.gmra.mrb[86].mxu0 %vm521_vm4, %v2411_v48  ;;  %v2418_v48 = vrot.slane %v13647_v11, 3  ;;  %v2423_v11 = vsel %vm2322_vm6, %v2420_v60, %v2422_v26 }
 0x349   : > { %2880 = vmatprep.mubr.f32.mxu0 %v20387_v12  ;;  %v2425_v13 = vsel %vm2322_vm6, %v2422_v26, %v2424_v39  ;;  %v2432_v26 = vrot.slane %v13689_v43, 3 }
 0x34c   : > { %10912 = vmatmul.mubr.msk.f32.gmra.mrb[88].mxu0 %vm521_vm4, %v2413_v1  ;;  %v2419_v1 = vsel %vm2322_vm6, %v2416_v62, %v2418_v48  ;;  %v2426_v62 = vrot.slane %v13671_v31, 3 }
 0x34d   : > { %2886 = vmatprep.mubr.f32.mxu0 %v20387_v12 }
 0x34e   : > { %v2427_v21 = vsel %vm2322_vm6, %v2424_v39, %v2426_v62  ;;  %v3083_v39 = vrot.slane %v13976_v29, 4 }
 0x350   : > { %10913 = vmatmul.mubr.msk.f32.gmra.mrb[90].mxu0 %vm521_vm4, %v2415_v16  ;;  %v2421_v16 = vsel %vm2322_vm6, %v2418_v48, %v2420_v60  ;;  %v2430_v48 = vrot.slane %v13683_v40, 3  ;;  %v3074_v40 = vrot.slane %v13944_v56, 4  ;;  %v3077_v60 = vrot.slane %v13955_v33, 4 }
 0x351   : > { %2892 = vmatprep.mubr.f32.mxu0 %v20387_v12 }
 0x354   : > { %10914 = vmatmul.mubr.msk.f32.gmra.mrb[92].mxu0 %vm521_vm4, %v2417_v50  ;;  %v2428_v50 = vrot.slane %v13677_v34, 3  ;;  %v2433_v34 = vsel %vm2322_vm6, %v2430_v48, %v2432_v26 }
 0x355   : > { %2898 = vmatprep.mubr.f32.mxu0 %v20387_v12 }
 0x356   : > { %v2429_v25 = vsel %vm2322_vm6, %v2426_v62, %v2428_v50  ;;  %v2431_v31 = vsel %vm2322_vm6, %v2428_v50, %v2430_v48  ;;  %v3087_v62 = vrot.slane %v13990_v47, 4  ;;  %v3091_v50 = vrot.slane %v14004_v3, 4 }
 0x357   : > { %v3095_v48 = vrot.slane %v14030_v55, 4 }
 0x358   : > { %10915 = vmatmul.mubr.msk.f32.gmra.mrb[94].mxu0 %vm521_vm4, %v2419_v1  ;;  %v3075_v1 = vrot.slane %v13948_v61, 4  ;;  %v3081_v61 = vrot.slane %v13969_v2, 4 }
 0x359   : > { %2904 = vmatprep.mubr.f32.mxu0 %v20387_v12 }
 0x35a   : > { %v3076_v43 = vsel %vm634_vm0, %v3074_v40, %v3075_v1  ;;  %v3103_v40 = vrot.slane %v14058_v30, 4 }
 0x35c   : > { %10916 = vmatmul.mubr.msk.f32.gmra.mrb[96].mxu0 %vm521_vm4, %v2421_v16  ;;  %v3078_v16 = vsel %vm634_vm0, %v3075_v1, %v3077_v60  ;;  %v3105_v1 = vrot.slane %v14065_v6, 4 }
 0x35d   : > { %2910 = vmatprep.mubr.f32.mxu0 %v20387_v12 }
 0x360   : > { %10917 = vmatmul.mubr.msk.f32.gmra.mrb[98].mxu0 %vm521_vm4, %v2423_v11  ;;  %v3079_v11 = vrot.slane %v13962_v10, 4  ;;  %v3084_v10 = vsel %vm634_vm0, %v3081_v61, %v3083_v39 }
 0x361   : > { %2916 = vmatprep.mubr.f32.mxu0 %v20387_v12 }
 0x362   : > { %v3080_v56 = vsel %vm634_vm0, %v3077_v60, %v3079_v11  ;;  %v3082_v33 = vsel %vm634_vm0, %v3079_v11, %v3081_v61  ;;  %v14405_v60 = vld [vmem:[%s13107_s19 + $0x180] sm:$0xff] }
 0x363   : > { %v505_v30 = vrot.slane %v14405_v60, 1 }
 0x364   : > { %10918 = vmatmul.mubr.msk.f32.gmra.mrb[100].mxu0 %vm521_vm4, %v2425_v13  ;;  %v3085_v13 = vrot.slane %v13983_v36, 4 }
 0x365   : > { %2922 = vmatprep.mubr.f32.mxu0 %v20387_v12 }
 0x366   : > { %v3086_v2 = vsel %vm634_vm0, %v3083_v39, %v3085_v13  ;;  %v3088_v29 = vsel %vm634_vm0, %v3085_v13, %v3087_v62  ;;  %v3111_v39 = vrot.slane %v14086_v7, 4  ;;  %v14440_v7 = vld [vmem:[%s13107_s19 + $0x198] sm:$0xff] }
 0x368   : > { %10919 = vmatmul.mubr.msk.f32.gmra.mrb[102].mxu0 %vm521_vm4, %v2427_v21  ;;  %v3089_v21 = vrot.slane %v13997_v23, 4 }
 0x369   : > { %2928 = vmatprep.mubr.f32.mxu0 %v20387_v12 }
 0x36a   : > { %v3090_v36 = vsel %vm634_vm0, %v3087_v62, %v3089_v21  ;;  %v3092_v47 = vsel %vm634_vm0, %v3089_v21, %v3091_v50  ;;  %v3113_v62 = vrot.slane %v14093_v19, 4  ;;  %v14451_v19 = vld [vmem:[%s13107_s19 + $0x1a0] sm:$0xff] }
 0x36c   : > { %10920 = vmatmul.mubr.msk.f32.gmra.mrb[104].mxu0 %vm521_vm4, %v2429_v25  ;;  %v3093_v25 = vrot.slane %v14023_v38, 4 }
 0x36d   : > { %2934 = vmatprep.mubr.f32.mxu0 %v20387_v12 }
 0x36e   : > { %v3094_v23 = vsel %vm634_vm0, %v3091_v50, %v3093_v25  ;;  %v3096_v3 = vsel %vm634_vm0, %v3093_v25, %v3095_v48  ;;  %v3115_v50 = vrot.slane %v14100_v59, 4  ;;  %v14462_v59 = vld [vmem:[%s13107_s19 + $0x1a8] sm:$0xff] }
 0x370   : > { %10921 = vmatmul.mubr.msk.f32.gmra.mrb[106].mxu0 %vm521_vm4, %v2431_v31  ;;  %v3097_v31 = vrot.slane %v14037_v24, 4 }
 0x371   : > { %2940 = vmatprep.mubr.f32.mxu0 %v20387_v12 }
 0x372   : > { %v3098_v38 = vsel %vm634_vm0, %v3095_v48, %v3097_v31  ;;  %v3117_v48 = vrot.slane %v14107_v8, 4  ;;  %v14473_v8 = vld [vmem:[%s13107_s19 + $0x1b0] sm:$0xff] }
 0x374   : > { %10922 = vmatmul.mubr.msk.f32.gmra.mrb[108].mxu0 %vm521_vm4, %v2433_v34  ;;  %v3101_v34 = vrot.slane %v14051_v51, 4  ;;  %v3106_v51 = vsel %vm634_vm0, %v3103_v40, %v3105_v1 }
 0x375   : > { %2946 = vmatprep.mubr.f32.mxu0 %v20387_v12 }
 0x378   : > { %10923 = vmatmul.mubr.msk.f32.gmra.mrb[110].mxu0 %vm521_vm4, %v2432_v26  ;;  %v3099_v26 = vrot.slane %v14044_v44, 4  ;;  %v3104_v44 = vsel %vm634_vm0, %v3101_v34, %v3103_v40  ;;  %v3121_v40 = vrot.slane %v14121_v37, 4 }
 0x379   : > { %3367 = vmatprep.mubr.f32.mxu0 %v20387_v12 }
 0x37a   : > { %v3100_v55 = vsel %vm634_vm0, %v3097_v31, %v3099_v26  ;;  %v3102_v24 = vsel %vm634_vm0, %v3099_v26, %v3101_v34  ;;  %v3119_v26 = vrot.slane %v14114_v32, 4  ;;  %v14484_v32 = vld [vmem:[%s13107_s19 + $0x1b8] sm:$0xff] }
 0x37c   : > { %10934 = vmatmul.mubr.msk.f32.vlgmr.msra.gmra.mrb[0].mxu0 %vm521_vm4, %v3076_v43  ;;  %v3107_v43 = vrot.slane %v14072_v5, 4  ;;  %v14418_v5 = vld [vmem:[%s13107_s19 + $0x188] sm:$0xff] }
 0x37d   : > { %3373 = vmatprep.mubr.f32.mxu0 %v20387_v12  ;;  %v507_v61 = vrot.slane %v14418_v5, 1 }
 0x37e   : > { %v3108_v6 = vsel %vm634_vm0, %v3105_v1, %v3107_v43 }
 0x380   : > { %10935 = vmatmul.mubr.msk.f32.gmra.mrb[2].mxu0 %vm521_vm4, %v3078_v16  ;;  %v20809_v16 = vrot.slane %v13461_v0, 1  ;;  %v508_v0 = vsel %vm409_vm3, %v505_v30, %v507_v61 }
 0x381   : > { %3379 = vmatprep.mubr.f32.mxu0 %v20387_v12 }
 0x382   : > { %v506_v11 = vsel %vm409_vm3, %v20809_v16, %v505_v30  ;;  %v3125_v30 = vrot.slane %v14149_v57, 4 }
 0x383   : > { %10725 = vmatmul.mubr.msk.f32.vlgmr.msra.gmra.mrb[0].mxu1 %vm521_vm4, %v506_v11 }
 0x384   : > { %10936 = vmatmul.mubr.msk.f32.gmra.mrb[4].mxu0 %vm521_vm4, %v3080_v56  ;;  %v3109_v56 = vrot.slane %v14079_v17, 4  ;;  %993 = vmatprep.mubr.f32.mxu1 %v20387_v12  ;;  %v14429_v17 = vld [vmem:[%s13107_s19 + $0x190] sm:$0xff] }
 0x385   : > { %3385 = vmatprep.mubr.f32.mxu0 %v20387_v12 }
 0x387   : > { %10726 = vmatmul.mubr.msk.f32.gmra.mrb[2].mxu1 %vm521_vm4, %v508_v0  ;;  %v3135_v0 = vrot.slane %v14186_v18, 4 }
 0x388   : > { %10937 = vmatmul.mubr.msk.f32.gmra.mrb[6].mxu0 %vm521_vm4, %v3082_v33  ;;  %v3110_v33 = vsel %vm634_vm0, %v3107_v43, %v3109_v56  ;;  %999 = vmatprep.mubr.f32.mxu1 %v20387_v12  ;;  %v3123_v43 = vrot.slane %v14128_v41, 4  ;;  %v3127_v41 = vrot.slane %v14158_v63, 4 }
 0x389   : > { %3391 = vmatprep.mubr.f32.mxu0 %v20387_v12 }
 0x38a   : > { %v3124_v37 = vsel %vm634_vm0, %v3121_v40, %v3123_v43  ;;  %v3126_v16 = vsel %vm634_vm0, %v3123_v43, %v3125_v30  ;;  %v3128_v11 = vsel %vm634_vm0, %v3125_v30, %v3127_v41  ;;  %v20389_v43 = vmov 0.0|0.0  }
 0x38b   : > { %11677 = vmatprep.subr.bf16.mxu1 %v20389_v43  ;;  %v3175_v30 = vrot.slane %v14440_v7, 4 }
 0x38c   : > { %10938 = vmatmul.mubr.msk.f32.gmra.mrb[8].mxu0 %vm521_vm4, %v3084_v10  ;;  %v509_v10 = vrot.slane %v14429_v17, 1 }
 0x38d   : > { %3397 = vmatprep.mubr.f32.mxu0 %v20387_v12 }
 0x38e   : > { %v510_v13 = vsel %vm409_vm3, %v507_v61, %v509_v10  ;;  %v3133_v61 = vrot.slane %v14179_v15, 4 }
 0x38f   : > { %10727 = vmatmul.mubr.msk.f32.gmra.mrb[4].mxu1 %vm521_vm4, %v510_v13  ;;  %v3143_v13 = vrot.slane %v14214_v52, 4 }
 0x390   : > { %10939 = vmatmul.mubr.msk.f32.gmra.mrb[10].mxu0 %vm521_vm4, %v3086_v2  ;;  %v3112_v2 = vsel %vm634_vm0, %v3109_v56, %v3111_v39  ;;  %1005 = vmatprep.mubr.f32.mxu1 %v20387_v12  ;;  %v3131_v56 = vrot.slane %v14172_v42, 4  ;;  %v3136_v42 = vsel %vm634_vm0, %v3133_v61, %v3135_v0 }
 0x391   : > { %3403 = vmatprep.mubr.f32.mxu0 %v20387_v12 }
 0x394   : > { %10940 = vmatmul.mubr.msk.f32.gmra.mrb[12].mxu0 %vm521_vm4, %v3088_v29  ;;  %v511_v29 = vrot.slane %v14440_v7, 1  ;;  %v3177_v7 = vrot.slane %v14451_v19, 4 }
 0x395   : > { %3409 = vmatprep.mubr.f32.mxu0 %v20387_v12 }
 0x396   : > { %v512_v21 = vsel %vm409_vm3, %v509_v10, %v511_v29  ;;  %v3141_v10 = vrot.slane %v14207_v27, 4 }
 0x397   : > { %10728 = vmatmul.mubr.msk.f32.gmra.mrb[6].mxu1 %vm521_vm4, %v512_v21  ;;  %v3151_v21 = vrot.slane %v14242_v49, 4 }
 0x398   : > { %10941 = vmatmul.mubr.msk.f32.gmra.mrb[14].mxu0 %vm521_vm4, %v3090_v36  ;;  %v3114_v36 = vsel %vm634_vm0, %v3111_v39, %v3113_v62  ;;  %1011 = vmatprep.mubr.f32.mxu1 %v20387_v12  ;;  %v3139_v39 = vrot.slane %v14200_v45, 4  ;;  %v3144_v45 = vsel %vm634_vm0, %v3141_v10, %v3143_v13 }
 0x399   : > { %3415 = vmatprep.mubr.f32.mxu0 %v20387_v12 }
 0x39c   : > { %10942 = vmatmul.mubr.msk.f32.gmra.mrb[16].mxu0 %vm521_vm4, %v3092_v47  ;;  %v513_v47 = vrot.slane %v14451_v19, 1  ;;  %v3179_v19 = vrot.slane %v14462_v59, 4 }
 0x39d   : > { %3421 = vmatprep.mubr.f32.mxu0 %v20387_v12 }
 0x39e   : > { %v514_v25 = vsel %vm409_vm3, %v511_v29, %v513_v47  ;;  %v3149_v29 = vrot.slane %v14235_v28, 4 }
 0x39f   : > { %10729 = vmatmul.mubr.msk.f32.gmra.mrb[8].mxu1 %vm521_vm4, %v514_v25  ;;  %v3159_v25 = vrot.slane %v14270_v53, 4 }
 0x3a0   : > { %10943 = vmatmul.mubr.msk.f32.gmra.mrb[18].mxu0 %vm521_vm4, %v3094_v23  ;;  %v3116_v23 = vsel %vm634_vm0, %v3113_v62, %v3115_v50  ;;  %1017 = vmatprep.mubr.f32.mxu1 %v20387_v12  ;;  %v3147_v62 = vrot.slane %v14228_v35, 4  ;;  %v3152_v35 = vsel %vm634_vm0, %v3149_v29, %v3151_v21 }
 0x3a1   : > { %3427 = vmatprep.mubr.f32.mxu0 %v20387_v12 }
 0x3a4   : > { %10944 = vmatmul.mubr.msk.f32.gmra.mrb[20].mxu0 %vm521_vm4, %v3096_v3  ;;  %v515_v3 = vrot.slane %v14462_v59, 1  ;;  %v3816_v59 = vld [vmem:[%s20378_s2] sm:$0x3] }
 0x3a5   : > { %3433 = vmatprep.mubr.f32.mxu0 %v20387_v12 }
 0x3a6   : > { %v516_v31 = vsel %vm409_vm3, %v513_v47, %v515_v3  ;;  %v3157_v47 = vrot.slane %v14263_v22, 4 }
 0x3a7   : > { %10730 = vmatmul.mubr.msk.f32.gmra.mrb[10].mxu1 %vm521_vm4, %v516_v31  ;;  %v3165_v31 = vrot.slane %v14291_v14, 4 }
 0x3a8   : > { %10945 = vmatmul.mubr.msk.f32.gmra.mrb[22].mxu0 %vm521_vm4, %v3098_v38  ;;  %v3118_v38 = vsel %vm634_vm0, %v3115_v50, %v3117_v48  ;;  %1023 = vmatprep.mubr.f32.mxu1 %v20387_v12  ;;  %v3155_v50 = vrot.slane %v14256_v54, 4  ;;  %v3160_v54 = vsel %vm634_vm0, %v3157_v47, %v3159_v25 }
 0x3a9   : > { %3439 = vmatprep.mubr.f32.mxu0 %v20387_v12 }
 0x3ac   : > { %10946 = vmatmul.mubr.msk.f32.gmra.mrb[24].mxu0 %vm521_vm4, %v3100_v55  ;;  %v517_v55 = vrot.slane %v14473_v8, 1 }
 0x3ad   : > { %3445 = vmatprep.mubr.f32.mxu0 %v20387_v12 }
 0x3ae   : > { %v518_v34 = vsel %vm409_vm3, %v515_v3, %v517_v55 }
 0x3af   : > { %10731 = vmatmul.mubr.msk.f32.gmra.mrb[12].mxu1 %vm521_vm4, %v518_v34  ;;  %v3169_v34 = vrot.slane %v14405_v60, 4 }
 0x3b0   : > { %10947 = vmatmul.mubr.msk.f32.gmra.mrb[26].mxu0 %vm521_vm4, %v3102_v24  ;;  %v3120_v24 = vsel %vm634_vm0, %v3117_v48, %v3119_v26  ;;  %1029 = vmatprep.mubr.f32.mxu1 %v20387_v12  ;;  %v20810_v48 = vld [vmem:[#allocation5_spill] sm:$0xff] }
 0x3b1   : > { %3451 = vmatprep.mubr.f32.mxu0 %v20387_v12  ;;  %v3163_v3 = vrot.slane %v20810_v48, 4 }
 0x3b4   : > { %10948 = vmatmul.mubr.msk.f32.gmra.mrb[28].mxu0 %vm521_vm4, %v3104_v44  ;;  %v519_v44 = vrot.slane %v14484_v32, 1 }
 0x3b5   : > { %3457 = vmatprep.mubr.f32.mxu0 %v20387_v12 }
 0x3b6   : > { %v520_v1 = vsel %vm409_vm3, %v517_v55, %v519_v44 }
 0x3b7   : > { %10732 = vmatmul.mubr.msk.f32.gmra.mrb[14].mxu1 %vm521_vm4, %v520_v1  ;;  %v3173_v1 = vrot.slane %v14429_v17, 4 }
 0x3b8   : > { %10949 = vmatmul.mubr.msk.f32.gmra.mrb[30].mxu0 %vm521_vm4, %v3106_v51  ;;  %v3122_v51 = vsel %vm634_vm0, %v3119_v26, %v3121_v40  ;;  %1035 = vmatprep.mubr.f32.mxu1 %v20387_v12  ;;  %v10990_v40 = vld [vmem:[%s20379_s3 + $0x90] sm:$0xff] }
 0x3b9   : > { %3463 = vmatprep.mubr.f32.mxu0 %v20387_v12 }
 0x3bb   : > { %10733 = vmatmul.mubr.msk.f32.gmra.mrb[16].mxu1 %vm521_vm4, %v519_v44  ;;  %v10991_v44 = vld [vmem:[%s20379_s3 + $0x98] sm:$0xff] }
 0x3bc   : > { %10950 = vmatmul.mubr.msk.f32.gmra.mrb[32].mxu0 %vm521_vm4, %v3108_v6  ;;  %v3129_v6 = vrot.slane %v14165_v9, 4  ;;  %v3134_v9 = vsel %vm634_vm0, %v3131_v56, %v3133_v61  ;;  %v10996_v61 = vld [vmem:[%s20379_s3 + $0xc0] sm:$0xff] }
 0x3bd   : > { %3469 = vmatprep.mubr.f32.mxu0 %v20387_v12 }
 0x3be   : > { %v3130_v57 = vsel %vm634_vm0, %v3127_v41, %v3129_v6  ;;  %v3132_v63 = vsel %vm634_vm0, %v3129_v6, %v3131_v56  ;;  %v3818_v41 = vlaneseq  ;;  %v10995_v6 = vld [vmem:[%s20379_s3 + $0xb8] sm:$0xff] }
 0x3c0   : > { %10951 = vmatmul.mubr.msk.f32.gmra.mrb[34].mxu0 %vm521_vm4, %v3110_v33  ;;  %v3137_v33 = vrot.slane %v14193_v46, 4  ;;  %v3142_v46 = vsel %vm634_vm0, %v3139_v39, %v3141_v10 }
 0x3c1   : > { %3475 = vmatprep.mubr.f32.mxu0 %v20387_v12 }
 0x3c2   : > { %v3138_v15 = vsel %vm634_vm0, %v3135_v0, %v3137_v33  ;;  %v3140_v18 = vsel %vm634_vm0, %v3137_v33, %v3139_v39  ;;  %v3178_v0 = vsel %vm634_vm0, %v3175_v30, %v3177_v7  ;;  %v10999_v39 = vld [vmem:[%s20379_s3 + $0xd8] sm:$0xff] }
 0x3c4   : > { %10952 = vmatmul.mubr.msk.f32.gmra.mrb[36].mxu0 %vm521_vm4, %v3112_v2  ;;  %v3145_v2 = vrot.slane %v14221_v4, 4  ;;  %v3150_v4 = vsel %vm634_vm0, %v3147_v62, %v3149_v29 }
 0x3c5   : > { %3481 = vmatprep.mubr.f32.mxu0 %v20387_v12 }
 0x3c6   : > { %v3146_v27 = vsel %vm634_vm0, %v3143_v13, %v3145_v2  ;;  %v3148_v52 = vsel %vm634_vm0, %v3145_v2, %v3147_v62  ;;  %v11000_v2 = vld [vmem:[%s20379_s3 + $0xe0] sm:$0xff] }
 0x3c8   : > { %10953 = vmatmul.mubr.msk.f32.gmra.mrb[38].mxu0 %vm521_vm4, %v3114_v36  ;;  %v3153_v36 = vrot.slane %v14249_v58, 4  ;;  %v3158_v58 = vsel %vm634_vm0, %v3155_v50, %v3157_v47 }
 0x3c9   : > { %3487 = vmatprep.mubr.f32.mxu0 %v20387_v12 }
 0x3ca   : > { %v3154_v28 = vsel %vm634_vm0, %v3151_v21, %v3153_v36  ;;  %v3156_v49 = vsel %vm634_vm0, %v3153_v36, %v3155_v50  ;;  %v11002_v36 = vld [vmem:[%s20379_s3 + $0xf0] sm:$0xff] }
 0x3cc   : > { %10954 = vmatmul.mubr.msk.f32.gmra.mrb[40].mxu0 %vm521_vm4, %v3116_v23  ;;  %v3161_v23 = vrot.slane %v14277_v20, 4  ;;  %v3166_v20 = vsel %vm634_vm0, %v3163_v3, %v3165_v31 }
 0x3cd   : > { %3493 = vmatprep.mubr.f32.mxu0 %v20387_v12 }
 0x3ce   : > { %v3162_v22 = vsel %vm634_vm0, %v3159_v25, %v3161_v23  ;;  %v3164_v53 = vsel %vm634_vm0, %v3161_v23, %v3163_v3  ;;  %v11004_v23 = vld [vmem:[%s20379_s3 + $0x100] sm:$0xff] }
 0x3d0   : > { %10955 = vmatmul.mubr.msk.f32.gmra.mrb[42].mxu0 %vm521_vm4, %v3118_v38  ;;  %v20811_v38 = vld [vmem:[#allocation6_spill] sm:$0xff] }
 0x3d1   : > { %3499 = vmatprep.mubr.f32.mxu0 %v20387_v12  ;;  %v3167_v26 = vrot.slane %v20811_v38, 4 }
 0x3d3   : > { %v3168_v55 = vsel %vm634_vm0, %v3165_v31, %v3167_v26  ;;  %v3170_v14 = vsel %vm634_vm0, %v3167_v26, %v3169_v34 }
 0x3d4   : > { %10956 = vmatmul.mubr.msk.f32.gmra.mrb[44].mxu0 %vm521_vm4, %v3120_v24  ;;  %v3171_v24 = vrot.slane %v14418_v5, 4  ;;  %v10992_v5 = vld [vmem:[%s20379_s3 + $0xa0] sm:$0xff] }
 0x3d5   : > { %3505 = vmatprep.mubr.f32.mxu0 %v20387_v12 }
 0x3d6   : > { %v3172_v60 = vsel %vm634_vm0, %v3169_v34, %v3171_v24  ;;  %v3174_v17 = vsel %vm634_vm0, %v3171_v24, %v3173_v1  ;;  %v20812_v24 = vmov 0 }
 0x3d7   : > { %v20813_v24 = vsel %vm14692_vm7, 4294967295, %v20812_v24 }
 0x3d8   : > { %10957 = vmatmul.mubr.msk.f32.gmra.mrb[46].mxu0 %vm521_vm4, %v3122_v51  ;;  %v11678_v51 = vpack.c.bf16 %v10991_v44, %v10990_v40  ;;  %20814 = vst [vmem:[#allocation5_spill] sm:$0xff] %v20813_v24 }
 0x3d9   : > { %3511 = vmatprep.mubr.f32.mxu0 %v20387_v12 }
 0x3da   : > { %11679 = vmatpush1.bf16.msra.mxu1 %v11678_v51  ;;  %v11007_v51 = vld [vmem:[%s20379_s3 + $0x118] sm:$0x7f] }
 0x3db   : > { %11680 = vmatprep.subr.bf16.mxu1 %v20389_v43 }
 0x3dc   : > { %10958 = vmatmul.mubr.msk.f32.gmra.mrb[48].mxu0 %vm521_vm4, %v3124_v37  ;;  %v10993_v37 = vld [vmem:[%s20379_s3 + $0xa8] sm:$0xff] }
 0x3dd   : > { %3517 = vmatprep.mubr.f32.mxu0 %v20387_v12 }
 0x3e0   : > { %10959 = vmatmul.mubr.msk.f32.gmra.mrb[50].mxu0 %vm521_vm4, %v3126_v16  ;;  %v11681_v16 = vpack.c.bf16 %v10993_v37, %v10992_v5 }
 0x3e1   : > { %3523 = vmatprep.mubr.f32.mxu0 %v20387_v12 }
 0x3e2   : > { %11682 = vmatpush1.bf16.msra.mxu1 %v11681_v16 }
 0x3e3   : > { %11683 = vmatprep.subr.bf16.mxu1 %v20389_v43 }
 0x3e4   : > { %10960 = vmatmul.mubr.msk.f32.gmra.mrb[52].mxu0 %vm521_vm4, %v3128_v11  ;;  %v10994_v11 = vld [vmem:[%s20379_s3 + $0xb0] sm:$0xff] }
 0x3e5   : > { %3529 = vmatprep.mubr.f32.mxu0 %v20387_v12  ;;  %v11684_v56 = vpack.c.bf16 %v10995_v6, %v10994_v11 }
 0x3e7   : > { %11685 = vmatpush1.bf16.msra.mxu1 %v11684_v56 }
 0x3e8   : > { %10961 = vmatmul.mubr.msk.f32.gmra.mrb[54].mxu0 %vm521_vm4, %v3130_v57  ;;  %v3176_v57 = vsel %vm634_vm0, %v3173_v1, %v3175_v30  ;;  %11686 = vmatprep.subr.bf16.mxu1 %v20389_v43  ;;  %v11006_v1 = vld [vmem:[%s20379_s3 + $0x110] sm:$0xff] }
 0x3e9   : > { %3535 = vmatprep.mubr.f32.mxu0 %v20387_v12 }
 0x3ec   : > { %10962 = vmatmul.mubr.msk.f32.gmra.mrb[56].mxu0 %vm521_vm4, %v3132_v63  ;;  %v3819_v63 = vshrl.u32 %v3818_v41, 7 }
 0x3ed   : > { %3541 = vmatprep.mubr.f32.mxu0 %v20387_v12 }
 0x3ee   : > { %v3820_v33 = vsub.s32 0, %v3819_v63  ;;  %v3824_v10 = vsub.s32 1, %v3819_v63 }
 0x3f0   : > { %10963 = vmatmul.mubr.msk.f32.gmra.mrb[58].mxu0 %vm521_vm4, %v3134_v9  ;;  %v10997_v9 = vld [vmem:[%s20379_s3 + $0xc8] sm:$0xff]  ;;  %v14660_v62 = vrot.slane %v3816_v59, %v3824_v10 }
 0x3f1   : > { %3547 = vmatprep.mubr.f32.mxu0 %v20387_v12 }
 0x3f4   : > { %10964 = vmatmul.mubr.msk.f32.gmra.mrb[60].mxu0 %vm521_vm4, %v3136_v42  ;;  %v11687_v42 = vpack.c.bf16 %v10997_v9, %v10996_v61 }
 0x3f5   : > { %3553 = vmatprep.mubr.f32.mxu0 %v20387_v12 }
 0x3f6   : > { %11688 = vmatpush1.bf16.msra.mxu1 %v11687_v42 }
 0x3f7   : > { %11689 = vmatprep.subr.bf16.mxu1 %v20389_v43 }
 0x3f8   : > { %10965 = vmatmul.mubr.msk.f32.gmra.mrb[62].mxu0 %vm521_vm4, %v3138_v15  ;;  %v10998_v15 = vld [vmem:[%s20379_s3 + $0xd0] sm:$0xff] }
 0x3f9   : > { %3559 = vmatprep.mubr.f32.mxu0 %v20387_v12  ;;  %v11690_v13 = vpack.c.bf16 %v10999_v39, %v10998_v15 }
 0x3fb   : > { %11691 = vmatpush1.bf16.msra.mxu1 %v11690_v13 }
 0x3fc   : > { %10966 = vmatmul.mubr.msk.f32.gmra.mrb[64].mxu0 %vm521_vm4, %v3140_v18  ;;  %v3180_v18 = vsel %vm634_vm0, %v3177_v7, %v3179_v19  ;;  %11692 = vmatprep.subr.bf16.mxu1 %v20389_v43 }
 0x3fd   : > { %3565 = vmatprep.mubr.f32.mxu0 %v20387_v12 }
 0x400   : > { %10967 = vmatmul.mubr.msk.f32.gmra.mrb[66].mxu0 %vm521_vm4, %v3142_v46  ;;  %v3181_v46 = vrot.slane %v14473_v8, 4 }
 0x401   : > { %3571 = vmatprep.mubr.f32.mxu0 %v20387_v12 }
 0x402   : > { %v3182_v8 = vsel %vm634_vm0, %v3179_v19, %v3181_v46 }
 0x404   : > { %10968 = vmatmul.mubr.msk.f32.gmra.mrb[68].mxu0 %vm521_vm4, %v3144_v45  ;;  %v14650_v45 = vrot.slane %v3816_v59, %v3820_v33 }
 0x405   : > { %3577 = vmatprep.mubr.f32.mxu0 %v20387_v12 }
 0x408   : > { %10969 = vmatmul.mubr.msk.f32.gmra.mrb[70].mxu0 %vm521_vm4, %v3146_v27  ;;  %v11001_v27 = vld [vmem:[%s20379_s3 + $0xe8] sm:$0xff] }
 0x409   : > { %3583 = vmatprep.mubr.f32.mxu0 %v20387_v12  ;;  %v11693_v29 = vpack.c.bf16 %v11001_v27, %v11000_v2 }
 0x40b   : > { %11694 = vmatpush1.bf16.msra.mxu1 %v11693_v29 }
 0x40c   : > { %10970 = vmatmul.mubr.msk.f32.gmra.mrb[72].mxu0 %vm521_vm4, %v3148_v52  ;;  %v3183_v52 = vrot.slane %v14484_v32, 4  ;;  %11695 = vmatprep.subr.bf16.mxu1 %v20389_v43 }
 0x40d   : > { %3589 = vmatprep.mubr.f32.mxu0 %v20387_v12 }
 0x40e   : > { %v3184_v50 = vsel %vm634_vm0, %v3181_v46, %v3183_v52 }
 0x410   : > { %10971 = vmatmul.mubr.msk.f32.gmra.mrb[74].mxu0 %vm521_vm4, %v3150_v4 }
 0x411   : > { %3595 = vmatprep.mubr.f32.mxu0 %v20387_v12 }
 0x414   : > { %10972 = vmatmul.mubr.msk.f32.gmra.mrb[76].mxu0 %vm521_vm4, %v3152_v35 }
 0x415   : > { %3601 = vmatprep.mubr.f32.mxu0 %v20387_v12 }
 0x418   : > { %10973 = vmatmul.mubr.msk.f32.gmra.mrb[78].mxu0 %vm521_vm4, %v3154_v28  ;;  %v11003_v28 = vld [vmem:[%s20379_s3 + $0xf8] sm:$0xff] }
 0x419   : > { %3607 = vmatprep.mubr.f32.mxu0 %v20387_v12 }
 0x41c   : > { %10974 = vmatmul.mubr.msk.f32.gmra.mrb[80].mxu0 %vm521_vm4, %v3156_v49  ;;  %v11696_v49 = vpack.c.bf16 %v11003_v28, %v11002_v36 }
 0x41d   : > { %3613 = vmatprep.mubr.f32.mxu0 %v20387_v12 }
 0x41e   : > { %11697 = vmatpush1.bf16.msra.mxu1 %v11696_v49 }
 0x41f   : > { %11698 = vmatprep.subr.bf16.mxu1 %v20389_v43 }
 0x420   : > { %10975 = vmatmul.mubr.msk.f32.gmra.mrb[82].mxu0 %vm521_vm4, %v3158_v58 }
 0x421   : > { %3619 = vmatprep.mubr.f32.mxu0 %v20387_v12 }
 0x424   : > { %10976 = vmatmul.mubr.msk.f32.gmra.mrb[84].mxu0 %vm521_vm4, %v3160_v54 }
 0x425   : > { %3625 = vmatprep.mubr.f32.mxu0 %v20387_v12 }
 0x428   : > { %10977 = vmatmul.mubr.msk.f32.gmra.mrb[86].mxu0 %vm521_vm4, %v3162_v22  ;;  %v11005_v22 = vld [vmem:[%s20379_s3 + $0x108] sm:$0xff] }
 0x429   : > { %3631 = vmatprep.mubr.f32.mxu0 %v20387_v12 }
 0x42c   : > { %10978 = vmatmul.mubr.msk.f32.gmra.mrb[88].mxu0 %vm521_vm4, %v3164_v53  ;;  %v11699_v53 = vpack.c.bf16 %v11005_v22, %v11004_v23 }
 0x42d   : > { %3637 = vmatprep.mubr.f32.mxu0 %v20387_v12 }
 0x42e   : > { %11700 = vmatpush1.bf16.msra.mxu1 %v11699_v53 }
 0x42f   : > { %11701 = vmatprep.subr.bf16.mxu1 %v20389_v43 }
 0x430   : > { %10979 = vmatmul.mubr.msk.f32.gmra.mrb[90].mxu0 %vm521_vm4, %v3166_v20 }
 0x431   : > { %3643 = vmatprep.mubr.f32.mxu0 %v20387_v12 }
 0x434   : > { %10980 = vmatmul.mubr.msk.f32.gmra.mrb[92].mxu0 %vm521_vm4, %v3168_v55 }
 0x435   : > { %3649 = vmatprep.mubr.f32.mxu0 %v20387_v12 }
 0x438   : > { %10981 = vmatmul.mubr.msk.f32.gmra.mrb[94].mxu0 %vm521_vm4, %v3170_v14 }
 0x439   : > { %3655 = vmatprep.mubr.f32.mxu0 %v20387_v12 }
 0x43c   : > { %10982 = vmatmul.mubr.msk.f32.gmra.mrb[96].mxu0 %vm521_vm4, %v3172_v60 }
 0x43d   : > { %3661 = vmatprep.mubr.f32.mxu0 %v20387_v12 }
 0x440   : > { %10983 = vmatmul.mubr.msk.f32.gmra.mrb[98].mxu0 %vm521_vm4, %v3174_v17  ;;  %v11702_v17 = vpack.c.bf16 %v11007_v51, %v11006_v1 }
 0x441   : > { %3667 = vmatprep.mubr.f32.mxu0 %v20387_v12 }
 0x442   : > { %11704 = vmatpush1.bf16.msk.msra.mxu1 %vm14692_vm7, %v11702_v17 }
 0x443   : > { %11705 = vmatprep.subr.bf16.mxu1 %v20389_v43 }
 0x444   : > { %10984 = vmatmul.mubr.msk.f32.gmra.mrb[100].mxu0 %vm521_vm4, %v3176_v57 }
 0x445   : > { %3673 = vmatprep.mubr.f32.mxu0 %v20387_v12 }
 0x448   : > { %10985 = vmatmul.mubr.msk.f32.gmra.mrb[102].mxu0 %vm521_vm4, %v3178_v0 }
 0x449   : > { %3679 = vmatprep.mubr.f32.mxu0 %v20387_v12 }
 0x44c   : > { %10986 = vmatmul.mubr.msk.f32.gmra.mrb[104].mxu0 %vm521_vm4, %v3180_v18 }
 0x44d   : > { %3685 = vmatprep.mubr.f32.mxu0 %v20387_v12 }
 0x44f   : > { %v3369_v4 = vpop.f32.mrb[0].mxu0 }
 0x450   : > { %v3828_v21 = vadd.f32 %v14650_v45, %v3369_v4  ;;  %v3371_v35 = vpop.f32.mrb[1].mxu0  ;;  %10987 = vmatmul.mubr.msk.f32.gmra.mrb[106].mxu0 %vm521_vm4, %v3182_v8 }
 0x451   : > { %v3829_v32 = vadd.f32 %v14660_v62, %v3371_v35  ;;  %3691 = vmatprep.mubr.f32.mxu0 %v20387_v12 }
 0x452   : > { %v3940_v58 = vmax.f32 %v3828_v21, 0.0 }
 0x453   : > { %v3375_v47 = vpop.f32.mrb[2].mxu0  ;;  %v3941_v48 = vmax.f32 %v3829_v32, 0.0 }
 0x454   : > { %v3830_v25 = vadd.f32 %v14650_v45, %v3375_v47  ;;  %v3377_v54 = vpop.f32.mrb[3].mxu0  ;;  %10988 = vmatmul.mubr.msk.f32.gmra.mrb[108].mxu0 %vm521_vm4, %v3184_v50  ;;  %v4164_v26 = vrot.slane %v3940_v58, 1 }
 0x455   : > { %v3831_v3 = vadd.f32 %v14660_v62, %v3377_v54  ;;  %3697 = vmatprep.mubr.f32.mxu0 %v20387_v12  ;;  %v4167_v40 = vrot.slane %v3941_v48, 1 }
 0x456   : > { %v3942_v31 = vmax.f32 %v3830_v25, 0.0 }
 0x457   : > { %v3943_v20 = vmax.f32 %v3831_v3, 0.0  ;;  %v3381_v38 = vpop.f32.mrb[4].mxu0 }
 0x458   : > { %v4165_v55 = vrot.slane %v3942_v31, 1  ;;  %v3832_v34 = vadd.f32 %v14650_v45, %v3381_v38  ;;  %v3383_v14 = vpop.f32.mrb[5].mxu0  ;;  %10989 = vmatmul.mubr.msk.f32.gmra.mrb[110].mxu0 %vm521_vm4, %v3183_v52 }
 0x459   : > { %v4168_v44 = vrot.slane %v3943_v20, 1  ;;  %v3833_v60 = vadd.f32 %v14660_v62, %v3383_v14 }
 0x45a   : > { %v3944_v5 = vmax.f32 %v3832_v34, 0.0  ;;  %v4166_v37 = vsel %vm409_vm3, %v4164_v26, %v4165_v55 }
 0x45b   : > { %v3945_v30 = vmax.f32 %v3833_v60, 0.0  ;;  %v3387_v16 = vpop.f32.mrb[6].mxu0  ;;  %v4169_v41 = vsel %vm409_vm3, %v4167_v40, %v4168_v44  ;;  %v14705_v11 = vmax.f32 %v3940_v58, %v4166_v37 }
 0x45c   : > { %v4170_v6 = vrot.slane %v3944_v5, 1  ;;  %v3834_v57 = vadd.f32 %v14650_v45, %v3387_v16  ;;  %v3389_v7 = vpop.f32.mrb[7].mxu0  ;;  %v14708_v56 = vmax.f32 %v3941_v48, %v4169_v41 }
 0x45d   : > { %v4172_v63 = vrot.slane %v3945_v30, 1  ;;  %v3835_v61 = vadd.f32 %v14660_v62, %v3389_v7 }
 0x45e   : > { %v3946_v9 = vmax.f32 %v3834_v57, 0.0  ;;  %4724 = vrot.lane.b32.xlu0 %v14708_v56, %s12973_s14  ;;  %v4171_v0 = vsel %vm409_vm3, %v4165_v55, %v4170_v6 }
 0x45f   : > { %v3947_v19 = vmax.f32 %v3835_v61, 0.0  ;;  %v3393_v42 = vpop.f32.mrb[8].mxu0  ;;  %v4173_v33 = vsel %vm409_vm3, %v4168_v44, %v4172_v63  ;;  %v14718_v15 = vmax.f32 %v3942_v31, %v4171_v0 }
 0x460   : > { %v4174_v39 = vrot.slane %v3946_v9, 1  ;;  %v3836_v18 = vadd.f32 %v14650_v45, %v3393_v42  ;;  %v3395_v59 = vpop.f32.mrb[9].mxu0  ;;  %v14721_v10 = vmax.f32 %v3943_v20, %v4173_v33 }
 0x461   : > { %v4176_v46 = vrot.slane %v3947_v19, 1  ;;  %v3837_v13 = vadd.f32 %v14660_v62, %v3395_v59  ;;  %v12710_v2 = vpack.i.bf16 %v14718_v15, %v14705_v11 }
 0x462   : > { %v3948_v27 = vmax.f32 %v3836_v18, 0.0  ;;  %4728 = vrot.lane.b32.xlu1 %v14721_v10, %s12973_s14  ;;  %v4175_v8 = vsel %vm409_vm3, %v4170_v6, %v4174_v39 }
 0x463   : > { %v3949_v52 = vmax.f32 %v3837_v13, 0.0  ;;  %12711 = vrot.lane.b32.xlu0 %v12710_v2, %s12973_s14  ;;  %v3399_v29 = vpop.f32.mrb[10].mxu0  ;;  %v14730_v4 = vmax.f32 %v3944_v5, %v4175_v8  ;;  %v4177_v21 = vsel %vm409_vm3, %v4172_v63, %v4176_v46 }
 0x464   : > { %v4178_v35 = vrot.slane %v3948_v27, 1  ;;  %v3838_v36 = vadd.f32 %v14650_v45, %v3399_v29  ;;  %v3401_v28 = vpop.f32.mrb[11].mxu0  ;;  %v14734_v32 = vmax.f32 %v3945_v30, %v4177_v21 }
 0x465   : > { %v4180_v50 = vrot.slane %v3949_v52, 1  ;;  %v3839_v49 = vadd.f32 %v14660_v62, %v3401_v28 }
 0x466   : > { %v3950_v47 = vmax.f32 %v3838_v36, 0.0  ;;  %4730 = vrot.lane.b32.xlu1 %v14730_v4, %s12973_s14  ;;  %v4179_v58 = vsel %vm409_vm3, %v4174_v39, %v4178_v35 }
 0x467   : > { %v3951_v25 = vmax.f32 %v3839_v49, 0.0  ;;  %4732 = vrot.lane.b32.xlu0 %v14734_v32, %s12973_s14  ;;  %v3405_v54 = vpop.f32.mrb[12].mxu0  ;;  %v14742_v23 = vmax.f32 %v3946_v9, %v4179_v58  ;;  %v4181_v22 = vsel %vm409_vm3, %v4176_v46, %v4180_v50 }
 0x468   : > { %v4182_v48 = vrot.slane %v3950_v47, 1  ;;  %v3840_v3 = vadd.f32 %v14650_v45, %v3405_v54  ;;  %v3407_v53 = vpop.f32.mrb[13].mxu0  ;;  %v14746_v31 = vmax.f32 %v3947_v19, %v4181_v22 }
 0x469   : > { %v4184_v20 = vrot.slane %v3951_v25, 1  ;;  %v3841_v38 = vadd.f32 %v14660_v62, %v3407_v53 }
 0x46a   : > { %v3952_v26 = vmax.f32 %v3840_v3, 0.0  ;;  %4734 = vrot.lane.b32.xlu1 %v14742_v23, %s12973_s14  ;;  %v4183_v55 = vsel %vm409_vm3, %v4178_v35, %v4182_v48 }
 0x46b   : > { %v3953_v34 = vmax.f32 %v3841_v38, 0.0  ;;  %4736 = vrot.lane.b32.xlu0 %v14746_v31, %s12973_s14  ;;  %v3411_v14 = vpop.f32.mrb[14].mxu0  ;;  %v14754_v40 = vmax.f32 %v3948_v27, %v4183_v55  ;;  %v4185_v44 = vsel %vm409_vm3, %v4180_v50, %v4184_v20 }
 0x46c   : > { %v4186_v60 = vrot.slane %v3952_v26, 1  ;;  %v3842_v1 = vadd.f32 %v14650_v45, %v3411_v14  ;;  %v3413_v51 = vpop.f32.mrb[15].mxu0  ;;  %v14758_v5 = vmax.f32 %v3949_v52, %v4185_v44 }
 0x46d   : > { %v4188_v37 = vrot.slane %v3953_v34, 1  ;;  %v3843_v17 = vadd.f32 %v14660_v62, %v3413_v51 }
 0x46e   : > { %v3954_v30 = vmax.f32 %v3842_v1, 0.0  ;;  %4738 = vrot.lane.b32.xlu1 %v14754_v40, %s12973_s14  ;;  %v4187_v16 = vsel %vm409_vm3, %v4182_v48, %v4186_v60 }
 0x46f   : > { %v3955_v41 = vmax.f32 %v3843_v17, 0.0  ;;  %4740 = vrot.lane.b32.xlu0 %v14758_v5, %s12973_s14  ;;  %v3417_v6 = vpop.f32.mrb[16].mxu0  ;;  %v14766_v57 = vmax.f32 %v3950_v47, %v4187_v16  ;;  %v4189_v7 = vsel %vm409_vm3, %v4184_v20, %v4188_v37 }
 0x470   : > { %v4190_v63 = vrot.slane %v3954_v30, 1  ;;  %v3844_v61 = vadd.f32 %v14650_v45, %v3417_v6  ;;  %v3419_v9 = vpop.f32.mrb[17].mxu0  ;;  %v14770_v0 = vmax.f32 %v3951_v25, %v4189_v7 }
 0x471   : > { %v4192_v19 = vrot.slane %v3955_v41, 1  ;;  %v3845_v42 = vadd.f32 %v14660_v62, %v3419_v9 }
 0x472   : > { %v3956_v33 = vmax.f32 %v3844_v61, 0.0  ;;  %4742 = vrot.lane.b32.xlu1 %v14766_v57, %s12973_s14  ;;  %v4191_v39 = vsel %vm409_vm3, %v4186_v60, %v4190_v63 }
 0x473   : > { %v3957_v18 = vmax.f32 %v3845_v42, 0.0  ;;  %4744 = vrot.lane.b32.xlu0 %v14770_v0, %s12973_s14  ;;  %v3423_v59 = vpop.f32.mrb[18].mxu0  ;;  %v14778_v46 = vmax.f32 %v3952_v26, %v4191_v39  ;;  %v4193_v13 = vsel %vm409_vm3, %v4188_v37, %v4192_v19 }
 0x474   : > { %v4194_v2 = vrot.slane %v3956_v33, 1  ;;  %v3846_v27 = vadd.f32 %v14650_v45, %v3423_v59  ;;  %v3425_v8 = vpop.f32.mrb[19].mxu0  ;;  %v14782_v52 = vmax.f32 %v3953_v34, %v4193_v13 }
 0x475   : > { %v4196_v29 = vrot.slane %v3957_v18, 1  ;;  %v3847_v21 = vadd.f32 %v14660_v62, %v3425_v8 }
 0x476   : > { %v3958_v35 = vmax.f32 %v3846_v27, 0.0  ;;  %4746 = vrot.lane.b32.xlu1 %v14778_v46, %s12973_s14  ;;  %v4195_v36 = vsel %vm409_vm3, %v4190_v63, %v4194_v2 }
 0x477   : > { %v3959_v28 = vmax.f32 %v3847_v21, 0.0  ;;  %4748 = vrot.lane.b32.xlu0 %v14782_v52, %s12973_s14  ;;  %v3429_v50 = vpop.f32.mrb[20].mxu0  ;;  %v14790_v49 = vmax.f32 %v3954_v30, %v4195_v36  ;;  %v4197_v47 = vsel %vm409_vm3, %v4192_v19, %v4196_v29 }
 0x478   : > { %v4198_v58 = vrot.slane %v3958_v35, 1  ;;  %v3848_v25 = vadd.f32 %v14650_v45, %v3429_v50  ;;  %v3431_v54 = vpop.f32.mrb[21].mxu0  ;;  %v14794_v22 = vmax.f32 %v3955_v41, %v4197_v47 }
 0x479   : > { %v4200_v48 = vrot.slane %v3959_v28, 1  ;;  %v3849_v3 = vadd.f32 %v14660_v62, %v3431_v54 }
 0x47a   : > { %v3960_v53 = vmax.f32 %v3848_v25, 0.0  ;;  %4750 = vrot.lane.b32.xlu1 %v14790_v49, %s12973_s14  ;;  %v4199_v20 = vsel %vm409_vm3, %v4194_v2, %v4198_v58 }
 0x47b   : > { %v3961_v38 = vmax.f32 %v3849_v3, 0.0  ;;  %4752 = vrot.lane.b32.xlu0 %v14794_v22, %s12973_s14  ;;  %v3435_v26 = vpop.f32.mrb[22].mxu0  ;;  %v14802_v55 = vmax.f32 %v3956_v33, %v4199_v20  ;;  %v4201_v34 = vsel %vm409_vm3, %v4196_v29, %v4200_v48 }
 0x47c   : > { %v4202_v14 = vrot.slane %v3960_v53, 1  ;;  %v3850_v44 = vadd.f32 %v14650_v45, %v3435_v26  ;;  %v3437_v60 = vpop.f32.mrb[23].mxu0  ;;  %v14806_v1 = vmax.f32 %v3957_v18, %v4201_v34 }
 0x47d   : > { %v4204_v51 = vrot.slane %v3961_v38, 1  ;;  %v3851_v37 = vadd.f32 %v14660_v62, %v3437_v60 }
 0x47e   : > { %v3962_v17 = vmax.f32 %v3850_v44, 0.0  ;;  %4754 = vrot.lane.b32.xlu1 %v14802_v55, %s12973_s14  ;;  %v4203_v30 = vsel %vm409_vm3, %v4198_v58, %v4202_v14 }
 0x47f   : > { %v3963_v16 = vmax.f32 %v3851_v37, 0.0  ;;  %4756 = vrot.lane.b32.xlu0 %v14806_v1, %s12973_s14  ;;  %v3441_v41 = vpop.f32.mrb[24].mxu0  ;;  %v14814_v6 = vmax.f32 %v3958_v35, %v4203_v30  ;;  %v4205_v7 = vsel %vm409_vm3, %v4200_v48, %v4204_v51 }
 0x480   : > { %v4206_v63 = vrot.slane %v3962_v17, 1  ;;  %v3852_v61 = vadd.f32 %v14650_v45, %v3441_v41  ;;  %v3443_v9 = vpop.f32.mrb[25].mxu0  ;;  %v14818_v19 = vmax.f32 %v3959_v28, %v4205_v7 }
 0x481   : > { %v4208_v42 = vrot.slane %v3963_v16, 1  ;;  %v3853_v33 = vadd.f32 %v14660_v62, %v3443_v9 }
 0x482   : > { %v3964_v39 = vmax.f32 %v3852_v61, 0.0  ;;  %4758 = vrot.lane.b32.xlu1 %v14814_v6, %s12973_s14  ;;  %v4207_v18 = vsel %vm409_vm3, %v4202_v14, %v4206_v63 }
 0x483   : > { %v3965_v59 = vmax.f32 %v3853_v33, 0.0  ;;  %4760 = vrot.lane.b32.xlu0 %v14818_v19, %s12973_s14  ;;  %v3447_v13 = vpop.f32.mrb[26].mxu0  ;;  %v14826_v2 = vmax.f32 %v3960_v53, %v4207_v18  ;;  %v4209_v27 = vsel %vm409_vm3, %v4204_v51, %v4208_v42 }
 0x484   : > { %v4210_v8 = vrot.slane %v3964_v39, 1  ;;  %v3854_v29 = vadd.f32 %v14650_v45, %v3447_v13  ;;  %v3449_v21 = vpop.f32.mrb[27].mxu0  ;;  %v14830_v35 = vmax.f32 %v3961_v38, %v4209_v27 }
 0x485   : > { %v4212_v36 = vrot.slane %v3965_v59, 1  ;;  %v3855_v28 = vadd.f32 %v14660_v62, %v3449_v21  ;;  %v14868_v21 = vpop.f32.mrb[0].mxu1 }
 0x486   : > { %v3966_v50 = vmax.f32 %v3854_v29, 0.0  ;;  %4762 = vrot.lane.b32.xlu1 %v14826_v2, %s12973_s14  ;;  %v4211_v47 = vsel %vm409_vm3, %v4206_v63, %v4210_v8 }
 0x487   : > { %v3967_v58 = vmax.f32 %v3855_v28, 0.0  ;;  %4764 = vrot.lane.b32.xlu0 %v14830_v35, %s12973_s14  ;;  %v3453_v25 = vpop.f32.mrb[28].mxu0  ;;  %v14838_v54 = vmax.f32 %v3962_v17, %v4211_v47  ;;  %v4213_v48 = vsel %vm409_vm3, %v4208_v42, %v4212_v36 }
 0x488   : > { %v4214_v3 = vrot.slane %v3966_v50, 1  ;;  %v3856_v53 = vadd.f32 %v14650_v45, %v3453_v25  ;;  %v3455_v20 = vpop.f32.mrb[29].mxu0  ;;  %v14842_v38 = vmax.f32 %v3963_v16, %v4213_v48 }
 0x489   : > { %v4216_v26 = vrot.slane %v3967_v58, 1  ;;  %v3857_v34 = vadd.f32 %v14660_v62, %v3455_v20 }
 0x48a   : > { %v3968_v14 = vmax.f32 %v3856_v53, 0.0  ;;  %4766 = vrot.lane.b32.xlu1 %v14838_v54, %s12973_s14  ;;  %v4215_v44 = vsel %vm409_vm3, %v4210_v8, %v4214_v3 }
 0x48b   : > { %v3969_v60 = vmax.f32 %v3857_v34, 0.0  ;;  %4768 = vrot.lane.b32.xlu0 %v14842_v38, %s12973_s14  ;;  %v3459_v51 = vpop.f32.mrb[30].mxu0  ;;  %v14850_v37 = vmax.f32 %v3964_v39, %v4215_v44  ;;  %v4217_v17 = vsel %vm409_vm3, %v4212_v36, %v4216_v26  ;;  %v14882_v44 = vpop.f32.mrb[1].mxu1 }
 0x48c   : > { %v4218_v30 = vrot.slane %v3968_v14, 1  ;;  %v3858_v16 = vadd.f32 %v14650_v45, %v3459_v51  ;;  %v3461_v41 = vpop.f32.mrb[31].mxu0  ;;  %v14854_v7 = vmax.f32 %v3965_v59, %v4217_v17 }
 0x48d   : > { %v4220_v63 = vrot.slane %v3969_v60, 1  ;;  %v3859_v61 = vadd.f32 %v14660_v62, %v3461_v41 }
 0x48e   : > { %v3970_v9 = vmax.f32 %v3858_v16, 0.0  ;;  %4770 = vrot.lane.b32.xlu1 %v14850_v37, %s12973_s14  ;;  %v4219_v42 = vsel %vm409_vm3, %v4214_v3, %v4218_v30 }
 0x48f   : > { %v3971_v33 = vmax.f32 %v3859_v61, 0.0  ;;  %4772 = vrot.lane.b32.xlu0 %v14854_v7, %s12973_s14  ;;  %v3465_v39 = vpop.f32.mrb[32].mxu0  ;;  %v14862_v18 = vmax.f32 %v3966_v50, %v4219_v42  ;;  %v4221_v13 = vsel %vm409_vm3, %v4216_v26, %v4220_v63 }
 0x490   : > { %v4222_v59 = vrot.slane %v3970_v9, 1  ;;  %v3860_v27 = vadd.f32 %v14650_v45, %v3465_v39  ;;  %v3467_v8 = vpop.f32.mrb[33].mxu0  ;;  %v14866_v29 = vmax.f32 %v3967_v58, %v4221_v13 }
 0x491   : > { %v4224_v36 = vrot.slane %v3971_v33, 1  ;;  %v3861_v28 = vadd.f32 %v14660_v62, %v3467_v8 }
 0x492   : > { %v3972_v47 = vmax.f32 %v3860_v27, 0.0  ;;  %4774 = vrot.lane.b32.xlu1 %v14862_v18, %s12973_s14  ;;  %v4223_v50 = vsel %vm409_vm3, %v4218_v30, %v4222_v59  ;;  %v14885_v30 = vpop.f32.mrb[2].mxu1 }
 0x493   : > { %v3973_v25 = vmax.f32 %v3861_v28, 0.0  ;;  %4776 = vrot.lane.b32.xlu0 %v14866_v29, %s12973_s14  ;;  %v3471_v48 = vpop.f32.mrb[34].mxu0  ;;  %v14876_v3 = vmax.f32 %v3968_v14, %v4223_v50  ;;  %v4225_v58 = vsel %vm409_vm3, %v4220_v63, %v4224_v36  ;;  %v14898_v8 = vpop.f32.mrb[3].mxu1 }
 0x494   : > { %v4226_v53 = vrot.slane %v3972_v47, 1  ;;  %v3862_v20 = vadd.f32 %v14650_v45, %v3471_v48  ;;  %v3473_v26 = vpop.f32.mrb[35].mxu0  ;;  %v14880_v34 = vmax.f32 %v3969_v60, %v4225_v58  ;;  %v14904_v48 = vpop.f32.mrb[4].mxu1 }
 0x495   : > { %v4228_v51 = vrot.slane %v3973_v25, 1  ;;  %v3863_v17 = vadd.f32 %v14660_v62, %v3473_v26  ;;  %20815 = vst [vmem:[#allocation6_spill] sm:$0xff] %v14904_v48 }
 0x496   : > { %v3974_v16 = vmax.f32 %v3862_v20, 0.0  ;;  %4778 = vrot.lane.b32.xlu1 %v14876_v3, %s12973_s14  ;;  %v4227_v14 = vsel %vm409_vm3, %v4222_v59, %v4226_v53 }
 0x497   : > { %v3975_v41 = vmax.f32 %v3863_v17, 0.0  ;;  %4780 = vrot.lane.b32.xlu0 %v14880_v34, %s12973_s14  ;;  %v3477_v63 = vpop.f32.mrb[36].mxu0  ;;  %v14892_v60 = vmax.f32 %v3970_v9, %v4227_v14  ;;  %v4229_v61 = vsel %vm409_vm3, %v4224_v36, %v4228_v51 }
 0x498   : > { %v4230_v42 = vrot.slane %v3974_v16, 1  ;;  %v3864_v39 = vadd.f32 %v14650_v45, %v3477_v63  ;;  %v3479_v13 = vpop.f32.mrb[37].mxu0  ;;  %v14896_v27 = vmax.f32 %v3971_v33, %v4229_v61  ;;  %v14914_v61 = vpop.f32.mrb[5].mxu1 }
 0x499   : > { %v4232_v28 = vrot.slane %v3975_v41, 1  ;;  %v3865_v59 = vadd.f32 %v14660_v62, %v3479_v13  ;;  %20818 = vst [vmem:[#allocation9_spill] sm:$0xff] %v14914_v61 }
 0x49a   : > { %v3976_v50 = vmax.f32 %v3864_v39, 0.0  ;;  %4782 = vrot.lane.b32.xlu1 %v14892_v60, %s12973_s14  ;;  %v4231_v9 = vsel %vm409_vm3, %v4226_v53, %v4230_v42 }
 0x49b   : > { %v3977_v36 = vmax.f32 %v3865_v59, 0.0  ;;  %4784 = vrot.lane.b32.xlu0 %v14896_v27, %s12973_s14  ;;  %v3483_v58 = vpop.f32.mrb[38].mxu0  ;;  %v14908_v33 = vmax.f32 %v3972_v47, %v4231_v9  ;;  %v4233_v20 = vsel %vm409_vm3, %v4228_v51, %v4232_v28  ;;  %v14920_v59 = vpop.f32.mrb[6].mxu1 }
 0x49c   : > { %v4234_v26 = vrot.slane %v3976_v50, 1  ;;  %v3866_v17 = vadd.f32 %v14650_v45, %v3483_v58  ;;  %v3485_v14 = vpop.f32.mrb[39].mxu0  ;;  %v14912_v63 = vmax.f32 %v3973_v25, %v4233_v20  ;;  %20819 = vst [vmem:[#allocation10_spill] sm:$0xff] %v14920_v59  ;;  %v14931_v24 = vpop.f32.mrb[7].mxu1 }
 0x49d   : > { %20816 = vst [vmem:[#allocation7_spill] sm:$0xff] %v14908_v33  ;;  %v4236_v53 = vrot.slane %v3977_v36, 1  ;;  %v3867_v39 = vadd.f32 %v14660_v62, %v3485_v14  ;;  %20822 = vst [vmem:[#allocation13_spill] sm:$0xff] %v14931_v24 }
 0x49e   : > { %20817 = vst [vmem:[#allocation8_spill] sm:$0xff] %v14912_v63  ;;  %v3978_v13 = vmax.f32 %v3866_v17, 0.0  ;;  %4786 = vrot.lane.b32.xlu1 %v14908_v33, %s12973_s14  ;;  %v4235_v47 = vsel %vm409_vm3, %v4230_v42, %v4234_v26 }
 0x49f   : > { %v3979_v51 = vmax.f32 %v3867_v39, 0.0  ;;  %4788 = vrot.lane.b32.xlu0 %v14912_v63, %s12973_s14  ;;  %v3489_v9 = vpop.f32.mrb[40].mxu0  ;;  %v14924_v25 = vmax.f32 %v3974_v16, %v4235_v47  ;;  %v4237_v58 = vsel %vm409_vm3, %v4232_v28, %v4236_v53 }
 0x4a0   : > { %v4238_v20 = vrot.slane %v3978_v13, 1  ;;  %v3868_v14 = vadd.f32 %v14650_v45, %v3489_v9  ;;  %v3491_v17 = vpop.f32.mrb[41].mxu0  ;;  %v14928_v12 = vmax.f32 %v3975_v41, %v4237_v58 }
 0x4a1   : > { %20820 = vst [vmem:[#allocation11_spill] sm:$0xff] %v14924_v25  ;;  %v4240_v43 = vrot.slane %v3979_v51, 1  ;;  %v3869_v42 = vadd.f32 %v14660_v62, %v3491_v17 }
 0x4a2   : > { %20821 = vst [vmem:[#allocation12_spill] sm:$0xff] %v14928_v12  ;;  %v3980_v39 = vmax.f32 %v3868_v14, 0.0  ;;  %4790 = vrot.lane.b32.xlu1 %v14924_v25, %s12973_s14  ;;  %v4239_v16 = vsel %vm409_vm3, %v4234_v26, %v4238_v20  ;;  %v14944_v14 = vpop.f32.mrb[8].mxu1 }
 0x4a3   : > { %v3981_v47 = vmax.f32 %v3869_v42, 0.0  ;;  %4792 = vrot.lane.b32.xlu0 %v14928_v12, %s12973_s14  ;;  %v3495_v28 = vpop.f32.mrb[42].mxu0  ;;  %v14938_v9 = vmax.f32 %v3976_v50, %v4239_v16  ;;  %v4241_v41 = vsel %vm409_vm3, %v4236_v53, %v4240_v43  ;;  %20825 = vst [vmem:[#allocation16_spill] sm:$0xff] %v14944_v14  ;;  %v14950_v16 = vpop.f32.mrb[9].mxu1 }
 0x4a4   : > { %v4242_v58 = vrot.slane %v3980_v39, 1  ;;  %v3870_v17 = vadd.f32 %v14650_v45, %v3495_v28  ;;  %v3497_v59 = vpop.f32.mrb[43].mxu0  ;;  %v14942_v24 = vmax.f32 %v3977_v36, %v4241_v41  ;;  %20826 = vst [vmem:[#allocation17_spill] sm:$0xff] %v14950_v16 }
 0x4a5   : > { %20823 = vst [vmem:[#allocation14_spill] sm:$0xff] %v14938_v9  ;;  %v4244_v25 = vrot.slane %v3981_v47, 1  ;;  %v3871_v26 = vadd.f32 %v14660_v62, %v3497_v59 }
 0x4a6   : > { %20824 = vst [vmem:[#allocation15_spill] sm:$0xff] %v14942_v24  ;;  %v3982_v42 = vmax.f32 %v3870_v17, 0.0  ;;  %4794 = vrot.lane.b32.xlu1 %v14938_v9, %s12973_s14  ;;  %v4243_v50 = vsel %vm409_vm3, %v4238_v20, %v4242_v58  ;;  %v14960_v9 = vpop.f32.mrb[10].mxu1 }
 0x4a7   : > { %v3983_v53 = vmax.f32 %v3871_v26, 0.0  ;;  %4796 = vrot.lane.b32.xlu0 %v14942_v24, %s12973_s14  ;;  %v3501_v28 = vpop.f32.mrb[44].mxu0  ;;  %v14954_v36 = vmax.f32 %v3978_v13, %v4243_v50  ;;  %v4245_v41 = vsel %vm409_vm3, %v4240_v43, %v4244_v25  ;;  %20829 = vst [vmem:[#allocation20_spill] sm:$0xff] %v14960_v9  ;;  %v14966_v50 = vpop.f32.mrb[11].mxu1 }
 0x4a8   : > { %v4246_v14 = vrot.slane %v3982_v42, 1  ;;  %v3872_v59 = vadd.f32 %v14650_v45, %v3501_v28  ;;  %v3503_v17 = vpop.f32.mrb[45].mxu0  ;;  %v14958_v12 = vmax.f32 %v3979_v51, %v4245_v41  ;;  %20830 = vst [vmem:[#allocation21_spill] sm:$0xff] %v14966_v50  ;;  %v14977_v61 = vpop.f32.mrb[12].mxu1 }
 0x4a9   : > { %20827 = vst [vmem:[#allocation18_spill] sm:$0xff] %v14954_v36  ;;  %v4248_v20 = vrot.slane %v3983_v53, 1  ;;  %v3873_v16 = vadd.f32 %v14660_v62, %v3503_v17  ;;  %20833 = vst [vmem:[#allocation24_spill] sm:$0xff] %v14977_v61 }
 0x4aa   : > { %20828 = vst [vmem:[#allocation19_spill] sm:$0xff] %v14958_v12  ;;  %v3984_v26 = vmax.f32 %v3872_v59, 0.0  ;;  %4798 = vrot.lane.b32.xlu1 %v14954_v36, %s12973_s14  ;;  %v4247_v13 = vsel %vm409_vm3, %v4242_v58, %v4246_v14 }
 0x4ab   : > { %v3985_v43 = vmax.f32 %v3873_v16, 0.0  ;;  %4800 = vrot.lane.b32.xlu0 %v14958_v12, %s12973_s14  ;;  %v3507_v28 = vpop.f32.mrb[46].mxu0  ;;  %v14970_v51 = vmax.f32 %v3980_v39, %v4247_v13  ;;  %v4249_v41 = vsel %vm409_vm3, %v4244_v25, %v4248_v20 }
 0x4ac   : > { %v4250_v9 = vrot.slane %v3984_v26, 1  ;;  %v3874_v17 = vadd.f32 %v14650_v45, %v3507_v28  ;;  %v3509_v59 = vpop.f32.mrb[47].mxu0  ;;  %v14974_v24 = vmax.f32 %v3981_v47, %v4249_v41  ;;  %v14987_v41 = vpop.f32.mrb[13].mxu1 }
 0x4ad   : > { %20831 = vst [vmem:[#allocation22_spill] sm:$0xff] %v14970_v51  ;;  %v4252_v36 = vrot.slane %v3985_v43, 1  ;;  %v3875_v58 = vadd.f32 %v14660_v62, %v3509_v59  ;;  %20835 = vst [vmem:[#allocation26_spill] sm:$0xff] %v14987_v41 }
 0x4ae   : > { %20832 = vst [vmem:[#allocation23_spill] sm:$0xff] %v14974_v24  ;;  %v3986_v16 = vmax.f32 %v3874_v17, 0.0  ;;  %4802 = vrot.lane.b32.xlu1 %v14970_v51, %s12973_s14  ;;  %v4251_v39 = vsel %vm409_vm3, %v4246_v14, %v4250_v9 }
 0x4af   : > { %v3987_v13 = vmax.f32 %v3875_v58, 0.0  ;;  %4804 = vrot.lane.b32.xlu0 %v14974_v24, %s12973_s14  ;;  %v3513_v25 = vpop.f32.mrb[48].mxu0  ;;  %v14984_v28 = vmax.f32 %v3982_v42, %v4251_v39  ;;  %v4253_v47 = vsel %vm409_vm3, %v4248_v20, %v4252_v36  ;;  %v14996_v39 = vpop.f32.mrb[14].mxu1 }
 0x4b0   : > { %v4254_v59 = vrot.slane %v3986_v16, 1  ;;  %v3876_v61 = vadd.f32 %v14650_v45, %v3513_v25  ;;  %v3515_v17 = vpop.f32.mrb[49].mxu0  ;;  %v14990_v50 = vmax.f32 %v3983_v53, %v4253_v47  ;;  %20837 = vst [vmem:[#allocation28_spill] sm:$0xff] %v14996_v39  ;;  %v15003_v47 = vpop.f32.mrb[15].mxu1 }
 0x4b1   : > { %20834 = vst [vmem:[#allocation25_spill] sm:$0xff] %v14984_v28  ;;  %v4256_v51 = vrot.slane %v3987_v13, 1  ;;  %v3877_v14 = vadd.f32 %v14660_v62, %v3515_v17  ;;  %20839 = vst [vmem:[#allocation30_spill] sm:$0xff] %v15003_v47 }
 0x4b2   : > { %20836 = vst [vmem:[#allocation27_spill] sm:$0xff] %v14990_v50  ;;  %v3988_v58 = vmax.f32 %v3876_v61, 0.0  ;;  %4806 = vrot.lane.b32.xlu1 %v14984_v28, %s12973_s14  ;;  %v4255_v42 = vsel %vm409_vm3, %v4250_v9, %v4254_v59 }
 0x4b3   : > { %v3989_v20 = vmax.f32 %v3877_v14, 0.0  ;;  %4808 = vrot.lane.b32.xlu0 %v14990_v50, %s12973_s14  ;;  %v3519_v41 = vpop.f32.mrb[50].mxu0  ;;  %v15000_v25 = vmax.f32 %v3984_v26, %v4255_v42  ;;  %v4257_v53 = vsel %vm409_vm3, %v4252_v36, %v4256_v51  ;;  %v15012_v42 = vpop.f32.mrb[16].mxu1 }
 0x4b4   : > { %v4258_v17 = vrot.slane %v3988_v58, 1  ;;  %v3878_v61 = vadd.f32 %v14650_v45, %v3519_v41  ;;  %v3521_v24 = vpop.f32.mrb[51].mxu0  ;;  %v15006_v28 = vmax.f32 %v3985_v43, %v4257_v53  ;;  %20841 = vst [vmem:[#allocation32_spill] sm:$0xff] %v15012_v42 }
 0x4b5   : > { %20838 = vst [vmem:[#allocation29_spill] sm:$0xff] %v15000_v25  ;;  %v4260_v9 = vrot.slane %v3989_v20, 1  ;;  %v3879_v39 = vadd.f32 %v14660_v62, %v3521_v24 }
 0x4b6   : > { %20840 = vst [vmem:[#allocation31_spill] sm:$0xff] %v15006_v28  ;;  %v3990_v14 = vmax.f32 %v3878_v61, 0.0  ;;  %4810 = vrot.lane.b32.xlu1 %v15000_v25, %s12973_s14  ;;  %v4259_v26 = vsel %vm409_vm3, %v4254_v59, %v4258_v17  ;;  %v15022_v25 = vpop.f32.mrb[17].mxu1 }
 0x4b7   : > { %v3991_v36 = vmax.f32 %v3879_v39, 0.0  ;;  %4812 = vrot.lane.b32.xlu0 %v15006_v28, %s12973_s14  ;;  %v3525_v47 = vpop.f32.mrb[52].mxu0  ;;  %v15016_v41 = vmax.f32 %v3986_v16, %v4259_v26  ;;  %v4261_v43 = vsel %vm409_vm3, %v4256_v51, %v4260_v9  ;;  %20844 = vst [vmem:[#allocation35_spill] sm:$0xff] %v15022_v25 }
 0x4b8   : > { %v4262_v53 = vrot.slane %v3990_v14, 1  ;;  %v3880_v24 = vadd.f32 %v14650_v45, %v3525_v47  ;;  %v3527_v61 = vpop.f32.mrb[53].mxu0  ;;  %v15020_v50 = vmax.f32 %v3987_v13, %v4261_v43 }
 0x4b9   : > { %20842 = vst [vmem:[#allocation33_spill] sm:$0xff] %v15016_v41  ;;  %v4264_v59 = vrot.slane %v3991_v36, 1  ;;  %v3881_v42 = vadd.f32 %v14660_v62, %v3527_v61 }
 0x4ba   : > { %20843 = vst [vmem:[#allocation34_spill] sm:$0xff] %v15020_v50  ;;  %v3992_v39 = vmax.f32 %v3880_v24, 0.0  ;;  %4814 = vrot.lane.b32.xlu1 %v15016_v41, %s12973_s14  ;;  %v4263_v16 = vsel %vm409_vm3, %v4258_v17, %v4262_v53 }
 0x4bb   : > { %v3993_v26 = vmax.f32 %v3881_v42, 0.0  ;;  %4816 = vrot.lane.b32.xlu0 %v15020_v50, %s12973_s14  ;;  %v3531_v51 = vpop.f32.mrb[54].mxu0  ;;  %v15030_v47 = vmax.f32 %v3988_v58, %v4263_v16  ;;  %v4265_v13 = vsel %vm409_vm3, %v4260_v9, %v4264_v59 }
 0x4bc   : > { %v4266_v43 = vrot.slane %v3992_v39, 1  ;;  %v3882_v25 = vadd.f32 %v14650_v45, %v3531_v51  ;;  %v3533_v28 = vpop.f32.mrb[55].mxu0  ;;  %v15034_v61 = vmax.f32 %v3989_v20, %v4265_v13 }
 0x4bd   : > { %20845 = vst [vmem:[#allocation36_spill] sm:$0xff] %v15030_v47  ;;  %v4268_v24 = vrot.slane %v3993_v26, 1  ;;  %v3883_v41 = vadd.f32 %v14660_v62, %v3533_v28 }
 0x4be   : > { %20846 = vst [vmem:[#allocation37_spill] sm:$0xff] %v15034_v61  ;;  %v3994_v12 = vmax.f32 %v3882_v25, 0.0  ;;  %4818 = vrot.lane.b32.xlu1 %v15030_v47, %s12973_s14  ;;  %v4267_v17 = vsel %vm409_vm3, %v4262_v53, %v4266_v43 }
 0x4bf   : > { %v3995_v42 = vmax.f32 %v3883_v41, 0.0  ;;  %4820 = vrot.lane.b32.xlu0 %v15034_v61, %s12973_s14  ;;  %v3537_v58 = vpop.f32.mrb[56].mxu0  ;;  %v15042_v9 = vmax.f32 %v3990_v14, %v4267_v17  ;;  %v4269_v16 = vsel %vm409_vm3, %v4264_v59, %v4268_v24 }
 0x4c0   : > { %v4270_v20 = vrot.slane %v3994_v12, 1  ;;  %v3884_v51 = vadd.f32 %v14650_v45, %v3537_v58  ;;  %v3539_v13 = vpop.f32.mrb[57].mxu0  ;;  %v15046_v28 = vmax.f32 %v3991_v36, %v4269_v16 }
 0x4c1   : > { %20847 = vst [vmem:[#allocation38_spill] sm:$0xff] %v15042_v9  ;;  %v4272_v25 = vrot.slane %v3995_v42, 1  ;;  %v3885_v47 = vadd.f32 %v14660_v62, %v3539_v13 }
 0x4c2   : > { %20848 = vst [vmem:[#allocation39_spill] sm:$0xff] %v15046_v28  ;;  %v3996_v50 = vmax.f32 %v3884_v51, 0.0  ;;  %4822 = vrot.lane.b32.xlu1 %v15042_v9, %s12973_s14  ;;  %v4271_v41 = vsel %vm409_vm3, %v4266_v43, %v4270_v20 }
 0x4c3   : > { %v3997_v53 = vmax.f32 %v3885_v47, 0.0  ;;  %4824 = vrot.lane.b32.xlu0 %v15046_v28, %s12973_s14  ;;  %v3543_v14 = vpop.f32.mrb[58].mxu0  ;;  %v15054_v59 = vmax.f32 %v3992_v39, %v4271_v41  ;;  %v4273_v17 = vsel %vm409_vm3, %v4268_v24, %v4272_v25 }
 0x4c4   : > { %v4274_v36 = vrot.slane %v3996_v50, 1  ;;  %v3886_v58 = vadd.f32 %v14650_v45, %v3543_v14  ;;  %v3545_v16 = vpop.f32.mrb[59].mxu0  ;;  %v15058_v13 = vmax.f32 %v3993_v26, %v4273_v17 }
 0x4c5   : > { %20849 = vst [vmem:[#allocation40_spill] sm:$0xff] %v15054_v59  ;;  %v4276_v51 = vrot.slane %v3997_v53, 1  ;;  %v3887_v9 = vadd.f32 %v14660_v62, %v3545_v16 }
 0x4c6   : > { %20850 = vst [vmem:[#allocation41_spill] sm:$0xff] %v15058_v13  ;;  %v3998_v61 = vmax.f32 %v3886_v58, 0.0  ;;  %4826 = vrot.lane.b32.xlu1 %v15054_v59, %s12973_s14  ;;  %v4275_v47 = vsel %vm409_vm3, %v4270_v20, %v4274_v36 }
 0x4c7   : > { %v3999_v43 = vmax.f32 %v3887_v9, 0.0  ;;  %4828 = vrot.lane.b32.xlu0 %v15058_v13, %s12973_s14  ;;  %v3549_v39 = vpop.f32.mrb[60].mxu0  ;;  %v15066_v24 = vmax.f32 %v3994_v12, %v4275_v47  ;;  %v4277_v41 = vsel %vm409_vm3, %v4272_v25, %v4276_v51 }
 0x4c8   : > { %v4278_v26 = vrot.slane %v3998_v61, 1  ;;  %v3888_v14 = vadd.f32 %v14650_v45, %v3549_v39  ;;  %v3551_v17 = vpop.f32.mrb[61].mxu0  ;;  %v15070_v16 = vmax.f32 %v3995_v42, %v4277_v41 }
 0x4c9   : > { %20851 = vst [vmem:[#allocation42_spill] sm:$0xff] %v15066_v24  ;;  %v4280_v58 = vrot.slane %v3999_v43, 1  ;;  %v3889_v59 = vadd.f32 %v14660_v62, %v3551_v17 }
 0x4ca   : > { %20852 = vst [vmem:[#allocation43_spill] sm:$0xff] %v15070_v16  ;;  %v4000_v28 = vmax.f32 %v3888_v14, 0.0  ;;  %4830 = vrot.lane.b32.xlu1 %v15066_v24, %s12973_s14  ;;  %v4279_v9 = vsel %vm409_vm3, %v4274_v36, %v4278_v26 }
 0x4cb   : > { %v4001_v20 = vmax.f32 %v3889_v59, 0.0  ;;  %4832 = vrot.lane.b32.xlu0 %v15070_v16, %s12973_s14  ;;  %v3555_v12 = vpop.f32.mrb[62].mxu0  ;;  %v15078_v25 = vmax.f32 %v3996_v50, %v4279_v9  ;;  %v4281_v47 = vsel %vm409_vm3, %v4276_v51, %v4280_v58 }
 0x4cc   : > { %v4282_v42 = vrot.slane %v4000_v28, 1  ;;  %v3890_v39 = vadd.f32 %v14650_v45, %v3555_v12  ;;  %v3557_v41 = vpop.f32.mrb[63].mxu0  ;;  %v15082_v17 = vmax.f32 %v3997_v53, %v4281_v47 }
 0x4cd   : > { %20853 = vst [vmem:[#allocation44_spill] sm:$0xff] %v15078_v25  ;;  %v4284_v14 = vrot.slane %v4001_v20, 1  ;;  %v15085_v24 = vadd.f32 %v14660_v62, %v3557_v41 }
 0x4ce   : > { %20854 = vst [vmem:[#allocation45_spill] sm:$0xff] %v15082_v17  ;;  %v4002_v36 = vmax.f32 %v3890_v39, 0.0  ;;  %4834 = vrot.lane.b32.xlu1 %v15078_v25, %s12973_s14  ;;  %v4283_v59 = vsel %vm409_vm3, %v4278_v26, %v4282_v42 }
 0x4cf   : > { %v4003_v50 = vmax.f32 %v15085_v24, 0.0  ;;  %4836 = vrot.lane.b32.xlu0 %v15082_v17, %s12973_s14  ;;  %v3561_v51 = vpop.f32.mrb[64].mxu0  ;;  %v15093_v9 = vmax.f32 %v3998_v61, %v4283_v59  ;;  %v4285_v53 = vsel %vm409_vm3, %v4280_v58, %v4284_v14 }
 0x4d0   : > { %v4286_v12 = vrot.slane %v4002_v36, 1  ;;  %v15097_v47 = vadd.f32 %v14650_v45, %v3561_v51  ;;  %v4725_v39 = vpop.permute.xlu0 %4724  ;;  %v3563_v41 = vpop.f32.mrb[65].mxu0  ;;  %v15099_v16 = vmax.f32 %v3999_v43, %v4285_v53 }
 0x4d1   : > { %20855 = vst [vmem:[#allocation46_spill] sm:$0xff] %v15093_v9  ;;  %v4288_v25 = vrot.slane %v4003_v50, 1  ;;  %v15102_v26 = vmax.f32 %v14708_v56, %v4725_v39  ;;  %v15105_v24 = vadd.f32 %v14660_v62, %v3563_v41 }
 0x4d2   : > { %20856 = vst [vmem:[#allocation47_spill] sm:$0xff] %v15099_v16  ;;  %v4004_v61 = vmax.f32 %v15097_v47, 0.0  ;;  %4838 = vrot.lane.b32.xlu1 %v15093_v9, %s12973_s14  ;;  %v4287_v58 = vsel %vm409_vm3, %v4282_v42, %v4286_v12 }
 0x4d3   : > { %20857 = vst [vmem:[#allocation48_spill] sm:$0xff] %v15102_v26  ;;  %v20420_v59 = vmax.f32 %v15105_v24, 0.0  ;;  %4840 = vrot.lane.b32.xlu0 %v15099_v16, %s12973_s14  ;;  %v3567_v43 = vpop.f32.mrb[66].mxu0  ;;  %v15114_v51 = vmax.f32 %v4000_v28, %v4287_v58  ;;  %v4289_v56 = vsel %vm409_vm3, %v4284_v14, %v4288_v25  ;;  %v5377_v14 = vrot.slane %v15102_v26, 2 }
 0x4d4   : > { %v4290_v53 = vrot.slane %v4004_v61, 1  ;;  %v15118_v41 = vadd.f32 %v14650_v45, %v3567_v43  ;;  %v4729_v47 = vpop.permute.xlu1 %4728  ;;  %v3569_v17 = vpop.f32.mrb[67].mxu0  ;;  %v15120_v9 = vmax.f32 %v4001_v20, %v4289_v56 }
 0x4d5   : > { %20858 = vst [vmem:[#allocation49_spill] sm:$0xff] %v15114_v51  ;;  %v4292_v42 = vrot.slane %v20420_v59, 1  ;;  %v15125_v16 = vmax.f32 %v14721_v10, %v4729_v47  ;;  %v15128_v28 = vadd.f32 %v14660_v62, %v3569_v17  ;;  %v12712_v58 = vpop.permute.xlu0 %12711 }
 0x4d6   : > { %20859 = vst [vmem:[#allocation50_spill] sm:$0xff] %v15120_v9  ;;  %v20426_v43 = vmax.f32 %v15118_v41, 0.0  ;;  %v12714_v13 = vunpack.i.h.bf16 %v12712_v58  ;;  %v12713_v33 = vunpack.i.l.bf16 %v12712_v58  ;;  %4842 = vrot.lane.b32.xlu1 %v15114_v51, %s12973_s14  ;;  %v4291_v20 = vsel %vm409_vm3, %v4286_v12, %v4290_v53 }
 0x4d7   : > { %20860 = vst [vmem:[#allocation51_spill] sm:$0xff] %v15125_v16  ;;  %4844 = vrot.lane.b32.xlu0 %v15120_v9, %s12973_s14  ;;  %v3573_v10 = vpop.f32.mrb[68].mxu0  ;;  %v5378_v17 = vrot.slane %v15125_v16, 2  ;;  %v15139_v59 = vmax.f32 %v4002_v36, %v4291_v20  ;;  %v4293_v26 = vsel %vm409_vm3, %v4288_v25, %v4292_v42 }
 0x4d8   : > { %v4294_v58 = vrot.slane %v20426_v43, 1  ;;  %v4947_v48 = vsel %vm4946_vm8, %v12713_v33, %v4725_v39  ;;  %v4948_v51 = vsel %vm4946_vm8, %v12714_v13, %v4729_v47  ;;  %v15147_v12 = vadd.f32 %v14650_v45, %v3573_v10  ;;  %v4731_v56 = vpop.permute.xlu1 %4730  ;;  %v3575_v63 = vpop.f32.mrb[69].mxu0 }
 0x4d9   : > { %v15150_v9 = vmax.f32 %v14705_v11, %v4947_v48  ;;  %v15153_v36 = vmax.f32 %v14718_v15, %v4948_v51  ;;  %v15156_v25 = vadd.f32 %v14660_v62, %v3575_v63  ;;  %v4733_v20 = vpop.permute.xlu0 %4732  ;;  %v5379_v39 = vsel %vm1570_vm5, %v5377_v14, %v5378_v17 }
 0x4da   : > { %v20427_v43 = vmax.f32 %v15147_v12, 0.0  ;;  %v4949_v33 = vsel %vm4946_vm8, %v4731_v56, %v4733_v20  ;;  %v15161_v13 = vmax.f32 %v14734_v32, %v4733_v20  ;;  %4846 = vrot.lane.b32.xlu1 %v15139_v59, %s12973_s14  ;;  %v20864_v11 = vmax.f32 %v15128_v28, 0.0  ;;  %11009 = vmatprep.mubr.msk.f32.mxu1 %vm5647_vm9, %v5379_v39 }
 0x4db   : > { %20861 = vst [vmem:[#allocation52_spill] sm:$0xff] %v15150_v9  ;;  %20862 = vst [vmem:[#allocation53_spill] sm:$0xff] %v15153_v36  ;;  %v15170_v63 = vmax.f32 %v4003_v50, %v4293_v26  ;;  %v3579_v51 = vpop.f32.mrb[70].mxu0  ;;  %v5374_v47 = vrot.slane %v15150_v9, 2  ;;  %v15174_v32 = vmax.f32 %v14730_v4, %v4949_v33  ;;  %v5375_v20 = vrot.slane %v15153_v36, 2 }
 0x4dc   : > { %20863 = vst [vmem:[#allocation54_spill] sm:$0xff] %v15161_v13  ;;  %v4296_v15 = vrot.slane %v20864_v11, 1  ;;  %v15177_v14 = vadd.f32 %v14650_v45, %v3579_v51  ;;  %v4735_v56 = vpop.permute.xlu1 %4734  ;;  %v3581_v10 = vpop.f32.mrb[71].mxu0  ;;  %v4295_v11 = vsel %vm409_vm3, %v4290_v53, %v4294_v58  ;;  %v4298_v39 = vrot.slane %v20427_v43, 1 }
 0x4dd   : > { %20865 = vst [vmem:[#allocation55_spill] sm:$0xff] %v15174_v32  ;;  %4848 = vrot.lane.b32.xlu0 %v15170_v63, %s12973_s14  ;;  %v15186_v50 = vadd.f32 %v14660_v62, %v3581_v10  ;;  %v4737_v4 = vpop.permute.xlu0 %4736  ;;  %v15188_v26 = vmax.f32 %v4004_v61, %v4295_v11  ;;  %v5382_v33 = vrot.slane %v15161_v13, 2  ;;  %v5376_v43 = vsel %vm1570_vm5, %v5374_v47, %v5375_v20 }
 0x4de   : > { %v4950_v48 = vsel %vm4946_vm8, %v4735_v56, %v4737_v4  ;;  %v15194_v53 = vmax.f32 %v14746_v31, %v4737_v4  ;;  %v20868_v36 = vmax.f32 %v15156_v25, 0.0  ;;  %5826 = vmatmul.mubr.f32.vlgmr.msra.gmra.mrb[18].mxu1 %v5376_v43  ;;  %v4297_v11 = vsel %vm409_vm3, %v4292_v42, %v4296_v15 }
 0x4df   : > { %20866 = vst [vmem:[#allocation56_spill] sm:$0xff] %v15188_v26  ;;  %4850 = vrot.lane.b32.xlu1 %v15188_v26, %s12973_s14  ;;  %v5383_v61 = vsel %vm1570_vm5, %v5378_v17, %v5382_v33  ;;  %v3585_v51 = vpop.f32.mrb[72].mxu0  ;;  %v15205_v56 = vmax.f32 %v14742_v23, %v4950_v48  ;;  %v20870_v31 = vmax.f32 %v15105_v24, 0.0  ;;  %v5380_v10 = vrot.slane %v15174_v32, 2 }
 0x4e0   : > { %20867 = vst [vmem:[#allocation57_spill] sm:$0xff] %v15194_v53  ;;  %v4300_v16 = vrot.slane %v20868_v36, 1  ;;  %11010 = vmatprep.mubr.msk.f32.mxu1 %vm5647_vm9, %v5383_v61  ;;  %v15213_v36 = vadd.f32 %v14650_v45, %v3585_v51  ;;  %v4739_v43 = vpop.permute.xlu1 %4738  ;;  %v3587_v4 = vpop.f32.mrb[73].mxu0  ;;  %v20871_v17 = vmax.f32 %v15177_v14, 0.0  ;;  %v4299_v48 = vsel %vm409_vm3, %v4294_v58, %v4298_v39 }
 0x4e1   : > { %20869 = vst [vmem:[#allocation58_spill] sm:$0xff] %v15205_v56  ;;  %v15210_v47 = vmax.f32 %v20870_v31, %v4297_v11  ;;  %v15219_v13 = vadd.f32 %v14660_v62, %v3587_v4  ;;  %v4741_v23 = vpop.permute.xlu0 %4740  ;;  %v5386_v24 = vrot.slane %v15194_v53, 2  ;;  %v20872_v61 = vmax.f32 %v15186_v50, 0.0 }
 0x4e2   : > { %v4302_v42 = vrot.slane %v20871_v17, 1  ;;  %v20441_v51 = vmax.f32 %v15213_v36, 0.0  ;;  %v4951_v31 = vsel %vm4946_vm8, %v4739_v43, %v4741_v23  ;;  %v5381_v17 = vsel %vm1570_vm5, %v5375_v20, %v5380_v10 }
 0x4e3   : > { %v4304_v11 = vrot.slane %v20872_v61, 1  ;;  %4852 = vrot.lane.b32.xlu0 %v15210_v47, %s12973_s14  ;;  %v20442_v4 = vmax.f32 %v15219_v13, 0.0  ;;  %v15232_v32 = vmax.f32 %v14758_v5, %v4741_v23  ;;  %5831 = vmatmul.mubr.f32.gmra.mrb[20].mxu1 %v5381_v17  ;;  %v20874_v58 = vmax.f32 %v15118_v41, 0.0  ;;  %v3591_v9 = vpop.f32.mrb[74].mxu0 }
 0x4e4   : > { %v5387_v61 = vsel %vm1570_vm5, %v5382_v33, %v5386_v24  ;;  %v15240_v26 = vmax.f32 %v14754_v40, %v4951_v31  ;;  %v4301_v20 = vsel %vm409_vm3, %v4296_v15, %v4300_v16  ;;  %v15245_v43 = vadd.f32 %v14650_v45, %v3591_v9  ;;  %v4743_v5 = vpop.permute.xlu1 %4742  ;;  %v3593_v23 = vpop.f32.mrb[75].mxu0 }
 0x4e5   : > { %20873 = vst [vmem:[#allocation59_spill] sm:$0xff] %v15232_v32  ;;  %v15236_v53 = vmax.f32 %v20874_v58, %v4299_v48  ;;  %11011 = vmatprep.mubr.msk.f32.mxu1 %vm5647_vm9, %v5387_v61  ;;  %v5384_v17 = vrot.slane %v15205_v56, 2  ;;  %v4306_v41 = vrot.slane %v20441_v51, 1  ;;  %v20876_v40 = vmax.f32 %v15128_v28, 0.0  ;;  %v4745_v15 = vpop.permute.xlu0 %4744 }
 0x4e6   : > { %20875 = vst [vmem:[#allocation60_spill] sm:$0xff] %v15240_v26  ;;  %v15257_v48 = vadd.f32 %v14660_v62, %v3593_v23  ;;  %v4303_v9 = vsel %vm409_vm3, %v4298_v39, %v4302_v42  ;;  %v4308_v31 = vrot.slane %v20442_v4, 1  ;;  %v4952_v61 = vsel %vm4946_vm8, %v4743_v5, %v4745_v15 }
 0x4e7   : > { %4854 = vrot.lane.b32.xlu1 %v15236_v53, %s12973_s14  ;;  %v15254_v33 = vmax.f32 %v20876_v40, %v4301_v20  ;;  %v5385_v51 = vsel %vm1570_vm5, %v5380_v10, %v5384_v17  ;;  %v15269_v20 = vmax.f32 %v14770_v0, %v4745_v15  ;;  %v20878_v39 = vmax.f32 %v15147_v12, 0.0  ;;  %v3597_v4 = vpop.f32.mrb[76].mxu0 }
 0x4e8   : > { %5836 = vmatmul.mubr.f32.gmra.mrb[22].mxu1 %v5385_v51  ;;  %v5390_v40 = vrot.slane %v15232_v32, 2  ;;  %v15277_v5 = vmax.f32 %v14766_v57, %v4952_v61  ;;  %v4305_v10 = vsel %vm409_vm3, %v4300_v16, %v4304_v11  ;;  %v15281_v58 = vadd.f32 %v14650_v45, %v3597_v4  ;;  %v4747_v28 = vpop.permute.xlu1 %4746  ;;  %v3599_v56 = vpop.f32.mrb[77].mxu0 }
 0x4e9   : > { %4856 = vrot.lane.b32.xlu0 %v15254_v33, %s12973_s14  ;;  %20877 = vst [vmem:[#allocation61_spill] sm:$0xff] %v15269_v20  ;;  %v15273_v23 = vmax.f32 %v20878_v39, %v4303_v9  ;;  %v5388_v0 = vrot.slane %v15240_v26, 2  ;;  %v20880_v51 = vmax.f32 %v15245_v43, 0.0  ;;  %v20881_v57 = vmax.f32 %v15156_v25, 0.0  ;;  %v4749_v4 = vpop.permute.xlu0 %4748 }
 0x4ea   : > { %20879 = vst [vmem:[#allocation62_spill] sm:$0xff] %v15277_v5  ;;  %v5391_v15 = vsel %vm1570_vm5, %v5386_v24, %v5390_v40  ;;  %v15296_v16 = vadd.f32 %v14660_v62, %v3599_v56  ;;  %v20882_v61 = vmax.f32 %v15257_v48, 0.0  ;;  %v4953_v26 = vsel %vm4946_vm8, %v4747_v28, %v4749_v4 }
 0x4eb   : > { %v15286_v12 = vrot.slane %v20880_v51, 1  ;;  %4858 = vrot.lane.b32.xlu1 %v15273_v23, %s12973_s14  ;;  %v15293_v9 = vmax.f32 %v20881_v57, %v4305_v10  ;;  %11012 = vmatprep.mubr.msk.f32.mxu1 %vm5647_vm9, %v5391_v15  ;;  %v5389_v24 = vsel %vm1570_vm5, %v5384_v17, %v5388_v0  ;;  %v15310_v56 = vmax.f32 %v14782_v52, %v4749_v4  ;;  %v3603_v15 = vpop.f32.mrb[78].mxu0 }
 0x4ec   : > { %v15300_v39 = vrot.slane %v20882_v61, 1  ;;  %5841 = vmatmul.mubr.f32.gmra.mrb[24].mxu1 %v5389_v24  ;;  %v4307_v10 = vsel %vm409_vm3, %v4302_v42, %v4306_v41  ;;  %v5394_v57 = vrot.slane %v15269_v20, 2  ;;  %v15315_v61 = vmax.f32 %v14778_v46, %v4953_v26  ;;  %v4751_v52 = vpop.permute.xlu1 %4750  ;;  %v3605_v4 = vpop.f32.mrb[79].mxu0 }
 0x4ed   : > { %4860 = vrot.lane.b32.xlu0 %v15293_v9, %s12973_s14  ;;  %20883 = vst [vmem:[#allocation63_spill] sm:$0xff] %v15310_v56  ;;  %v20885_v28 = vmax.f32 %v15177_v14, 0.0  ;;  %v4309_v51 = vsel %vm409_vm3, %v4304_v11, %v4308_v31  ;;  %v15323_v25 = vadd.f32 %v14650_v45, %v3603_v15  ;;  %v20886_v24 = vmax.f32 %v15281_v58, 0.0 }
 0x4ee   : > { %20884 = vst [vmem:[#allocation64_spill] sm:$0xff] %v15315_v61  ;;  %v5395_v20 = vsel %vm1570_vm5, %v5390_v40, %v5394_v57  ;;  %v20887_v46 = vmax.f32 %v15186_v50, 0.0  ;;  %v15335_v14 = vadd.f32 %v14660_v62, %v3605_v4  ;;  %v20888_v11 = vmax.f32 %v15296_v16, 0.0 }
 0x4ef   : > { %v15319_v17 = vmax.f32 %v20885_v28, %v4307_v10  ;;  %v15327_v42 = vrot.slane %v20886_v24, 1  ;;  %v4753_v10 = vpop.permute.xlu0 %4752  ;;  %11013 = vmatprep.mubr.msk.f32.mxu1 %vm5647_vm9, %v5395_v20  ;;  %v5392_v50 = vrot.slane %v15277_v5, 2  ;;  %v4311_v24 = vsel %vm409_vm3, %v4306_v41, %v15286_v12  ;;  %v3609_v20 = vpop.f32.mrb[80].mxu0 }
 0x4f0   : > { %v15332_v26 = vmax.f32 %v20887_v46, %v4309_v51  ;;  %v15339_v15 = vrot.slane %v20888_v11, 1  ;;  %v4954_v40 = vsel %vm4946_vm8, %v4751_v52, %v4753_v10  ;;  %v15351_v4 = vmax.f32 %v14794_v22, %v4753_v10  ;;  %v4755_v22 = vpop.permute.xlu1 %4754  ;;  %v3611_v10 = vpop.f32.mrb[81].mxu0 }
 0x4f1   : > { %4862 = vrot.lane.b32.xlu1 %v15319_v17, %s12973_s14  ;;  %v5398_v46 = vrot.slane %v15310_v56, 2  ;;  %v15357_v11 = vmax.f32 %v14790_v49, %v4954_v40  ;;  %v5393_v52 = vsel %vm1570_vm5, %v5388_v0, %v5392_v50  ;;  %v20891_v28 = vmax.f32 %v15213_v36, 0.0 }
 0x4f2   : > { %4864 = vrot.lane.b32.xlu0 %v15332_v26, %s12973_s14  ;;  %20889 = vst [vmem:[#allocation65_spill] sm:$0xff] %v15351_v4  ;;  %v4313_v51 = vsel %vm409_vm3, %v4308_v31, %v15300_v39  ;;  %v20893_v32 = vmax.f32 %v15323_v25, 0.0  ;;  %5846 = vmatmul.mubr.f32.gmra.mrb[26].mxu1 %v5393_v52  ;;  %v20894_v49 = vmax.f32 %v15219_v13, 0.0  ;;  %v15376_v36 = vadd.f32 %v14650_v45, %v3609_v20 }
 0x4f3   : > { %20890 = vst [vmem:[#allocation66_spill] sm:$0xff] %v15357_v11  ;;  %v15362_v5 = vmax.f32 %v20891_v28, %v4311_v24  ;;  %v5399_v56 = vsel %vm1570_vm5, %v5394_v57, %v5398_v46  ;;  %v4757_v0 = vpop.permute.xlu0 %4756  ;;  %v20895_v28 = vmax.f32 %v15335_v14, 0.0  ;;  %v5396_v57 = vrot.slane %v15315_v61, 2  ;;  %v3615_v52 = vpop.f32.mrb[82].mxu0 }
 0x4f4   : > { %v15368_v41 = vrot.slane %v20893_v32, 1  ;;  %v15373_v40 = vmax.f32 %v20894_v49, %v4313_v51  ;;  %11014 = vmatprep.mubr.msk.f32.mxu1 %vm5647_vm9, %v5399_v56  ;;  %v15386_v32 = vadd.f32 %v14660_v62, %v3611_v10  ;;  %v4955_v13 = vsel %vm4946_vm8, %v4755_v22, %v4757_v0  ;;  %v3617_v51 = vpop.f32.mrb[83].mxu0 }
 0x4f5   : > { %20892 = vst [vmem:[#allocation67_spill] sm:$0xff] %v15362_v5  ;;  %v15380_v31 = vrot.slane %v20895_v28, 1  ;;  %4866 = vrot.lane.b32.xlu1 %v15362_v5, %s12973_s14  ;;  %v15394_v24 = vmax.f32 %v14806_v1, %v4757_v0  ;;  %v4315_v20 = vsel %vm409_vm3, %v15286_v12, %v15327_v42  ;;  %v5402_v56 = vrot.slane %v15351_v4, 2  ;;  %v4759_v0 = vpop.permute.xlu1 %4758 }
 0x4f6   : > { %4868 = vrot.lane.b32.xlu0 %v15373_v40, %s12973_s14  ;;  %v5397_v22 = vsel %vm1570_vm5, %v5392_v50, %v5396_v57  ;;  %v20897_v49 = vmax.f32 %v15245_v43, 0.0  ;;  %v4317_v1 = vsel %vm409_vm3, %v15300_v39, %v15339_v15  ;;  %v15410_v61 = vmax.f32 %v14802_v55, %v4955_v13 }
 0x4f7   : > { %20896 = vst [vmem:[#allocation68_spill] sm:$0xff] %v15394_v24  ;;  %5851 = vmatmul.mubr.f32.gmra.mrb[28].mxu1 %v5397_v22  ;;  %v5403_v12 = vsel %vm1570_vm5, %v5398_v46, %v5402_v56  ;;  %v20899_v10 = vmax.f32 %v15257_v48, 0.0  ;;  %v15418_v43 = vadd.f32 %v14650_v45, %v3615_v52  ;;  %v4761_v50 = vpop.permute.xlu0 %4760  ;;  %v20901_v39 = vmax.f32 %v15386_v32, 0.0  ;;  %v3621_v22 = vpop.f32.mrb[84].mxu0 }
 0x4f8   : > { %v15404_v28 = vmax.f32 %v20897_v49, %v4315_v20  ;;  %20898 = vst [vmem:[#allocation69_spill] sm:$0xff] %v15410_v61  ;;  %v20900_v20 = vmax.f32 %v15376_v36, 0.0  ;;  %11015 = vmatprep.mubr.msk.f32.mxu1 %vm5647_vm9, %v5403_v12  ;;  %v15430_v55 = vadd.f32 %v14660_v62, %v3617_v51  ;;  %v4956_v48 = vsel %vm4946_vm8, %v4759_v0, %v4761_v50 }
 0x4f9   : > { %v15415_v4 = vmax.f32 %v20899_v10, %v4317_v1  ;;  %v15424_v5 = vrot.slane %v20901_v39, 1  ;;  %v15437_v13 = vmax.f32 %v14818_v19, %v4761_v50  ;;  %v5400_v52 = vrot.slane %v15357_v11, 2  ;;  %v4763_v50 = vpop.permute.xlu1 %4762 }
 0x4fa   : > { %v4322_v49 = vrot.slane %v20900_v20, 1  ;;  %4870 = vrot.lane.b32.xlu1 %v15404_v28, %s12973_s14  ;;  %v4319_v10 = vsel %vm409_vm3, %v15327_v42, %v15368_v41  ;;  %v20903_v1 = vmax.f32 %v15281_v58, 0.0  ;;  %v5406_v12 = vrot.slane %v15394_v24, 2  ;;  %v3623_v20 = vpop.f32.mrb[85].mxu0 }
 0x4fb   : > { %4872 = vrot.lane.b32.xlu0 %v15415_v4, %s12973_s14  ;;  %20902 = vst [vmem:[#allocation70_spill] sm:$0xff] %v15437_v13  ;;  %v4321_v19 = vsel %vm409_vm3, %v15339_v15, %v15380_v31  ;;  %v15453_v39 = vmax.f32 %v14814_v6, %v4956_v48  ;;  %v5401_v42 = vsel %vm1570_vm5, %v5396_v57, %v5400_v52  ;;  %v20906_v46 = vmax.f32 %v15296_v16, 0.0 }
 0x4fc   : > { %v15446_v0 = vmax.f32 %v20903_v1, %v4319_v10  ;;  %v15461_v58 = vadd.f32 %v14650_v45, %v3621_v22  ;;  %v4765_v10 = vpop.permute.xlu0 %4764  ;;  %v20907_v1 = vmax.f32 %v15418_v43, 0.0  ;;  %5856 = vmatmul.mubr.f32.gmra.mrb[30].mxu1 %v5401_v42  ;;  %v5407_v6 = vsel %vm1570_vm5, %v5402_v56, %v5406_v12 }
 0x4fd   : > { %20905 = vst [vmem:[#allocation72_spill] sm:$0xff] %v15453_v39  ;;  %v15458_v51 = vmax.f32 %v20906_v46, %v4321_v19  ;;  %v15471_v15 = vadd.f32 %v14660_v62, %v3623_v20  ;;  %v4957_v16 = vsel %vm4946_vm8, %v4763_v50, %v4765_v10  ;;  %v20908_v57 = vmax.f32 %v15430_v55, 0.0  ;;  %11016 = vmatprep.mubr.msk.f32.mxu1 %vm5647_vm9, %v5407_v6  ;;  %v3627_v19 = vpop.f32.mrb[86].mxu0  ;;  %v4767_v6 = vpop.permute.xlu1 %4766 }
 0x4fe   : > { %20904 = vst [vmem:[#allocation71_spill] sm:$0xff] %v15446_v0  ;;  %v15465_v24 = vrot.slane %v20907_v1, 1  ;;  %4874 = vrot.lane.b32.xlu1 %v15446_v0, %s12973_s14  ;;  %v15483_v22 = vmax.f32 %v14826_v2, %v4957_v16  ;;  %v5404_v56 = vrot.slane %v15410_v61, 2  ;;  %v4323_v50 = vsel %vm409_vm3, %v15368_v41, %v4322_v49 }
 0x4ff   : > { %v15476_v48 = vrot.slane %v20908_v57, 1  ;;  %4876 = vrot.lane.b32.xlu0 %v15458_v51, %s12973_s14  ;;  %v5410_v42 = vrot.slane %v15437_v13, 2  ;;  %v4325_v1 = vsel %vm409_vm3, %v15380_v31, %v15424_v5  ;;  %v3629_v57 = vpop.f32.mrb[87].mxu0  ;;  %v15494_v46 = vmax.f32 %v14830_v35, %v4765_v10 }
 0x500   : > { %20909 = vst [vmem:[#allocation73_spill] sm:$0xff] %v15483_v22  ;;  %v5405_v2 = vsel %vm1570_vm5, %v5400_v52, %v5404_v56  ;;  %v20911_v16 = vmax.f32 %v15323_v25, 0.0  ;;  %v20912_v20 = vmax.f32 %v15335_v14, 0.0  ;;  %v4769_v13 = vpop.permute.xlu0 %4768  ;;  %v20913_v11 = vmax.f32 %v15461_v58, 0.0 }
 0x501   : > { %20910 = vst [vmem:[#allocation74_spill] sm:$0xff] %v15494_v46  ;;  %5861 = vmatmul.mubr.f32.gmra.mrb[32].mxu1 %v5405_v2  ;;  %v5411_v31 = vsel %vm1570_vm5, %v5406_v12, %v5410_v42  ;;  %v15511_v35 = vadd.f32 %v14650_v45, %v3627_v19  ;;  %v15514_v52 = vadd.f32 %v14660_v62, %v3629_v57  ;;  %v20914_v25 = vmax.f32 %v15471_v15, 0.0  ;;  %v3633_v19 = vpop.f32.mrb[88].mxu0 }
 0x502   : > { %v15499_v61 = vmax.f32 %v20911_v16, %v4323_v50  ;;  %v15503_v41 = vmax.f32 %v20912_v20, %v4325_v1  ;;  %v15507_v0 = vrot.slane %v20913_v11, 1  ;;  %11017 = vmatprep.mubr.msk.f32.mxu1 %vm5647_vm9, %v5411_v31  ;;  %v4958_v14 = vsel %vm4946_vm8, %v4767_v6, %v4769_v13  ;;  %v4771_v6 = vpop.permute.xlu1 %4770  ;;  %v3635_v16 = vpop.f32.mrb[89].mxu0 }
 0x503   : > { %v15518_v10 = vrot.slane %v20914_v25, 1  ;;  %v5408_v11 = vrot.slane %v15453_v39, 2  ;;  %v4327_v12 = vsel %vm409_vm3, %v4322_v49, %v15465_v24  ;;  %v15532_v1 = vmax.f32 %v14842_v38, %v4769_v13 }
 0x504   : > { %4878 = vrot.lane.b32.xlu1 %v15499_v61, %s12973_s14  ;;  %4880 = vrot.lane.b32.xlu0 %v15503_v41, %s12973_s14  ;;  %v20916_v57 = vmax.f32 %v15376_v36, 0.0  ;;  %v5414_v49 = vrot.slane %v15494_v46, 2  ;;  %v4329_v25 = vsel %vm409_vm3, %v15424_v5, %v15476_v48  ;;  %v15544_v20 = vadd.f32 %v14650_v45, %v3633_v19  ;;  %v4773_v50 = vpop.permute.xlu0 %4772 }
 0x505   : > { %20915 = vst [vmem:[#allocation75_spill] sm:$0xff] %v15532_v1  ;;  %v5409_v31 = vsel %vm1570_vm5, %v5404_v56, %v5408_v11  ;;  %v20917_v38 = vmax.f32 %v15511_v35, 0.0  ;;  %v15551_v36 = vmax.f32 %v14838_v54, %v4958_v14  ;;  %v20919_v56 = vmax.f32 %v15386_v32, 0.0 }
 0x506   : > { %v15536_v2 = vmax.f32 %v20916_v57, %v4327_v12  ;;  %5866 = vmatmul.mubr.f32.gmra.mrb[34].mxu1 %v5409_v31  ;;  %v15558_v57 = vadd.f32 %v14660_v62, %v3635_v16  ;;  %v20920_v5 = vmax.f32 %v15514_v52, 0.0  ;;  %v4959_v14 = vsel %vm4946_vm8, %v4771_v6, %v4773_v50  ;;  %v3639_v31 = vpop.f32.mrb[90].mxu0 }
 0x507   : > { %v15548_v13 = vrot.slane %v20917_v38, 1  ;;  %20918 = vst [vmem:[#allocation76_spill] sm:$0xff] %v15551_v36  ;;  %v15555_v12 = vmax.f32 %v20919_v56, %v4329_v25  ;;  %v5415_v38 = vsel %vm1570_vm5, %v5410_v42, %v5414_v49  ;;  %v15574_v16 = vmax.f32 %v14854_v7, %v4773_v50  ;;  %v4775_v56 = vpop.permute.xlu1 %4774 }
 0x508   : > { %v15562_v19 = vrot.slane %v20920_v5, 1  ;;  %4882 = vrot.lane.b32.xlu1 %v15536_v2, %s12973_s14  ;;  %11018 = vmatprep.mubr.msk.f32.mxu1 %vm5647_vm9, %v5415_v38  ;;  %v5412_v25 = vrot.slane %v15483_v22, 2  ;;  %v4331_v42 = vsel %vm409_vm3, %v15465_v24, %v15507_v0  ;;  %v3641_v5 = vpop.f32.mrb[91].mxu0  ;;  %v15581_v6 = vmax.f32 %v14850_v37, %v4959_v14  ;;  %v4777_v50 = vpop.permute.xlu0 %4776 }
 0x509   : > { %4884 = vrot.lane.b32.xlu0 %v15555_v12, %s12973_s14  ;;  %20921 = vst [vmem:[#allocation77_spill] sm:$0xff] %v15574_v16  ;;  %v20923_v38 = vmax.f32 %v15418_v43, 0.0  ;;  %v5418_v32 = vrot.slane %v15532_v1, 2  ;;  %v4333_v7 = vsel %vm409_vm3, %v15476_v48, %v15518_v10  ;;  %v20924_v22 = vmax.f32 %v15544_v20, 0.0 }
 0x50a   : > { %20922 = vst [vmem:[#allocation78_spill] sm:$0xff] %v15581_v6  ;;  %v5413_v24 = vsel %vm1570_vm5, %v5408_v11, %v5412_v25  ;;  %v20925_v37 = vmax.f32 %v15430_v55, 0.0  ;;  %v15601_v43 = vadd.f32 %v14650_v45, %v3639_v31  ;;  %v5416_v11 = vrot.slane %v15551_v36, 2 }
 0x50b   : > { %v15585_v54 = vmax.f32 %v20923_v38, %v4331_v42  ;;  %v15593_v46 = vrot.slane %v20924_v22, 1  ;;  %5871 = vmatmul.mubr.f32.gmra.mrb[36].mxu1 %v5413_v24  ;;  %v5419_v48 = vsel %vm1570_vm5, %v5414_v49, %v5418_v32  ;;  %v15607_v42 = vadd.f32 %v14660_v62, %v3641_v5  ;;  %v3645_v38 = vpop.f32.mrb[92].mxu0  ;;  %v4779_v5 = vpop.permute.xlu1 %4778 }
 0x50c   : > { %v15598_v14 = vmax.f32 %v20925_v37, %v4333_v7  ;;  %v4960_v22 = vsel %vm4946_vm8, %v4775_v56, %v4777_v50  ;;  %v20926_v55 = vmax.f32 %v15558_v57, 0.0  ;;  %11019 = vmatprep.mubr.msk.f32.mxu1 %vm5647_vm9, %v5419_v48  ;;  %v4335_v56 = vsel %vm409_vm3, %v15507_v0, %v15548_v13  ;;  %v3647_v24 = vpop.f32.mrb[93].mxu0  ;;  %v4781_v1 = vpop.permute.xlu0 %4780 }
 0x50d   : > { %4886 = vrot.lane.b32.xlu1 %v15585_v54, %s12973_s14  ;;  %v15620_v49 = vmax.f32 %v14862_v18, %v4960_v22  ;;  %v20929_v48 = vmax.f32 %v15461_v58, 0.0  ;;  %v5422_v31 = vrot.slane %v15574_v16, 2  ;;  %v5417_v18 = vsel %vm1570_vm5, %v5412_v25, %v5416_v11 }
 0x50e   : > { %v15613_v7 = vrot.slane %v20926_v55, 1  ;;  %4888 = vrot.lane.b32.xlu0 %v15598_v14, %s12973_s14  ;;  %v15627_v55 = vmax.f32 %v14866_v29, %v4777_v50  ;;  %v4337_v0 = vsel %vm409_vm3, %v15518_v10, %v15562_v19  ;;  %v15639_v22 = vadd.f32 %v14650_v45, %v3645_v38  ;;  %v3651_v38 = vpop.f32.mrb[94].mxu0 }
 0x50f   : > { %20927 = vst [vmem:[#allocation79_spill] sm:$0xff] %v15620_v49  ;;  %v15631_v36 = vmax.f32 %v20929_v48, %v4335_v56  ;;  %v15642_v37 = vadd.f32 %v14660_v62, %v3647_v24  ;;  %v20931_v29 = vmax.f32 %v15601_v43, 0.0  ;;  %5876 = vmatmul.mubr.f32.gmra.mrb[38].mxu1 %v5417_v18  ;;  %v5423_v25 = vsel %vm1570_vm5, %v5418_v32, %v5422_v31  ;;  %v4783_v32 = vpop.permute.xlu1 %4782 }
 0x510   : > { %20928 = vst [vmem:[#allocation80_spill] sm:$0xff] %v15627_v55  ;;  %v20932_v50 = vmax.f32 %v15471_v15, 0.0  ;;  %v4961_v10 = vsel %vm4946_vm8, %v4779_v5, %v4781_v1  ;;  %v20934_v24 = vmax.f32 %v15607_v42, 0.0  ;;  %11020 = vmatprep.mubr.msk.f32.mxu1 %vm5647_vm9, %v5423_v25  ;;  %v20486_v18 = vmax.f32 %v15639_v22, 0.0  ;;  %v3653_v15 = vpop.f32.mrb[95].mxu0 }
 0x511   : > { %20930 = vst [vmem:[#allocation81_spill] sm:$0xff] %v15631_v36  ;;  %v15646_v58 = vrot.slane %v20931_v29, 1  ;;  %4890 = vrot.lane.b32.xlu1 %v15631_v36, %s12973_s14  ;;  %v15664_v16 = vmax.f32 %v14880_v34, %v4781_v1  ;;  %v5420_v5 = vrot.slane %v15581_v6, 2  ;;  %v5426_v25 = vrot.slane %v15627_v55, 2 }
 0x512   : > { %v15653_v56 = vmax.f32 %v20932_v50, %v4337_v0  ;;  %v15658_v48 = vrot.slane %v20934_v24, 1  ;;  %v4339_v0 = vsel %vm409_vm3, %v15548_v13, %v15593_v46  ;;  %v4341_v50 = vsel %vm409_vm3, %v15562_v19, %v15613_v7  ;;  %v4785_v24 = vpop.permute.xlu0 %4784 }
 0x513   : > { %20935 = vst [vmem:[#allocation83_spill] sm:$0xff] %v15664_v16  ;;  %v15678_v34 = vrot.slane %v20486_v18, 1  ;;  %v15681_v1 = vmax.f32 %v14876_v3, %v4961_v10  ;;  %v20937_v29 = vmax.f32 %v15511_v35, 0.0  ;;  %v20938_v13 = vmax.f32 %v15514_v52, 0.0 }
 0x514   : > { %20933 = vst [vmem:[#allocation82_spill] sm:$0xff] %v15653_v56  ;;  %4892 = vrot.lane.b32.xlu0 %v15653_v56, %s12973_s14  ;;  %v5421_v55 = vsel %vm1570_vm5, %v5416_v11, %v5420_v5  ;;  %v5427_v19 = vsel %vm1570_vm5, %v5422_v31, %v5426_v25  ;;  %v12205_v36 = vadd.f32 %v3651_v38, %v14868_v21  ;;  %v3657_v56 = vpop.f32.mrb[96].mxu0  ;;  %v20939_v3 = vmax.f32 %v15642_v37, 0.0  ;;  %v4787_v21 = vpop.permute.xlu1 %4786 }
 0x515   : > { %20936 = vst [vmem:[#allocation84_spill] sm:$0xff] %v15681_v1  ;;  %v15685_v6 = vmax.f32 %v20937_v29, %v4339_v0  ;;  %v15689_v39 = vmax.f32 %v20938_v13, %v4341_v50  ;;  %v12206_v18 = vadd.f32 %v3653_v15, %v14882_v44  ;;  %5881 = vmatmul.mubr.f32.gmra.mrb[40].mxu1 %v5421_v55  ;;  %v5424_v52 = vrot.slane %v15620_v49, 2  ;;  %v3659_v31 = vpop.f32.mrb[97].mxu0  ;;  %v20961_v49 = vld [vmem:[#allocation11_spill] sm:$0xff] }
 0x516   : > { %v15697_v10 = vrot.slane %v20939_v3, 1  ;;  %v4962_v35 = vsel %vm4946_vm8, %v4783_v32, %v4785_v24  ;;  %v4343_v11 = vsel %vm409_vm3, %v15593_v46, %v15646_v58  ;;  %11021 = vmatprep.mubr.msk.f32.mxu1 %vm5647_vm9, %v5427_v19  ;;  %v15710_v44 = vadd.f32 %v12205_v36, %v14650_v45  ;;  %v4789_v32 = vpop.permute.xlu0 %4788 }
 0x517   : > { %4894 = vrot.lane.b32.xlu1 %v15685_v6, %s12973_s14  ;;  %v15713_v55 = vadd.f32 %v12206_v18, %v14660_v62  ;;  %v15716_v38 = vmax.f32 %v14896_v27, %v4785_v24  ;;  %v5430_v29 = vrot.slane %v15664_v16, 2  ;;  %v5425_v46 = vsel %vm1570_vm5, %v5420_v5, %v5424_v52  ;;  %v3663_v5 = vpop.f32.mrb[98].mxu0 }
 0x518   : > { %4896 = vrot.lane.b32.xlu0 %v15689_v39, %s12973_s14  ;;  %v20941_v15 = vmax.f32 %v15544_v20, 0.0  ;;  %v4345_v36 = vsel %vm409_vm3, %v15613_v7, %v15658_v48  ;;  %v12207_v50 = vadd.f32 %v3657_v56, %v14885_v30  ;;  %v20489_v18 = vmax.f32 %v15710_v44, 0.0  ;;  %v3665_v3 = vpop.f32.mrb[99].mxu0 }
 0x519   : > { %20940 = vst [vmem:[#allocation85_spill] sm:$0xff] %v15716_v38  ;;  %v20488_v27 = vmax.f32 %v15713_v55, 0.0  ;;  %v5431_v24 = vsel %vm1570_vm5, %v5426_v25, %v5430_v29  ;;  %v20943_v13 = vmax.f32 %v15558_v57, 0.0  ;;  %v15736_v20 = vmax.f32 %v14892_v60, %v4962_v35  ;;  %5886 = vmatmul.mubr.f32.gmra.mrb[42].mxu1 %v5425_v46  ;;  %v4791_v25 = vpop.permute.xlu1 %4790 }
 0x51a   : > { %v15722_v0 = vmax.f32 %v20941_v15, %v4343_v11  ;;  %v15741_v30 = vadd.f32 %v12207_v50, %v14650_v45  ;;  %v12208_v7 = vadd.f32 %v3659_v31, %v14898_v8  ;;  %v5428_v56 = vrot.slane %v15681_v1, 2  ;;  %11022 = vmatprep.mubr.msk.f32.mxu1 %vm5647_vm9, %v5431_v24  ;;  %v20945_v8 = vld [vmem:[#allocation8_spill] sm:$0xff]  ;;  %v4793_v31 = vpop.permute.xlu0 %4792 }
 0x51b   : > { %v15733_v19 = vmax.f32 %v20943_v13, %v4345_v36  ;;  %20944 = vst [vmem:[#allocation87_spill] sm:$0xff] %v15736_v20  ;;  %v15747_v57 = vrot.slane %v20489_v18, 1  ;;  %v15751_v60 = vrot.slane %v20488_v27, 1  ;;  %v4963_v35 = vsel %vm4946_vm8, %v4787_v21, %v4789_v32 }
 0x51c   : > { %20942 = vst [vmem:[#allocation86_spill] sm:$0xff] %v15722_v0  ;;  %4898 = vrot.lane.b32.xlu1 %v15722_v0, %s12973_s14  ;;  %v15758_v11 = vmax.f32 %v20945_v8, %v4789_v32  ;;  %v15762_v15 = vadd.f32 %v12208_v7, %v14660_v62  ;;  %v5429_v36 = vsel %vm1570_vm5, %v5424_v52, %v5428_v56  ;;  %v20947_v24 = vmax.f32 %v15601_v43, 0.0  ;;  %v20949_v8 = vld [vmem:[#allocation6_spill] sm:$0xff]  ;;  %v3669_v7 = vpop.f32.mrb[100].mxu0  ;;  %v20950_v52 = vld [vmem:[#allocation7_spill] sm:$0xff] }
 0x51d   : > { %4900 = vrot.lane.b32.xlu0 %v15733_v19, %s12973_s14  ;;  %v4347_v50 = vsel %vm409_vm3, %v15646_v58, %v15678_v34  ;;  %v5434_v21 = vrot.slane %v15716_v38, 2  ;;  %v4349_v32 = vsel %vm409_vm3, %v15658_v48, %v15697_v10  ;;  %v12209_v27 = vadd.f32 %v3663_v5, %v20949_v8  ;;  %5891 = vmatmul.mubr.f32.gmra.mrb[44].mxu1 %v5429_v36  ;;  %v4795_v38 = vpop.permute.xlu1 %4794  ;;  %v3671_v1 = vpop.f32.mrb[101].mxu0 }
 0x51e   : > { %20946 = vst [vmem:[#allocation8_spill] sm:$0xff] %v15758_v11  ;;  %v15770_v13 = vmax.f32 %v20947_v24, %v4347_v50  ;;  %v20496_v18 = vmax.f32 %v15762_v15, 0.0  ;;  %v15779_v46 = vmax.f32 %v20950_v52, %v4963_v35  ;;  %v20952_v58 = vmax.f32 %v15607_v42, 0.0  ;;  %v20954_v50 = vld [vmem:[#allocation9_spill] sm:$0xff]  ;;  %v4797_v36 = vpop.permute.xlu0 %4796 }
 0x51f   : > { %v12210_v24 = vadd.f32 %v3665_v3, %v20954_v50  ;;  %v20955_v16 = vmax.f32 %v15741_v30, 0.0  ;;  %v5435_v5 = vsel %vm1570_vm5, %v5430_v29, %v5434_v21  ;;  %v15794_v35 = vadd.f32 %v12209_v27, %v14650_v45 }
 0x520   : > { %20948 = vst [vmem:[#allocation88_spill] sm:$0xff] %v15770_v13  ;;  %20951 = vst [vmem:[#allocation6_spill] sm:$0xff] %v15779_v46  ;;  %v15783_v43 = vmax.f32 %v20952_v58, %v4349_v32  ;;  %4902 = vrot.lane.b32.xlu1 %v15770_v13, %s12973_s14  ;;  %v4964_v42 = vsel %vm4946_vm8, %v4791_v25, %v4793_v31  ;;  %v15799_v3 = vrot.slane %v20496_v18, 1  ;;  %11023 = vmatprep.mubr.msk.f32.mxu1 %vm5647_vm9, %v5435_v5  ;;  %v20956_v32 = vld [vmem:[#allocation12_spill] sm:$0xff]  ;;  %v20958_v58 = vld [vmem:[#allocation10_spill] sm:$0xff]  ;;  %v3675_v5 = vpop.f32.mrb[102].mxu0 }
 0x521   : > { %v15788_v48 = vrot.slane %v20955_v16, 1  ;;  %v15805_v16 = vadd.f32 %v12210_v24, %v14660_v62  ;;  %v15808_v29 = vmax.f32 %v20956_v32, %v4793_v31  ;;  %v5432_v27 = vrot.slane %v15736_v20, 2  ;;  %v3677_v20 = vpop.f32.mrb[103].mxu0 }
 0x522   : > { %20953 = vst [vmem:[#allocation7_spill] sm:$0xff] %v15783_v43  ;;  %4904 = vrot.lane.b32.xlu0 %v15783_v43, %s12973_s14  ;;  %v5438_v8 = vrot.slane %v15758_v11, 2  ;;  %v4351_v52 = vsel %vm409_vm3, %v15678_v34, %v15747_v57  ;;  %v12211_v50 = vadd.f32 %v3669_v7, %v20958_v58  ;;  %v20959_v31 = vmax.f32 %v15639_v22, 0.0  ;;  %v4799_v11 = vpop.permute.xlu1 %4798 }
 0x523   : > { %20957 = vst [vmem:[#allocation9_spill] sm:$0xff] %v15808_v29  ;;  %v20504_v18 = vmax.f32 %v15805_v16, 0.0  ;;  %v5433_v24 = vsel %vm1570_vm5, %v5428_v56, %v5432_v27  ;;  %v4353_v25 = vsel %vm409_vm3, %v15697_v10, %v15751_v60  ;;  %v15827_v13 = vmax.f32 %v20961_v49, %v4964_v42  ;;  %v20966_v49 = vld [vmem:[#allocation13_spill] sm:$0xff]  ;;  %v20970_v42 = vld [vmem:[#allocation14_spill] sm:$0xff] }
 0x524   : > { %v15821_v32 = vmax.f32 %v20959_v31, %v4351_v52  ;;  %5896 = vmatmul.mubr.f32.gmra.mrb[46].mxu1 %v5433_v24  ;;  %v5439_v34 = vsel %vm1570_vm5, %v5434_v21, %v5438_v8  ;;  %v15831_v7 = vadd.f32 %v12211_v50, %v14650_v45  ;;  %v20963_v56 = vmax.f32 %v15642_v37, 0.0  ;;  %v4801_v52 = vpop.permute.xlu0 %4800 }
 0x525   : > { %20962 = vst [vmem:[#allocation10_spill] sm:$0xff] %v15827_v13  ;;  %v20965_v58 = vmax.f32 %v15794_v35, 0.0  ;;  %v15843_v10 = vrot.slane %v20504_v18, 1  ;;  %11024 = vmatprep.mubr.msk.f32.mxu1 %vm5647_vm9, %v5439_v34  ;;  %v12212_v21 = vadd.f32 %v3671_v1, %v20966_v49  ;;  %v4965_v37 = vsel %vm4946_vm8, %v4795_v38, %v4797_v36  ;;  %v3681_v34 = vpop.f32.mrb[104].mxu0  ;;  %v20969_v38 = vld [vmem:[#allocation16_spill] sm:$0xff] }
 0x526   : > { %20960 = vst [vmem:[#allocation12_spill] sm:$0xff] %v15821_v32  ;;  %v15835_v22 = vmax.f32 %v20963_v56, %v4353_v25  ;;  %4906 = vrot.lane.b32.xlu1 %v15821_v32, %s12973_s14  ;;  %v20967_v25 = vld [vmem:[#allocation15_spill] sm:$0xff]  ;;  %v5436_v24 = vrot.slane %v15779_v46, 2  ;;  %v5442_v56 = vrot.slane %v15808_v29, 2  ;;  %v4355_v1 = vsel %vm409_vm3, %v15747_v57, %v15788_v48 }
 0x527   : > { %v15839_v31 = vrot.slane %v20965_v58, 1  ;;  %v15854_v50 = vmax.f32 %v20967_v25, %v4797_v36  ;;  %v15859_v58 = vadd.f32 %v12212_v21, %v14660_v62  ;;  %v12213_v49 = vadd.f32 %v3675_v5, %v20969_v38  ;;  %v4803_v36 = vpop.permute.xlu1 %4802  ;;  %v3683_v25 = vpop.f32.mrb[105].mxu0 }
 0x528   : > { %20964 = vst [vmem:[#allocation11_spill] sm:$0xff] %v15835_v22  ;;  %4908 = vrot.lane.b32.xlu0 %v15835_v22, %s12973_s14  ;;  %v4357_v18 = vsel %vm409_vm3, %v15751_v60, %v15799_v3  ;;  %v15869_v46 = vmax.f32 %v20970_v42, %v4965_v37  ;;  %v5437_v29 = vsel %vm1570_vm5, %v5432_v27, %v5436_v24  ;;  %v20972_v32 = vmax.f32 %v15710_v44, 0.0  ;;  %v4805_v57 = vpop.permute.xlu0 %4804  ;;  %v20976_v37 = vld [vmem:[#allocation17_spill] sm:$0xff] }
 0x529   : > { %20968 = vst [vmem:[#allocation13_spill] sm:$0xff] %v15854_v50  ;;  %v5443_v21 = vsel %vm1570_vm5, %v5438_v8, %v5442_v56  ;;  %v20512_v5 = vmax.f32 %v15859_v58, 0.0  ;;  %5901 = vmatmul.mubr.f32.gmra.mrb[48].mxu1 %v5437_v29  ;;  %v15879_v38 = vadd.f32 %v12213_v49, %v14650_v45  ;;  %v20974_v60 = vmax.f32 %v15713_v55, 0.0  ;;  %v3687_v55 = vpop.f32.mrb[106].mxu0  ;;  %v20978_v49 = vld [vmem:[#allocation19_spill] sm:$0xff] }
 0x52a   : > { %20971 = vst [vmem:[#allocation15_spill] sm:$0xff] %v15869_v46  ;;  %v15875_v22 = vmax.f32 %v20972_v32, %v4355_v1  ;;  %v12214_v42 = vadd.f32 %v3677_v20, %v20976_v37  ;;  %v20977_v27 = vmax.f32 %v15831_v7, 0.0  ;;  %11025 = vmatprep.mubr.msk.f32.mxu1 %vm5647_vm9, %v5443_v21  ;;  %v4966_v44 = vsel %vm4946_vm8, %v4799_v11, %v4801_v52  ;;  %v20980_v20 = vld [vmem:[#allocation20_spill] sm:$0xff] }
 0x52b   : > { %v15883_v43 = vmax.f32 %v20974_v60, %v4357_v18  ;;  %v5440_v29 = vrot.slane %v15827_v13, 2  ;;  %v5446_v32 = vrot.slane %v15854_v50, 2  ;;  %v15898_v18 = vrot.slane %v20512_v5, 1  ;;  %v4807_v11 = vpop.permute.xlu1 %4806  ;;  %v3689_v60 = vpop.f32.mrb[107].mxu0 }
 0x52c   : > { %20973 = vst [vmem:[#allocation16_spill] sm:$0xff] %v15875_v22  ;;  %v15888_v8 = vrot.slane %v20977_v27, 1  ;;  %4910 = vrot.lane.b32.xlu1 %v15875_v22, %s12973_s14  ;;  %v15904_v1 = vadd.f32 %v12214_v42, %v14660_v62  ;;  %v15907_v21 = vmax.f32 %v20978_v49, %v4801_v52  ;;  %v4359_v5 = vsel %vm409_vm3, %v15788_v48, %v15839_v31  ;;  %v4809_v13 = vpop.permute.xlu0 %4808  ;;  %v20981_v42 = vld [vmem:[#allocation18_spill] sm:$0xff] }
 0x52d   : > { %20975 = vst [vmem:[#allocation14_spill] sm:$0xff] %v15883_v43  ;;  %4912 = vrot.lane.b32.xlu0 %v15883_v43, %s12973_s14  ;;  %v5441_v37 = vsel %vm1570_vm5, %v5436_v24, %v5440_v29  ;;  %v5447_v27 = vsel %vm1570_vm5, %v5442_v56, %v5446_v32  ;;  %v12215_v50 = vadd.f32 %v3681_v34, %v20980_v20  ;;  %v20983_v52 = vmax.f32 %v15741_v30, 0.0  ;;  %v20988_v30 = vld [vmem:[#allocation21_spill] sm:$0xff] }
 0x52e   : > { %20979 = vst [vmem:[#allocation17_spill] sm:$0xff] %v15907_v21  ;;  %v20519_v22 = vmax.f32 %v15904_v1, 0.0  ;;  %v15917_v43 = vmax.f32 %v20981_v42, %v4966_v44  ;;  %5906 = vmatmul.mubr.f32.gmra.mrb[50].mxu1 %v5441_v37  ;;  %v4361_v24 = vsel %vm409_vm3, %v15799_v3, %v15843_v10  ;;  %v20985_v56 = vmax.f32 %v15879_v38, 0.0  ;;  %v3693_v37 = vpop.f32.mrb[108].mxu0 }
 0x52f   : > { %v15921_v49 = vmax.f32 %v20983_v52, %v4359_v5  ;;  %11026 = vmatprep.mubr.msk.f32.mxu1 %vm5647_vm9, %v5447_v27  ;;  %v15932_v34 = vadd.f32 %v12215_v50, %v14650_v45  ;;  %v20986_v44 = vmax.f32 %v15762_v15, 0.0  ;;  %v12216_v5 = vadd.f32 %v3683_v25, %v20988_v30  ;;  %v20989_v27 = vld [vmem:[#allocation23_spill] sm:$0xff]  ;;  %v4811_v15 = vpop.permute.xlu1 %4810 }
 0x530   : > { %20982 = vst [vmem:[#allocation19_spill] sm:$0xff] %v15917_v43  ;;  %v15928_v48 = vrot.slane %v20985_v56, 1  ;;  %v15941_v42 = vrot.slane %v20519_v22, 1  ;;  %v4967_v3 = vsel %vm4946_vm8, %v4803_v36, %v4805_v57  ;;  %v15947_v52 = vmax.f32 %v20989_v27, %v4805_v57  ;;  %v4813_v57 = vpop.permute.xlu0 %4812  ;;  %v20993_v56 = vld [vmem:[#allocation24_spill] sm:$0xff] }
 0x531   : > { %20984 = vst [vmem:[#allocation20_spill] sm:$0xff] %v15921_v49  ;;  %v15936_v20 = vmax.f32 %v20986_v44, %v4361_v24  ;;  %4914 = vrot.lane.b32.xlu1 %v15921_v49, %s12973_s14  ;;  %v5444_v50 = vrot.slane %v15869_v46, 2  ;;  %v3695_v24 = vpop.f32.mrb[109].mxu0  ;;  %v15954_v25 = vadd.f32 %v12216_v5, %v14660_v62  ;;  %v5450_v44 = vrot.slane %v15907_v21, 2  ;;  %v20994_v21 = vld [vmem:[#allocation22_spill] sm:$0xff] }
 0x532   : > { %20990 = vst [vmem:[#allocation21_spill] sm:$0xff] %v15947_v52  ;;  %v4363_v36 = vsel %vm409_vm3, %v15839_v31, %v15888_v8  ;;  %v20991_v27 = vmax.f32 %v15794_v35, 0.0  ;;  %v12217_v46 = vadd.f32 %v3687_v55, %v20993_v56  ;;  %v4365_v5 = vsel %vm409_vm3, %v15843_v10, %v15898_v18  ;;  %v3699_v35 = vpop.f32.mrb[110].mxu0 }
 0x533   : > { %20987 = vst [vmem:[#allocation18_spill] sm:$0xff] %v15936_v20  ;;  %4916 = vrot.lane.b32.xlu0 %v15936_v20, %s12973_s14  ;;  %v5445_v30 = vsel %vm1570_vm5, %v5440_v29, %v5444_v50  ;;  %v20527_v49 = vmax.f32 %v15954_v25, 0.0  ;;  %v15971_v20 = vmax.f32 %v20994_v21, %v4967_v3  ;;  %v5451_v31 = vsel %vm1570_vm5, %v5446_v32, %v5450_v44  ;;  %v20998_v21 = vld [vmem:[#allocation26_spill] sm:$0xff]  ;;  %v3701_v56 = vpop.f32.mrb[111].mxu0 }
 0x534   : > { %v15963_v22 = vmax.f32 %v20991_v27, %v4363_v36  ;;  %5911 = vmatmul.mubr.f32.gmra.mrb[52].mxu1 %v5445_v30  ;;  %v20996_v29 = vmax.f32 %v15805_v16, 0.0  ;;  %v20997_v36 = vmax.f32 %v15932_v34, 0.0  ;;  %v15986_v10 = vadd.f32 %v12217_v46, %v14650_v45  ;;  %v4815_v16 = vpop.permute.xlu1 %4814 }
 0x535   : > { %20995 = vst [vmem:[#allocation24_spill] sm:$0xff] %v15971_v20  ;;  %11027 = vmatprep.mubr.msk.f32.mxu1 %vm5647_vm9, %v5451_v31  ;;  %v12218_v3 = vadd.f32 %v3689_v60, %v20998_v21  ;;  %v5448_v32 = vrot.slane %v15917_v43, 2  ;;  %v4372_v30 = vrot.slane %v20527_v49, 1  ;;  %v4968_v27 = vsel %vm4946_vm8, %v4807_v11, %v4809_v13 }
 0x536   : > { %20992 = vst [vmem:[#allocation23_spill] sm:$0xff] %v15963_v22  ;;  %v15976_v0 = vmax.f32 %v20996_v29, %v4365_v5  ;;  %v15980_v55 = vrot.slane %v20997_v36, 1  ;;  %4918 = vrot.lane.b32.xlu1 %v15963_v22, %s12973_s14  ;;  %v20999_v5 = vld [vmem:[#allocation27_spill] sm:$0xff]  ;;  %v5454_v46 = vrot.slane %v15947_v52, 2  ;;  %v4817_v29 = vpop.permute.xlu0 %4816  ;;  %v4367_v49 = vsel %vm409_vm3, %v15888_v8, %v15928_v48  ;;  %v21003_v52 = vld [vmem:[#allocation28_spill] sm:$0xff] }
 0x537   : > { %v15996_v31 = vmax.f32 %v20999_v5, %v4809_v13  ;;  %v16001_v36 = vadd.f32 %v12218_v3, %v14660_v62  ;;  %v5449_v21 = vsel %vm1570_vm5, %v5444_v50, %v5448_v32  ;;  %v21001_v13 = vmax.f32 %v15831_v7, 0.0  ;;  %v21004_v50 = vld [vmem:[#allocation25_spill] sm:$0xff]  ;;  %v21007_v7 = vld [vmem:[#allocation30_spill] sm:$0xff] }
 0x538   : > { %4920 = vrot.lane.b32.xlu0 %v15976_v0, %s12973_s14  ;;  %5916 = vmatmul.mubr.f32.gmra.mrb[54].mxu1 %v5449_v21  ;;  %v5455_v11 = vsel %vm1570_vm5, %v5450_v44, %v5454_v46  ;;  %v12219_v43 = vadd.f32 %v3693_v37, %v21003_v52  ;;  %v4369_v3 = vsel %vm409_vm3, %v15898_v18, %v15941_v42  ;;  %v21006_v8 = vmax.f32 %v15859_v58, 0.0  ;;  %v4819_v21 = vpop.permute.xlu1 %4818 }
 0x539   : > { %21000 = vst [vmem:[#allocation22_spill] sm:$0xff] %v15996_v31  ;;  %v16010_v5 = vmax.f32 %v21001_v13, %v4367_v49  ;;  %v20533_v60 = vmax.f32 %v16001_v36, 0.0  ;;  %v16018_v22 = vmax.f32 %v21004_v50, %v4968_v27  ;;  %11028 = vmatprep.mubr.msk.f32.mxu1 %vm5647_vm9, %v5455_v11  ;;  %v12220_v49 = vadd.f32 %v3695_v24, %v21007_v7 }
 0x53a   : > { %v16023_v44 = vmax.f32 %v21006_v8, %v4369_v3  ;;  %v21008_v37 = vmax.f32 %v15986_v10, 0.0  ;;  %v16031_v18 = vadd.f32 %v12219_v43, %v14650_v45  ;;  %v4969_v27 = vsel %vm4946_vm8, %v4811_v15, %v4813_v57  ;;  %v4821_v13 = vpop.permute.xlu0 %4820  ;;  %v21009_v3 = vld [vmem:[#allocation31_spill] sm:$0xff] }
 0x53b   : > { %21002 = vst [vmem:[#allocation26_spill] sm:$0xff] %v16010_v5  ;;  %21005 = vst [vmem:[#allocation27_spill] sm:$0xff] %v16018_v22  ;;  %4922 = vrot.lane.b32.xlu1 %v16010_v5, %s12973_s14  ;;  %v5452_v11 = vrot.slane %v15971_v20, 2  ;;  %v4376_v58 = vrot.slane %v20533_v60, 1  ;;  %v16040_v24 = vadd.f32 %v12220_v49, %v14660_v62  ;;  %v16043_v50 = vmax.f32 %v21009_v3, %v4813_v57 }
 0x53c   : > { %v4374_v52 = vrot.slane %v21008_v37, 1  ;;  %4924 = vrot.lane.b32.xlu0 %v16023_v44, %s12973_s14  ;;  %v5458_v43 = vrot.slane %v15996_v31, 2  ;;  %v4371_v7 = vsel %vm409_vm3, %v15928_v48, %v15980_v55  ;;  %v21011_v37 = vld [vmem:[#allocation32_spill] sm:$0xff]  ;;  %v21012_v57 = vmax.f32 %v15879_v38, 0.0  ;;  %v4823_v31 = vpop.permute.xlu1 %4822 }
 0x53d   : > { %21010 = vst [vmem:[#allocation28_spill] sm:$0xff] %v16043_v50  ;;  %v5453_v15 = vsel %vm1570_vm5, %v5448_v32, %v5452_v11  ;;  %v12221_v60 = vadd.f32 %v3699_v35, %v21011_v37  ;;  %v20539_v20 = vmax.f32 %v16040_v24, 0.0  ;;  %v4373_v8 = vsel %vm409_vm3, %v15941_v42, %v4372_v30  ;;  %v21013_v32 = vld [vmem:[#allocation29_spill] sm:$0xff] }
 0x53e   : > { %5921 = vmatmul.mubr.f32.gmra.mrb[56].mxu1 %v5453_v15  ;;  %v5459_v49 = vsel %vm1570_vm5, %v5454_v46, %v5458_v43  ;;  %v16056_v3 = vmax.f32 %v21012_v57, %v4371_v7  ;;  %v16061_v5 = vmax.f32 %v21013_v32, %v4969_v27  ;;  %v21015_v35 = vmax.f32 %v15904_v1, 0.0  ;;  %v21016_v46 = vld [vmem:[#allocation35_spill] sm:$0xff]  ;;  %v4825_v7 = vpop.permute.xlu0 %4824  ;;  %v21020_v32 = vld [vmem:[#allocation33_spill] sm:$0xff] }
 0x53f   : > { %11029 = vmatprep.mubr.msk.f32.mxu1 %vm5647_vm9, %v5459_v49  ;;  %v16065_v48 = vadd.f32 %v12221_v60, %v14650_v45  ;;  %v12222_v38 = vadd.f32 %v3701_v56, %v21016_v46  ;;  %v21017_v37 = vmax.f32 %v16031_v18, 0.0  ;;  %v4380_v42 = vrot.slane %v20539_v20, 1  ;;  %v21018_v60 = vld [vmem:[#allocation34_spill] sm:$0xff]  ;;  %v21025_v1 = vld [vmem:[#allocation37_spill] sm:$0xff] }
 0x540   : > { %21014 = vst [vmem:[#allocation25_spill] sm:$0xff] %v16061_v5  ;;  %v16069_v15 = vmax.f32 %v21015_v35, %v4373_v8  ;;  %4926 = vrot.lane.b32.xlu1 %v16056_v3, %s12973_s14  ;;  %v4970_v27 = vsel %vm4946_vm8, %v4815_v16, %v4817_v29  ;;  %v5456_v45 = vrot.slane %v16018_v22, 2  ;;  %v16087_v8 = vmax.f32 %v21018_v60, %v4817_v29  ;;  %v4827_v20 = vpop.permute.xlu1 %4826 }
 0x541   : > { %v4378_v57 = vrot.slane %v21017_v37, 1  ;;  %v16084_v56 = vadd.f32 %v12222_v38, %v14660_v62  ;;  %v5462_v49 = vrot.slane %v16043_v50, 2  ;;  %v16091_v35 = vmax.f32 %v21020_v32, %v4970_v27 }
 0x542   : > { %4928 = vrot.lane.b32.xlu0 %v16069_v15, %s12973_s14  ;;  %21019 = vst [vmem:[#allocation30_spill] sm:$0xff] %v16087_v8  ;;  %v5457_v16 = vsel %vm1570_vm5, %v5452_v11, %v5456_v45  ;;  %v4375_v46 = vsel %vm409_vm3, %v15980_v55, %v4374_v52  ;;  %v4377_v37 = vsel %vm409_vm3, %v4372_v30, %v4376_v58  ;;  %v21022_v29 = vmax.f32 %v15932_v34, 0.0  ;;  %v4829_v60 = vpop.permute.xlu0 %4828 }
 0x543   : > { %21021 = vst [vmem:[#allocation31_spill] sm:$0xff] %v16091_v35  ;;  %5926 = vmatmul.mubr.f32.gmra.mrb[58].mxu1 %v5457_v16  ;;  %v5463_v62 = vsel %vm1570_vm5, %v5458_v43, %v5462_v49  ;;  %v4971_v27 = vsel %vm4946_vm8, %v4819_v21, %v4821_v13  ;;  %v21023_v11 = vmax.f32 %v16065_v48, 0.0  ;;  %v21024_v55 = vmax.f32 %v15954_v25, 0.0 }
 0x544   : > { %v16101_v38 = vmax.f32 %v21022_v29, %v4375_v46  ;;  %11030 = vmatprep.mubr.msk.f32.mxu1 %vm5647_vm9, %v5463_v62  ;;  %v16112_v16 = vmax.f32 %v21025_v1, %v4821_v13  ;;  %v5460_v43 = vrot.slane %v16061_v5, 2  ;;  %v21027_v34 = vmax.f32 %v16084_v56, 0.0  ;;  %v4831_v62 = vpop.permute.xlu1 %4830 }
 0x545   : > { %v4382_v32 = vrot.slane %v21023_v11, 1  ;;  %v16109_v30 = vmax.f32 %v21024_v55, %v4377_v37  ;;  %v5466_v21 = vrot.slane %v16087_v8, 2  ;;  %v4379_v29 = vsel %vm409_vm3, %v4374_v52, %v4378_v57  ;;  %v21029_v11 = vld [vmem:[#allocation36_spill] sm:$0xff] }
 0x546   : > { %21026 = vst [vmem:[#allocation32_spill] sm:$0xff] %v16112_v16  ;;  %v4384_v46 = vrot.slane %v21027_v34, 1  ;;  %4930 = vrot.lane.b32.xlu1 %v16101_v38, %s12973_s14  ;;  %v5461_v25 = vsel %vm1570_vm5, %v5456_v45, %v5460_v43  ;;  %v21028_v13 = vmax.f32 %v15986_v10, 0.0  ;;  %v4381_v37 = vsel %vm409_vm3, %v4376_v58, %v4380_v42  ;;  %v4833_v45 = vpop.permute.xlu0 %4832  ;;  %v21032_v10 = vld [vmem:[#allocation39_spill] sm:$0xff] }
 0x547   : > { %4932 = vrot.lane.b32.xlu0 %v16109_v30, %s12973_s14  ;;  %v16130_v55 = vmax.f32 %v21029_v11, %v4971_v27  ;;  %5931 = vmatmul.mubr.f32.gmra.mrb[60].mxu1 %v5461_v25  ;;  %v5467_v34 = vsel %vm1570_vm5, %v5462_v49, %v5466_v21  ;;  %v21031_v52 = vmax.f32 %v16001_v36, 0.0  ;;  %v4972_v5 = vsel %vm4946_vm8, %v4823_v31, %v4825_v7 }
 0x548   : > { %v16126_v1 = vmax.f32 %v21028_v13, %v4379_v29  ;;  %11031 = vmatprep.mubr.msk.f32.mxu1 %vm5647_vm9, %v5467_v34  ;;  %v16140_v29 = vmax.f32 %v21032_v10, %v4825_v7  ;;  %v5464_v58 = vrot.slane %v16091_v35, 2  ;;  %v5470_v27 = vrot.slane %v16112_v16, 2  ;;  %v21035_v13 = vld [vmem:[#allocation41_spill] sm:$0xff]  ;;  %v21037_v7 = vld [vmem:[#allocation38_spill] sm:$0xff]  ;;  %v4835_v10 = vpop.permute.xlu1 %4834  ;;  %v5229_v16 = vld [vmem:[%s20379_s3 + $0x10] sm:$0xff] }
 0x549   : > { %21030 = vst [vmem:[#allocation29_spill] sm:$0xff] %v16130_v55  ;;  %v16135_v8 = vmax.f32 %v21031_v52, %v4381_v37  ;;  %v4383_v25 = vsel %vm409_vm3, %v4378_v57, %v4382_v32  ;;  %v21034_v36 = vmax.f32 %v16031_v18, 0.0  ;;  %v4385_v31 = vsel %vm409_vm3, %v4380_v42, %v4384_v46 }
 0x54a   : > { %21033 = vst [vmem:[#allocation35_spill] sm:$0xff] %v16140_v29  ;;  %4934 = vrot.lane.b32.xlu1 %v16126_v1, %s12973_s14  ;;  %v16153_v37 = vmax.f32 %v21035_v13, %v4829_v60  ;;  %v16158_v11 = vmax.f32 %v21037_v7, %v4972_v5  ;;  %v5465_v57 = vsel %vm1570_vm5, %v5460_v43, %v5464_v58  ;;  %v21039_v52 = vmax.f32 %v16040_v24, 0.0  ;;  %v4837_v13 = vpop.permute.xlu0 %4836  ;;  %v5227_v5 = vld [vmem:[%s20379_s3] sm:$0xff]  ;;  %v5228_v24 = vld [vmem:[%s20379_s3 + $0x8] sm:$0xff] }
 0x54b   : > { %v16149_v49 = vmax.f32 %v21034_v36, %v4383_v25  ;;  %4936 = vrot.lane.b32.xlu0 %v16135_v8, %s12973_s14  ;;  %v5471_v34 = vsel %vm1570_vm5, %v5466_v21, %v5470_v27  ;;  %5936 = vmatmul.mubr.f32.gmra.mrb[62].mxu1 %v5465_v57  ;;  %v4973_v42 = vsel %vm4946_vm8, %v4827_v20, %v4829_v60  ;;  %v5468_v25 = vrot.slane %v16130_v55, 2  ;;  %v21040_v60 = vld [vmem:[#allocation43_spill] sm:$0xff] }
 0x54c   : > { %21036 = vst [vmem:[#allocation34_spill] sm:$0xff] %v16153_v37  ;;  %21038 = vst [vmem:[#allocation33_spill] sm:$0xff] %v16158_v11  ;;  %v16164_v18 = vmax.f32 %v21039_v52, %v4385_v31  ;;  %v5474_v36 = vrot.slane %v16140_v29, 2  ;;  %11032 = vmatprep.mubr.msk.f32.mxu1 %vm5647_vm9, %v5471_v34  ;;  %v16180_v43 = vmax.f32 %v21040_v60, %v4833_v45  ;;  %v5478_v21 = vrot.slane %v16153_v37, 2  ;;  %v21041_v31 = vld [vmem:[#allocation40_spill] sm:$0xff]  ;;  %v4839_v52 = vpop.permute.xlu1 %4838 }
 0x54d   : > { %v16186_v7 = vmax.f32 %v21041_v31, %v4973_v42  ;;  %v5469_v57 = vsel %vm1570_vm5, %v5464_v58, %v5468_v25  ;;  %v5472_v34 = vrot.slane %v16158_v11, 2  ;;  %v21043_v29 = vmax.f32 %v16065_v48, 0.0  ;;  %v5230_v58 = vld [vmem:[%s20379_s3 + $0x18] sm:$0xff] }
 0x54e   : > { %4938 = vrot.lane.b32.xlu1 %v16149_v49, %s12973_s14  ;;  %v5475_v20 = vsel %vm1570_vm5, %v5470_v27, %v5474_v36  ;;  %v4974_v27 = vsel %vm4946_vm8, %v4831_v62, %v4833_v45  ;;  %v4841_v60 = vpop.permute.xlu0 %4840  ;;  %v11706_v37 = vpack.c.bf16 %v5228_v24, %v5227_v5  ;;  %v21045_v42 = vmax.f32 %v16084_v56, 0.0 }
 0x54f   : > { %4940 = vrot.lane.b32.xlu0 %v16164_v18, %s12973_s14  ;;  %21042 = vst [vmem:[#allocation37_spill] sm:$0xff] %v16186_v7  ;;  %v16192_v55 = vmax.f32 %v21043_v29, %v4382_v32  ;;  %5941 = vmatmul.mubr.f32.gmra.mrb[64].mxu1 %v5469_v57  ;;  %v5479_v48 = vsel %vm1570_vm5, %v5474_v36, %v5478_v21  ;;  %v21047_v32 = vld [vmem:[#allocation45_spill] sm:$0xff]  ;;  %v5482_v45 = vrot.slane %v16180_v43, 2  ;;  %v21049_v29 = vld [vmem:[#allocation42_spill] sm:$0xff] }
 0x550   : > { %v16203_v31 = vmax.f32 %v21045_v42, %v4384_v46  ;;  %11033 = vmatprep.mubr.msk.f32.mxu1 %vm5647_vm9, %v5475_v20  ;;  %v16210_v62 = vmax.f32 %v21047_v32, %v4837_v13  ;;  %v16216_v5 = vmax.f32 %v21049_v29, %v4974_v27  ;;  %v5473_v56 = vsel %vm1570_vm5, %v5468_v25, %v5472_v34  ;;  %v4843_v24 = vpop.permute.xlu1 %4842  ;;  %v5231_v32 = vld [vmem:[%s20379_s3 + $0x20] sm:$0xff]  ;;  %v5232_v27 = vld [vmem:[%s20379_s3 + $0x28] sm:$0xff] }
 0x551   : > { %21044 = vst [vmem:[#allocation36_spill] sm:$0xff] %v16192_v55  ;;  %v5476_v46 = vrot.slane %v16186_v7, 2  ;;  %11707 = vmatpush1.bf16.msra.mxu1 %v11706_v37  ;;  %v11709_v20 = vpack.c.bf16 %v5230_v58, %v5229_v16  ;;  %v4975_v36 = vsel %vm4946_vm8, %v4835_v10, %v4837_v13  ;;  %v21051_v42 = vmov 0.0|0.0   ;;  %v21052_v37 = vld [vmem:[#allocation47_spill] sm:$0xff]  ;;  %v21054_v13 = vld [vmem:[#allocation44_spill] sm:$0xff] }
 0x552   : > { %21046 = vst [vmem:[#allocation39_spill] sm:$0xff] %v16203_v31  ;;  %4942 = vrot.lane.b32.xlu1 %v16192_v55, %s12973_s14  ;;  %21048 = vst [vmem:[#allocation41_spill] sm:$0xff] %v16210_v62  ;;  %v4845_v57 = vpop.permute.xlu0 %4844  ;;  %11708 = vmatprep.subr.bf16.mxu1 %v21051_v42  ;;  %v5483_v25 = vsel %vm1570_vm5, %v5478_v21, %v5482_v45  ;;  %v16231_v16 = vmax.f32 %v21052_v37, %v4841_v60  ;;  %v5486_v10 = vrot.slane %v16210_v62, 2  ;;  %v5233_v21 = vld [vmem:[%s20379_s3 + $0x30] sm:$0xff]  ;;  %v21056_v37 = vld [vmem:[#allocation50_spill] sm:$0xff] }
 0x553   : > { %4944 = vrot.lane.b32.xlu0 %v16203_v31, %s12973_s14  ;;  %21050 = vst [vmem:[#allocation38_spill] sm:$0xff] %v16216_v5  ;;  %5946 = vmatmul.mubr.f32.gmra.mrb[66].mxu1 %v5473_v56  ;;  %v16235_v58 = vmax.f32 %v21054_v13, %v4975_v36  ;;  %v5477_v29 = vsel %vm1570_vm5, %v5472_v34, %v5476_v46  ;;  %v5480_v56 = vrot.slane %v16216_v5, 2  ;;  %v5234_v36 = vld [vmem:[%s20379_s3 + $0x38] sm:$0xff] }
 0x554   : > { %11034 = vmatprep.mubr.msk.f32.mxu1 %vm5647_vm9, %v5479_v48  ;;  %21053 = vst [vmem:[#allocation43_spill] sm:$0xff] %v16231_v16  ;;  %v4847_v55 = vpop.permute.xlu1 %4846  ;;  %v11712_v31 = vpack.c.bf16 %v5232_v27, %v5231_v32  ;;  %v4976_v48 = vsel %vm4946_vm8, %v4839_v52, %v4841_v60  ;;  %v5487_v34 = vsel %vm1570_vm5, %v5482_v45, %v5486_v10  ;;  %v5490_v32 = vrot.slane %v16231_v16, 2  ;;  %v21058_v60 = vld [vmem:[#allocation46_spill] sm:$0xff] }
 0x555   : > { %21055 = vst [vmem:[#allocation40_spill] sm:$0xff] %v16235_v58  ;;  %11710 = vmatpush1.bf16.msra.mxu1 %v11709_v20  ;;  %v16250_v20 = vmax.f32 %v21056_v37, %v4845_v57  ;;  %v16254_v27 = vmax.f32 %v21058_v60, %v4976_v48  ;;  %v5481_v13 = vsel %vm1570_vm5, %v5476_v46, %v5480_v56  ;;  %v5235_v45 = vld [vmem:[%s20379_s3 + $0x40] sm:$0xff]  ;;  %v5236_v48 = vld [vmem:[%s20379_s3 + $0x48] sm:$0xff] }
 0x556   : > { %11711 = vmatprep.subr.bf16.mxu1 %v21051_v42  ;;  %v4849_v52 = vpop.permute.xlu0 %4848  ;;  %v11715_v62 = vpack.c.bf16 %v5234_v36, %v5233_v21  ;;  %v5491_v46 = vsel %vm1570_vm5, %v5486_v10, %v5490_v32  ;;  %v5238_v10 = vld [vmem:[%s20379_s3 + $0x58] sm:$0xff] }
 0x557   : > { %5951 = vmatmul.mubr.f32.gmra.mrb[68].mxu1 %v5477_v29  ;;  %21057 = vst [vmem:[#allocation45_spill] sm:$0xff] %v16250_v20  ;;  %21059 = vst [vmem:[#allocation42_spill] sm:$0xff] %v16254_v27  ;;  %v5484_v29 = vrot.slane %v16235_v58, 2  ;;  %v5488_v37 = vrot.slane %v16254_v27, 2 }
 0x558   : > { %11035 = vmatprep.mubr.msk.f32.mxu1 %vm5647_vm9, %v5483_v25  ;;  %v4977_v25 = vsel %vm4946_vm8, %v4843_v24, %v4845_v57  ;;  %v4851_v5 = vpop.permute.xlu1 %4850  ;;  %v5494_v24 = vrot.slane %v16250_v20, 2  ;;  %v21061_v57 = vld [vmem:[#allocation49_spill] sm:$0xff] }
 0x559   : > { %11713 = vmatpush1.bf16.msra.mxu1 %v11712_v31  ;;  %v16269_v31 = vmax.f32 %v15170_v63, %v4849_v52  ;;  %v16273_v21 = vmax.f32 %v21061_v57, %v4977_v25  ;;  %v5485_v36 = vsel %vm1570_vm5, %v5480_v56, %v5484_v29  ;;  %v5237_v63 = vld [vmem:[%s20379_s3 + $0x50] sm:$0xff] }
 0x55a   : > { %11714 = vmatprep.subr.bf16.mxu1 %v21051_v42  ;;  %v4853_v60 = vpop.permute.xlu0 %4852  ;;  %v5495_v56 = vsel %vm1570_vm5, %v5490_v32, %v5494_v24  ;;  %v11721_v57 = vpack.c.bf16 %v5238_v10, %v5237_v63 }
 0x55b   : > { %5956 = vmatmul.mubr.f32.gmra.mrb[70].mxu1 %v5481_v13  ;;  %21060 = vst [vmem:[#allocation47_spill] sm:$0xff] %v16269_v31  ;;  %21062 = vst [vmem:[#allocation44_spill] sm:$0xff] %v16273_v21  ;;  %v11718_v13 = vpack.c.bf16 %v5236_v48, %v5235_v45  ;;  %v5498_v25 = vrot.slane %v16269_v31, 2  ;;  %v5489_v45 = vsel %vm1570_vm5, %v5484_v29, %v5488_v37  ;;  %v5492_v48 = vrot.slane %v16273_v21, 2 }
 0x55c   : > { %11036 = vmatprep.mubr.msk.f32.mxu1 %vm5647_vm9, %v5487_v34  ;;  %v4978_v34 = vsel %vm4946_vm8, %v4847_v55, %v4849_v52  ;;  %v4855_v55 = vpop.permute.xlu1 %4854 }
 0x55d   : > { %11716 = vmatpush1.bf16.msra.mxu1 %v11715_v62  ;;  %v16288_v62 = vmax.f32 %v15210_v47, %v4853_v60  ;;  %v16292_v52 = vmax.f32 %v15139_v59, %v4978_v34  ;;  %v5239_v47 = vld [vmem:[%s20379_s3 + $0x60] sm:$0xff]  ;;  %v5240_v59 = vld [vmem:[%s20379_s3 + $0x68] sm:$0xff]  ;;  %v5499_v32 = vsel %vm1570_vm5, %v5494_v24, %v5498_v25  ;;  %v5493_v63 = vsel %vm1570_vm5, %v5488_v37, %v5492_v48  ;;  %v5242_v24 = vld [vmem:[%s20379_s3 + $0x78] sm:$0xff] }
 0x55e   : > { %11717 = vmatprep.subr.bf16.mxu1 %v21051_v42 }
 0x55f   : > { %5961 = vmatmul.mubr.f32.gmra.mrb[72].mxu1 %v5485_v36  ;;  %21063 = vst [vmem:[#allocation50_spill] sm:$0xff] %v16288_v62  ;;  %21064 = vst [vmem:[#allocation46_spill] sm:$0xff] %v16292_v52  ;;  %v4857_v36 = vpop.permute.xlu0 %4856  ;;  %v5496_v10 = vrot.slane %v16292_v52, 2 }
 0x560   : > { %11037 = vmatprep.mubr.msk.f32.mxu1 %vm5647_vm9, %v5491_v46  ;;  %v4979_v46 = vsel %vm4946_vm8, %v4851_v5, %v4853_v60  ;;  %v16307_v29 = vmax.f32 %v15254_v33, %v4857_v36  ;;  %v5502_v5 = vrot.slane %v16288_v62, 2  ;;  %v4859_v60 = vpop.permute.xlu1 %4858  ;;  %v5241_v33 = vld [vmem:[%s20379_s3 + $0x70] sm:$0xff] }
 0x561   : > { %11719 = vmatpush1.bf16.msra.mxu1 %v11718_v13  ;;  %v21066_v13 = vld [vmem:[#allocation56_spill] sm:$0xff] }
 0x562   : > { %11720 = vmatprep.subr.bf16.mxu1 %v21051_v42  ;;  %21065 = vst [vmem:[#allocation49_spill] sm:$0xff] %v16307_v29  ;;  %v16311_v34 = vmax.f32 %v21066_v13, %v4979_v46  ;;  %v5503_v37 = vsel %vm1570_vm5, %v5498_v25, %v5502_v5  ;;  %v11727_v13 = vpack.c.bf16 %v5242_v24, %v5241_v33 }
 0x563   : > { %5966 = vmatmul.mubr.f32.gmra.mrb[74].mxu1 %v5489_v45  ;;  %v11724_v45 = vpack.c.bf16 %v5240_v59, %v5239_v47  ;;  %v4861_v31 = vpop.permute.xlu0 %4860 }
 0x564   : > { %11038 = vmatprep.mubr.msk.f32.mxu1 %vm5647_vm9, %v5495_v56  ;;  %21067 = vst [vmem:[#allocation56_spill] sm:$0xff] %v16311_v34  ;;  %v4980_v56 = vsel %vm4946_vm8, %v4855_v55, %v4857_v36  ;;  %v5506_v55 = vrot.slane %v16307_v29, 2  ;;  %v5497_v36 = vsel %vm1570_vm5, %v5492_v48, %v5496_v10  ;;  %v5500_v47 = vrot.slane %v16311_v34, 2  ;;  %v4863_v59 = vpop.permute.xlu1 %4862 }
 0x565   : > { %11722 = vmatpush1.bf16.msra.mxu1 %v11721_v57  ;;  %v16326_v57 = vmax.f32 %v15293_v9, %v4861_v31  ;;  %v16330_v46 = vmax.f32 %v15236_v53, %v4980_v56  ;;  %v5243_v9 = vld [vmem:[%s20379_s3 + $0x80] sm:$0xff]  ;;  %v5244_v53 = vld [vmem:[%s20379_s3 + $0x88] sm:$0x7f] }
 0x566   : > { %11723 = vmatprep.subr.bf16.mxu1 %v21051_v42  ;;  %v5507_v25 = vsel %vm1570_vm5, %v5502_v5, %v5506_v55  ;;  %v11730_v24 = vpack.c.bf16 %v5244_v53, %v5243_v9  ;;  %v21076_v53 = vld [vmem:[#allocation67_spill] sm:$0xff] }
 0x567   : > { %5971 = vmatmul.mubr.f32.gmra.mrb[76].mxu1 %v5493_v63  ;;  %21068 = vst [vmem:[#allocation89_spill] sm:$0xff] %v16326_v57  ;;  %21069 = vst [vmem:[#allocation90_spill] sm:$0xff] %v16330_v46  ;;  %v4865_v63 = vpop.permute.xlu0 %4864  ;;  %v5504_v56 = vrot.slane %v16330_v46, 2 }
 0x568   : > { %11039 = vmatprep.mubr.msk.f32.mxu1 %vm5647_vm9, %v5499_v32  ;;  %v4981_v32 = vsel %vm4946_vm8, %v4859_v60, %v4861_v31  ;;  %v16345_v48 = vmax.f32 %v15332_v26, %v4865_v63  ;;  %v5510_v31 = vrot.slane %v16326_v57, 2  ;;  %v4867_v33 = vpop.permute.xlu1 %4866 }
 0x569   : > { %11725 = vmatpush1.bf16.msra.mxu1 %v11724_v45  ;;  %v16349_v60 = vmax.f32 %v15273_v23, %v4981_v32  ;;  %v5501_v45 = vsel %vm1570_vm5, %v5496_v10, %v5500_v47 }
 0x56a   : > { %11726 = vmatprep.subr.bf16.mxu1 %v21051_v42  ;;  %21070 = vst [vmem:[#allocation91_spill] sm:$0xff] %v16345_v48  ;;  %v5511_v26 = vsel %vm1570_vm5, %v5506_v55, %v5510_v31  ;;  %v5514_v5 = vrot.slane %v16345_v48, 2 }
 0x56b   : > { %5976 = vmatmul.mubr.f32.gmra.mrb[78].mxu1 %v5497_v36  ;;  %21071 = vst [vmem:[#allocation92_spill] sm:$0xff] %v16349_v60  ;;  %v4869_v36 = vpop.permute.xlu0 %4868  ;;  %v5508_v32 = vrot.slane %v16349_v60, 2 }
 0x56c   : > { %11040 = vmatprep.mubr.msk.f32.mxu1 %vm5647_vm9, %v5503_v37  ;;  %v4982_v37 = vsel %vm4946_vm8, %v4863_v59, %v4865_v63  ;;  %v16358_v23 = vmax.f32 %v15373_v40, %v4869_v36  ;;  %v4871_v59 = vpop.permute.xlu1 %4870  ;;  %v4983_v9 = vsel %vm4946_vm8, %v4867_v33, %v4869_v36  ;;  %v5515_v40 = vsel %vm1570_vm5, %v5510_v31, %v5514_v5 }
 0x56d   : > { %11728 = vmatpush1.bf16.msra.mxu1 %v11727_v13  ;;  %v16362_v10 = vmax.f32 %v15319_v17, %v4982_v37  ;;  %v5505_v13 = vsel %vm1570_vm5, %v5500_v47, %v5504_v56 }
 0x56e   : > { %11729 = vmatprep.subr.bf16.mxu1 %v21051_v42  ;;  %21072 = vst [vmem:[#allocation93_spill] sm:$0xff] %v16358_v23  ;;  %v5518_v47 = vrot.slane %v16358_v23, 2 }
 0x56f   : > { %5981 = vmatmul.mubr.f32.gmra.mrb[80].mxu1 %v5501_v45  ;;  %21073 = vst [vmem:[#allocation94_spill] sm:$0xff] %v16362_v10  ;;  %v4873_v55 = vpop.permute.xlu0 %4872  ;;  %v5509_v45 = vsel %vm1570_vm5, %v5504_v56, %v5508_v32 }
 0x570   : > { %11041 = vmatprep.mubr.msk.f32.mxu1 %vm5647_vm9, %v5507_v25  ;;  %v16373_v17 = vmax.f32 %v15415_v4, %v4873_v55  ;;  %v16377_v25 = vmax.f32 %v21076_v53, %v4983_v9  ;;  %v4875_v33 = vpop.permute.xlu1 %4874  ;;  %v4984_v37 = vsel %vm4946_vm8, %v4871_v59, %v4873_v55  ;;  %v5519_v31 = vsel %vm1570_vm5, %v5514_v5, %v5518_v47 }
 0x571   : > { %11732 = vmatpush1.bf16.msk.msra.mxu1 %vm14692_vm7, %v11730_v24  ;;  %v5512_v24 = vrot.slane %v16362_v10, 2 }
 0x572   : > { %11733 = vmatprep.subr.bf16.mxu1 %v21051_v42  ;;  %21075 = vst [vmem:[#allocation95_spill] sm:$0xff] %v16373_v17  ;;  %21077 = vst [vmem:[#allocation67_spill] sm:$0xff] %v16377_v25  ;;  %v5516_v9 = vrot.slane %v16377_v25, 2 }
 0x573   : > { %5986 = vmatmul.mubr.f32.gmra.mrb[82].mxu1 %v5505_v13  ;;  %v4877_v36 = vpop.permute.xlu0 %4876  ;;  %v16389_v13 = vmax.f32 %v15404_v28, %v4984_v37  ;;  %v5513_v56 = vsel %vm1570_vm5, %v5508_v32, %v5512_v24  ;;  %v21081_v28 = vld [vmem:[#allocation71_spill] sm:$0xff] }
 0x574   : > { %11042 = vmatprep.mubr.msk.f32.mxu1 %vm5647_vm9, %v5511_v26  ;;  %v16385_v4 = vmax.f32 %v15458_v51, %v4877_v36  ;;  %v5522_v26 = vrot.slane %v16373_v17, 2  ;;  %v4985_v59 = vsel %vm4946_vm8, %v4875_v33, %v4877_v36  ;;  %v5517_v32 = vsel %vm1570_vm5, %v5512_v24, %v5516_v9 }
 0x575   : > { %21079 = vst [vmem:[#allocation97_spill] sm:$0xff] %v16389_v13  ;;  %v5520_v37 = vrot.slane %v16389_v13, 2 }
 0x576   : > { %21078 = vst [vmem:[#allocation96_spill] sm:$0xff] %v16385_v4  ;;  %v4879_v55 = vpop.permute.xlu1 %4878  ;;  %v5523_v5 = vsel %vm1570_vm5, %v5518_v47, %v5522_v26  ;;  %v5526_v53 = vrot.slane %v16385_v4, 2 }
 0x577   : > { %5991 = vmatmul.mubr.f32.gmra.mrb[84].mxu1 %v5509_v45  ;;  %v16401_v45 = vmax.f32 %v21081_v28, %v4985_v59  ;;  %v5521_v24 = vsel %vm1570_vm5, %v5516_v9, %v5520_v37 }
 0x578   : > { %11043 = vmatprep.mubr.msk.f32.mxu1 %vm5647_vm9, %v5515_v40  ;;  %v4881_v40 = vpop.permute.xlu0 %4880  ;;  %v5527_v47 = vsel %vm1570_vm5, %v5522_v26, %v5526_v53 }
 0x579   : > { %v16397_v51 = vmax.f32 %v15503_v41, %v4881_v40  ;;  %21082 = vst [vmem:[#allocation71_spill] sm:$0xff] %v16401_v45  ;;  %v4986_v33 = vsel %vm4946_vm8, %v4879_v55, %v4881_v40  ;;  %v5524_v28 = vrot.slane %v16401_v45, 2 }
 0x57a   : > { %v4883_v36 = vpop.permute.xlu1 %4882  ;;  %v16413_v59 = vmax.f32 %v15499_v61, %v4986_v33 }
 0x57b   : > { %5996 = vmatmul.mubr.f32.gmra.mrb[86].mxu1 %v5513_v56  ;;  %21080 = vst [vmem:[#allocation98_spill] sm:$0xff] %v16397_v51  ;;  %v5530_v56 = vrot.slane %v16397_v51, 2  ;;  %v5525_v9 = vsel %vm1570_vm5, %v5520_v37, %v5524_v28 }
 0x57c   : > { %11044 = vmatprep.mubr.msk.f32.mxu1 %vm5647_vm9, %v5519_v31  ;;  %v4885_v31 = vpop.permute.xlu0 %4884  ;;  %21084 = vst [vmem:[#allocation100_spill] sm:$0xff] %v16413_v59  ;;  %v5528_v33 = vrot.slane %v16413_v59, 2 }
 0x57d   : > { %v16409_v41 = vmax.f32 %v15555_v12, %v4885_v31  ;;  %v4987_v55 = vsel %vm4946_vm8, %v4883_v36, %v4885_v31  ;;  %v5531_v26 = vsel %vm1570_vm5, %v5526_v53, %v5530_v56 }
 0x57e   : > { %v16425_v61 = vmax.f32 %v15536_v2, %v4987_v55  ;;  %v5529_v2 = vsel %vm1570_vm5, %v5524_v28, %v5528_v33  ;;  %v21088_v55 = vld [vmem:[#allocation82_spill] sm:$0xff] }
 0x57f   : > { %6001 = vmatmul.mubr.f32.gmra.mrb[88].mxu1 %v5517_v32  ;;  %21083 = vst [vmem:[#allocation99_spill] sm:$0xff] %v16409_v41  ;;  %v4887_v40 = vpop.permute.xlu1 %4886  ;;  %v5534_v32 = vrot.slane %v16409_v41, 2 }
 0x580   : > { %11045 = vmatprep.mubr.msk.f32.mxu1 %vm5647_vm9, %v5523_v5  ;;  %v4889_v5 = vpop.permute.xlu0 %4888  ;;  %21086 = vst [vmem:[#allocation102_spill] sm:$0xff] %v16425_v61 }
 0x581   : > { %v16421_v12 = vmax.f32 %v15598_v14, %v4889_v5  ;;  %v4988_v36 = vsel %vm4946_vm8, %v4887_v40, %v4889_v5  ;;  %v5535_v53 = vsel %vm1570_vm5, %v5530_v56, %v5534_v32 }
 0x583   : > { %6006 = vmatmul.mubr.f32.gmra.mrb[90].mxu1 %v5521_v24  ;;  %21085 = vst [vmem:[#allocation101_spill] sm:$0xff] %v16421_v12  ;;  %v4891_v31 = vpop.permute.xlu1 %4890  ;;  %v5538_v14 = vrot.slane %v16421_v12, 2  ;;  %v16434_v24 = vmax.f32 %v15585_v54, %v4988_v36  ;;  %v21090_v54 = vld [vmem:[#allocation81_spill] sm:$0xff] }
 0x584   : > { %11046 = vmatprep.mubr.msk.f32.mxu1 %vm5647_vm9, %v5527_v47 }
 0x585   : > { %21087 = vst [vmem:[#allocation103_spill] sm:$0xff] %v16434_v24  ;;  %v5539_v56 = vsel %vm1570_vm5, %v5534_v32, %v5538_v14 }
 0x586   : > { %v4893_v47 = vpop.permute.xlu0 %4892 }
 0x587   : > { %6011 = vmatmul.mubr.f32.gmra.mrb[92].mxu1 %v5525_v9  ;;  %v16438_v37 = vmax.f32 %v21088_v55, %v4893_v47  ;;  %v5532_v9 = vrot.slane %v16425_v61, 2  ;;  %v4989_v40 = vsel %vm4946_vm8, %v4891_v31, %v4893_v47 }
 0x588   : > { %11047 = vmatprep.mubr.msk.f32.mxu1 %vm5647_vm9, %v5531_v26  ;;  %v16446_v36 = vmax.f32 %v21090_v54, %v4989_v40 }
 0x589   : > { %21089 = vst [vmem:[#allocation82_spill] sm:$0xff] %v16438_v37  ;;  %v4895_v5 = vpop.permute.xlu1 %4894  ;;  %v5542_v12 = vrot.slane %v16438_v37, 2  ;;  %v5533_v28 = vsel %vm1570_vm5, %v5528_v33, %v5532_v9 }
 0x58a   : > { %v4897_v26 = vpop.permute.xlu0 %4896  ;;  %21091 = vst [vmem:[#allocation81_spill] sm:$0xff] %v16446_v36  ;;  %v5540_v54 = vrot.slane %v16446_v36, 2 }
 0x58b   : > { %6016 = vmatmul.mubr.f32.gmra.mrb[94].mxu1 %v5529_v2  ;;  %v16450_v55 = vmax.f32 %v15689_v39, %v4897_v26  ;;  %v5536_v2 = vrot.slane %v16434_v24, 2  ;;  %v4990_v31 = vsel %vm4946_vm8, %v4895_v5, %v4897_v26  ;;  %v5543_v32 = vsel %vm1570_vm5, %v5538_v14, %v5542_v12 }
 0x58c   : > { %11048 = vmatprep.mubr.msk.f32.mxu1 %vm5647_vm9, %v5535_v53  ;;  %v16458_v40 = vmax.f32 %v15685_v6, %v4990_v31 }
 0x58d   : > { %21092 = vst [vmem:[#allocation104_spill] sm:$0xff] %v16450_v55  ;;  %v5546_v37 = vrot.slane %v16450_v55, 2  ;;  %v5537_v33 = vsel %vm1570_vm5, %v5532_v9, %v5536_v2  ;;  %v5541_v9 = vsel %vm1570_vm5, %v5536_v2, %v5540_v54  ;;  %v21097_v55 = vld [vmem:[#allocation7_spill] sm:$0xff] }
 0x58e   : > { %v4899_v53 = vpop.permute.xlu1 %4898  ;;  %21093 = vst [vmem:[#allocation105_spill] sm:$0xff] %v16458_v40 }
 0x58f   : > { %6021 = vmatmul.mubr.f32.gmra.mrb[96].mxu1 %v5533_v28  ;;  %v4901_v47 = vpop.permute.xlu0 %4900  ;;  %v5547_v14 = vsel %vm1570_vm5, %v5542_v12, %v5546_v37  ;;  %v21095_v28 = vld [vmem:[#allocation86_spill] sm:$0xff] }
 0x590   : > { %11049 = vmatprep.mubr.msk.f32.mxu1 %vm5647_vm9, %v5539_v56  ;;  %v16462_v39 = vmax.f32 %v15733_v19, %v4901_v47  ;;  %v4991_v5 = vsel %vm4946_vm8, %v4899_v53, %v4901_v47  ;;  %v5544_v19 = vrot.slane %v16458_v40, 2  ;;  %v21099_v47 = vld [vmem:[#allocation88_spill] sm:$0xff] }
 0x591   : > { %v16470_v6 = vmax.f32 %v21095_v28, %v4991_v5 }
 0x592   : > { %21094 = vst [vmem:[#allocation106_spill] sm:$0xff] %v16462_v39  ;;  %v4903_v56 = vpop.permute.xlu1 %4902  ;;  %v5550_v26 = vrot.slane %v16462_v39, 2  ;;  %v5545_v2 = vsel %vm1570_vm5, %v5540_v54, %v5544_v19 }
 0x593   : > { %6026 = vmatmul.mubr.f32.gmra.mrb[98].mxu1 %v5537_v33  ;;  %21096 = vst [vmem:[#allocation86_spill] sm:$0xff] %v16470_v6  ;;  %v5548_v39 = vrot.slane %v16470_v6, 2 }
 0x594   : > { %11050 = vmatprep.mubr.msk.f32.mxu1 %vm5647_vm9, %v5543_v32  ;;  %v4905_v31 = vpop.permute.xlu0 %4904  ;;  %v5551_v12 = vsel %vm1570_vm5, %v5546_v37, %v5550_v26  ;;  %v21103_v37 = vld [vmem:[#allocation12_spill] sm:$0xff] }
 0x595   : > { %v4992_v33 = vsel %vm4946_vm8, %v4903_v56, %v4905_v31  ;;  %v16476_v53 = vmax.f32 %v21097_v55, %v4905_v31  ;;  %v21101_v56 = vld [vmem:[#allocation11_spill] sm:$0xff] }
 0x596   : > { %v16482_v5 = vmax.f32 %v21099_v47, %v4992_v33  ;;  %v5549_v47 = vsel %vm1570_vm5, %v5544_v19, %v5548_v39 }
 0x597   : > { %6031 = vmatmul.mubr.f32.gmra.mrb[100].mxu1 %v5541_v9  ;;  %21098 = vst [vmem:[#allocation7_spill] sm:$0xff] %v16476_v53  ;;  %v5554_v32 = vrot.slane %v16476_v53, 2 }
 0x598   : > { %11051 = vmatprep.mubr.msk.f32.mxu1 %vm5647_vm9, %v5547_v14  ;;  %21100 = vst [vmem:[#allocation88_spill] sm:$0xff] %v16482_v5  ;;  %v4907_v28 = vpop.permute.xlu1 %4906  ;;  %v5552_v54 = vrot.slane %v16482_v5, 2 }
 0x599   : > { %v5555_v33 = vsel %vm1570_vm5, %v5550_v26, %v5554_v32 }
 0x59a   : > { %v4909_v9 = vpop.permute.xlu0 %4908  ;;  %v5553_v19 = vsel %vm1570_vm5, %v5548_v39, %v5552_v54 }
 0x59b   : > { %6036 = vmatmul.mubr.f32.gmra.mrb[102].mxu1 %v5545_v2  ;;  %v4993_v55 = vsel %vm4946_vm8, %v4907_v28, %v4909_v9  ;;  %v16489_v14 = vmax.f32 %v21101_v56, %v4909_v9  ;;  %v21105_v56 = vld [vmem:[#allocation14_spill] sm:$0xff] }
 0x59c   : > { %11052 = vmatprep.mubr.msk.f32.mxu1 %vm5647_vm9, %v5551_v12  ;;  %v16492_v31 = vmax.f32 %v21103_v37, %v4993_v55  ;;  %v21107_v37 = vld [vmem:[#allocation16_spill] sm:$0xff] }
 0x59d   : > { %21102 = vst [vmem:[#allocation11_spill] sm:$0xff] %v16489_v14  ;;  %v5558_v53 = vrot.slane %v16489_v14, 2 }
 0x59e   : > { %21104 = vst [vmem:[#allocation12_spill] sm:$0xff] %v16492_v31  ;;  %v4911_v2 = vpop.permute.xlu1 %4910  ;;  %v5556_v28 = vrot.slane %v16492_v31, 2 }
 0x59f   : > { %6041 = vmatmul.mubr.f32.gmra.mrb[104].mxu1 %v5549_v47  ;;  %v4913_v12 = vpop.permute.xlu0 %4912  ;;  %v5559_v26 = vsel %vm1570_vm5, %v5554_v32, %v5558_v53 }
 0x5a0   : > { %11053 = vmatprep.mubr.msk.f32.mxu1 %vm5647_vm9, %v5555_v33  ;;  %v4994_v9 = vsel %vm4946_vm8, %v4911_v2, %v4913_v12  ;;  %v16502_v55 = vmax.f32 %v21105_v56, %v4913_v12  ;;  %v5557_v31 = vsel %vm1570_vm5, %v5552_v54, %v5556_v28  ;;  %v21109_v56 = vld [vmem:[#allocation18_spill] sm:$0xff] }
 0x5a1   : > { %v16507_v5 = vmax.f32 %v21107_v37, %v4994_v9  ;;  %v21111_v9 = vld [vmem:[#allocation20_spill] sm:$0xff] }
 0x5a2   : > { %21106 = vst [vmem:[#allocation14_spill] sm:$0xff] %v16502_v55  ;;  %v5562_v47 = vrot.slane %v16502_v55, 2 }
 0x5a3   : > { %21108 = vst [vmem:[#allocation16_spill] sm:$0xff] %v16507_v5  ;;  %6046 = vmatmul.mubr.f32.gmra.mrb[106].mxu1 %v5553_v19  ;;  %v4915_v33 = vpop.permute.xlu1 %4914  ;;  %v5560_v2 = vrot.slane %v16507_v5, 2 }
 0x5a4   : > { %11054 = vmatprep.mubr.msk.f32.mxu1 %vm5647_vm9, %v5559_v26  ;;  %v5563_v12 = vsel %vm1570_vm5, %v5558_v53, %v5562_v47 }
 0x5a5   : > { %v4917_v14 = vpop.permute.xlu0 %4916  ;;  %v5561_v37 = vsel %vm1570_vm5, %v5556_v28, %v5560_v2 }
 0x5a6   : > { %v4995_v32 = vsel %vm4946_vm8, %v4915_v33, %v4917_v14  ;;  %v16516_v39 = vmax.f32 %v21109_v56, %v4917_v14 }
 0x5a7   : > { %6051 = vmatmul.mubr.f32.gmra.mrb[108].mxu1 %v5557_v31  ;;  %v16519_v19 = vmax.f32 %v21111_v9, %v4995_v32  ;;  %v21114_v31 = vld [vmem:[#allocation23_spill] sm:$0xff] }
 0x5a8   : > { %21110 = vst [vmem:[#allocation18_spill] sm:$0xff] %v16516_v39  ;;  %11055 = vmatprep.mubr.msk.f32.mxu1 %vm5647_vm9, %v5563_v12  ;;  %v4919_v26 = vpop.permute.xlu1 %4918  ;;  %v5566_v54 = vrot.slane %v16516_v39, 2 }
 0x5a9   : > { %21112 = vst [vmem:[#allocation20_spill] sm:$0xff] %v16519_v19  ;;  %v5564_v55 = vrot.slane %v16519_v19, 2 }
 0x5aa   : > { %v4921_v5 = vpop.permute.xlu0 %4920  ;;  %v5567_v14 = vsel %vm1570_vm5, %v5562_v47, %v5566_v54  ;;  %v21117_v47 = vld [vmem:[#allocation26_spill] sm:$0xff] }
 0x5ab   : > { %v4996_v53 = vsel %vm4946_vm8, %v4919_v26, %v4921_v5  ;;  %v16527_v33 = vmax.f32 %v15976_v0, %v4921_v5  ;;  %6056 = vmatmul.mubr.f32.gmra.mrb[110].mxu1 %v5561_v37  ;;  %v5565_v28 = vsel %vm1570_vm5, %v5560_v2, %v5564_v55 }
 0x5ac   : > { %v16531_v32 = vmax.f32 %v21114_v31, %v4996_v53  ;;  %11056 = vmatprep.mubr.msk.f32.mxu1 %vm5647_vm9, %v5567_v14 }
 0x5ad   : > { %21113 = vst [vmem:[#allocation107_spill] sm:$0xff] %v16527_v33  ;;  %v5570_v12 = vrot.slane %v16527_v33, 2  ;;  %v4923_v56 = vpop.permute.xlu1 %4922 }
 0x5ae   : > { %21115 = vst [vmem:[#allocation23_spill] sm:$0xff] %v16531_v32  ;;  %v5568_v9 = vrot.slane %v16531_v32, 2  ;;  %v4925_v19 = vpop.permute.xlu0 %4924 }
 0x5af   : > { %v5571_v26 = vsel %vm1570_vm5, %v5566_v54, %v5570_v12  ;;  %6061 = vmatmul.mubr.f32.gmra.mrb[112].mxu1 %v5565_v28  ;;  %v4997_v0 = vsel %vm4946_vm8, %v4923_v56, %v4925_v19  ;;  %v16540_v5 = vmax.f32 %v16023_v44, %v4925_v19 }
 0x5b0   : > { %v16543_v37 = vmax.f32 %v21117_v47, %v4997_v0  ;;  %11057 = vmatprep.mubr.msk.f32.mxu1 %vm5647_vm9, %v5571_v26  ;;  %v5569_v2 = vsel %vm1570_vm5, %v5564_v55, %v5568_v9 }
 0x5b1   : > { %21116 = vst [vmem:[#allocation108_spill] sm:$0xff] %v16540_v5  ;;  %v5574_v53 = vrot.slane %v16540_v5, 2 }
 0x5b2   : > { %21118 = vst [vmem:[#allocation26_spill] sm:$0xff] %v16543_v37  ;;  %v4927_v14 = vpop.permute.xlu1 %4926  ;;  %v5572_v31 = vrot.slane %v16543_v37, 2 }
 0x5b3   : > { %6066 = vmatmul.mubr.f32.gmra.mrb[114].mxu1 %v5569_v2  ;;  %v5575_v28 = vsel %vm1570_vm5, %v5570_v12, %v5574_v53 }
 0x5b4   : > { %v4929_v54 = vpop.permute.xlu0 %4928  ;;  %11058 = vmatprep.mubr.msk.f32.mxu1 %vm5647_vm9, %v5575_v28  ;;  %v5573_v19 = vsel %vm1570_vm5, %v5568_v9, %v5572_v31 }
 0x5b5   : > { %v4998_v56 = vsel %vm4946_vm8, %v4927_v14, %v4929_v54  ;;  %v16552_v44 = vmax.f32 %v16069_v15, %v4929_v54 }
 0x5b6   : > { %v16557_v55 = vmax.f32 %v16056_v3, %v4998_v56 }
 0x5b7   : > { %21119 = vst [vmem:[#allocation109_spill] sm:$0xff] %v16552_v44  ;;  %v5578_v26 = vrot.slane %v16552_v44, 2  ;;  %6071 = vmatmul.mubr.f32.gmra.mrb[116].mxu1 %v5573_v19 }
 0x5b8   : > { %21120 = vst [vmem:[#allocation110_spill] sm:$0xff] %v16557_v55  ;;  %v4931_v0 = vpop.permute.xlu1 %4930  ;;  %v5576_v47 = vrot.slane %v16557_v55, 2 }
 0x5b9   : > { %v4933_v2 = vpop.permute.xlu0 %4932  ;;  %v5579_v12 = vsel %vm1570_vm5, %v5574_v53, %v5578_v26  ;;  %v16573_v53 = vpop.f32.mrb[18].mxu1 }
 0x5ba   : > { %v4999_v14 = vsel %vm4946_vm8, %v4931_v0, %v4933_v2  ;;  %v16564_v15 = vmax.f32 %v16109_v30, %v4933_v2  ;;  %11059 = vmatprep.mubr.msk.f32.mxu1 %vm5647_vm9, %v5579_v12  ;;  %v5577_v9 = vsel %vm1570_vm5, %v5572_v31, %v5576_v47  ;;  %21123 = vst [vmem:[#allocation113_spill] sm:$0xff] %v16573_v53  ;;  %v5829_v31 = vpop.f32.mrb[19].mxu1 }
 0x5bb   : > { %v16569_v3 = vmax.f32 %v16101_v38, %v4999_v14  ;;  %6076 = vmatmul.mubr.f32.gmra.mrb[118].mxu1 %v5577_v9 }
 0x5bc   : > { %21121 = vst [vmem:[#allocation111_spill] sm:$0xff] %v16564_v15  ;;  %v4935_v54 = vpop.permute.xlu1 %4934  ;;  %v5582_v28 = vrot.slane %v16564_v15, 2 }
 0x5bd   : > { %21122 = vst [vmem:[#allocation112_spill] sm:$0xff] %v16569_v3  ;;  %v4937_v56 = vpop.permute.xlu0 %4936  ;;  %v5580_v19 = vrot.slane %v16569_v3, 2  ;;  %v16587_v3 = vpop.f32.mrb[20].mxu1 }
 0x5be   : > { %v5000_v0 = vsel %vm4946_vm8, %v4935_v54, %v4937_v56  ;;  %v16577_v30 = vmax.f32 %v16135_v8, %v4937_v56  ;;  %v5583_v2 = vsel %vm1570_vm5, %v5578_v26, %v5582_v28  ;;  %v5834_v56 = vpop.f32.mrb[21].mxu1 }
 0x5bf   : > { %v16581_v38 = vmax.f32 %v16126_v1, %v5000_v0  ;;  %11060 = vmatprep.mubr.msk.f32.mxu1 %vm5647_vm9, %v5583_v2  ;;  %v5581_v12 = vsel %vm1570_vm5, %v5576_v47, %v5580_v19  ;;  %v21133_v56 = vld [vmem:[#allocation51_spill] sm:$0xff] }
 0x5c0   : > { %21124 = vst [vmem:[#allocation114_spill] sm:$0xff] %v16577_v30  ;;  %v4939_v14 = vpop.permute.xlu1 %4938  ;;  %6081 = vmatmul.mubr.f32.gmra.mrb[120].mxu1 %v5581_v12  ;;  %v5586_v9 = vrot.slane %v16577_v30, 2  ;;  %v16601_v12 = vpop.f32.mrb[22].mxu1 }
 0x5c1   : > { %21125 = vst [vmem:[#allocation115_spill] sm:$0xff] %v16581_v38  ;;  %v4941_v53 = vpop.permute.xlu0 %4940  ;;  %v5584_v54 = vrot.slane %v16581_v38, 2  ;;  %21128 = vst [vmem:[#allocation118_spill] sm:$0xff] %v16601_v12 }
 0x5c2   : > { %v5001_v8 = vsel %vm4946_vm8, %v4939_v14, %v4941_v53  ;;  %v16591_v26 = vmax.f32 %v16164_v18, %v4941_v53  ;;  %v5587_v1 = vsel %vm1570_vm5, %v5582_v28, %v5586_v9  ;;  %v5839_v53 = vpop.f32.mrb[23].mxu1  ;;  %v21130_v14 = vld [vmem:[#allocation48_spill] sm:$0xff] }
 0x5c3   : > { %v16595_v0 = vmax.f32 %v16149_v49, %v5001_v8  ;;  %11061 = vmatprep.mubr.msk.f32.mxu1 %vm5647_vm9, %v5587_v1  ;;  %v5585_v47 = vsel %vm1570_vm5, %v5580_v19, %v5584_v54  ;;  %v16607_v49 = vpop.f32.mrb[24].mxu1  ;;  %v21132_v1 = vld [vmem:[#allocation52_spill] sm:$0xff] }
 0x5c4   : > { %21126 = vst [vmem:[#allocation116_spill] sm:$0xff] %v16591_v26  ;;  %6086 = vmatmul.mubr.f32.gmra.mrb[122].mxu1 %v5585_v47  ;;  %v5590_v2 = vrot.slane %v16591_v26, 2  ;;  %21129 = vst [vmem:[#allocation119_spill] sm:$0xff] %v16607_v49  ;;  %v5844_v19 = vpop.f32.mrb[25].mxu1  ;;  %v21142_v49 = vld [vmem:[#allocation59_spill] sm:$0xff] }
 0x5c5   : > { %21127 = vst [vmem:[#allocation117_spill] sm:$0xff] %v16595_v0  ;;  %v5588_v31 = vrot.slane %v16595_v0, 2  ;;  %v16611_v8 = vpop.f32.mrb[26].mxu1  ;;  %v21159_v0 = vld [vmem:[#allocation74_spill] sm:$0xff] }
 0x5c6   : > { %v5591_v18 = vsel %vm1570_vm5, %v5586_v9, %v5590_v2  ;;  %21131 = vst [vmem:[#allocation120_spill] sm:$0xff] %v16611_v8  ;;  %v5849_v9 = vpop.f32.mrb[27].mxu1 }
 0x5c7   : > { %11062 = vmatprep.mubr.msk.f32.mxu1 %vm5647_vm9, %v5591_v18  ;;  %v5589_v28 = vsel %vm1570_vm5, %v5584_v54, %v5588_v31  ;;  %v21135_v54 = vld [vmem:[#allocation53_spill] sm:$0xff]  ;;  %v21136_v18 = vld [vmem:[#allocation54_spill] sm:$0xff] }
 0x5c8   : > { %6091 = vmatmul.mubr.f32.gmra.mrb[124].mxu1 %v5589_v28  ;;  %v21139_v28 = vld [vmem:[#allocation57_spill] sm:$0xff]  ;;  %v21140_v9 = vld [vmem:[#allocation58_spill] sm:$0xff] }
 0x5c9   : > { %11063 = vmatprep.mubr.msk.f32.mxu1 %vm5647_vm9, %v5590_v2 }
 0x5ca   : > { %v16616_v47 = vpop.f32.mrb[28].mxu1 }
 0x5cb   : > { %21134 = vst [vmem:[#allocation121_spill] sm:$0xff] %v16616_v47  ;;  %v5854_v2 = vpop.f32.mrb[29].mxu1 }
 0x5cc   : > { %6096 = vmatmul.mubr.f32.gmra.mrb[126].mxu1 %v5588_v31  ;;  %v21137_v31 = vld [vmem:[#allocation55_spill] sm:$0xff]  ;;  %v21143_v2 = vld [vmem:[#allocation60_spill] sm:$0xff] }
 0x5cd   : > { %11065 = vmatprep.mubr.msk.f32.mxu1 %vm5647_vm9, %v21130_v14 }
 0x5cf   : > { %v16622_v53 = vpop.f32.mrb[30].mxu1 }
 0x5d0   : > { %6279 = vmatmul.mubr.f32.vlgmr.msra.gmra.mrb[128].mxu1 %v21132_v1  ;;  %21138 = vst [vmem:[#allocation122_spill] sm:$0xff] %v16622_v53  ;;  %v5859_v19 = vpop.f32.mrb[31].mxu1 }
 0x5d1   : > { %11066 = vmatprep.mubr.msk.f32.mxu1 %vm5647_vm9, %v21133_v56 }
 0x5d4   : > { %6284 = vmatmul.mubr.f32.gmra.mrb[130].mxu1 %v21135_v54  ;;  %v16627_v8 = vpop.f32.mrb[32].mxu1 }
 0x5d5   : > { %11067 = vmatprep.mubr.msk.f32.mxu1 %vm5647_vm9, %v21136_v18  ;;  %21141 = vst [vmem:[#allocation123_spill] sm:$0xff] %v16627_v8  ;;  %v5864_v47 = vpop.f32.mrb[33].mxu1  ;;  %v21145_v18 = vld [vmem:[#allocation61_spill] sm:$0xff] }
 0x5d8   : > { %6289 = vmatmul.mubr.f32.gmra.mrb[132].mxu1 %v21137_v31  ;;  %v21146_v31 = vld [vmem:[#allocation62_spill] sm:$0xff] }
 0x5d9   : > { %11068 = vmatprep.mubr.msk.f32.mxu1 %vm5647_vm9, %v21139_v28  ;;  %v16632_v12 = vpop.f32.mrb[34].mxu1  ;;  %v21147_v28 = vld [vmem:[#allocation63_spill] sm:$0xff] }
 0x5da   : > { %21144 = vst [vmem:[#allocation124_spill] sm:$0xff] %v16632_v12  ;;  %v5869_v53 = vpop.f32.mrb[35].mxu1 }
 0x5db   : > { %v11120_v53 = vld [vmem:[%s20379_s3 + $0x120] sm:$0xff] }
 0x5dc   : > { %6294 = vmatmul.mubr.f32.gmra.mrb[134].mxu1 %v21140_v9  ;;  %v21149_v9 = vld [vmem:[#allocation64_spill] sm:$0xff] }
 0x5dd   : > { %11069 = vmatprep.mubr.msk.f32.mxu1 %vm5647_vm9, %v21142_v49  ;;  %v21150_v49 = vld [vmem:[#allocation65_spill] sm:$0xff] }
 0x5de   : > { %v16639_v19 = vpop.f32.mrb[36].mxu1 }
 0x5df   : > { %21148 = vst [vmem:[#allocation125_spill] sm:$0xff] %v16639_v19  ;;  %v5874_v8 = vpop.f32.mrb[37].mxu1  ;;  %v21153_v19 = vld [vmem:[#allocation68_spill] sm:$0xff] }
 0x5e0   : > { %6299 = vmatmul.mubr.f32.gmra.mrb[136].mxu1 %v21143_v2  ;;  %v21152_v2 = vld [vmem:[#allocation66_spill] sm:$0xff] }
 0x5e1   : > { %11070 = vmatprep.mubr.msk.f32.mxu1 %vm5647_vm9, %v21145_v18  ;;  %v21158_v18 = vld [vmem:[#allocation72_spill] sm:$0xff] }
 0x5e2   : > { %v16644_v47 = vpop.f32.mrb[38].mxu1 }
 0x5e3   : > { %21151 = vst [vmem:[#allocation126_spill] sm:$0xff] %v16644_v47  ;;  %v5879_v12 = vpop.f32.mrb[39].mxu1  ;;  %v21155_v47 = vld [vmem:[#allocation69_spill] sm:$0xff] }
 0x5e4   : > { %6304 = vmatmul.mubr.f32.gmra.mrb[138].mxu1 %v21146_v31  ;;  %v21156_v12 = vld [vmem:[#allocation70_spill] sm:$0xff] }
 0x5e5   : > { %11071 = vmatprep.mubr.msk.f32.mxu1 %vm5647_vm9, %v21147_v28  ;;  %v11121_v28 = vld [vmem:[%s20379_s3 + $0x128] sm:$0xff] }
 0x5e6   : > { %v11734_v8 = vpack.c.bf16 %v11121_v28, %v11120_v53 }
 0x5e8   : > { %6309 = vmatmul.mubr.f32.gmra.mrb[140].mxu1 %v21149_v9  ;;  %v16655_v9 = vpop.f32.mrb[40].mxu1 }
 0x5e9   : > { %11072 = vmatprep.mubr.msk.f32.mxu1 %vm5647_vm9, %v21150_v49  ;;  %21154 = vst [vmem:[#allocation127_spill] sm:$0xff] %v16655_v9  ;;  %v5884_v49 = vpop.f32.mrb[41].mxu1  ;;  %11735 = vmatpush1.bf16.msra.mxu1 %v11734_v8  ;;  %v21162_v8 = vld [vmem:[#allocation75_spill] sm:$0xff] }
 0x5ea   : > { %11736 = vmatprep.subr.bf16.mxu1 %v21051_v42  ;;  %v21161_v49 = vld [vmem:[#allocation73_spill] sm:$0xff] }
 0x5ec   : > { %6314 = vmatmul.mubr.f32.gmra.mrb[142].mxu1 %v21152_v2  ;;  %v16661_v2 = vpop.f32.mrb[42].mxu1 }
 0x5ed   : > { %11073 = vmatprep.mubr.msk.f32.mxu1 %vm5647_vm9, %v21153_v19  ;;  %21157 = vst [vmem:[#allocation128_spill] sm:$0xff] %v16661_v2  ;;  %v5889_v31 = vpop.f32.mrb[43].mxu1  ;;  %v21165_v2 = vld [vmem:[#allocation77_spill] sm:$0xff] }
 0x5ee   : > { %v21166_v31 = vld [vmem:[#allocation78_spill] sm:$0xff] }
 0x5f0   : > { %6319 = vmatmul.mubr.f32.gmra.mrb[144].mxu1 %v21155_v47  ;;  %v16666_v28 = vpop.f32.mrb[44].mxu1  ;;  %v21164_v47 = vld [vmem:[#allocation76_spill] sm:$0xff] }
 0x5f1   : > { %11074 = vmatprep.mubr.msk.f32.mxu1 %vm5647_vm9, %v21156_v12  ;;  %21160 = vst [vmem:[#allocation129_spill] sm:$0xff] %v16666_v28  ;;  %v5894_v53 = vpop.f32.mrb[45].mxu1  ;;  %v21169_v28 = vld [vmem:[#allocation79_spill] sm:$0xff] }
 0x5f4   : > { %6324 = vmatmul.mubr.f32.gmra.mrb[146].mxu1 %v21158_v18 }
 0x5f5   : > { %11075 = vmatprep.mubr.msk.f32.mxu1 %vm5647_vm9, %v21159_v0  ;;  %v21168_v0 = vld [vmem:[#allocation80_spill] sm:$0xff] }
 0x5f7   : > { %v16671_v9 = vpop.f32.mrb[46].mxu1 }
 0x5f8   : > { %6329 = vmatmul.mubr.f32.gmra.mrb[148].mxu1 %v21161_v49  ;;  %21163 = vst [vmem:[#allocation130_spill] sm:$0xff] %v16671_v9  ;;  %v5899_v12 = vpop.f32.mrb[47].mxu1 }
 0x5f9   : > { %11076 = vmatprep.mubr.msk.f32.mxu1 %vm5647_vm9, %v21162_v8  ;;  %v21171_v8 = vld [vmem:[#allocation83_spill] sm:$0xff]  ;;  %v11122_v12 = vld [vmem:[%s20379_s3 + $0x130] sm:$0xff] }
 0x5fc   : > { %6334 = vmatmul.mubr.f32.gmra.mrb[150].mxu1 %v21164_v47  ;;  %v16677_v18 = vpop.f32.mrb[48].mxu1 }
 0x5fd   : > { %11077 = vmatprep.mubr.msk.f32.mxu1 %vm5647_vm9, %v21165_v2  ;;  %21167 = vst [vmem:[#allocation131_spill] sm:$0xff] %v16677_v18  ;;  %v5904_v53 = vpop.f32.mrb[49].mxu1  ;;  %v11123_v18 = vld [vmem:[%s20379_s3 + $0x138] sm:$0xff]  ;;  %v21172_v2 = vld [vmem:[#allocation84_spill] sm:$0xff] }
 0x5fe   : > { %v21173_v53 = vld [vmem:[#allocation85_spill] sm:$0xff] }
 0x600   : > { %6339 = vmatmul.mubr.f32.gmra.mrb[152].mxu1 %v21166_v31  ;;  %v11737_v31 = vpack.c.bf16 %v11123_v18, %v11122_v12  ;;  %v21178_v18 = vld [vmem:[#allocation6_spill] sm:$0xff] }
 0x601   : > { %11078 = vmatprep.mubr.msk.f32.mxu1 %vm5647_vm9, %v21168_v0  ;;  %v16682_v49 = vpop.f32.mrb[50].mxu1  ;;  %v11124_v12 = vld [vmem:[%s20379_s3 + $0x140] sm:$0xff] }
 0x602   : > { %21170 = vst [vmem:[#allocation132_spill] sm:$0xff] %v16682_v49  ;;  %v5909_v9 = vpop.f32.mrb[51].mxu1  ;;  %11738 = vmatpush1.bf16.msra.mxu1 %v11737_v31  ;;  %v21179_v31 = vld [vmem:[#allocation9_spill] sm:$0xff] }
 0x603   : > { %11739 = vmatprep.subr.bf16.mxu1 %v21051_v42  ;;  %v21175_v9 = vld [vmem:[#allocation87_spill] sm:$0xff] }
 0x604   : > { %6344 = vmatmul.mubr.f32.gmra.mrb[154].mxu1 %v21169_v28 }
 0x605   : > { %11079 = vmatprep.mubr.msk.f32.mxu1 %vm5647_vm9, %v21171_v8  ;;  %v21176_v8 = vld [vmem:[#allocation8_spill] sm:$0xff] }
 0x607   : > { %v16695_v28 = vpop.f32.mrb[52].mxu1 }
 0x608   : > { %6349 = vmatmul.mubr.f32.gmra.mrb[156].mxu1 %v21172_v2  ;;  %21174 = vst [vmem:[#allocation133_spill] sm:$0xff] %v16695_v28  ;;  %v5914_v49 = vpop.f32.mrb[53].mxu1 }
 0x609   : > { %11080 = vmatprep.mubr.msk.f32.mxu1 %vm5647_vm9, %v21173_v53  ;;  %v11125_v49 = vld [vmem:[%s20379_s3 + $0x148] sm:$0xff]  ;;  %v21182_v53 = vld [vmem:[#allocation13_spill] sm:$0xff] }
 0x60a   : > { %v11740_v28 = vpack.c.bf16 %v11125_v49, %v11124_v12 }
 0x60b   : > { %v16701_v0 = vpop.f32.mrb[54].mxu1 }
 0x60c   : > { %6354 = vmatmul.mubr.f32.gmra.mrb[158].mxu1 %v21175_v9  ;;  %21177 = vst [vmem:[#allocation134_spill] sm:$0xff] %v16701_v0  ;;  %v5919_v47 = vpop.f32.mrb[55].mxu1  ;;  %v21181_v0 = vld [vmem:[#allocation10_spill] sm:$0xff] }
 0x60d   : > { %11081 = vmatprep.mubr.msk.f32.mxu1 %vm5647_vm9, %v21176_v8  ;;  %11741 = vmatpush1.bf16.msra.mxu1 %v11740_v28  ;;  %v11126_v47 = vld [vmem:[%s20379_s3 + $0x150] sm:$0xff] }
 0x60e   : > { %11742 = vmatprep.subr.bf16.mxu1 %v21051_v42 }
 0x610   : > { %6359 = vmatmul.mubr.f32.gmra.mrb[160].mxu1 %v21178_v18  ;;  %v11127_v18 = vld [vmem:[%s20379_s3 + $0x158] sm:$0xff] }
 0x611   : > { %11082 = vmatprep.mubr.msk.f32.mxu1 %vm5647_vm9, %v21179_v31  ;;  %v16712_v9 = vpop.f32.mrb[56].mxu1  ;;  %v11743_v12 = vpack.c.bf16 %v11127_v18, %v11126_v47  ;;  %v21185_v31 = vld [vmem:[#allocation17_spill] sm:$0xff] }
 0x612   : > { %21180 = vst [vmem:[#allocation135_spill] sm:$0xff] %v16712_v9  ;;  %v5924_v8 = vpop.f32.mrb[57].mxu1  ;;  %v11128_v9 = vld [vmem:[%s20379_s3 + $0x160] sm:$0xff] }
 0x613   : > { %11744 = vmatpush1.bf16.msra.mxu1 %v11743_v12  ;;  %v21184_v8 = vld [vmem:[#allocation15_spill] sm:$0xff] }
 0x614   : > { %6364 = vmatmul.mubr.f32.gmra.mrb[162].mxu1 %v21181_v0  ;;  %11745 = vmatprep.subr.bf16.mxu1 %v21051_v42  ;;  %v11129_v0 = vld [vmem:[%s20379_s3 + $0x168] sm:$0xff] }
 0x615   : > { %11083 = vmatprep.mubr.msk.f32.mxu1 %vm5647_vm9, %v21182_v53  ;;  %v11746_v18 = vpack.c.bf16 %v11129_v0, %v11128_v9  ;;  %v21188_v53 = vld [vmem:[#allocation21_spill] sm:$0xff] }
 0x616   : > { %v16724_v49 = vpop.f32.mrb[58].mxu1 }
 0x617   : > { %21183 = vst [vmem:[#allocation136_spill] sm:$0xff] %v16724_v49  ;;  %v5929_v28 = vpop.f32.mrb[59].mxu1  ;;  %11747 = vmatpush1.bf16.msra.mxu1 %v11746_v18  ;;  %v11130_v49 = vld [vmem:[%s20379_s3 + $0x170] sm:$0xff] }
 0x618   : > { %6369 = vmatmul.mubr.f32.gmra.mrb[164].mxu1 %v21184_v8  ;;  %v21187_v28 = vld [vmem:[#allocation19_spill] sm:$0xff]  ;;  %11748 = vmatprep.subr.bf16.mxu1 %v21051_v42  ;;  %v11131_v8 = vld [vmem:[%s20379_s3 + $0x178] sm:$0xff] }
 0x619   : > { %11084 = vmatprep.mubr.msk.f32.mxu1 %vm5647_vm9, %v21185_v31  ;;  %v11749_v0 = vpack.c.bf16 %v11131_v8, %v11130_v49  ;;  %v21191_v31 = vld [vmem:[#allocation22_spill] sm:$0xff] }
 0x61a   : > { %v16736_v47 = vpop.f32.mrb[60].mxu1 }
 0x61b   : > { %21186 = vst [vmem:[#allocation137_spill] sm:$0xff] %v16736_v47  ;;  %v5934_v12 = vpop.f32.mrb[61].mxu1  ;;  %11750 = vmatpush1.bf16.msra.mxu1 %v11749_v0  ;;  %v11132_v47 = vld [vmem:[%s20379_s3 + $0x180] sm:$0xff] }
 0x61c   : > { %6374 = vmatmul.mubr.f32.gmra.mrb[166].mxu1 %v21187_v28  ;;  %v21190_v12 = vld [vmem:[#allocation24_spill] sm:$0xff]  ;;  %11751 = vmatprep.subr.bf16.mxu1 %v21051_v42  ;;  %v11133_v28 = vld [vmem:[%s20379_s3 + $0x188] sm:$0xff] }
 0x61d   : > { %11085 = vmatprep.mubr.msk.f32.mxu1 %vm5647_vm9, %v21188_v53  ;;  %v11752_v49 = vpack.c.bf16 %v11133_v28, %v11132_v47 }
 0x61e   : > { %v16748_v9 = vpop.f32.mrb[62].mxu1 }
 0x61f   : > { %21189 = vst [vmem:[#allocation138_spill] sm:$0xff] %v16748_v9  ;;  %v5939_v18 = vpop.f32.mrb[63].mxu1  ;;  %11753 = vmatpush1.bf16.msra.mxu1 %v11752_v49  ;;  %v11135_v9 = vld [vmem:[%s20379_s3 + $0x198] sm:$0xff] }
 0x620   : > { %6379 = vmatmul.mubr.f32.gmra.mrb[168].mxu1 %v21190_v12  ;;  %11754 = vmatprep.subr.bf16.mxu1 %v21051_v42  ;;  %v11134_v18 = vld [vmem:[%s20379_s3 + $0x190] sm:$0xff] }
 0x621   : > { %11086 = vmatprep.mubr.msk.f32.mxu1 %vm5647_vm9, %v21191_v31  ;;  %v11755_v47 = vpack.c.bf16 %v11135_v9, %v11134_v18  ;;  %v21195_v31 = vld [vmem:[#allocation30_spill] sm:$0xff] }
 0x622   : > { %v16760_v8 = vpop.f32.mrb[64].mxu1 }
 0x623   : > { %21192 = vst [vmem:[#allocation139_spill] sm:$0xff] %v16760_v8  ;;  %v5944_v0 = vpop.f32.mrb[65].mxu1  ;;  %11756 = vmatpush1.bf16.msra.mxu1 %v11755_v47  ;;  %v11136_v8 = vld [vmem:[%s20379_s3 + $0x1a0] sm:$0xff] }
 0x624   : > { %6384 = vmatmul.mubr.f32.gmra.mrb[170].mxu1 %v16018_v22  ;;  %v21194_v0 = vld [vmem:[#allocation25_spill] sm:$0xff]  ;;  %11757 = vmatprep.subr.bf16.mxu1 %v21051_v42  ;;  %v11137_v22 = vld [vmem:[%s20379_s3 + $0x1a8] sm:$0x7f] }
 0x625   : > { %11087 = vmatprep.mubr.msk.f32.mxu1 %vm5647_vm9, %v16043_v50  ;;  %v11758_v9 = vpack.c.bf16 %v11137_v22, %v11136_v8  ;;  %v21199_v50 = vld [vmem:[#allocation29_spill] sm:$0xff] }
 0x626   : > { %v16772_v28 = vpop.f32.mrb[66].mxu1 }
 0x627   : > { %21193 = vst [vmem:[#allocation140_spill] sm:$0xff] %v16772_v28  ;;  %v5949_v49 = vpop.f32.mrb[67].mxu1  ;;  %11760 = vmatpush1.bf16.msk.msra.mxu1 %vm14692_vm7, %v11758_v9  ;;  %v21202_v9 = vld [vmem:[#allocation34_spill] sm:$0xff] }
 0x628   : > { %6389 = vmatmul.mubr.f32.gmra.mrb[172].mxu1 %v21194_v0  ;;  %11761 = vmatprep.subr.bf16.mxu1 %v21051_v42  ;;  %v21197_v49 = vld [vmem:[#allocation32_spill] sm:$0xff] }
 0x629   : > { %11088 = vmatprep.mubr.msk.f32.mxu1 %vm5647_vm9, %v21195_v31  ;;  %v21200_v31 = vld [vmem:[#allocation35_spill] sm:$0xff] }
 0x62a   : > { %v16784_v18 = vpop.f32.mrb[68].mxu1 }
 0x62b   : > { %21196 = vst [vmem:[#allocation141_spill] sm:$0xff] %v16784_v18  ;;  %v5954_v47 = vpop.f32.mrb[69].mxu1  ;;  %v21205_v18 = vld [vmem:[#allocation38_spill] sm:$0xff] }
 0x62c   : > { %6394 = vmatmul.mubr.f32.gmra.mrb[174].mxu1 %v16091_v35 }
 0x62d   : > { %11089 = vmatprep.mubr.msk.f32.mxu1 %vm5647_vm9, %v21197_v49 }
 0x62e   : > { %v16792_v28 = vpop.f32.mrb[70].mxu1 }
 0x62f   : > { %21198 = vst [vmem:[#allocation142_spill] sm:$0xff] %v16792_v28  ;;  %v5959_v0 = vpop.f32.mrb[71].mxu1 }
 0x630   : > { %6399 = vmatmul.mubr.f32.gmra.mrb[176].mxu1 %v21199_v50 }
 0x631   : > { %11090 = vmatprep.mubr.msk.f32.mxu1 %vm5647_vm9, %v21200_v31 }
 0x632   : > { %v16797_v22 = vpop.f32.mrb[72].mxu1 }
 0x633   : > { %21201 = vst [vmem:[#allocation143_spill] sm:$0xff] %v16797_v22  ;;  %v5964_v8 = vpop.f32.mrb[73].mxu1  ;;  %v21206_v22 = vld [vmem:[#allocation41_spill] sm:$0xff] }
 0x634   : > { %6404 = vmatmul.mubr.f32.gmra.mrb[178].mxu1 %v16158_v11 }
 0x635   : > { %11091 = vmatprep.mubr.msk.f32.mxu1 %vm5647_vm9, %v21202_v9 }
 0x636   : > { %v16802_v47 = vpop.f32.mrb[74].mxu1 }
 0x637   : > { %21203 = vst [vmem:[#allocation34_spill] sm:$0xff] %v16802_v47  ;;  %v5969_v63 = vpop.f32.mrb[75].mxu1 }
 0x638   : > { %6409 = vmatmul.mubr.f32.gmra.mrb[180].mxu1 %v16186_v7 }
 0x639   : > { %11092 = vmatprep.mubr.msk.f32.mxu1 %vm5647_vm9, %v16180_v43 }
 0x63a   : > { %v16807_v0 = vpop.f32.mrb[76].mxu1 }
 0x63b   : > { %21204 = vst [vmem:[#allocation144_spill] sm:$0xff] %v16807_v0  ;;  %v5974_v28 = vpop.f32.mrb[77].mxu1 }
 0x63c   : > { %6414 = vmatmul.mubr.f32.gmra.mrb[182].mxu1 %v21205_v18 }
 0x63d   : > { %11093 = vmatprep.mubr.msk.f32.mxu1 %vm5647_vm9, %v21206_v22 }
 0x63e   : > { %v16812_v8 = vpop.f32.mrb[78].mxu1 }
 0x63f   : > { %21207 = vst [vmem:[#allocation145_spill] sm:$0xff] %v16812_v8  ;;  %v5979_v11 = vpop.f32.mrb[79].mxu1  ;;  %v21210_v8 = vld [vmem:[#allocation47_spill] sm:$0xff] }
 0x640   : > { %6419 = vmatmul.mubr.f32.gmra.mrb[184].mxu1 %v16235_v58 }
 0x641   : > { %11094 = vmatprep.mubr.msk.f32.mxu1 %vm5647_vm9, %v16231_v16 }
 0x642   : > { %v16817_v63 = vpop.f32.mrb[80].mxu1 }
 0x643   : > { %21208 = vst [vmem:[#allocation146_spill] sm:$0xff] %v16817_v63  ;;  %v5984_v47 = vpop.f32.mrb[81].mxu1 }
 0x644   : > { %6424 = vmatmul.mubr.f32.gmra.mrb[186].mxu1 %v16254_v27 }
 0x645   : > { %11095 = vmatprep.mubr.msk.f32.mxu1 %vm5647_vm9, %v16250_v20 }
 0x646   : > { %v16822_v28 = vpop.f32.mrb[82].mxu1 }
 0x647   : > { %21209 = vst [vmem:[#allocation147_spill] sm:$0xff] %v16822_v28  ;;  %v5989_v0 = vpop.f32.mrb[83].mxu1 }
 0x648   : > { %6429 = vmatmul.mubr.f32.gmra.mrb[188].mxu1 %v16273_v21 }
 0x649   : > { %11096 = vmatprep.mubr.msk.f32.mxu1 %vm5647_vm9, %v21210_v8 }
 0x64a   : > { %v16827_v11 = vpop.f32.mrb[84].mxu1 }
 0x64b   : > { %21211 = vst [vmem:[#allocation148_spill] sm:$0xff] %v16827_v11  ;;  %v5994_v58 = vpop.f32.mrb[85].mxu1 }
 0x64c   : > { %6434 = vmatmul.mubr.f32.gmra.mrb[190].mxu1 %v16292_v52 }
 0x64d   : > { %11097 = vmatprep.mubr.msk.f32.mxu1 %vm5647_vm9, %v16288_v62 }
 0x64e   : > { %v16832_v47 = vpop.f32.mrb[86].mxu1 }
 0x64f   : > { %21212 = vst [vmem:[#allocation149_spill] sm:$0xff] %v16832_v47  ;;  %v5999_v63 = vpop.f32.mrb[87].mxu1 }
 0x650   : > { %6439 = vmatmul.mubr.f32.gmra.mrb[192].mxu1 %v16311_v34 }
 0x651   : > { %11098 = vmatprep.mubr.msk.f32.mxu1 %vm5647_vm9, %v16307_v29 }
 0x652   : > { %v16837_v0 = vpop.f32.mrb[88].mxu1 }
 0x653   : > { %21213 = vst [vmem:[#allocation150_spill] sm:$0xff] %v16837_v0  ;;  %v6004_v28 = vpop.f32.mrb[89].mxu1 }
 0x654   : > { %6444 = vmatmul.mubr.f32.gmra.mrb[194].mxu1 %v16330_v46 }
 0x655   : > { %11099 = vmatprep.mubr.msk.f32.mxu1 %vm5647_vm9, %v16326_v57 }
 0x656   : > { %v16842_v58 = vpop.f32.mrb[90].mxu1 }
 0x657   : > { %21214 = vst [vmem:[#allocation151_spill] sm:$0xff] %v16842_v58  ;;  %v6009_v11 = vpop.f32.mrb[91].mxu1 }
 0x658   : > { %6449 = vmatmul.mubr.f32.gmra.mrb[196].mxu1 %v16349_v60 }
 0x659   : > { %11100 = vmatprep.mubr.msk.f32.mxu1 %vm5647_vm9, %v16345_v48 }
 0x65a   : > { %v16847_v63 = vpop.f32.mrb[92].mxu1 }
 0x65b   : > { %21215 = vst [vmem:[#allocation152_spill] sm:$0xff] %v16847_v63  ;;  %v6014_v47 = vpop.f32.mrb[93].mxu1 }
 0x65c   : > { %6454 = vmatmul.mubr.f32.gmra.mrb[198].mxu1 %v16362_v10 }
 0x65d   : > { %11101 = vmatprep.mubr.msk.f32.mxu1 %vm5647_vm9, %v16358_v23 }
 0x65e   : > { %v16852_v28 = vpop.f32.mrb[94].mxu1 }
 0x65f   : > { %21216 = vst [vmem:[#allocation153_spill] sm:$0xff] %v16852_v28  ;;  %v6019_v0 = vpop.f32.mrb[95].mxu1 }
 0x660   : > { %6459 = vmatmul.mubr.f32.gmra.mrb[200].mxu1 %v16377_v25 }
 0x661   : > { %11102 = vmatprep.mubr.msk.f32.mxu1 %vm5647_vm9, %v16373_v17 }
 0x662   : > { %v16857_v11 = vpop.f32.mrb[96].mxu1 }
 0x663   : > { %21217 = vst [vmem:[#allocation154_spill] sm:$0xff] %v16857_v11  ;;  %v6024_v58 = vpop.f32.mrb[97].mxu1 }
 0x664   : > { %6464 = vmatmul.mubr.f32.gmra.mrb[202].mxu1 %v16389_v13 }
 0x665   : > { %11103 = vmatprep.mubr.msk.f32.mxu1 %vm5647_vm9, %v16385_v4 }
 0x666   : > { %v16862_v47 = vpop.f32.mrb[98].mxu1 }
 0x667   : > { %21218 = vst [vmem:[#allocation155_spill] sm:$0xff] %v16862_v47  ;;  %v6029_v63 = vpop.f32.mrb[99].mxu1  ;;  %v21221_v47 = vld [vmem:[#allocation101_spill] sm:$0xff] }
 0x668   : > { %6469 = vmatmul.mubr.f32.gmra.mrb[204].mxu1 %v16401_v45 }
 0x669   : > { %11104 = vmatprep.mubr.msk.f32.mxu1 %vm5647_vm9, %v16397_v51 }
 0x66a   : > { %v16867_v0 = vpop.f32.mrb[100].mxu1 }
 0x66b   : > { %21219 = vst [vmem:[#allocation156_spill] sm:$0xff] %v16867_v0  ;;  %v6034_v28 = vpop.f32.mrb[101].mxu1  ;;  %v21223_v0 = vld [vmem:[#allocation82_spill] sm:$0xff] }
 0x66c   : > { %6474 = vmatmul.mubr.f32.gmra.mrb[206].mxu1 %v16413_v59 }
 0x66d   : > { %11105 = vmatprep.mubr.msk.f32.mxu1 %vm5647_vm9, %v16409_v41 }
 0x66e   : > { %v16872_v58 = vpop.f32.mrb[102].mxu1 }
 0x66f   : > { %21220 = vst [vmem:[#allocation157_spill] sm:$0xff] %v16872_v58  ;;  %v6039_v11 = vpop.f32.mrb[103].mxu1  ;;  %v21225_v58 = vld [vmem:[#allocation104_spill] sm:$0xff] }
 0x670   : > { %6479 = vmatmul.mubr.f32.gmra.mrb[208].mxu1 %v16425_v61 }
 0x671   : > { %11106 = vmatprep.mubr.msk.f32.mxu1 %vm5647_vm9, %v21221_v47 }
 0x672   : > { %v16877_v63 = vpop.f32.mrb[104].mxu1 }
 0x673   : > { %21222 = vst [vmem:[#allocation158_spill] sm:$0xff] %v16877_v63  ;;  %v6044_v45 = vpop.f32.mrb[105].mxu1  ;;  %v21227_v63 = vld [vmem:[#allocation106_spill] sm:$0xff] }
 0x674   : > { %6484 = vmatmul.mubr.f32.gmra.mrb[210].mxu1 %v16434_v24 }
 0x675   : > { %11107 = vmatprep.mubr.msk.f32.mxu1 %vm5647_vm9, %v21223_v0 }
 0x676   : > { %v16882_v28 = vpop.f32.mrb[106].mxu1 }
 0x677   : > { %21224 = vst [vmem:[#allocation159_spill] sm:$0xff] %v16882_v28  ;;  %v6049_v59 = vpop.f32.mrb[107].mxu1  ;;  %v21229_v28 = vld [vmem:[#allocation7_spill] sm:$0xff] }
 0x678   : > { %6489 = vmatmul.mubr.f32.gmra.mrb[212].mxu1 %v16446_v36 }
 0x679   : > { %11108 = vmatprep.mubr.msk.f32.mxu1 %vm5647_vm9, %v21225_v58  ;;  %v21231_v58 = vld [vmem:[#allocation88_spill] sm:$0xff] }
 0x67a   : > { %v16887_v11 = vpop.f32.mrb[108].mxu1 }
 0x67b   : > { %21226 = vst [vmem:[#allocation160_spill] sm:$0xff] %v16887_v11  ;;  %v6054_v61 = vpop.f32.mrb[109].mxu1  ;;  %v21232_v11 = vld [vmem:[#allocation11_spill] sm:$0xff] }
 0x67c   : > { %6494 = vmatmul.mubr.f32.gmra.mrb[214].mxu1 %v16458_v40 }
 0x67d   : > { %11109 = vmatprep.mubr.msk.f32.mxu1 %vm5647_vm9, %v21227_v63  ;;  %v21234_v63 = vld [vmem:[#allocation12_spill] sm:$0xff] }
 0x67e   : > { %v16892_v45 = vpop.f32.mrb[110].mxu1 }
 0x67f   : > { %21228 = vst [vmem:[#allocation161_spill] sm:$0xff] %v16892_v45  ;;  %v6059_v24 = vpop.f32.mrb[111].mxu1  ;;  %v21235_v45 = vld [vmem:[#allocation14_spill] sm:$0xff] }
 0x680   : > { %6499 = vmatmul.mubr.f32.gmra.mrb[216].mxu1 %v16470_v6 }
 0x681   : > { %11110 = vmatprep.mubr.msk.f32.mxu1 %vm5647_vm9, %v21229_v28  ;;  %v21237_v28 = vld [vmem:[#allocation16_spill] sm:$0xff] }
 0x682   : > { %v16897_v59 = vpop.f32.mrb[112].mxu1 }
 0x683   : > { %21230 = vst [vmem:[#allocation162_spill] sm:$0xff] %v16897_v59  ;;  %v6064_v36 = vpop.f32.mrb[113].mxu1 }
 0x684   : > { %6504 = vmatmul.mubr.f32.gmra.mrb[218].mxu1 %v21231_v58 }
 0x685   : > { %11111 = vmatprep.mubr.msk.f32.mxu1 %vm5647_vm9, %v21232_v11  ;;  %v21239_v11 = vld [vmem:[#allocation20_spill] sm:$0xff] }
 0x686   : > { %v16902_v61 = vpop.f32.mrb[114].mxu1 }
 0x687   : > { %21233 = vst [vmem:[#allocation163_spill] sm:$0xff] %v16902_v61  ;;  %v6069_v40 = vpop.f32.mrb[115].mxu1 }
 0x688   : > { %6509 = vmatmul.mubr.f32.gmra.mrb[220].mxu1 %v21234_v63 }
 0x689   : > { %11112 = vmatprep.mubr.msk.f32.mxu1 %vm5647_vm9, %v21235_v45 }
 0x68a   : > { %v16907_v24 = vpop.f32.mrb[116].mxu1 }
 0x68b   : > { %21236 = vst [vmem:[#allocation164_spill] sm:$0xff] %v16907_v24  ;;  %v6074_v6 = vpop.f32.mrb[117].mxu1 }
 0x68c   : > { %6514 = vmatmul.mubr.f32.gmra.mrb[222].mxu1 %v21237_v28 }
 0x68d   : > { %11113 = vmatprep.mubr.msk.f32.mxu1 %vm5647_vm9, %v16516_v39 }
 0x68e   : > { %v16912_v36 = vpop.f32.mrb[118].mxu1 }
 0x68f   : > { %21238 = vst [vmem:[#allocation165_spill] sm:$0xff] %v16912_v36  ;;  %v6079_v59 = vpop.f32.mrb[119].mxu1 }
 0x690   : > { %6519 = vmatmul.mubr.f32.gmra.mrb[224].mxu1 %v21239_v11 }
 0x691   : > { %11114 = vmatprep.mubr.msk.f32.mxu1 %vm5647_vm9, %v16527_v33 }
 0x693   : > { %v16917_v40 = vpop.f32.mrb[120].mxu1 }
 0x694   : > { %21240 = vst [vmem:[#allocation166_spill] sm:$0xff] %v16917_v40  ;;  %v6084_v61 = vpop.f32.mrb[121].mxu1  ;;  %6524 = vmatmul.mubr.f32.gmra.mrb[226].mxu1 %v16531_v32 }
 0x695   : > { %11115 = vmatprep.mubr.msk.f32.mxu1 %vm5647_vm9, %v16540_v5  ;;  %v21244_v5 = vld [vmem:[#allocation112_spill] sm:$0xff] }
 0x697   : > { %v16922_v6 = vpop.f32.mrb[122].mxu1 }
 0x698   : > { %21241 = vst [vmem:[#allocation167_spill] sm:$0xff] %v16922_v6  ;;  %v6089_v24 = vpop.f32.mrb[123].mxu1  ;;  %6529 = vmatmul.mubr.f32.gmra.mrb[228].mxu1 %v16543_v37  ;;  %v21245_v6 = vld [vmem:[#allocation113_spill] sm:$0xff] }
 0x699   : > { %11116 = vmatprep.mubr.msk.f32.mxu1 %vm5647_vm9, %v16552_v44 }
 0x69b   : > { %v16927_v59 = vpop.f32.mrb[124].mxu1 }
 0x69c   : > { %21242 = vst [vmem:[#allocation168_spill] sm:$0xff] %v16927_v59  ;;  %v6094_v36 = vpop.f32.mrb[125].mxu1  ;;  %6534 = vmatmul.mubr.f32.gmra.mrb[230].mxu1 %v16557_v55  ;;  %v6573_v59 = vrot.slane %v21132_v1, 4  ;;  %v21251_v1 = vld [vmem:[#allocation118_spill] sm:$0xff] }
 0x69d   : > { %11117 = vmatprep.mubr.msk.f32.mxu1 %vm5647_vm9, %v16564_v15  ;;  %v6577_v36 = vrot.slane %v21133_v56, 4 }
 0x69f   : > { %v16932_v61 = vpop.f32.mrb[126].mxu1 }
 0x6a0   : > { %21243 = vst [vmem:[#allocation169_spill] sm:$0xff] %v16932_v61  ;;  %v6099_v40 = vpop.f32.mrb[127].mxu1  ;;  %6539 = vmatmul.mubr.f32.gmra.mrb[232].mxu1 %v21244_v5  ;;  %v6576_v61 = vrot.slane %v21130_v14, 4  ;;  %v6574_v5 = vrot.slane %v21135_v54, 4 }
 0x6a1   : > { %11118 = vmatprep.mubr.msk.f32.mxu1 %vm5647_vm9, %v16577_v30 }
 0x6a2   : > { %v6575_v14 = vsel %vm634_vm0, %v6573_v59, %v6574_v5 }
 0x6a3   : > { %v6280_v24 = vpop.f32.mrb[128].mxu1 }
 0x6a4   : > { %v16938_v37 = vadd.f32 %v6280_v24, %v21245_v6  ;;  %v6282_v44 = vpop.f32.mrb[129].mxu1  ;;  %6544 = vmatmul.mubr.f32.gmra.mrb[234].mxu1 %v16581_v38  ;;  %v21248_v24 = vld [vmem:[#allocation117_spill] sm:$0xff]  ;;  %v21250_v38 = vld [vmem:[#allocation55_spill] sm:$0xff] }
 0x6a5   : > { %11119 = vmatprep.mubr.msk.f32.mxu1 %vm5647_vm9, %v16591_v26  ;;  %v6578_v44 = vsel %vm634_vm0, %v6576_v61, %v6577_v36  ;;  %v6579_v15 = vrot.slane %v21250_v38, 4 }
 0x6a6   : > { %21246 = vst [vmem:[#allocation113_spill] sm:$0xff] %v16938_v37  ;;  %v21249_v37 = vld [vmem:[#allocation54_spill] sm:$0xff] }
 0x6a7   : > { %v6285_v40 = vpop.f32.mrb[130].mxu1  ;;  %v6581_v56 = vrot.slane %v21249_v37, 4 }
 0x6a8   : > { %v16948_v30 = vadd.f32 %v6285_v40, %v16587_v3  ;;  %v6287_v6 = vpop.f32.mrb[131].mxu1  ;;  %6549 = vmatmul.mubr.f32.gmra.mrb[236].mxu1 %v21248_v24  ;;  %v21253_v40 = vld [vmem:[#allocation57_spill] sm:$0xff]  ;;  %v21255_v24 = vld [vmem:[#allocation119_spill] sm:$0xff] }
 0x6a9   : > { %11139 = vmatprep.mubr.msk.f32.mxu1 %vm5647_vm9, %v6578_v44  ;;  %v6582_v3 = vsel %vm634_vm0, %v6577_v36, %v6581_v56  ;;  %v6585_v6 = vrot.slane %v21253_v40, 4  ;;  %v21254_v44 = vld [vmem:[#allocation58_spill] sm:$0xff]  ;;  %v21259_v40 = vld [vmem:[#allocation120_spill] sm:$0xff] }
 0x6aa   : > { %21247 = vst [vmem:[#allocation170_spill] sm:$0xff] %v16948_v30  ;;  %v6580_v30 = vsel %vm634_vm0, %v6574_v5, %v6579_v15  ;;  %v6583_v37 = vrot.slane %v21254_v44, 4 }
 0x6ab   : > { %v6290_v26 = vpop.f32.mrb[132].mxu1 }
 0x6ac   : > { %v16957_v55 = vadd.f32 %v6290_v26, %v21251_v1  ;;  %v6292_v54 = vpop.f32.mrb[133].mxu1  ;;  %7024 = vmatmul.mubr.f32.vlgmr.msra.gmra.mrb[238].mxu1 %v6575_v14  ;;  %v6586_v26 = vsel %vm634_vm0, %v6581_v56, %v6585_v6  ;;  %v21257_v1 = vld [vmem:[#allocation59_spill] sm:$0xff]  ;;  %v6584_v36 = vsel %vm634_vm0, %v6579_v15, %v6583_v37 }
 0x6ad   : > { %11140 = vmatprep.mubr.msk.f32.mxu1 %vm5647_vm9, %v6582_v3  ;;  %v6589_v14 = vrot.slane %v21257_v1, 4  ;;  %v21258_v3 = vld [vmem:[#allocation60_spill] sm:$0xff]  ;;  %v21263_v1 = vld [vmem:[#allocation121_spill] sm:$0xff] }
 0x6ae   : > { %21252 = vst [vmem:[#allocation118_spill] sm:$0xff] %v16957_v55  ;;  %v6587_v55 = vrot.slane %v21258_v3, 4 }
 0x6af   : > { %v6295_v61 = vpop.f32.mrb[134].mxu1 }
 0x6b0   : > { %v16965_v59 = vadd.f32 %v6295_v61, %v21255_v24  ;;  %v6297_v38 = vpop.f32.mrb[135].mxu1  ;;  %7029 = vmatmul.mubr.f32.gmra.mrb[240].mxu1 %v6580_v30  ;;  %v6590_v24 = vsel %vm634_vm0, %v6585_v6, %v6589_v14  ;;  %v6588_v61 = vsel %vm634_vm0, %v6583_v37, %v6587_v55 }
 0x6b1   : > { %11141 = vmatprep.mubr.msk.f32.mxu1 %vm5647_vm9, %v6586_v26  ;;  %v21261_v38 = vld [vmem:[#allocation61_spill] sm:$0xff]  ;;  %v21262_v26 = vld [vmem:[#allocation62_spill] sm:$0xff] }
 0x6b2   : > { %21256 = vst [vmem:[#allocation119_spill] sm:$0xff] %v16965_v59  ;;  %v6593_v30 = vrot.slane %v21261_v38, 4  ;;  %v6591_v59 = vrot.slane %v21262_v26, 4  ;;  %v21267_v38 = vld [vmem:[#allocation122_spill] sm:$0xff] }
 0x6b3   : > { %v6300_v54 = vpop.f32.mrb[136].mxu1 }
 0x6b4   : > { %v16973_v5 = vadd.f32 %v6300_v54, %v21259_v40  ;;  %v6302_v44 = vpop.f32.mrb[137].mxu1  ;;  %7034 = vmatmul.mubr.f32.gmra.mrb[242].mxu1 %v6584_v36  ;;  %v6594_v40 = vsel %vm634_vm0, %v6589_v14, %v6593_v30  ;;  %v6592_v36 = vsel %vm634_vm0, %v6587_v55, %v6591_v59 }
 0x6b5   : > { %11142 = vmatprep.mubr.msk.f32.mxu1 %vm5647_vm9, %v6590_v24  ;;  %v21265_v44 = vld [vmem:[#allocation63_spill] sm:$0xff]  ;;  %v21266_v24 = vld [vmem:[#allocation64_spill] sm:$0xff] }
 0x6b6   : > { %21260 = vst [vmem:[#allocation120_spill] sm:$0xff] %v16973_v5  ;;  %v6597_v54 = vrot.slane %v21265_v44, 4  ;;  %v6595_v5 = vrot.slane %v21266_v24, 4  ;;  %v21271_v44 = vld [vmem:[#allocation123_spill] sm:$0xff] }
 0x6b7   : > { %v6305_v56 = vpop.f32.mrb[138].mxu1 }
 0x6b8   : > { %v16981_v15 = vadd.f32 %v6305_v56, %v21263_v1  ;;  %v6307_v3 = vpop.f32.mrb[139].mxu1  ;;  %7039 = vmatmul.mubr.f32.gmra.mrb[244].mxu1 %v6588_v61  ;;  %v6598_v1 = vsel %vm634_vm0, %v6593_v30, %v6597_v54  ;;  %v6596_v61 = vsel %vm634_vm0, %v6591_v59, %v6595_v5 }
 0x6b9   : > { %11143 = vmatprep.mubr.msk.f32.mxu1 %vm5647_vm9, %v6594_v40  ;;  %v21269_v3 = vld [vmem:[#allocation65_spill] sm:$0xff]  ;;  %v21270_v40 = vld [vmem:[#allocation66_spill] sm:$0xff] }
 0x6ba   : > { %21264 = vst [vmem:[#allocation121_spill] sm:$0xff] %v16981_v15  ;;  %v6601_v56 = vrot.slane %v21269_v3, 4  ;;  %v6599_v15 = vrot.slane %v21270_v40, 4 }
 0x6bb   : > { %v6310_v6 = vpop.f32.mrb[140].mxu1 }
 0x6bc   : > { %v16989_v37 = vadd.f32 %v6310_v6, %v21267_v38  ;;  %v6312_v26 = vpop.f32.mrb[141].mxu1  ;;  %7044 = vmatmul.mubr.f32.gmra.mrb[246].mxu1 %v6592_v36  ;;  %v6602_v38 = vsel %vm634_vm0, %v6597_v54, %v6601_v56  ;;  %v6600_v6 = vsel %vm634_vm0, %v6595_v5, %v6599_v15  ;;  %v21273_v36 = vld [vmem:[#allocation69_spill] sm:$0xff] }
 0x6bd   : > { %11144 = vmatprep.mubr.msk.f32.mxu1 %vm5647_vm9, %v6598_v1  ;;  %v6605_v26 = vrot.slane %v21153_v19, 4  ;;  %v6603_v1 = vrot.slane %v21273_v36, 4  ;;  %v21278_v19 = vld [vmem:[#allocation125_spill] sm:$0xff] }
 0x6be   : > { %21268 = vst [vmem:[#allocation122_spill] sm:$0xff] %v16989_v37  ;;  %v21274_v37 = vld [vmem:[#allocation124_spill] sm:$0xff] }
 0x6bf   : > { %v6315_v14 = vpop.f32.mrb[142].mxu1 }
 0x6c0   : > { %v16997_v55 = vadd.f32 %v6315_v14, %v21271_v44  ;;  %v6317_v24 = vpop.f32.mrb[143].mxu1  ;;  %7049 = vmatmul.mubr.f32.gmra.mrb[248].mxu1 %v6596_v61  ;;  %v6606_v44 = vsel %vm634_vm0, %v6601_v56, %v6605_v26  ;;  %v6604_v61 = vsel %vm634_vm0, %v6599_v15, %v6603_v1  ;;  %v11194_v56 = vld [vmem:[%s20379_s3 + $0x1b0] sm:$0xff] }
 0x6c1   : > { %11145 = vmatprep.mubr.msk.f32.mxu1 %vm5647_vm9, %v6602_v38  ;;  %v21276_v24 = vld [vmem:[#allocation70_spill] sm:$0xff]  ;;  %v21277_v38 = vld [vmem:[#allocation72_spill] sm:$0xff] }
 0x6c2   : > { %21272 = vst [vmem:[#allocation123_spill] sm:$0xff] %v16997_v55  ;;  %v6609_v14 = vrot.slane %v21276_v24, 4  ;;  %v6607_v55 = vrot.slane %v21277_v38, 4  ;;  %v21290_v24 = vld [vmem:[#allocation128_spill] sm:$0xff] }
 0x6c3   : > { %v6320_v30 = vpop.f32.mrb[144].mxu1 }
 0x6c4   : > { %v17005_v59 = vadd.f32 %v6320_v30, %v21274_v37  ;;  %v6322_v40 = vpop.f32.mrb[145].mxu1  ;;  %7054 = vmatmul.mubr.f32.gmra.mrb[250].mxu1 %v6600_v6  ;;  %v6610_v37 = vsel %vm634_vm0, %v6605_v26, %v6609_v14  ;;  %v11195_v6 = vld [vmem:[%s20379_s3 + $0x1b8] sm:$0xff]  ;;  %v21282_v26 = vld [vmem:[#allocation126_spill] sm:$0xff] }
 0x6c5   : > { %11146 = vmatprep.mubr.msk.f32.mxu1 %vm5647_vm9, %v6606_v44  ;;  %v21280_v40 = vld [vmem:[#allocation74_spill] sm:$0xff]  ;;  %v11762_v15 = vpack.c.bf16 %v11195_v6, %v11194_v56 }
 0x6c6   : > { %21275 = vst [vmem:[#allocation124_spill] sm:$0xff] %v17005_v59  ;;  %v6613_v30 = vrot.slane %v21280_v40, 4  ;;  %v21284_v40 = vld [vmem:[#allocation75_spill] sm:$0xff] }
 0x6c7   : > { %v6325_v54 = vpop.f32.mrb[146].mxu1  ;;  %11763 = vmatpush1.bf16.msra.mxu1 %v11762_v15  ;;  %v6617_v38 = vrot.slane %v21284_v40, 4 }
 0x6c8   : > { %v17013_v5 = vadd.f32 %v6325_v54, %v21278_v19  ;;  %v6327_v36 = vpop.f32.mrb[147].mxu1  ;;  %7059 = vmatmul.mubr.f32.gmra.mrb[252].mxu1 %v6604_v61  ;;  %v6608_v19 = vsel %vm634_vm0, %v6603_v1, %v6607_v55  ;;  %v6614_v59 = vsel %vm634_vm0, %v6609_v14, %v6613_v30  ;;  %11764 = vmatprep.subr.bf16.mxu1 %v21051_v42  ;;  %v21285_v1 = vld [vmem:[#allocation76_spill] sm:$0xff] }
 0x6c9   : > { %11147 = vmatprep.mubr.msk.f32.mxu1 %vm5647_vm9, %v6610_v37  ;;  %v21281_v36 = vld [vmem:[#allocation73_spill] sm:$0xff]  ;;  %v6615_v6 = vrot.slane %v21285_v1, 4 }
 0x6ca   : > { %21279 = vst [vmem:[#allocation125_spill] sm:$0xff] %v17013_v5  ;;  %v6611_v54 = vrot.slane %v21281_v36, 4  ;;  %v21286_v36 = vld [vmem:[#allocation127_spill] sm:$0xff] }
 0x6cb   : > { %v6330_v44 = vpop.f32.mrb[148].mxu1 }
 0x6cc   : > { %v17027_v61 = vadd.f32 %v6330_v44, %v21282_v26  ;;  %v6332_v5 = vpop.f32.mrb[149].mxu1  ;;  %7064 = vmatmul.mubr.f32.gmra.mrb[254].mxu1 %v6608_v19  ;;  %v6612_v56 = vsel %vm634_vm0, %v6607_v55, %v6611_v54  ;;  %v21288_v19 = vld [vmem:[#allocation77_spill] sm:$0xff] }
 0x6cd   : > { %11148 = vmatprep.mubr.msk.f32.mxu1 %vm5647_vm9, %v6614_v59  ;;  %v6618_v5 = vsel %vm634_vm0, %v6613_v30, %v6617_v38  ;;  %v6621_v14 = vrot.slane %v21288_v19, 4  ;;  %v21289_v59 = vld [vmem:[#allocation78_spill] sm:$0xff]  ;;  %v21294_v19 = vld [vmem:[#allocation129_spill] sm:$0xff] }
 0x6ce   : > { %21283 = vst [vmem:[#allocation126_spill] sm:$0xff] %v17027_v61  ;;  %v6616_v61 = vsel %vm634_vm0, %v6611_v54, %v6615_v6  ;;  %v6619_v40 = vrot.slane %v21289_v59, 4 }
 0x6cf   : > { %v6335_v37 = vpop.f32.mrb[150].mxu1 }
 0x6d0   : > { %v17036_v15 = vadd.f32 %v6335_v37, %v21286_v36  ;;  %v6337_v44 = vpop.f32.mrb[151].mxu1  ;;  %7069 = vmatmul.mubr.f32.gmra.mrb[0].mxu1 %v6612_v56  ;;  %v6622_v36 = vsel %vm634_vm0, %v6617_v38, %v6621_v14  ;;  %v21292_v37 = vld [vmem:[#allocation80_spill] sm:$0xff] }
 0x6d1   : > { %11149 = vmatprep.mubr.msk.f32.mxu1 %vm5647_vm9, %v6618_v5  ;;  %v6625_v56 = vrot.slane %v21292_v37, 4  ;;  %v6620_v44 = vsel %vm634_vm0, %v6615_v6, %v6619_v40  ;;  %v21293_v5 = vld [vmem:[#allocation79_spill] sm:$0xff] }
 0x6d2   : > { %21287 = vst [vmem:[#allocation127_spill] sm:$0xff] %v17036_v15  ;;  %v6623_v15 = vrot.slane %v21293_v5, 4 }
 0x6d3   : > { %v6340_v26 = vpop.f32.mrb[152].mxu1 }
 0x6d4   : > { %v17044_v55 = vadd.f32 %v6340_v26, %v21290_v24  ;;  %v6342_v1 = vpop.f32.mrb[153].mxu1  ;;  %7074 = vmatmul.mubr.f32.gmra.mrb[2].mxu1 %v6616_v61  ;;  %v6626_v24 = vsel %vm634_vm0, %v6621_v14, %v6625_v56  ;;  %v6624_v26 = vsel %vm634_vm0, %v6619_v40, %v6623_v15 }
 0x6d5   : > { %11150 = vmatprep.mubr.msk.f32.mxu1 %vm5647_vm9, %v6622_v36  ;;  %v21296_v1 = vld [vmem:[#allocation83_spill] sm:$0xff]  ;;  %v6627_v36 = vrot.slane %v21172_v2, 4 }
 0x6d6   : > { %21291 = vst [vmem:[#allocation128_spill] sm:$0xff] %v17044_v55  ;;  %v6629_v61 = vrot.slane %v21296_v1, 4  ;;  %v21297_v55 = vld [vmem:[#allocation130_spill] sm:$0xff]  ;;  %v21301_v1 = vld [vmem:[#allocation131_spill] sm:$0xff] }
 0x6d7   : > { %v6345_v30 = vpop.f32.mrb[154].mxu1 }
 0x6d8   : > { %v17052_v54 = vadd.f32 %v6345_v30, %v21294_v19  ;;  %v6347_v59 = vpop.f32.mrb[155].mxu1  ;;  %7079 = vmatmul.mubr.f32.gmra.mrb[4].mxu1 %v6620_v44  ;;  %v6630_v19 = vsel %vm634_vm0, %v6625_v56, %v6629_v61  ;;  %v6628_v44 = vsel %vm634_vm0, %v6623_v15, %v6627_v36  ;;  %v11196_v56 = vld [vmem:[%s20379_s3 + $0x1c0] sm:$0xff]  ;;  %v11197_v15 = vld [vmem:[%s20379_s3 + $0x1c8] sm:$0xff] }
 0x6d9   : > { %11151 = vmatprep.mubr.msk.f32.mxu1 %vm5647_vm9, %v6626_v24  ;;  %v21299_v59 = vld [vmem:[#allocation85_spill] sm:$0xff]  ;;  %v21300_v24 = vld [vmem:[#allocation87_spill] sm:$0xff] }
 0x6da   : > { %21295 = vst [vmem:[#allocation129_spill] sm:$0xff] %v17052_v54  ;;  %v6633_v30 = vrot.slane %v21299_v59, 4  ;;  %v6631_v54 = vrot.slane %v21300_v24, 4 }
 0x6db   : > { %v6350_v38 = vpop.f32.mrb[156].mxu1 }
 0x6dc   : > { %v17060_v6 = vadd.f32 %v6350_v38, %v21297_v55  ;;  %v6352_v5 = vpop.f32.mrb[157].mxu1  ;;  %7084 = vmatmul.mubr.f32.gmra.mrb[6].mxu1 %v6624_v26  ;;  %v6634_v55 = vsel %vm634_vm0, %v6629_v61, %v6633_v30  ;;  %v11765_v26 = vpack.c.bf16 %v11197_v15, %v11196_v56 }
 0x6dd   : > { %11152 = vmatprep.mubr.msk.f32.mxu1 %vm5647_vm9, %v6630_v19  ;;  %v21303_v5 = vld [vmem:[#allocation8_spill] sm:$0xff] }
 0x6de   : > { %21298 = vst [vmem:[#allocation130_spill] sm:$0xff] %v17060_v6  ;;  %v6637_v38 = vrot.slane %v21303_v5, 4  ;;  %v21307_v6 = vld [vmem:[#allocation9_spill] sm:$0xff]  ;;  %11766 = vmatpush1.bf16.msra.mxu1 %v11765_v26 }
 0x6df   : > { %v6355_v14 = vpop.f32.mrb[158].mxu1  ;;  %v6641_v5 = vrot.slane %v21307_v6, 4  ;;  %11767 = vmatprep.subr.bf16.mxu1 %v21051_v42  ;;  %v21313_v6 = vld [vmem:[#allocation134_spill] sm:$0xff] }
 0x6e0   : > { %v17068_v40 = vadd.f32 %v6355_v14, %v21301_v1  ;;  %v6357_v2 = vpop.f32.mrb[159].mxu1  ;;  %7089 = vmatmul.mubr.f32.gmra.mrb[8].mxu1 %v6628_v44  ;;  %v6632_v1 = vsel %vm634_vm0, %v6627_v36, %v6631_v54  ;;  %v21305_v44 = vld [vmem:[#allocation132_spill] sm:$0xff]  ;;  %v21308_v36 = vld [vmem:[#allocation10_spill] sm:$0xff] }
 0x6e1   : > { %11153 = vmatprep.mubr.msk.f32.mxu1 %vm5647_vm9, %v6634_v55  ;;  %v21304_v2 = vld [vmem:[#allocation6_spill] sm:$0xff]  ;;  %v6638_v55 = vsel %vm634_vm0, %v6633_v30, %v6637_v38  ;;  %v6639_v24 = vrot.slane %v21308_v36, 4  ;;  %v21311_v30 = vld [vmem:[#allocation13_spill] sm:$0xff] }
 0x6e2   : > { %21302 = vst [vmem:[#allocation131_spill] sm:$0xff] %v17068_v40  ;;  %v6635_v14 = vrot.slane %v21304_v2, 4  ;;  %v21309_v2 = vld [vmem:[#allocation133_spill] sm:$0xff] }
 0x6e3   : > { %v6360_v19 = vpop.f32.mrb[160].mxu1 }
 0x6e4   : > { %v17082_v61 = vadd.f32 %v6360_v19, %v21305_v44  ;;  %v6362_v40 = vpop.f32.mrb[161].mxu1  ;;  %7094 = vmatmul.mubr.f32.gmra.mrb[10].mxu1 %v6632_v1  ;;  %v6636_v15 = vsel %vm634_vm0, %v6631_v54, %v6635_v14  ;;  %v6645_v1 = vrot.slane %v21311_v30, 4  ;;  %v6640_v26 = vsel %vm634_vm0, %v6635_v14, %v6639_v24  ;;  %v11199_v14 = vld [vmem:[%s20379_s3 + $0x1d8] sm:$0xff] }
 0x6e5   : > { %11154 = vmatprep.mubr.msk.f32.mxu1 %vm5647_vm9, %v6638_v55  ;;  %v6642_v40 = vsel %vm634_vm0, %v6637_v38, %v6641_v5  ;;  %v21312_v55 = vld [vmem:[#allocation15_spill] sm:$0xff]  ;;  %v11198_v38 = vld [vmem:[%s20379_s3 + $0x1d0] sm:$0xff] }
 0x6e6   : > { %21306 = vst [vmem:[#allocation132_spill] sm:$0xff] %v17082_v61  ;;  %v6643_v61 = vrot.slane %v21312_v55, 4 }
 0x6e7   : > { %v6365_v56 = vpop.f32.mrb[162].mxu1 }
 0x6e8   : > { %v17091_v59 = vadd.f32 %v6365_v56, %v21309_v2  ;;  %v6367_v19 = vpop.f32.mrb[163].mxu1  ;;  %7099 = vmatmul.mubr.f32.gmra.mrb[12].mxu1 %v6636_v15  ;;  %v6646_v2 = vsel %vm634_vm0, %v6641_v5, %v6645_v1  ;;  %v21315_v56 = vld [vmem:[#allocation17_spill] sm:$0xff] }
 0x6e9   : > { %11155 = vmatprep.mubr.msk.f32.mxu1 %vm5647_vm9, %v6642_v40  ;;  %v6649_v15 = vrot.slane %v21315_v56, 4  ;;  %v11768_v19 = vpack.c.bf16 %v11199_v14, %v11198_v38  ;;  %v11200_v38 = vld [vmem:[%s20379_s3 + $0x1e0] sm:$0xff] }
 0x6ea   : > { %21310 = vst [vmem:[#allocation133_spill] sm:$0xff] %v17091_v59  ;;  %v6653_v59 = vrot.slane %v21188_v53, 4 }
 0x6eb   : > { %v6370_v44 = vpop.f32.mrb[164].mxu1  ;;  %11769 = vmatpush1.bf16.msra.mxu1 %v11768_v19 }
 0x6ec   : > { %v17099_v54 = vadd.f32 %v6370_v44, %v21313_v6  ;;  %v6372_v36 = vpop.f32.mrb[165].mxu1  ;;  %7104 = vmatmul.mubr.f32.gmra.mrb[14].mxu1 %v6640_v26  ;;  %v6644_v6 = vsel %vm634_vm0, %v6639_v24, %v6643_v61  ;;  %v21317_v26 = vld [vmem:[#allocation135_spill] sm:$0xff]  ;;  %11770 = vmatprep.subr.bf16.mxu1 %v21051_v42 }
 0x6ed   : > { %11156 = vmatprep.mubr.msk.f32.mxu1 %vm5647_vm9, %v6646_v2  ;;  %v21316_v36 = vld [vmem:[#allocation19_spill] sm:$0xff]  ;;  %v6650_v2 = vsel %vm634_vm0, %v6645_v1, %v6649_v15  ;;  %v6651_v1 = vrot.slane %v21190_v12, 4 }
 0x6ee   : > { %21314 = vst [vmem:[#allocation134_spill] sm:$0xff] %v17099_v54  ;;  %v6647_v44 = vrot.slane %v21316_v36, 4  ;;  %v11201_v24 = vld [vmem:[%s20379_s3 + $0x1e8] sm:$0xff] }
 0x6ef   : > { %v6375_v40 = vpop.f32.mrb[166].mxu1  ;;  %v11771_v14 = vpack.c.bf16 %v11201_v24, %v11200_v38  ;;  %v11202_v38 = vld [vmem:[%s20379_s3 + $0x1f0] sm:$0xff] }
 0x6f0   : > { %v17113_v5 = vadd.f32 %v6375_v40, %v21317_v26  ;;  %v6377_v54 = vpop.f32.mrb[167].mxu1  ;;  %7109 = vmatmul.mubr.f32.gmra.mrb[16].mxu1 %v6644_v6  ;;  %v6648_v40 = vsel %vm634_vm0, %v6643_v61, %v6647_v44  ;;  %v21319_v6 = vld [vmem:[#allocation136_spill] sm:$0xff]  ;;  %v11203_v61 = vld [vmem:[%s20379_s3 + $0x1f8] sm:$0xff] }
 0x6f1   : > { %11157 = vmatprep.mubr.msk.f32.mxu1 %vm5647_vm9, %v6650_v2  ;;  %v6654_v2 = vsel %vm634_vm0, %v6649_v15, %v6653_v59  ;;  %11772 = vmatpush1.bf16.msra.mxu1 %v11771_v14  ;;  %v11774_v24 = vpack.c.bf16 %v11203_v61, %v11202_v38  ;;  %v21322_v15 = vld [vmem:[#allocation27_spill] sm:$0xff]  ;;  %v11204_v38 = vld [vmem:[%s20379_s3 + $0x200] sm:$0xff] }
 0x6f2   : > { %21318 = vst [vmem:[#allocation135_spill] sm:$0xff] %v17113_v5  ;;  %v21321_v5 = vld [vmem:[#allocation22_spill] sm:$0xff]  ;;  %11773 = vmatprep.subr.bf16.mxu1 %v21051_v42 }
 0x6f3   : > { %v6380_v54 = vpop.f32.mrb[168].mxu1  ;;  %v6657_v53 = vrot.slane %v21321_v5, 4  ;;  %v21325_v5 = vld [vmem:[#allocation28_spill] sm:$0xff] }
 0x6f4   : > { %v17128_v26 = vadd.f32 %v6380_v54, %v21319_v6  ;;  %v6382_v19 = vpop.f32.mrb[169].mxu1  ;;  %7114 = vmatmul.mubr.f32.gmra.mrb[18].mxu1 %v6648_v40  ;;  %v6652_v40 = vsel %vm634_vm0, %v6647_v44, %v6651_v1  ;;  %v6655_v6 = vrot.slane %v21322_v15, 4  ;;  %v6661_v12 = vrot.slane %v21325_v5, 4  ;;  %v11205_v44 = vld [vmem:[%s20379_s3 + $0x208] sm:$0xff]  ;;  %v21329_v5 = vld [vmem:[#allocation30_spill] sm:$0xff] }
 0x6f5   : > { %11158 = vmatprep.mubr.msk.f32.mxu1 %vm5647_vm9, %v6654_v2  ;;  %v21323_v19 = vld [vmem:[#allocation137_spill] sm:$0xff]  ;;  %v6658_v2 = vsel %vm634_vm0, %v6653_v59, %v6657_v53  ;;  %11775 = vmatpush1.bf16.msra.mxu1 %v11774_v24  ;;  %v11777_v61 = vpack.c.bf16 %v11205_v44, %v11204_v38  ;;  %v6665_v15 = vrot.slane %v21329_v5, 4  ;;  %v11206_v38 = vld [vmem:[%s20379_s3 + $0x210] sm:$0xff] }
 0x6f6   : > { %21320 = vst [vmem:[#allocation136_spill] sm:$0xff] %v17128_v26  ;;  %11776 = vmatprep.subr.bf16.mxu1 %v21051_v42  ;;  %v21326_v59 = vld [vmem:[#allocation25_spill] sm:$0xff] }
 0x6f7   : > { %v6385_v54 = vpop.f32.mrb[170].mxu1 }
 0x6f8   : > { %v17143_v26 = vadd.f32 %v6385_v54, %v21323_v19  ;;  %v6387_v14 = vpop.f32.mrb[171].mxu1  ;;  %7119 = vmatmul.mubr.f32.gmra.mrb[20].mxu1 %v6652_v40  ;;  %v6656_v40 = vsel %vm634_vm0, %v6651_v1, %v6655_v6  ;;  %v6659_v19 = vrot.slane %v21326_v59, 4  ;;  %v11207_v1 = vld [vmem:[%s20379_s3 + $0x218] sm:$0xff] }
 0x6f9   : > { %11159 = vmatprep.mubr.msk.f32.mxu1 %vm5647_vm9, %v6658_v2  ;;  %v21327_v14 = vld [vmem:[#allocation138_spill] sm:$0xff]  ;;  %v6662_v2 = vsel %vm634_vm0, %v6657_v53, %v6661_v12  ;;  %11778 = vmatpush1.bf16.msra.mxu1 %v11777_v61  ;;  %v11780_v44 = vpack.c.bf16 %v11207_v1, %v11206_v38  ;;  %v6663_v53 = vrot.slane %v16091_v35, 4 }
 0x6fa   : > { %21324 = vst [vmem:[#allocation137_spill] sm:$0xff] %v17143_v26  ;;  %11779 = vmatprep.subr.bf16.mxu1 %v21051_v42  ;;  %v11208_v38 = vld [vmem:[%s20379_s3 + $0x220] sm:$0xff] }
 0x6fb   : > { %v6390_v54 = vpop.f32.mrb[172].mxu1 }
 0x6fc   : > { %v17158_v26 = vadd.f32 %v6390_v54, %v21327_v14  ;;  %v6392_v24 = vpop.f32.mrb[173].mxu1  ;;  %7124 = vmatmul.mubr.f32.gmra.mrb[22].mxu1 %v6656_v40  ;;  %v6660_v40 = vsel %vm634_vm0, %v6655_v6, %v6659_v19  ;;  %v21330_v14 = vld [vmem:[#allocation139_spill] sm:$0xff] }
 0x6fd   : > { %11160 = vmatprep.mubr.msk.f32.mxu1 %vm5647_vm9, %v6662_v2  ;;  %v6666_v2 = vsel %vm634_vm0, %v6661_v12, %v6665_v15  ;;  %11781 = vmatpush1.bf16.msra.mxu1 %v11780_v44  ;;  %v11209_v6 = vld [vmem:[%s20379_s3 + $0x228] sm:$0xff]  ;;  %v6667_v12 = vrot.slane %v21199_v50, 4  ;;  %v6677_v50 = vrot.slane %v21202_v9, 4 }
 0x6fe   : > { %21328 = vst [vmem:[#allocation138_spill] sm:$0xff] %v17158_v26  ;;  %v6669_v26 = vrot.slane %v21197_v49, 4  ;;  %11782 = vmatprep.subr.bf16.mxu1 %v21051_v42  ;;  %v11783_v1 = vpack.c.bf16 %v11209_v6, %v11208_v38  ;;  %v11210_v49 = vld [vmem:[%s20379_s3 + $0x230] sm:$0xff]  ;;  %v11211_v38 = vld [vmem:[%s20379_s3 + $0x238] sm:$0x7f] }
 0x6ff   : > { %v6395_v54 = vpop.f32.mrb[174].mxu1 }
 0x700   : > { %v17173_v24 = vadd.f32 %v6395_v54, %v21330_v14  ;;  %v6397_v61 = vpop.f32.mrb[175].mxu1  ;;  %7129 = vmatmul.mubr.f32.gmra.mrb[24].mxu1 %v6660_v40  ;;  %v6664_v40 = vsel %vm634_vm0, %v6659_v19, %v6663_v53  ;;  %v21332_v14 = vld [vmem:[#allocation140_spill] sm:$0xff]  ;;  %v11786_v19 = vpack.c.bf16 %v11211_v38, %v11210_v49  ;;  %v21338_v38 = vld [vmem:[#allocation142_spill] sm:$0xff] }
 0x701   : > { %11161 = vmatprep.mubr.msk.f32.mxu1 %vm5647_vm9, %v6666_v2  ;;  %v6670_v2 = vsel %vm634_vm0, %v6665_v15, %v6669_v26  ;;  %11784 = vmatpush1.bf16.msra.mxu1 %v11783_v1  ;;  %v21334_v15 = vld [vmem:[#allocation33_spill] sm:$0xff] }
 0x702   : > { %21331 = vst [vmem:[#allocation139_spill] sm:$0xff] %v17173_v24  ;;  %v6673_v24 = vrot.slane %v21200_v31, 4  ;;  %11785 = vmatprep.subr.bf16.mxu1 %v21051_v42 }
 0x703   : > { %v6400_v54 = vpop.f32.mrb[176].mxu1 }
 0x704   : > { %v17188_v61 = vadd.f32 %v6400_v54, %v21332_v14  ;;  %v6402_v44 = vpop.f32.mrb[177].mxu1  ;;  %7134 = vmatmul.mubr.f32.gmra.mrb[26].mxu1 %v6664_v40  ;;  %v6668_v54 = vsel %vm634_vm0, %v6663_v53, %v6667_v12  ;;  %v6671_v40 = vrot.slane %v21334_v15, 4  ;;  %v21335_v14 = vld [vmem:[#allocation141_spill] sm:$0xff]  ;;  %v6674_v31 = vsel %vm634_vm0, %v6669_v26, %v6673_v24 }
 0x705   : > { %11162 = vmatprep.mubr.msk.f32.mxu1 %vm5647_vm9, %v6670_v2  ;;  %11788 = vmatpush1.bf16.msk.msra.mxu1 %vm14692_vm7, %v11786_v19  ;;  %v6675_v2 = vrot.slane %v16186_v7, 4  ;;  %v6678_v26 = vsel %vm634_vm0, %v6673_v24, %v6677_v50 }
 0x706   : > { %21333 = vst [vmem:[#allocation140_spill] sm:$0xff] %v17188_v61  ;;  %11789 = vmatprep.subr.bf16.mxu1 %v21051_v42  ;;  %v6672_v53 = vsel %vm634_vm0, %v6667_v12, %v6671_v40 }
 0x707   : > { %v6405_v6 = vpop.f32.mrb[178].mxu1  ;;  %v6676_v19 = vsel %vm634_vm0, %v6671_v40, %v6675_v2 }
 0x708   : > { %v17203_v44 = vadd.f32 %v6405_v6, %v21335_v14  ;;  %v6407_v61 = vpop.f32.mrb[179].mxu1  ;;  %7139 = vmatmul.mubr.f32.gmra.mrb[28].mxu1 %v6668_v54  ;;  %v6681_v54 = vrot.slane %v16180_v43, 4  ;;  %v6679_v14 = vrot.slane %v21205_v18, 4 }
 0x709   : > { %11163 = vmatprep.mubr.msk.f32.mxu1 %vm5647_vm9, %v6674_v31 }
 0x70a   : > { %21336 = vst [vmem:[#allocation33_spill] sm:$0xff] %v17203_v44  ;;  %v21340_v44 = vld [vmem:[#allocation143_spill] sm:$0xff] }
 0x70b   : > { %v6410_v49 = vpop.f32.mrb[180].mxu1 }
 0x70c   : > { %v17214_v6 = vadd.f32 %v6410_v49, %v21338_v38  ;;  %v6412_v61 = vpop.f32.mrb[181].mxu1  ;;  %7144 = vmatmul.mubr.f32.gmra.mrb[30].mxu1 %v6672_v53  ;;  %v6682_v49 = vsel %vm634_vm0, %v6677_v50, %v6681_v54  ;;  %v6685_v53 = vrot.slane %v21206_v22, 4  ;;  %v6680_v38 = vsel %vm634_vm0, %v6675_v2, %v6679_v14 }
 0x70d   : > { %11164 = vmatprep.mubr.msk.f32.mxu1 %vm5647_vm9, %v6678_v26  ;;  %v21342_v61 = vld [vmem:[#allocation40_spill] sm:$0xff] }
 0x70e   : > { %21339 = vst [vmem:[#allocation141_spill] sm:$0xff] %v17214_v6  ;;  %v6683_v26 = vrot.slane %v21342_v61, 4  ;;  %v21343_v6 = vld [vmem:[#allocation34_spill] sm:$0xff] }
 0x70f   : > { %v6415_v31 = vpop.f32.mrb[182].mxu1 }
 0x710   : > { %v17222_v12 = vadd.f32 %v6415_v31, %v21340_v44  ;;  %v6417_v7 = vpop.f32.mrb[183].mxu1  ;;  %7149 = vmatmul.mubr.f32.gmra.mrb[32].mxu1 %v6676_v19  ;;  %v6686_v44 = vsel %vm634_vm0, %v6681_v54, %v6685_v53  ;;  %v6684_v31 = vsel %vm634_vm0, %v6679_v14, %v6683_v26  ;;  %v6687_v19 = vrot.slane %v16254_v27, 4 }
 0x711   : > { %11165 = vmatprep.mubr.msk.f32.mxu1 %vm5647_vm9, %v6682_v49  ;;  %v6689_v7 = vrot.slane %v16231_v16, 4  ;;  %v21345_v49 = vld [vmem:[#allocation144_spill] sm:$0xff] }
 0x712   : > { %21341 = vst [vmem:[#allocation142_spill] sm:$0xff] %v17222_v12 }
 0x713   : > { %v6420_v24 = vpop.f32.mrb[184].mxu1 }
 0x714   : > { %v17230_v40 = vadd.f32 %v6420_v24, %v21343_v6  ;;  %v6422_v18 = vpop.f32.mrb[185].mxu1  ;;  %7154 = vmatmul.mubr.f32.gmra.mrb[34].mxu1 %v6680_v38  ;;  %v6690_v6 = vsel %vm634_vm0, %v6685_v53, %v6689_v7  ;;  %v6688_v24 = vsel %vm634_vm0, %v6683_v26, %v6687_v19  ;;  %v6691_v38 = vrot.slane %v16273_v21, 4 }
 0x715   : > { %11166 = vmatprep.mubr.msk.f32.mxu1 %vm5647_vm9, %v6686_v44  ;;  %v6693_v18 = vrot.slane %v16250_v20, 4  ;;  %v21347_v44 = vld [vmem:[#allocation145_spill] sm:$0xff] }
 0x716   : > { %21344 = vst [vmem:[#allocation143_spill] sm:$0xff] %v17230_v40 }
 0x717   : > { %v6425_v50 = vpop.f32.mrb[186].mxu1 }
 0x718   : > { %v17238_v2 = vadd.f32 %v6425_v50, %v21345_v49  ;;  %v6427_v12 = vpop.f32.mrb[187].mxu1  ;;  %7159 = vmatmul.mubr.f32.gmra.mrb[36].mxu1 %v6684_v31  ;;  %v6694_v50 = vsel %vm634_vm0, %v6689_v7, %v6693_v18  ;;  %v6692_v31 = vsel %vm634_vm0, %v6687_v19, %v6691_v38  ;;  %v6695_v49 = vrot.slane %v16292_v52, 4 }
 0x719   : > { %11167 = vmatprep.mubr.msk.f32.mxu1 %vm5647_vm9, %v6690_v6  ;;  %v6697_v12 = vrot.slane %v21210_v8, 4  ;;  %v21349_v6 = vld [vmem:[#allocation146_spill] sm:$0xff] }
 0x71a   : > { %21346 = vst [vmem:[#allocation34_spill] sm:$0xff] %v17238_v2 }
 0x71b   : > { %v6430_v54 = vpop.f32.mrb[188].mxu1 }
 0x71c   : > { %v17246_v14 = vadd.f32 %v6430_v54, %v21347_v44  ;;  %v6432_v40 = vpop.f32.mrb[189].mxu1  ;;  %7164 = vmatmul.mubr.f32.gmra.mrb[38].mxu1 %v6688_v24  ;;  %v6698_v54 = vsel %vm634_vm0, %v6693_v18, %v6697_v12  ;;  %v6696_v24 = vsel %vm634_vm0, %v6691_v38, %v6695_v49  ;;  %v6699_v44 = vrot.slane %v16311_v34, 4 }
 0x71d   : > { %11168 = vmatprep.mubr.msk.f32.mxu1 %vm5647_vm9, %v6694_v50  ;;  %v6701_v40 = vrot.slane %v16288_v62, 4  ;;  %v21351_v50 = vld [vmem:[#allocation147_spill] sm:$0xff] }
 0x71e   : > { %21348 = vst [vmem:[#allocation144_spill] sm:$0xff] %v17246_v14 }
 0x71f   : > { %v6435_v53 = vpop.f32.mrb[190].mxu1 }
 0x720   : > { %v17254_v26 = vadd.f32 %v6435_v53, %v21349_v6  ;;  %v6437_v2 = vpop.f32.mrb[191].mxu1  ;;  %7169 = vmatmul.mubr.f32.gmra.mrb[40].mxu1 %v6692_v31  ;;  %v6702_v53 = vsel %vm634_vm0, %v6697_v12, %v6701_v40  ;;  %v6700_v31 = vsel %vm634_vm0, %v6695_v49, %v6699_v44  ;;  %v6703_v6 = vrot.slane %v16330_v46, 4 }
 0x721   : > { %11169 = vmatprep.mubr.msk.f32.mxu1 %vm5647_vm9, %v6698_v54  ;;  %v6705_v2 = vrot.slane %v16307_v29, 4  ;;  %v21353_v54 = vld [vmem:[#allocation148_spill] sm:$0xff] }
 0x722   : > { %21350 = vst [vmem:[#allocation145_spill] sm:$0xff] %v17254_v26 }
 0x723   : > { %v6440_v7 = vpop.f32.mrb[192].mxu1 }
 0x724   : > { %v17262_v19 = vadd.f32 %v6440_v7, %v21351_v50  ;;  %v6442_v14 = vpop.f32.mrb[193].mxu1  ;;  %7174 = vmatmul.mubr.f32.gmra.mrb[42].mxu1 %v6696_v24  ;;  %v6706_v7 = vsel %vm634_vm0, %v6701_v40, %v6705_v2  ;;  %v6704_v24 = vsel %vm634_vm0, %v6699_v44, %v6703_v6  ;;  %v6707_v50 = vrot.slane %v16349_v60, 4 }
 0x725   : > { %11170 = vmatprep.mubr.msk.f32.mxu1 %vm5647_vm9, %v6702_v53  ;;  %v6709_v14 = vrot.slane %v16326_v57, 4  ;;  %v21355_v53 = vld [vmem:[#allocation149_spill] sm:$0xff] }
 0x726   : > { %21352 = vst [vmem:[#allocation146_spill] sm:$0xff] %v17262_v19 }
 0x727   : > { %v6445_v18 = vpop.f32.mrb[194].mxu1 }
 0x728   : > { %v17270_v38 = vadd.f32 %v6445_v18, %v21353_v54  ;;  %v6447_v26 = vpop.f32.mrb[195].mxu1  ;;  %7179 = vmatmul.mubr.f32.gmra.mrb[44].mxu1 %v6700_v31  ;;  %v6710_v18 = vsel %vm634_vm0, %v6705_v2, %v6709_v14  ;;  %v6708_v31 = vsel %vm634_vm0, %v6703_v6, %v6707_v50  ;;  %v6711_v54 = vrot.slane %v16362_v10, 4 }
 0x729   : > { %11171 = vmatprep.mubr.msk.f32.mxu1 %vm5647_vm9, %v6706_v7  ;;  %v6713_v26 = vrot.slane %v16345_v48, 4  ;;  %v21357_v7 = vld [vmem:[#allocation150_spill] sm:$0xff] }
 0x72a   : > { %21354 = vst [vmem:[#allocation147_spill] sm:$0xff] %v17270_v38 }
 0x72b   : > { %v6450_v12 = vpop.f32.mrb[196].mxu1 }
 0x72c   : > { %v17278_v49 = vadd.f32 %v6450_v12, %v21355_v53  ;;  %v6452_v19 = vpop.f32.mrb[197].mxu1  ;;  %7184 = vmatmul.mubr.f32.gmra.mrb[46].mxu1 %v6704_v24  ;;  %v6714_v12 = vsel %vm634_vm0, %v6709_v14, %v6713_v26  ;;  %v6712_v24 = vsel %vm634_vm0, %v6707_v50, %v6711_v54  ;;  %v6715_v53 = vrot.slane %v16377_v25, 4 }
 0x72d   : > { %11172 = vmatprep.mubr.msk.f32.mxu1 %vm5647_vm9, %v6710_v18  ;;  %v6717_v19 = vrot.slane %v16358_v23, 4  ;;  %v21359_v18 = vld [vmem:[#allocation151_spill] sm:$0xff] }
 0x72e   : > { %21356 = vst [vmem:[#allocation148_spill] sm:$0xff] %v17278_v49 }
 0x72f   : > { %v6455_v40 = vpop.f32.mrb[198].mxu1 }
 0x730   : > { %v17286_v44 = vadd.f32 %v6455_v40, %v21357_v7  ;;  %v6457_v38 = vpop.f32.mrb[199].mxu1  ;;  %7189 = vmatmul.mubr.f32.gmra.mrb[48].mxu1 %v6708_v31  ;;  %v6718_v40 = vsel %vm634_vm0, %v6713_v26, %v6717_v19  ;;  %v6716_v31 = vsel %vm634_vm0, %v6711_v54, %v6715_v53  ;;  %v6719_v7 = vrot.slane %v16389_v13, 4 }
 0x731   : > { %11173 = vmatprep.mubr.msk.f32.mxu1 %vm5647_vm9, %v6714_v12  ;;  %v6721_v38 = vrot.slane %v16373_v17, 4  ;;  %v21361_v12 = vld [vmem:[#allocation152_spill] sm:$0xff] }
 0x732   : > { %21358 = vst [vmem:[#allocation149_spill] sm:$0xff] %v17286_v44 }
 0x733   : > { %v6460_v2 = vpop.f32.mrb[200].mxu1 }
 0x734   : > { %v17294_v6 = vadd.f32 %v6460_v2, %v21359_v18  ;;  %v6462_v49 = vpop.f32.mrb[201].mxu1  ;;  %7194 = vmatmul.mubr.f32.gmra.mrb[50].mxu1 %v6712_v24  ;;  %v6722_v2 = vsel %vm634_vm0, %v6717_v19, %v6721_v38  ;;  %v6720_v24 = vsel %vm634_vm0, %v6715_v53, %v6719_v7  ;;  %v21363_v18 = vld [vmem:[#allocation71_spill] sm:$0xff] }
 0x735   : > { %11174 = vmatprep.mubr.msk.f32.mxu1 %vm5647_vm9, %v6718_v40  ;;  %v6725_v49 = vrot.slane %v16385_v4, 4  ;;  %v6723_v40 = vrot.slane %v21363_v18, 4 }
 0x736   : > { %21360 = vst [vmem:[#allocation150_spill] sm:$0xff] %v17294_v6  ;;  %v21364_v6 = vld [vmem:[#allocation153_spill] sm:$0xff] }
 0x737   : > { %v6465_v14 = vpop.f32.mrb[202].mxu1 }
 0x738   : > { %v17302_v50 = vadd.f32 %v6465_v14, %v21361_v12  ;;  %v6467_v44 = vpop.f32.mrb[203].mxu1  ;;  %7199 = vmatmul.mubr.f32.gmra.mrb[52].mxu1 %v6716_v31  ;;  %v6726_v14 = vsel %vm634_vm0, %v6721_v38, %v6725_v49  ;;  %v6724_v31 = vsel %vm634_vm0, %v6719_v7, %v6723_v40  ;;  %v21366_v12 = vld [vmem:[#allocation100_spill] sm:$0xff] }
 0x739   : > { %11175 = vmatprep.mubr.msk.f32.mxu1 %vm5647_vm9, %v6722_v2  ;;  %v6729_v44 = vrot.slane %v16397_v51, 4  ;;  %v6727_v2 = vrot.slane %v21366_v12, 4  ;;  %v21414_v51 = vld [vmem:[#allocation63_spill] sm:$0xff] }
 0x73a   : > { %21362 = vst [vmem:[#allocation151_spill] sm:$0xff] %v17302_v50  ;;  %v21367_v50 = vld [vmem:[#allocation154_spill] sm:$0xff] }
 0x73b   : > { %v6470_v26 = vpop.f32.mrb[204].mxu1 }
 0x73c   : > { %v17310_v54 = vadd.f32 %v6470_v26, %v21364_v6  ;;  %v6472_v13 = vpop.f32.mrb[205].mxu1  ;;  %7204 = vmatmul.mubr.f32.gmra.mrb[54].mxu1 %v6720_v24  ;;  %v6730_v6 = vsel %vm634_vm0, %v6725_v49, %v6729_v44  ;;  %v6728_v26 = vsel %vm634_vm0, %v6723_v40, %v6727_v2  ;;  %v21369_v24 = vld [vmem:[#allocation102_spill] sm:$0xff] }
 0x73d   : > { %11176 = vmatprep.mubr.msk.f32.mxu1 %vm5647_vm9, %v6726_v14  ;;  %v6733_v13 = vrot.slane %v16409_v41, 4  ;;  %v6731_v14 = vrot.slane %v21369_v24, 4  ;;  %v21412_v41 = vld [vmem:[#allocation61_spill] sm:$0xff] }
 0x73e   : > { %21365 = vst [vmem:[#allocation152_spill] sm:$0xff] %v17310_v54  ;;  %v21370_v54 = vld [vmem:[#allocation155_spill] sm:$0xff] }
 0x73f   : > { %v6475_v19 = vpop.f32.mrb[206].mxu1 }
 0x740   : > { %v17318_v53 = vadd.f32 %v6475_v19, %v21367_v50  ;;  %v6477_v18 = vpop.f32.mrb[207].mxu1  ;;  %7209 = vmatmul.mubr.f32.gmra.mrb[56].mxu1 %v6724_v31  ;;  %v6734_v50 = vsel %vm634_vm0, %v6729_v44, %v6733_v13  ;;  %v6732_v19 = vsel %vm634_vm0, %v6727_v2, %v6731_v14  ;;  %v21372_v31 = vld [vmem:[#allocation103_spill] sm:$0xff] }
 0x741   : > { %11177 = vmatprep.mubr.msk.f32.mxu1 %vm5647_vm9, %v6730_v6  ;;  %v6737_v18 = vrot.slane %v21221_v47, 4  ;;  %v6735_v6 = vrot.slane %v21372_v31, 4  ;;  %v21410_v47 = vld [vmem:[#allocation59_spill] sm:$0xff] }
 0x742   : > { %21368 = vst [vmem:[#allocation153_spill] sm:$0xff] %v17318_v53  ;;  %v21373_v53 = vld [vmem:[#allocation156_spill] sm:$0xff] }
 0x743   : > { %v6480_v38 = vpop.f32.mrb[208].mxu1 }
 0x744   : > { %v17326_v7 = vadd.f32 %v6480_v38, %v21370_v54  ;;  %v6482_v12 = vpop.f32.mrb[209].mxu1  ;;  %7214 = vmatmul.mubr.f32.gmra.mrb[58].mxu1 %v6728_v26  ;;  %v6738_v54 = vsel %vm634_vm0, %v6733_v13, %v6737_v18  ;;  %v6736_v38 = vsel %vm634_vm0, %v6731_v14, %v6735_v6  ;;  %v21375_v26 = vld [vmem:[#allocation81_spill] sm:$0xff] }
 0x745   : > { %11178 = vmatprep.mubr.msk.f32.mxu1 %vm5647_vm9, %v6734_v50  ;;  %v6741_v12 = vrot.slane %v21223_v0, 4  ;;  %v6739_v50 = vrot.slane %v21375_v26, 4  ;;  %v21380_v0 = vld [vmem:[#allocation158_spill] sm:$0xff] }
 0x746   : > { %21371 = vst [vmem:[#allocation154_spill] sm:$0xff] %v17326_v7  ;;  %v21376_v7 = vld [vmem:[#allocation157_spill] sm:$0xff] }
 0x747   : > { %v6485_v49 = vpop.f32.mrb[210].mxu1 }
 0x748   : > { %v17334_v40 = vadd.f32 %v6485_v49, %v21373_v53  ;;  %v6487_v24 = vpop.f32.mrb[211].mxu1  ;;  %7219 = vmatmul.mubr.f32.gmra.mrb[60].mxu1 %v6732_v19  ;;  %v6742_v53 = vsel %vm634_vm0, %v6737_v18, %v6741_v12  ;;  %v6740_v19 = vsel %vm634_vm0, %v6735_v6, %v6739_v50 }
 0x749   : > { %11179 = vmatprep.mubr.msk.f32.mxu1 %vm5647_vm9, %v6738_v54  ;;  %v21378_v24 = vld [vmem:[#allocation104_spill] sm:$0xff]  ;;  %v21379_v54 = vld [vmem:[#allocation105_spill] sm:$0xff] }
 0x74a   : > { %21374 = vst [vmem:[#allocation155_spill] sm:$0xff] %v17334_v40  ;;  %v6745_v49 = vrot.slane %v21378_v24, 4  ;;  %v6743_v40 = vrot.slane %v21379_v54, 4  ;;  %v21384_v24 = vld [vmem:[#allocation159_spill] sm:$0xff] }
 0x74b   : > { %v6490_v44 = vpop.f32.mrb[212].mxu1 }
 0x74c   : > { %v17342_v2 = vadd.f32 %v6490_v44, %v21376_v7  ;;  %v6492_v31 = vpop.f32.mrb[213].mxu1  ;;  %7224 = vmatmul.mubr.f32.gmra.mrb[62].mxu1 %v6736_v38  ;;  %v6746_v7 = vsel %vm634_vm0, %v6741_v12, %v6745_v49  ;;  %v6744_v38 = vsel %vm634_vm0, %v6739_v50, %v6743_v40 }
 0x74d   : > { %11180 = vmatprep.mubr.msk.f32.mxu1 %vm5647_vm9, %v6742_v53  ;;  %v21382_v31 = vld [vmem:[#allocation106_spill] sm:$0xff] }
 0x74e   : > { %21377 = vst [vmem:[#allocation156_spill] sm:$0xff] %v17342_v2  ;;  %v6749_v44 = vrot.slane %v21382_v31, 4  ;;  %v21383_v53 = vld [vmem:[#allocation86_spill] sm:$0xff]  ;;  %v21408_v31 = vld [vmem:[#allocation57_spill] sm:$0xff] }
 0x74f   : > { %v6495_v13 = vpop.f32.mrb[214].mxu1  ;;  %v6747_v2 = vrot.slane %v21383_v53, 4 }
 0x750   : > { %v17350_v14 = vadd.f32 %v6495_v13, %v21380_v0  ;;  %v6497_v26 = vpop.f32.mrb[215].mxu1  ;;  %7229 = vmatmul.mubr.f32.gmra.mrb[64].mxu1 %v6740_v19  ;;  %v6750_v0 = vsel %vm634_vm0, %v6745_v49, %v6749_v44 }
 0x751   : > { %11181 = vmatprep.mubr.msk.f32.mxu1 %vm5647_vm9, %v6746_v7  ;;  %v21386_v26 = vld [vmem:[#allocation7_spill] sm:$0xff]  ;;  %v6748_v19 = vsel %vm634_vm0, %v6743_v40, %v6747_v2  ;;  %v6751_v7 = vrot.slane %v21231_v58, 4 }
 0x752   : > { %21381 = vst [vmem:[#allocation157_spill] sm:$0xff] %v17350_v14  ;;  %v6753_v13 = vrot.slane %v21386_v26, 4  ;;  %v21387_v14 = vld [vmem:[#allocation160_spill] sm:$0xff] }
 0x753   : > { %v6500_v18 = vpop.f32.mrb[216].mxu1 }
 0x754   : > { %v17358_v6 = vadd.f32 %v6500_v18, %v21384_v24  ;;  %v6502_v54 = vpop.f32.mrb[217].mxu1  ;;  %7234 = vmatmul.mubr.f32.gmra.mrb[66].mxu1 %v6744_v38  ;;  %v6754_v24 = vsel %vm634_vm0, %v6749_v44, %v6753_v13  ;;  %v6752_v38 = vsel %vm634_vm0, %v6747_v2, %v6751_v7 }
 0x755   : > { %11182 = vmatprep.mubr.msk.f32.mxu1 %vm5647_vm9, %v6750_v0  ;;  %v21389_v54 = vld [vmem:[#allocation11_spill] sm:$0xff]  ;;  %v6755_v0 = vrot.slane %v21234_v63, 4 }
 0x756   : > { %21385 = vst [vmem:[#allocation158_spill] sm:$0xff] %v17358_v6  ;;  %v6757_v18 = vrot.slane %v21389_v54, 4  ;;  %v21390_v6 = vld [vmem:[#allocation161_spill] sm:$0xff] }
 0x757   : > { %v6505_v12 = vpop.f32.mrb[218].mxu1 }
 0x758   : > { %v17366_v50 = vadd.f32 %v6505_v12, %v21387_v14  ;;  %v6507_v53 = vpop.f32.mrb[219].mxu1  ;;  %7239 = vmatmul.mubr.f32.gmra.mrb[68].mxu1 %v6748_v19  ;;  %v6758_v14 = vsel %vm634_vm0, %v6753_v13, %v6757_v18  ;;  %v6756_v12 = vsel %vm634_vm0, %v6751_v7, %v6755_v0  ;;  %v6759_v19 = vrot.slane %v21237_v28, 4  ;;  %v21398_v28 = vld [vmem:[#allocation114_spill] sm:$0xff] }
 0x759   : > { %11183 = vmatprep.mubr.msk.f32.mxu1 %vm5647_vm9, %v6754_v24  ;;  %v6761_v53 = vrot.slane %v21235_v45, 4  ;;  %v21400_v45 = vld [vmem:[#allocation116_spill] sm:$0xff] }
 0x75a   : > { %21388 = vst [vmem:[#allocation159_spill] sm:$0xff] %v17366_v50  ;;  %v6760_v13 = vsel %vm634_vm0, %v6755_v0, %v6759_v19 }
 0x75b   : > { %v6510_v49 = vpop.f32.mrb[220].mxu1  ;;  %v6762_v24 = vsel %vm634_vm0, %v6757_v18, %v6761_v53 }
 0x75c   : > { %v17374_v40 = vadd.f32 %v6510_v49, %v21390_v6  ;;  %v6512_v58 = vpop.f32.mrb[221].mxu1  ;;  %7244 = vmatmul.mubr.f32.gmra.mrb[70].mxu1 %v6752_v38  ;;  %v6765_v6 = vrot.slane %v16516_v39, 4  ;;  %v6763_v49 = vrot.slane %v21239_v11, 4  ;;  %v21394_v11 = vld [vmem:[#allocation109_spill] sm:$0xff]  ;;  %v21396_v39 = vld [vmem:[#allocation111_spill] sm:$0xff] }
 0x75d   : > { %11184 = vmatprep.mubr.msk.f32.mxu1 %vm5647_vm9, %v6758_v14  ;;  %v6769_v14 = vrot.slane %v16527_v33, 4 }
 0x75e   : > { %21391 = vst [vmem:[#allocation160_spill] sm:$0xff] %v17374_v40  ;;  %v6766_v7 = vsel %vm634_vm0, %v6761_v53, %v6765_v6  ;;  %v6764_v18 = vsel %vm634_vm0, %v6759_v19, %v6763_v49  ;;  %v21392_v40 = vld [vmem:[#allocation108_spill] sm:$0xff] }
 0x75f   : > { %v17379_v44 = vpop.f32.mrb[222].mxu1  ;;  %v6770_v0 = vsel %vm634_vm0, %v6765_v6, %v6769_v14  ;;  %v6773_v50 = vrot.slane %v21392_v40, 4 }
 0x760   : > { %v6517_v2 = vpop.f32.mrb[223].mxu1  ;;  %7249 = vmatmul.mubr.f32.gmra.mrb[72].mxu1 %v6756_v12 }
 0x761   : > { %11185 = vmatprep.mubr.msk.f32.mxu1 %vm5647_vm9, %v6762_v24  ;;  %v6767_v2 = vrot.slane %v16531_v32, 4  ;;  %v6774_v19 = vsel %vm634_vm0, %v6769_v14, %v6773_v50  ;;  %v6777_v32 = vrot.slane %v21394_v11, 4 }
 0x763   : > { %v17386_v58 = vpop.f32.mrb[224].mxu1  ;;  %v6768_v53 = vsel %vm634_vm0, %v6763_v49, %v6767_v2  ;;  %v6778_v49 = vsel %vm634_vm0, %v6773_v50, %v6777_v32 }
 0x764   : > { %v6522_v38 = vpop.f32.mrb[225].mxu1  ;;  %7254 = vmatmul.mubr.f32.gmra.mrb[74].mxu1 %v6760_v13 }
 0x765   : > { %11186 = vmatprep.mubr.msk.f32.mxu1 %vm5647_vm9, %v6766_v7  ;;  %v21393_v38 = vld [vmem:[#allocation26_spill] sm:$0xff] }
 0x766   : > { %v6771_v7 = vrot.slane %v21393_v38, 4  ;;  %v6781_v38 = vrot.slane %v21396_v39, 4 }
 0x767   : > { %v17393_v12 = vpop.f32.mrb[226].mxu1 }
 0x768   : > { %v6527_v24 = vpop.f32.mrb[227].mxu1  ;;  %7259 = vmatmul.mubr.f32.gmra.mrb[76].mxu1 %v6764_v18  ;;  %v6772_v6 = vsel %vm634_vm0, %v6767_v2, %v6771_v7  ;;  %v6782_v2 = vsel %vm634_vm0, %v6777_v32, %v6781_v38 }
 0x769   : > { %11187 = vmatprep.mubr.msk.f32.mxu1 %vm5647_vm9, %v6770_v0  ;;  %v21395_v24 = vld [vmem:[#allocation110_spill] sm:$0xff] }
 0x76a   : > { %v6775_v0 = vrot.slane %v21395_v24, 4  ;;  %v6785_v24 = vrot.slane %v21398_v28, 4 }
 0x76b   : > { %v17400_v13 = vpop.f32.mrb[228].mxu1 }
 0x76c   : > { %v6532_v33 = vpop.f32.mrb[229].mxu1  ;;  %7264 = vmatmul.mubr.f32.gmra.mrb[78].mxu1 %v6768_v53  ;;  %v6776_v14 = vsel %vm634_vm0, %v6771_v7, %v6775_v0  ;;  %v21397_v53 = vld [vmem:[#allocation112_spill] sm:$0xff]  ;;  %v6786_v7 = vsel %vm634_vm0, %v6781_v38, %v6785_v24 }
 0x76d   : > { %11188 = vmatprep.mubr.msk.f32.mxu1 %vm5647_vm9, %v6774_v19  ;;  %v6779_v19 = vrot.slane %v21397_v53, 4  ;;  %v6789_v53 = vrot.slane %v21400_v45, 4  ;;  %v21402_v45 = vld [vmem:[#allocation51_spill] sm:$0xff] }
 0x76f   : > { %v17407_v18 = vpop.f32.mrb[230].mxu1  ;;  %v6780_v50 = vsel %vm634_vm0, %v6775_v0, %v6779_v19  ;;  %v6790_v0 = vsel %vm634_vm0, %v6785_v24, %v6789_v53  ;;  %v21405_v24 = vld [vmem:[#allocation53_spill] sm:$0xff] }
 0x770   : > { %v6537_v40 = vpop.f32.mrb[231].mxu1  ;;  %7269 = vmatmul.mubr.f32.gmra.mrb[80].mxu1 %v6772_v6  ;;  %v21399_v6 = vld [vmem:[#allocation115_spill] sm:$0xff]  ;;  %v7377_v63 = vrot.slane %v21405_v24, 6  ;;  %v7388_v24 = vrot.slane %v21408_v31, 6 }
 0x771   : > { %11189 = vmatprep.mubr.msk.f32.mxu1 %vm5647_vm9, %v6778_v49  ;;  %v6783_v49 = vrot.slane %v21399_v6, 4 }
 0x773   : > { %v17414_v33 = vpop.f32.mrb[232].mxu1  ;;  %v6784_v32 = vsel %vm634_vm0, %v6779_v19, %v6783_v49  ;;  %v21403_v19 = vld [vmem:[#allocation48_spill] sm:$0xff] }
 0x774   : > { %v6542_v11 = vpop.f32.mrb[233].mxu1  ;;  %7274 = vmatmul.mubr.f32.gmra.mrb[82].mxu1 %v6776_v14  ;;  %v21401_v14 = vld [vmem:[#allocation117_spill] sm:$0xff]  ;;  %v7379_v6 = vrot.slane %v21403_v19, 6 }
 0x775   : > { %11190 = vmatprep.mubr.msk.f32.mxu1 %vm5647_vm9, %v6782_v2  ;;  %v6787_v2 = vrot.slane %v21401_v14, 4 }
 0x777   : > { %v17421_v40 = vpop.f32.mrb[234].mxu1  ;;  %v6788_v38 = vsel %vm634_vm0, %v6783_v49, %v6787_v2  ;;  %v21406_v49 = vld [vmem:[#allocation54_spill] sm:$0xff] }
 0x778   : > { %v6547_v39 = vpop.f32.mrb[235].mxu1  ;;  %7279 = vmatmul.mubr.f32.gmra.mrb[84].mxu1 %v6780_v50 }
 0x779   : > { %11191 = vmatprep.mubr.msk.f32.mxu1 %vm5647_vm9, %v6786_v7  ;;  %v7380_v7 = vrot.slane %v21402_v45, 6  ;;  %v21407_v45 = vld [vmem:[#allocation55_spill] sm:$0xff] }
 0x77a   : > { %v7382_v19 = vrot.slane %v21407_v45, 6  ;;  %v7392_v45 = vrot.slane %v21410_v47, 6 }
 0x77b   : > { %v17428_v11 = vpop.f32.mrb[236].mxu1  ;;  %v7381_v54 = vsel %vm7375_vm10, %v7379_v6, %v7380_v7 }
 0x77c   : > { %v6552_v28 = vpop.f32.mrb[237].mxu1  ;;  %7284 = vmatmul.mubr.f32.gmra.mrb[86].mxu1 %v6784_v32  ;;  %v7383_v6 = vsel %vm7375_vm10, %v7377_v63, %v7382_v19 }
 0x77d   : > { %11192 = vmatprep.mubr.msk.f32.mxu1 %vm5647_vm9, %v6790_v0  ;;  %v21404_v28 = vld [vmem:[#allocation52_spill] sm:$0xff] }
 0x77e   : > { %v7376_v32 = vrot.slane %v21404_v28, 6 }
 0x77f   : > { %v17434_v39 = vpop.f32.mrb[238].mxu1 }
 0x780   : > { %v7027_v50 = vpop.f32.mrb[239].mxu1  ;;  %7289 = vmatmul.mubr.f32.gmra.mrb[88].mxu1 %v6788_v38 }
 0x781   : > { %11193 = vmatprep.mubr.msk.f32.mxu1 %vm5647_vm9, %v6789_v53  ;;  %v7384_v50 = vrot.slane %v21406_v49, 6  ;;  %v7378_v53 = vsel %vm7375_vm10, %v7376_v32, %v7377_v63  ;;  %v7393_v63 = vsel %vm7375_vm10, %v7388_v24, %v7392_v45 }
 0x783   : > { %v17440_v14 = vpop.f32.mrb[240].mxu1  ;;  %v7385_v28 = vsel %vm7375_vm10, %v7380_v7, %v7384_v50  ;;  %v7389_v32 = vsel %vm7375_vm10, %v7384_v50, %v7388_v24 }
 0x784   : > { %v7032_v0 = vpop.f32.mrb[241].mxu1  ;;  %7294 = vmatmul.mubr.f32.gmra.mrb[90].mxu1 %v6787_v2 }
 0x785   : > { %11213 = vmatprep.mubr.msk.f32.mxu1 %vm5647_vm9, %v7381_v54  ;;  %v21409_v0 = vld [vmem:[#allocation58_spill] sm:$0xff] }
 0x786   : > { %v7386_v54 = vrot.slane %v21409_v0, 6  ;;  %v7396_v0 = vrot.slane %v21412_v41, 6  ;;  %v21417_v41 = vld [vmem:[#allocation64_spill] sm:$0xff] }
 0x787   : > { %v17447_v38 = vpop.f32.mrb[242].mxu1 }
 0x788   : > { %v7037_v26 = vpop.f32.mrb[243].mxu1  ;;  %7831 = vmatmul.mubr.f32.vlgmr.msra.gmra.mrb[92].mxu1 %v7378_v53  ;;  %v7387_v7 = vsel %vm7375_vm10, %v7382_v19, %v7386_v54  ;;  %v21411_v53 = vld [vmem:[#allocation60_spill] sm:$0xff]  ;;  %v7397_v19 = vsel %vm7375_vm10, %v7392_v45, %v7396_v0  ;;  %v7404_v45 = vrot.slane %v21269_v3, 6 }
 0x789   : > { %11214 = vmatprep.mubr.msk.f32.mxu1 %vm5647_vm9, %v7385_v28  ;;  %v7390_v28 = vrot.slane %v21411_v53, 6  ;;  %v7400_v53 = vrot.slane %v21414_v51, 6 }
 0x78b   : > { %v17454_v2 = vpop.f32.mrb[244].mxu1  ;;  %v7391_v50 = vsel %vm7375_vm10, %v7386_v54, %v7390_v28  ;;  %v7398_v54 = vrot.slane %v21417_v41, 6  ;;  %v21422_v41 = vld [vmem:[#allocation164_spill] sm:$0xff] }
 0x78c   : > { %v7042_v49 = vpop.f32.mrb[245].mxu1  ;;  %7836 = vmatmul.mubr.f32.gmra.mrb[94].mxu1 %v7383_v6  ;;  %v21413_v6 = vld [vmem:[#allocation62_spill] sm:$0xff]  ;;  %v17498_v3 = vadd.f32 %v17393_v12, %v21422_v41 }
 0x78d   : > { %11215 = vmatprep.mubr.msk.f32.mxu1 %vm5647_vm9, %v7389_v32  ;;  %v7394_v32 = vrot.slane %v21413_v6, 6 }
 0x78e   : > { %21423 = vst [vmem:[#allocation52_spill] sm:$0xff] %v17498_v3 }
 0x78f   : > { %v17461_v26 = vpop.f32.mrb[246].mxu1 }
 0x790   : > { %v7047_v31 = vpop.f32.mrb[247].mxu1  ;;  %7841 = vmatmul.mubr.f32.gmra.mrb[96].mxu1 %v7387_v7 }
 0x791   : > { %11216 = vmatprep.mubr.msk.f32.mxu1 %vm5647_vm9, %v7393_v63  ;;  %v21415_v31 = vld [vmem:[#allocation162_spill] sm:$0xff]  ;;  %v7395_v63 = vsel %vm7375_vm10, %v7390_v28, %v7394_v32 }
 0x792   : > { %v17476_v7 = vadd.f32 %v17379_v44, %v21415_v31  ;;  %v21420_v31 = vld [vmem:[#allocation66_spill] sm:$0xff] }
 0x793   : > { %v17468_v49 = vpop.f32.mrb[248].mxu1  ;;  %v7402_v28 = vrot.slane %v21420_v31, 6  ;;  %v21426_v31 = vld [vmem:[#allocation165_spill] sm:$0xff] }
 0x794   : > { %v7052_v47 = vpop.f32.mrb[249].mxu1  ;;  %7846 = vmatmul.mubr.f32.gmra.mrb[98].mxu1 %v7391_v50  ;;  %21416 = vst [vmem:[#allocation161_spill] sm:$0xff] %v17476_v7  ;;  %v21418_v50 = vld [vmem:[#allocation163_spill] sm:$0xff] }
 0x795   : > { %11217 = vmatprep.mubr.msk.f32.mxu1 %vm5647_vm9, %v7397_v19  ;;  %v7401_v47 = vsel %vm7375_vm10, %v7396_v0, %v7400_v53  ;;  %v17487_v51 = vadd.f32 %v17386_v58, %v21418_v50  ;;  %v7399_v19 = vsel %vm7375_vm10, %v7394_v32, %v7398_v54  ;;  %v21424_v50 = vld [vmem:[#allocation69_spill] sm:$0xff] }
 0x796   : > { %v7406_v32 = vrot.slane %v21424_v50, 6 }
 0x797   : > { %v17479_v24 = vpop.f32.mrb[250].mxu1  ;;  %21419 = vst [vmem:[#allocation48_spill] sm:$0xff] %v17487_v51 }
 0x798   : > { %v7057_v4 = vpop.f32.mrb[251].mxu1  ;;  %7851 = vmatmul.mubr.f32.gmra.mrb[100].mxu1 %v7395_v63  ;;  %v21421_v63 = vld [vmem:[#allocation68_spill] sm:$0xff]  ;;  %v7407_v12 = vsel %vm7375_vm10, %v7402_v28, %v7406_v32 }
 0x799   : > { %11218 = vmatprep.mubr.msk.f32.mxu1 %vm5647_vm9, %v7401_v47  ;;  %v7405_v4 = vsel %vm7375_vm10, %v7400_v53, %v7404_v45  ;;  %v7408_v0 = vrot.slane %v21421_v63, 6  ;;  %v7403_v47 = vsel %vm7375_vm10, %v7398_v54, %v7402_v28  ;;  %v17509_v63 = vadd.f32 %v17400_v13, %v21426_v31  ;;  %v11269_v13 = vld [vmem:[%s20379_s3 + $0x248] sm:$0xff]  ;;  %v21430_v31 = vld [vmem:[#allocation166_spill] sm:$0xff] }
 0x79b   : > { %v17490_v44 = vpop.f32.mrb[252].mxu1  ;;  %21427 = vst [vmem:[#allocation162_spill] sm:$0xff] %v17509_v63  ;;  %v21432_v63 = vld [vmem:[#allocation75_spill] sm:$0xff] }
 0x79c   : > { %v7062_v6 = vpop.f32.mrb[253].mxu1  ;;  %7856 = vmatmul.mubr.f32.gmra.mrb[102].mxu1 %v7399_v19  ;;  %v21425_v19 = vld [vmem:[#allocation70_spill] sm:$0xff]  ;;  %v7420_v7 = vrot.slane %v21432_v63, 6  ;;  %v21437_v63 = vld [vmem:[#allocation168_spill] sm:$0xff] }
 0x79d   : > { %11219 = vmatprep.mubr.msk.f32.mxu1 %vm5647_vm9, %v7405_v4  ;;  %v7409_v6 = vsel %vm7375_vm10, %v7404_v45, %v7408_v0  ;;  %v7412_v53 = vrot.slane %v21425_v19, 6  ;;  %v21428_v4 = vld [vmem:[#allocation72_spill] sm:$0xff]  ;;  %v11268_v19 = vld [vmem:[%s20379_s3 + $0x240] sm:$0xff] }
 0x79e   : > { %v7410_v54 = vrot.slane %v21428_v4, 6 }
 0x79f   : > { %v17501_v58 = vpop.f32.mrb[254].mxu1 }
 0x7a0   : > { %v7067_v51 = vpop.f32.mrb[255].mxu1  ;;  %7861 = vmatmul.mubr.f32.gmra.mrb[104].mxu1 %v7403_v47  ;;  %v21429_v47 = vld [vmem:[#allocation74_spill] sm:$0xff] }
 0x7a1   : > { %11220 = vmatprep.mubr.msk.f32.mxu1 %vm5647_vm9, %v7409_v6  ;;  %v7413_v51 = vsel %vm7375_vm10, %v7408_v0, %v7412_v53  ;;  %v7416_v45 = vrot.slane %v21429_v47, 6  ;;  %v17526_v6 = vadd.f32 %v17407_v18, %v21430_v31  ;;  %v7411_v0 = vsel %vm7375_vm10, %v7406_v32, %v7410_v54  ;;  %v21433_v18 = vld [vmem:[#allocation167_spill] sm:$0xff] }
 0x7a2   : > { %v17538_v31 = vadd.f32 %v17414_v33, %v21433_v18  ;;  %v21438_v18 = vld [vmem:[#allocation78_spill] sm:$0xff] }
 0x7a3   : > { %v17512_v41 = vpop.f32.mrb[0].mxu1  ;;  %v7417_v50 = vsel %vm7375_vm10, %v7412_v53, %v7416_v45  ;;  %v7421_v53 = vsel %vm7375_vm10, %v7416_v45, %v7420_v7  ;;  %v7428_v45 = vrot.slane %v21292_v37, 6 }
 0x7a4   : > { %v7072_v3 = vpop.f32.mrb[1].mxu1  ;;  %7866 = vmatmul.mubr.f32.gmra.mrb[106].mxu1 %v7407_v12  ;;  %v21431_v12 = vld [vmem:[#allocation73_spill] sm:$0xff]  ;;  %21434 = vst [vmem:[#allocation163_spill] sm:$0xff] %v17538_v31 }
 0x7a5   : > { %11221 = vmatprep.mubr.msk.f32.mxu1 %vm5647_vm9, %v7413_v51  ;;  %v11790_v3 = vpack.c.bf16 %v11269_v13, %v11268_v19  ;;  %v7414_v47 = vrot.slane %v21431_v12, 6  ;;  %v21435_v51 = vld [vmem:[#allocation76_spill] sm:$0xff]  ;;  %v17549_v12 = vadd.f32 %v17421_v40, %v21437_v63 }
 0x7a6   : > { %v7418_v13 = vrot.slane %v21435_v51, 6 }
 0x7a7   : > { %v17529_v28 = vpop.f32.mrb[2].mxu1  ;;  %11791 = vmatpush1.bf16.msra.mxu1 %v11790_v3  ;;  %v7415_v32 = vsel %vm7375_vm10, %v7410_v54, %v7414_v47  ;;  %v21436_v3 = vld [vmem:[#allocation77_spill] sm:$0xff]  ;;  %v7422_v54 = vrot.slane %v21438_v18, 6 }
 0x7a8   : > { %v7077_v4 = vpop.f32.mrb[3].mxu1  ;;  %7871 = vmatmul.mubr.f32.gmra.mrb[108].mxu1 %v7411_v0  ;;  %11792 = vmatprep.subr.bf16.mxu1 %v21051_v42  ;;  %v7424_v0 = vrot.slane %v21436_v3, 6  ;;  %v21443_v18 = vld [vmem:[#allocation113_spill] sm:$0xff] }
 0x7a9   : > { %11222 = vmatprep.mubr.msk.f32.mxu1 %vm5647_vm9, %v7417_v50  ;;  %v7419_v50 = vsel %vm7375_vm10, %v7414_v47, %v7418_v13  ;;  %v7423_v63 = vsel %vm7375_vm10, %v7418_v13, %v7422_v54  ;;  %v17571_v37 = vadd.f32 %v17434_v39, %v21443_v18 }
 0x7ab   : > { %v17541_v19 = vpop.f32.mrb[4].mxu1  ;;  %21444 = vst [vmem:[#allocation165_spill] sm:$0xff] %v17571_v37 }
 0x7ac   : > { %v7082_v4 = vpop.f32.mrb[5].mxu1  ;;  %7876 = vmatmul.mubr.f32.gmra.mrb[110].mxu1 %v7415_v32  ;;  %v7425_v32 = vsel %vm7375_vm10, %v7420_v7, %v7424_v0 }
 0x7ad   : > { %11223 = vmatprep.mubr.msk.f32.mxu1 %vm5647_vm9, %v7421_v53  ;;  %v21439_v4 = vld [vmem:[#allocation169_spill] sm:$0xff]  ;;  %v21441_v53 = vld [vmem:[#allocation79_spill] sm:$0xff] }
 0x7ae   : > { %v17560_v3 = vadd.f32 %v17428_v11, %v21439_v4  ;;  %v7426_v47 = vrot.slane %v21441_v53, 6  ;;  %v21445_v4 = vld [vmem:[#allocation84_spill] sm:$0xff]  ;;  %v21447_v53 = vld [vmem:[#allocation170_spill] sm:$0xff] }
 0x7af   : > { %v17552_v33 = vpop.f32.mrb[6].mxu1  ;;  %v7430_v13 = vrot.slane %v21445_v4, 6  ;;  %v21450_v4 = vld [vmem:[#allocation118_spill] sm:$0xff] }
 0x7b0   : > { %v7087_v31 = vpop.f32.mrb[7].mxu1  ;;  %7881 = vmatmul.mubr.f32.gmra.mrb[112].mxu1 %v7419_v50  ;;  %21440 = vst [vmem:[#allocation164_spill] sm:$0xff] %v17560_v3  ;;  %v21442_v50 = vld [vmem:[#allocation83_spill] sm:$0xff] }
 0x7b1   : > { %11224 = vmatprep.mubr.msk.f32.mxu1 %vm5647_vm9, %v7425_v32  ;;  %v7429_v31 = vsel %vm7375_vm10, %v7424_v0, %v7428_v45  ;;  %v7432_v7 = vrot.slane %v21442_v50, 6  ;;  %v7427_v32 = vsel %vm7375_vm10, %v7422_v54, %v7426_v47  ;;  %v17582_v50 = vadd.f32 %v17440_v14, %v21447_v53  ;;  %v11270_v14 = vld [vmem:[%s20379_s3 + $0x250] sm:$0xff]  ;;  %v11271_v53 = vld [vmem:[%s20379_s3 + $0x258] sm:$0xff] }
 0x7b2   : > { %v7431_v18 = vsel %vm7375_vm10, %v7426_v47, %v7430_v13 }
 0x7b3   : > { %v17563_v40 = vpop.f32.mrb[8].mxu1 }
 0x7b4   : > { %v7092_v51 = vpop.f32.mrb[9].mxu1  ;;  %7886 = vmatmul.mubr.f32.gmra.mrb[114].mxu1 %v7423_v63  ;;  %v21446_v63 = vld [vmem:[#allocation85_spill] sm:$0xff] }
 0x7b5   : > { %11225 = vmatprep.mubr.msk.f32.mxu1 %vm5647_vm9, %v7429_v31  ;;  %v7433_v51 = vsel %vm7375_vm10, %v7428_v45, %v7432_v7  ;;  %v7436_v0 = vrot.slane %v21446_v63, 6  ;;  %v21448_v31 = vld [vmem:[#allocation87_spill] sm:$0xff]  ;;  %v17593_v63 = vadd.f32 %v17447_v38, %v21450_v4  ;;  %v21453_v4 = vld [vmem:[#allocation9_spill] sm:$0xff] }
 0x7b6   : > { %v7434_v54 = vrot.slane %v21448_v31, 6  ;;  %v21454_v31 = vld [vmem:[#allocation119_spill] sm:$0xff] }
 0x7b7   : > { %v17574_v11 = vpop.f32.mrb[10].mxu1  ;;  %21451 = vst [vmem:[#allocation166_spill] sm:$0xff] %v17593_v63  ;;  %v17610_v63 = vadd.f32 %v17454_v2, %v21454_v31 }
 0x7b8   : > { %v7097_v3 = vpop.f32.mrb[11].mxu1  ;;  %7891 = vmatmul.mubr.f32.gmra.mrb[116].mxu1 %v7427_v32  ;;  %v21449_v32 = vld [vmem:[#allocation8_spill] sm:$0xff] }
 0x7b9   : > { %11226 = vmatprep.mubr.msk.f32.mxu1 %vm5647_vm9, %v7433_v51  ;;  %v7437_v3 = vsel %vm7375_vm10, %v7432_v7, %v7436_v0  ;;  %v7440_v45 = vrot.slane %v21449_v32, 6  ;;  %v7435_v7 = vsel %vm7375_vm10, %v7430_v13, %v7434_v54  ;;  %v21452_v51 = vld [vmem:[#allocation6_spill] sm:$0xff] }
 0x7bb   : > { %v17585_v39 = vpop.f32.mrb[12].mxu1  ;;  %v7441_v38 = vsel %vm7375_vm10, %v7436_v0, %v7440_v45 }
 0x7bc   : > { %v7102_v37 = vpop.f32.mrb[13].mxu1  ;;  %7896 = vmatmul.mubr.f32.gmra.mrb[118].mxu1 %v7431_v18  ;;  %v7438_v18 = vrot.slane %v21452_v51, 6  ;;  %v21456_v51 = vld [vmem:[#allocation120_spill] sm:$0xff] }
 0x7bd   : > { %11227 = vmatprep.mubr.msk.f32.mxu1 %vm5647_vm9, %v7437_v3  ;;  %v11793_v37 = vpack.c.bf16 %v11271_v53, %v11270_v14  ;;  %v7444_v3 = vrot.slane %v21453_v4, 6  ;;  %v21455_v53 = vld [vmem:[#allocation10_spill] sm:$0xff]  ;;  %v7448_v4 = vrot.slane %v21311_v30, 6  ;;  %v17622_v2 = vadd.f32 %v17461_v26, %v21456_v51  ;;  %v11273_v51 = vld [vmem:[%s20379_s3 + $0x268] sm:$0xff] }
 0x7be   : > { %v7439_v13 = vsel %vm7375_vm10, %v7434_v54, %v7438_v18  ;;  %v7446_v54 = vrot.slane %v21312_v55, 6  ;;  %v11272_v26 = vld [vmem:[%s20379_s3 + $0x260] sm:$0xff] }
 0x7bf   : > { %v17602_v47 = vpop.f32.mrb[14].mxu1  ;;  %11794 = vmatpush1.bf16.msra.mxu1 %v11793_v37  ;;  %v7445_v0 = vsel %vm7375_vm10, %v7440_v45, %v7444_v3  ;;  %v7452_v45 = vrot.slane %v21315_v56, 6  ;;  %v21459_v56 = vld [vmem:[#allocation122_spill] sm:$0xff] }
 0x7c0   : > { %v7107_v32 = vpop.f32.mrb[15].mxu1  ;;  %7901 = vmatmul.mubr.f32.gmra.mrb[120].mxu1 %v7435_v7  ;;  %11795 = vmatprep.subr.bf16.mxu1 %v21051_v42  ;;  %v17650_v55 = vadd.f32 %v17479_v24, %v21459_v56  ;;  %v21460_v56 = vld [vmem:[#allocation24_spill] sm:$0xff] }
 0x7c1   : > { %11228 = vmatprep.mubr.msk.f32.mxu1 %vm5647_vm9, %v7441_v38  ;;  %v7442_v32 = vrot.slane %v21455_v53, 6  ;;  %v7454_v24 = vrot.slane %v21460_v56, 6  ;;  %v21466_v56 = vld [vmem:[#allocation124_spill] sm:$0xff] }
 0x7c3   : > { %v17614_v14 = vpop.f32.mrb[16].mxu1  ;;  %v7443_v37 = vsel %vm7375_vm10, %v7438_v18, %v7442_v32  ;;  %v11796_v18 = vpack.c.bf16 %v11273_v51, %v11272_v26  ;;  %v11274_v26 = vld [vmem:[%s20379_s3 + $0x270] sm:$0xff] }
 0x7c4   : > { %v7112_v7 = vpop.f32.mrb[17].mxu1  ;;  %7906 = vmatmul.mubr.f32.gmra.mrb[122].mxu1 %v7439_v13  ;;  %v7449_v13 = vsel %vm7375_vm10, %v7444_v3, %v7448_v4  ;;  %v7447_v3 = vsel %vm7375_vm10, %v7442_v32, %v7446_v54  ;;  %v11275_v32 = vld [vmem:[%s20379_s3 + $0x278] sm:$0xff] }
 0x7c5   : > { %11229 = vmatprep.mubr.msk.f32.mxu1 %vm5647_vm9, %v7445_v0  ;;  %v21457_v7 = vld [vmem:[#allocation121_spill] sm:$0xff]  ;;  %11797 = vmatpush1.bf16.msra.mxu1 %v11796_v18 }
 0x7c6   : > { %v17633_v30 = vadd.f32 %v17468_v49, %v21457_v7  ;;  %v7453_v49 = vsel %vm7375_vm10, %v7448_v4, %v7452_v45  ;;  %11798 = vmatprep.subr.bf16.mxu1 %v21051_v42  ;;  %v11799_v4 = vpack.c.bf16 %v11275_v32, %v11274_v26  ;;  %v11276_v26 = vld [vmem:[%s20379_s3 + $0x280] sm:$0xff] }
 0x7c7   : > { %v17625_v31 = vpop.f32.mrb[18].mxu1 }
 0x7c8   : > { %v7117_v38 = vpop.f32.mrb[19].mxu1  ;;  %7911 = vmatmul.mubr.f32.gmra.mrb[124].mxu1 %v7443_v37  ;;  %v7450_v37 = vrot.slane %v21316_v36, 6  ;;  %v21462_v36 = vld [vmem:[#allocation123_spill] sm:$0xff] }
 0x7c9   : > { %11230 = vmatprep.mubr.msk.f32.mxu1 %vm5647_vm9, %v7449_v13  ;;  %v21458_v13 = vld [vmem:[#allocation21_spill] sm:$0xff]  ;;  %v17668_v53 = vadd.f32 %v17490_v44, %v21462_v36  ;;  %11800 = vmatpush1.bf16.msra.mxu1 %v11799_v4  ;;  %v21464_v36 = vld [vmem:[#allocation27_spill] sm:$0xff] }
 0x7ca   : > { %v7456_v7 = vrot.slane %v21458_v13, 6  ;;  %11801 = vmatprep.subr.bf16.mxu1 %v21051_v42  ;;  %v7458_v44 = vrot.slane %v21464_v36, 6 }
 0x7cb   : > { %v17642_v0 = vpop.f32.mrb[20].mxu1  ;;  %21463 = vst [vmem:[#allocation167_spill] sm:$0xff] %v17668_v53  ;;  %v17686_v53 = vadd.f32 %v17501_v58, %v21466_v56  ;;  %v7462_v58 = vrot.slane %v21326_v59, 6 }
 0x7cc   : > { %v7122_v38 = vpop.f32.mrb[21].mxu1  ;;  %7916 = vmatmul.mubr.f32.gmra.mrb[126].mxu1 %v7447_v3  ;;  %v7451_v3 = vsel %vm7375_vm10, %v7446_v54, %v7450_v37  ;;  %v7457_v18 = vsel %vm7375_vm10, %v7452_v45, %v7456_v7  ;;  %v11277_v54 = vld [vmem:[%s20379_s3 + $0x288] sm:$0xff] }
 0x7cd   : > { %11231 = vmatprep.mubr.msk.f32.mxu1 %vm5647_vm9, %v7453_v49  ;;  %v21461_v49 = vld [vmem:[#allocation22_spill] sm:$0xff]  ;;  %v11802_v45 = vpack.c.bf16 %v11277_v54, %v11276_v26  ;;  %v11278_v26 = vld [vmem:[%s20379_s3 + $0x290] sm:$0xff] }
 0x7ce   : > { %v7460_v13 = vrot.slane %v21461_v49, 6 }
 0x7cf   : > { %v17660_v51 = vpop.f32.mrb[22].mxu1  ;;  %11803 = vmatpush1.bf16.msra.mxu1 %v11802_v45 }
 0x7d0   : > { %v7127_v38 = vpop.f32.mrb[23].mxu1  ;;  %7921 = vmatmul.mubr.f32.gmra.mrb[128].mxu1 %v7451_v3  ;;  %v7455_v3 = vsel %vm7375_vm10, %v7450_v37, %v7454_v24  ;;  %v7461_v4 = vsel %vm7375_vm10, %v7456_v7, %v7460_v13  ;;  %v11279_v37 = vld [vmem:[%s20379_s3 + $0x298] sm:$0xff]  ;;  %11804 = vmatprep.subr.bf16.mxu1 %v21051_v42 }
 0x7d1   : > { %11232 = vmatprep.mubr.msk.f32.mxu1 %vm5647_vm9, %v7457_v18  ;;  %v21465_v18 = vld [vmem:[#allocation28_spill] sm:$0xff]  ;;  %v11805_v7 = vpack.c.bf16 %v11279_v37, %v11278_v26  ;;  %v11280_v26 = vld [vmem:[%s20379_s3 + $0x2a0] sm:$0xff] }
 0x7d2   : > { %v7464_v49 = vrot.slane %v21465_v18, 6 }
 0x7d3   : > { %v17678_v32 = vpop.f32.mrb[24].mxu1  ;;  %11806 = vmatpush1.bf16.msra.mxu1 %v11805_v7 }
 0x7d4   : > { %v7132_v38 = vpop.f32.mrb[25].mxu1  ;;  %7926 = vmatmul.mubr.f32.gmra.mrb[130].mxu1 %v7455_v3  ;;  %v7459_v3 = vsel %vm7375_vm10, %v7454_v24, %v7458_v44  ;;  %v7465_v45 = vsel %vm7375_vm10, %v7460_v13, %v7464_v49  ;;  %v11281_v24 = vld [vmem:[%s20379_s3 + $0x2a8] sm:$0xff]  ;;  %11807 = vmatprep.subr.bf16.mxu1 %v21051_v42 }
 0x7d5   : > { %11233 = vmatprep.mubr.msk.f32.mxu1 %vm5647_vm9, %v7461_v4  ;;  %v7468_v38 = vrot.slane %v21329_v5, 6  ;;  %v21467_v4 = vld [vmem:[#allocation125_spill] sm:$0xff]  ;;  %v11808_v13 = vpack.c.bf16 %v11281_v24, %v11280_v26  ;;  %v21469_v5 = vld [vmem:[#allocation126_spill] sm:$0xff]  ;;  %v11282_v26 = vld [vmem:[%s20379_s3 + $0x2b0] sm:$0xff] }
 0x7d6   : > { %v17704_v18 = vadd.f32 %v17512_v41, %v21467_v4  ;;  %v7466_v41 = vrot.slane %v16091_v35, 6  ;;  %v17722_v59 = vadd.f32 %v17529_v28, %v21469_v5  ;;  %v21471_v5 = vld [vmem:[#allocation29_spill] sm:$0xff]  ;;  %v11284_v35 = vld [vmem:[%s20379_s3 + $0x2c0] sm:$0xff] }
 0x7d7   : > { %v17696_v54 = vpop.f32.mrb[26].mxu1  ;;  %v7469_v7 = vsel %vm7375_vm10, %v7464_v49, %v7468_v38  ;;  %11809 = vmatpush1.bf16.msra.mxu1 %v11808_v13  ;;  %v7470_v28 = vrot.slane %v21471_v5, 6 }
 0x7d8   : > { %v7137_v56 = vpop.f32.mrb[27].mxu1  ;;  %7931 = vmatmul.mubr.f32.gmra.mrb[132].mxu1 %v7459_v3  ;;  %v7463_v3 = vsel %vm7375_vm10, %v7458_v44, %v7462_v58  ;;  %21470 = vst [vmem:[#allocation168_spill] sm:$0xff] %v17722_v59  ;;  %v11283_v44 = vld [vmem:[%s20379_s3 + $0x2b8] sm:$0xff]  ;;  %11810 = vmatprep.subr.bf16.mxu1 %v21051_v42  ;;  %v7480_v59 = vrot.slane %v21202_v9, 6 }
 0x7d9   : > { %11234 = vmatprep.mubr.msk.f32.mxu1 %vm5647_vm9, %v7465_v45  ;;  %v21468_v45 = vld [vmem:[#allocation32_spill] sm:$0xff]  ;;  %v11811_v49 = vpack.c.bf16 %v11283_v44, %v11282_v26  ;;  %v11285_v26 = vld [vmem:[%s20379_s3 + $0x2c8] sm:$0x7f] }
 0x7da   : > { %v7472_v4 = vrot.slane %v21468_v45, 6  ;;  %v21473_v44 = vld [vmem:[#allocation127_spill] sm:$0xff] }
 0x7db   : > { %v17714_v37 = vpop.f32.mrb[28].mxu1  ;;  %v17746_v36 = vadd.f32 %v17541_v19, %v21473_v44  ;;  %11812 = vmatpush1.bf16.msra.mxu1 %v11811_v49  ;;  %v21474_v19 = vld [vmem:[#allocation128_spill] sm:$0xff]  ;;  %v21475_v49 = vld [vmem:[#allocation37_spill] sm:$0xff] }
 0x7dc   : > { %v7142_v56 = vpop.f32.mrb[29].mxu1  ;;  %7936 = vmatmul.mubr.f32.gmra.mrb[134].mxu1 %v7463_v3  ;;  %v7467_v3 = vsel %vm7375_vm10, %v7462_v58, %v7466_v41  ;;  %v7473_v13 = vsel %vm7375_vm10, %v7468_v38, %v7472_v4  ;;  %v11814_v58 = vpack.c.bf16 %v11285_v26, %v11284_v35  ;;  %11813 = vmatprep.subr.bf16.mxu1 %v21051_v42  ;;  %v21476_v26 = vld [vmem:[#allocation129_spill] sm:$0xff] }
 0x7dd   : > { %11235 = vmatprep.mubr.msk.f32.mxu1 %vm5647_vm9, %v7469_v7  ;;  %v21472_v7 = vld [vmem:[#allocation35_spill] sm:$0xff]  ;;  %v17758_v44 = vadd.f32 %v17552_v33, %v21474_v19  ;;  %v7484_v33 = vrot.slane %v16180_v43, 6  ;;  %v21477_v19 = vld [vmem:[#allocation38_spill] sm:$0xff] }
 0x7de   : > { %v7476_v45 = vrot.slane %v21472_v7, 6 }
 0x7df   : > { %v17732_v24 = vpop.f32.mrb[30].mxu1  ;;  %11816 = vmatpush1.bf16.msk.msra.mxu1 %vm14692_vm7, %v11814_v58 }
 0x7e0   : > { %v7147_v56 = vpop.f32.mrb[31].mxu1  ;;  %7941 = vmatmul.mubr.f32.gmra.mrb[136].mxu1 %v7467_v3  ;;  %v7471_v3 = vsel %vm7375_vm10, %v7466_v41, %v7470_v28  ;;  %v7477_v5 = vsel %vm7375_vm10, %v7472_v4, %v7476_v45  ;;  %11849 = vmatprep.subr.bf16.mxu1 %v21051_v42 }
 0x7e1   : > { %11236 = vmatprep.mubr.msk.f32.mxu1 %vm5647_vm9, %v7473_v13  ;;  %v7474_v56 = vrot.slane %v21334_v15, 6  ;;  %v7478_v13 = vrot.slane %v21475_v49, 6 }
 0x7e3   : > { %v17750_v38 = vpop.f32.mrb[32].mxu1  ;;  %v7475_v41 = vsel %vm7375_vm10, %v7470_v28, %v7474_v56  ;;  %v7482_v28 = vrot.slane %v21477_v19, 6 }
 0x7e4   : > { %v7152_v7 = vpop.f32.mrb[33].mxu1  ;;  %7946 = vmatmul.mubr.f32.gmra.mrb[138].mxu1 %v7471_v3  ;;  %v7479_v3 = vsel %vm7375_vm10, %v7474_v56, %v7478_v13  ;;  %v7486_v56 = vrot.slane %v21342_v61, 6 }
 0x7e5   : > { %11237 = vmatprep.mubr.msk.f32.mxu1 %vm5647_vm9, %v7477_v5  ;;  %v7481_v7 = vsel %vm7375_vm10, %v7476_v45, %v7480_v59  ;;  %v17772_v5 = vadd.f32 %v17563_v40, %v21476_v26  ;;  %v7488_v45 = vrot.slane %v21206_v22, 6 }
 0x7e7   : > { %v17764_v35 = vpop.f32.mrb[34].mxu1 }
 0x7e8   : > { %v7157_v4 = vpop.f32.mrb[35].mxu1  ;;  %7951 = vmatmul.mubr.f32.gmra.mrb[140].mxu1 %v7475_v41  ;;  %v7485_v41 = vsel %vm7375_vm10, %v7480_v59, %v7484_v33  ;;  %v7492_v59 = vrot.slane %v16231_v16, 6 }
 0x7e9   : > { %11238 = vmatprep.mubr.msk.f32.mxu1 %vm5647_vm9, %v7481_v7  ;;  %v21478_v4 = vld [vmem:[#allocation130_spill] sm:$0xff]  ;;  %v7483_v7 = vsel %vm7375_vm10, %v7478_v13, %v7482_v28  ;;  %v7490_v13 = vrot.slane %v16254_v27, 6 }
 0x7ea   : > { %v17783_v42 = vadd.f32 %v17574_v11, %v21478_v4 }
 0x7eb   : > { %v17775_v58 = vpop.f32.mrb[36].mxu1 }
 0x7ec   : > { %v7162_v1 = vpop.f32.mrb[37].mxu1  ;;  %7956 = vmatmul.mubr.f32.gmra.mrb[142].mxu1 %v7479_v3  ;;  %v21479_v3 = vld [vmem:[#allocation131_spill] sm:$0xff] }
 0x7ed   : > { %11239 = vmatprep.mubr.msk.f32.mxu1 %vm5647_vm9, %v7485_v41  ;;  %v7489_v1 = vsel %vm7375_vm10, %v7484_v33, %v7488_v45  ;;  %v17794_v22 = vadd.f32 %v17585_v39, %v21479_v3  ;;  %v7487_v41 = vsel %vm7375_vm10, %v7482_v28, %v7486_v56  ;;  %v7496_v33 = vrot.slane %v16250_v20, 6 }
 0x7ee   : > { %v7494_v28 = vrot.slane %v16273_v21, 6 }
 0x7ef   : > { %v17786_v40 = vpop.f32.mrb[38].mxu1 }
 0x7f0   : > { %v7167_v26 = vpop.f32.mrb[39].mxu1  ;;  %7961 = vmatmul.mubr.f32.gmra.mrb[144].mxu1 %v7483_v7  ;;  %v7493_v7 = vsel %vm7375_vm10, %v7488_v45, %v7492_v59  ;;  %v7500_v45 = vrot.slane %v21210_v8, 6 }
 0x7f1   : > { %11240 = vmatprep.mubr.msk.f32.mxu1 %vm5647_vm9, %v7489_v1  ;;  %v21480_v26 = vld [vmem:[#allocation132_spill] sm:$0xff]  ;;  %v7491_v1 = vsel %vm7375_vm10, %v7486_v56, %v7490_v13  ;;  %v7498_v56 = vrot.slane %v16292_v52, 6 }
 0x7f2   : > { %v17805_v16 = vadd.f32 %v17602_v47, %v21480_v26 }
 0x7f3   : > { %v17797_v11 = vpop.f32.mrb[40].mxu1 }
 0x7f4   : > { %v7172_v4 = vpop.f32.mrb[41].mxu1  ;;  %7966 = vmatmul.mubr.f32.gmra.mrb[146].mxu1 %v7487_v41  ;;  %v7497_v41 = vsel %vm7375_vm10, %v7492_v59, %v7496_v33  ;;  %v7504_v59 = vrot.slane %v16288_v62, 6 }
 0x7f5   : > { %11241 = vmatprep.mubr.msk.f32.mxu1 %vm5647_vm9, %v7493_v7  ;;  %v21481_v4 = vld [vmem:[#allocation133_spill] sm:$0xff]  ;;  %v7495_v7 = vsel %vm7375_vm10, %v7490_v13, %v7494_v28  ;;  %v7502_v13 = vrot.slane %v16311_v34, 6 }
 0x7f6   : > { %v17816_v20 = vadd.f32 %v17614_v14, %v21481_v4 }
 0x7f7   : > { %v17808_v39 = vpop.f32.mrb[42].mxu1 }
 0x7f8   : > { %v7177_v3 = vpop.f32.mrb[43].mxu1  ;;  %7971 = vmatmul.mubr.f32.gmra.mrb[148].mxu1 %v7491_v1  ;;  %v7501_v1 = vsel %vm7375_vm10, %v7496_v33, %v7500_v45  ;;  %v7508_v33 = vrot.slane %v16307_v29, 6 }
 0x7f9   : > { %11242 = vmatprep.mubr.msk.f32.mxu1 %vm5647_vm9, %v7497_v41  ;;  %v21482_v3 = vld [vmem:[#allocation134_spill] sm:$0xff]  ;;  %v7499_v41 = vsel %vm7375_vm10, %v7494_v28, %v7498_v56  ;;  %v7506_v28 = vrot.slane %v16330_v46, 6 }
 0x7fa   : > { %v17827_v8 = vadd.f32 %v17625_v31, %v21482_v3 }
 0x7fb   : > { %v17819_v47 = vpop.f32.mrb[44].mxu1 }
 0x7fc   : > { %v7182_v26 = vpop.f32.mrb[45].mxu1  ;;  %7976 = vmatmul.mubr.f32.gmra.mrb[150].mxu1 %v7495_v7  ;;  %v7505_v7 = vsel %vm7375_vm10, %v7500_v45, %v7504_v59  ;;  %v7512_v45 = vrot.slane %v16326_v57, 6 }
 0x7fd   : > { %11243 = vmatprep.mubr.msk.f32.mxu1 %vm5647_vm9, %v7501_v1  ;;  %v21483_v26 = vld [vmem:[#allocation135_spill] sm:$0xff]  ;;  %v7503_v1 = vsel %vm7375_vm10, %v7498_v56, %v7502_v13  ;;  %v7510_v56 = vrot.slane %v16349_v60, 6 }
 0x7fe   : > { %v17838_v62 = vadd.f32 %v17642_v0, %v21483_v26 }
 0x7ff   : > { %v17830_v14 = vpop.f32.mrb[46].mxu1 }
 0x800   : > { %v7187_v4 = vpop.f32.mrb[47].mxu1  ;;  %7981 = vmatmul.mubr.f32.gmra.mrb[152].mxu1 %v7499_v41  ;;  %v7509_v41 = vsel %vm7375_vm10, %v7504_v59, %v7508_v33  ;;  %v7516_v59 = vrot.slane %v16345_v48, 6 }
 0x801   : > { %11244 = vmatprep.mubr.msk.f32.mxu1 %vm5647_vm9, %v7505_v7  ;;  %v21484_v4 = vld [vmem:[#allocation136_spill] sm:$0xff]  ;;  %v7507_v7 = vsel %vm7375_vm10, %v7502_v13, %v7506_v28  ;;  %v7514_v13 = vrot.slane %v16362_v10, 6 }
 0x802   : > { %v17849_v29 = vadd.f32 %v17660_v51, %v21484_v4 }
 0x803   : > { %v17841_v31 = vpop.f32.mrb[48].mxu1 }
 0x804   : > { %v7192_v3 = vpop.f32.mrb[49].mxu1  ;;  %7986 = vmatmul.mubr.f32.gmra.mrb[154].mxu1 %v7503_v1  ;;  %v7513_v1 = vsel %vm7375_vm10, %v7508_v33, %v7512_v45  ;;  %v7520_v33 = vrot.slane %v16358_v23, 6 }
 0x805   : > { %11245 = vmatprep.mubr.msk.f32.mxu1 %vm5647_vm9, %v7509_v41  ;;  %v21485_v3 = vld [vmem:[#allocation137_spill] sm:$0xff]  ;;  %v7511_v41 = vsel %vm7375_vm10, %v7506_v28, %v7510_v56  ;;  %v7518_v28 = vrot.slane %v16377_v25, 6  ;;  %v21490_v25 = vld [vmem:[#allocation140_spill] sm:$0xff] }
 0x806   : > { %v17860_v57 = vadd.f32 %v17678_v32, %v21485_v3 }
 0x807   : > { %v17852_v0 = vpop.f32.mrb[50].mxu1 }
 0x808   : > { %v7197_v26 = vpop.f32.mrb[51].mxu1  ;;  %7991 = vmatmul.mubr.f32.gmra.mrb[156].mxu1 %v7507_v7  ;;  %v7517_v7 = vsel %vm7375_vm10, %v7512_v45, %v7516_v59  ;;  %v7524_v45 = vrot.slane %v16373_v17, 6  ;;  %v17893_v17 = vadd.f32 %v17732_v24, %v21490_v25 }
 0x809   : > { %11246 = vmatprep.mubr.msk.f32.mxu1 %vm5647_vm9, %v7513_v1  ;;  %v21486_v26 = vld [vmem:[#allocation138_spill] sm:$0xff]  ;;  %v7515_v1 = vsel %vm7375_vm10, %v7510_v56, %v7514_v13 }
 0x80a   : > { %v17871_v48 = vadd.f32 %v17696_v54, %v21486_v26  ;;  %v21488_v26 = vld [vmem:[#allocation97_spill] sm:$0xff] }
 0x80b   : > { %v17863_v51 = vpop.f32.mrb[52].mxu1  ;;  %v7522_v56 = vrot.slane %v21488_v26, 6  ;;  %v21493_v26 = vld [vmem:[#allocation33_spill] sm:$0xff] }
 0x80c   : > { %v7202_v4 = vpop.f32.mrb[53].mxu1  ;;  %7996 = vmatmul.mubr.f32.gmra.mrb[158].mxu1 %v7511_v41  ;;  %v7521_v41 = vsel %vm7375_vm10, %v7516_v59, %v7520_v33 }
 0x80d   : > { %11247 = vmatprep.mubr.msk.f32.mxu1 %vm5647_vm9, %v7517_v7  ;;  %v21487_v4 = vld [vmem:[#allocation139_spill] sm:$0xff]  ;;  %v7519_v7 = vsel %vm7375_vm10, %v7514_v13, %v7518_v28 }
 0x80e   : > { %v17882_v23 = vadd.f32 %v17714_v37, %v21487_v4  ;;  %v21491_v4 = vld [vmem:[#allocation71_spill] sm:$0xff] }
 0x80f   : > { %v17874_v32 = vpop.f32.mrb[54].mxu1  ;;  %v7526_v13 = vrot.slane %v21491_v4, 6  ;;  %v21496_v4 = vld [vmem:[#allocation141_spill] sm:$0xff] }
 0x810   : > { %v7207_v3 = vpop.f32.mrb[55].mxu1  ;;  %8001 = vmatmul.mubr.f32.gmra.mrb[160].mxu1 %v7515_v1  ;;  %v7525_v1 = vsel %vm7375_vm10, %v7520_v33, %v7524_v45 }
 0x811   : > { %11248 = vmatprep.mubr.msk.f32.mxu1 %vm5647_vm9, %v7521_v41  ;;  %v21489_v3 = vld [vmem:[#allocation96_spill] sm:$0xff]  ;;  %v7523_v41 = vsel %vm7375_vm10, %v7518_v28, %v7522_v56  ;;  %v7527_v24 = vsel %vm7375_vm10, %v7522_v56, %v7526_v13 }
 0x812   : > { %v7528_v59 = vrot.slane %v21489_v3, 6  ;;  %v17904_v3 = vadd.f32 %v17750_v38, %v21493_v26 }
 0x813   : > { %v17885_v54 = vpop.f32.mrb[56].mxu1 }
 0x814   : > { %v7212_v10 = vpop.f32.mrb[57].mxu1  ;;  %8006 = vmatmul.mubr.f32.gmra.mrb[162].mxu1 %v7519_v7  ;;  %v21492_v7 = vld [vmem:[#allocation98_spill] sm:$0xff] }
 0x815   : > { %11249 = vmatprep.mubr.msk.f32.mxu1 %vm5647_vm9, %v7525_v1  ;;  %v7529_v10 = vsel %vm7375_vm10, %v7524_v45, %v7528_v59  ;;  %v7532_v33 = vrot.slane %v21492_v7, 6  ;;  %v21494_v1 = vld [vmem:[#allocation100_spill] sm:$0xff]  ;;  %v17915_v7 = vadd.f32 %v17764_v35, %v21496_v4 }
 0x816   : > { %v7530_v28 = vrot.slane %v21494_v1, 6  ;;  %v21499_v1 = vld [vmem:[#allocation142_spill] sm:$0xff] }
 0x817   : > { %v17896_v37 = vpop.f32.mrb[58].mxu1 }
 0x818   : > { %v7217_v60 = vpop.f32.mrb[59].mxu1  ;;  %8011 = vmatmul.mubr.f32.gmra.mrb[164].mxu1 %v7523_v41  ;;  %v21495_v41 = vld [vmem:[#allocation99_spill] sm:$0xff]  ;;  %v7531_v26 = vsel %vm7375_vm10, %v7526_v13, %v7530_v28 }
 0x819   : > { %11250 = vmatprep.mubr.msk.f32.mxu1 %vm5647_vm9, %v7529_v10  ;;  %v7533_v60 = vsel %vm7375_vm10, %v7528_v59, %v7532_v33  ;;  %v7536_v45 = vrot.slane %v21495_v41, 6  ;;  %v21497_v10 = vld [vmem:[#allocation102_spill] sm:$0xff]  ;;  %v17926_v41 = vadd.f32 %v17775_v58, %v21499_v1 }
 0x81a   : > { %v7534_v56 = vrot.slane %v21497_v10, 6  ;;  %v21502_v10 = vld [vmem:[#allocation143_spill] sm:$0xff] }
 0x81b   : > { %v17907_v25 = vpop.f32.mrb[60].mxu1 }
 0x81c   : > { %v7222_v46 = vpop.f32.mrb[61].mxu1  ;;  %8016 = vmatmul.mubr.f32.gmra.mrb[166].mxu1 %v7527_v24  ;;  %v21498_v24 = vld [vmem:[#allocation101_spill] sm:$0xff]  ;;  %v7535_v4 = vsel %vm7375_vm10, %v7530_v28, %v7534_v56 }
 0x81d   : > { %11251 = vmatprep.mubr.msk.f32.mxu1 %vm5647_vm9, %v7533_v60  ;;  %v7537_v46 = vsel %vm7375_vm10, %v7532_v33, %v7536_v45  ;;  %v7540_v59 = vrot.slane %v21498_v24, 6  ;;  %v21500_v60 = vld [vmem:[#allocation103_spill] sm:$0xff]  ;;  %v17937_v24 = vadd.f32 %v17786_v40, %v21502_v10 }
 0x81e   : > { %v7538_v13 = vrot.slane %v21500_v60, 6  ;;  %v21505_v60 = vld [vmem:[#allocation34_spill] sm:$0xff] }
 0x81f   : > { %v17918_v38 = vpop.f32.mrb[62].mxu1 }
 0x820   : > { %v7227_v34 = vpop.f32.mrb[63].mxu1  ;;  %8021 = vmatmul.mubr.f32.gmra.mrb[168].mxu1 %v7531_v26  ;;  %v21501_v26 = vld [vmem:[#allocation82_spill] sm:$0xff]  ;;  %v7539_v1 = vsel %vm7375_vm10, %v7534_v56, %v7538_v13 }
 0x821   : > { %11252 = vmatprep.mubr.msk.f32.mxu1 %vm5647_vm9, %v7537_v46  ;;  %v7541_v34 = vsel %vm7375_vm10, %v7536_v45, %v7540_v59  ;;  %v7544_v33 = vrot.slane %v21501_v26, 6  ;;  %v21503_v46 = vld [vmem:[#allocation81_spill] sm:$0xff]  ;;  %v17948_v26 = vadd.f32 %v17797_v11, %v21505_v60 }
 0x822   : > { %v7542_v28 = vrot.slane %v21503_v46, 6  ;;  %v21509_v46 = vld [vmem:[#allocation144_spill] sm:$0xff] }
 0x823   : > { %v17929_v35 = vpop.f32.mrb[64].mxu1  ;;  %21506 = vst [vmem:[#allocation169_spill] sm:$0xff] %v17948_v26 }
 0x824   : > { %v7232_v52 = vpop.f32.mrb[65].mxu1  ;;  %8026 = vmatmul.mubr.f32.gmra.mrb[170].mxu1 %v7535_v4  ;;  %v21504_v4 = vld [vmem:[#allocation104_spill] sm:$0xff]  ;;  %v7543_v10 = vsel %vm7375_vm10, %v7538_v13, %v7542_v28 }
 0x825   : > { %11253 = vmatprep.mubr.msk.f32.mxu1 %vm5647_vm9, %v7541_v34  ;;  %v7545_v52 = vsel %vm7375_vm10, %v7540_v59, %v7544_v33  ;;  %v7548_v45 = vrot.slane %v21504_v4, 6  ;;  %v21507_v34 = vld [vmem:[#allocation105_spill] sm:$0xff]  ;;  %v17959_v4 = vadd.f32 %v17808_v39, %v21509_v46 }
 0x826   : > { %v7546_v56 = vrot.slane %v21507_v34, 6  ;;  %v21513_v34 = vld [vmem:[#allocation145_spill] sm:$0xff] }
 0x827   : > { %v17940_v58 = vpop.f32.mrb[66].mxu1  ;;  %21510 = vst [vmem:[#allocation113_spill] sm:$0xff] %v17959_v4 }
 0x828   : > { %v7237_v21 = vpop.f32.mrb[67].mxu1  ;;  %8031 = vmatmul.mubr.f32.gmra.mrb[172].mxu1 %v7539_v1  ;;  %v21508_v1 = vld [vmem:[#allocation106_spill] sm:$0xff]  ;;  %v7547_v60 = vsel %vm7375_vm10, %v7542_v28, %v7546_v56 }
 0x829   : > { %11254 = vmatprep.mubr.msk.f32.mxu1 %vm5647_vm9, %v7545_v52  ;;  %v7549_v21 = vsel %vm7375_vm10, %v7544_v33, %v7548_v45  ;;  %v7552_v59 = vrot.slane %v21508_v1, 6  ;;  %v21511_v52 = vld [vmem:[#allocation86_spill] sm:$0xff]  ;;  %v17970_v1 = vadd.f32 %v17819_v47, %v21513_v34 }
 0x82a   : > { %v7550_v13 = vrot.slane %v21511_v52, 6  ;;  %v21517_v52 = vld [vmem:[#allocation146_spill] sm:$0xff] }
 0x82b   : > { %v17951_v40 = vpop.f32.mrb[68].mxu1  ;;  %21514 = vst [vmem:[#allocation170_spill] sm:$0xff] %v17970_v1 }
 0x82c   : > { %v7242_v27 = vpop.f32.mrb[69].mxu1  ;;  %8036 = vmatmul.mubr.f32.gmra.mrb[174].mxu1 %v7543_v10  ;;  %v21512_v10 = vld [vmem:[#allocation7_spill] sm:$0xff]  ;;  %v7551_v46 = vsel %vm7375_vm10, %v7546_v56, %v7550_v13 }
 0x82d   : > { %11255 = vmatprep.mubr.msk.f32.mxu1 %vm5647_vm9, %v7549_v21  ;;  %v7553_v27 = vsel %vm7375_vm10, %v7548_v45, %v7552_v59  ;;  %v7556_v33 = vrot.slane %v21512_v10, 6  ;;  %v21515_v21 = vld [vmem:[#allocation88_spill] sm:$0xff]  ;;  %v17981_v10 = vadd.f32 %v17830_v14, %v21517_v52 }
 0x82e   : > { %v7554_v28 = vrot.slane %v21515_v21, 6  ;;  %v21521_v21 = vld [vmem:[#allocation147_spill] sm:$0xff] }
 0x82f   : > { %v17962_v11 = vpop.f32.mrb[70].mxu1  ;;  %21518 = vst [vmem:[#allocation118_spill] sm:$0xff] %v17981_v10 }
 0x830   : > { %v7247_v61 = vpop.f32.mrb[71].mxu1  ;;  %8041 = vmatmul.mubr.f32.gmra.mrb[176].mxu1 %v7547_v60  ;;  %v21516_v60 = vld [vmem:[#allocation11_spill] sm:$0xff]  ;;  %v7555_v34 = vsel %vm7375_vm10, %v7550_v13, %v7554_v28  ;;  %v21524_v13 = vld [vmem:[#allocation161_spill] sm:$0xff] }
 0x831   : > { %11256 = vmatprep.mubr.msk.f32.mxu1 %vm5647_vm9, %v7553_v27  ;;  %v7557_v61 = vsel %vm7375_vm10, %v7552_v59, %v7556_v33  ;;  %v7560_v45 = vrot.slane %v21516_v60, 6  ;;  %v21519_v27 = vld [vmem:[#allocation12_spill] sm:$0xff]  ;;  %v17992_v60 = vadd.f32 %v17841_v31, %v21521_v21 }
 0x832   : > { %v7558_v56 = vrot.slane %v21519_v27, 6  ;;  %v21527_v27 = vld [vmem:[#allocation148_spill] sm:$0xff] }
 0x833   : > { %v17973_v39 = vpop.f32.mrb[72].mxu1  ;;  %21522 = vst [vmem:[#allocation119_spill] sm:$0xff] %v17992_v60  ;;  %v18004_v31 = vadd.f32 %v17852_v0, %v21527_v27  ;;  %v21529_v60 = vld [vmem:[#allocation48_spill] sm:$0xff] }
 0x834   : > { %v7252_v4 = vpop.f32.mrb[73].mxu1  ;;  %8046 = vmatmul.mubr.f32.gmra.mrb[178].mxu1 %v7551_v46  ;;  %v21520_v46 = vld [vmem:[#allocation14_spill] sm:$0xff]  ;;  %v7559_v52 = vsel %vm7375_vm10, %v7554_v28, %v7558_v56 }
 0x835   : > { %11257 = vmatprep.mubr.msk.f32.mxu1 %vm5647_vm9, %v7557_v61  ;;  %v7561_v4 = vsel %vm7375_vm10, %v7556_v33, %v7560_v45  ;;  %v7564_v59 = vrot.slane %v21520_v46, 6  ;;  %v21523_v61 = vld [vmem:[#allocation16_spill] sm:$0xff] }
 0x836   : > { %v7562_v10 = vrot.slane %v21523_v61, 6 }
 0x837   : > { %v17984_v47 = vpop.f32.mrb[74].mxu1  ;;  %v7565_v33 = vsel %vm7375_vm10, %v7560_v45, %v7564_v59 }
 0x838   : > { %v7257_v1 = vpop.f32.mrb[75].mxu1  ;;  %8051 = vmatmul.mubr.f32.gmra.mrb[180].mxu1 %v7555_v34  ;;  %v21526_v34 = vld [vmem:[#allocation18_spill] sm:$0xff]  ;;  %v7563_v28 = vsel %vm7375_vm10, %v7558_v56, %v7562_v10 }
 0x839   : > { %11258 = vmatprep.mubr.msk.f32.mxu1 %vm5647_vm9, %v7561_v4  ;;  %v7568_v46 = vrot.slane %v21526_v34, 6  ;;  %v21528_v4 = vld [vmem:[#allocation20_spill] sm:$0xff]  ;;  %v21532_v34 = vld [vmem:[#allocation149_spill] sm:$0xff] }
 0x83a   : > { %v7566_v61 = vrot.slane %v21528_v4, 6  ;;  %v18016_v0 = vadd.f32 %v17863_v51, %v21532_v34 }
 0x83b   : > { %v7260_v14 = vpop.f32.mrb[76].mxu1  ;;  %v7569_v45 = vsel %vm7375_vm10, %v7564_v59, %v7568_v46 }
 0x83c   : > { %v17998_v26 = vadd.f32 %v7260_v14, %v21524_v13  ;;  %v7262_v1 = vpop.f32.mrb[77].mxu1  ;;  %8056 = vmatmul.mubr.f32.gmra.mrb[182].mxu1 %v7559_v52  ;;  %v21531_v52 = vld [vmem:[#allocation107_spill] sm:$0xff]  ;;  %v7567_v56 = vsel %vm7375_vm10, %v7562_v10, %v7566_v61 }
 0x83d   : > { %11259 = vmatprep.mubr.msk.f32.mxu1 %vm5647_vm9, %v7565_v33  ;;  %v7572_v1 = vrot.slane %v21531_v52, 6  ;;  %v21533_v33 = vld [vmem:[#allocation23_spill] sm:$0xff]  ;;  %v21537_v52 = vld [vmem:[#allocation150_spill] sm:$0xff] }
 0x83e   : > { %21525 = vst [vmem:[#allocation120_spill] sm:$0xff] %v17998_v26  ;;  %v7570_v4 = vrot.slane %v21533_v33, 6  ;;  %v21534_v26 = vld [vmem:[#allocation52_spill] sm:$0xff]  ;;  %v18028_v51 = vadd.f32 %v17874_v32, %v21537_v52 }
 0x83f   : > { %v7265_v21 = vpop.f32.mrb[78].mxu1  ;;  %v7573_v59 = vsel %vm7375_vm10, %v7568_v46, %v7572_v1 }
 0x840   : > { %v18010_v14 = vadd.f32 %v7265_v21, %v21529_v60  ;;  %v7267_v13 = vpop.f32.mrb[79].mxu1  ;;  %8061 = vmatmul.mubr.f32.gmra.mrb[184].mxu1 %v7563_v28  ;;  %v21536_v28 = vld [vmem:[#allocation108_spill] sm:$0xff]  ;;  %v7571_v10 = vsel %vm7375_vm10, %v7566_v61, %v7570_v4 }
 0x841   : > { %11260 = vmatprep.mubr.msk.f32.mxu1 %vm5647_vm9, %v7569_v45  ;;  %v7576_v13 = vrot.slane %v21536_v28, 6  ;;  %v21538_v45 = vld [vmem:[#allocation26_spill] sm:$0xff]  ;;  %v21542_v28 = vld [vmem:[#allocation151_spill] sm:$0xff] }
 0x842   : > { %21530 = vst [vmem:[#allocation121_spill] sm:$0xff] %v18010_v14  ;;  %v7574_v33 = vrot.slane %v21538_v45, 6  ;;  %v21539_v14 = vld [vmem:[#allocation162_spill] sm:$0xff]  ;;  %v18040_v32 = vadd.f32 %v17885_v54, %v21542_v28  ;;  %v4943_v28 = vpop.permute.xlu1 %4942 }
 0x843   : > { %v7270_v27 = vpop.f32.mrb[80].mxu1  ;;  %v7577_v46 = vsel %vm7375_vm10, %v7572_v1, %v7576_v13 }
 0x844   : > { %v18022_v60 = vadd.f32 %v7270_v27, %v21534_v26  ;;  %v7272_v21 = vpop.f32.mrb[81].mxu1  ;;  %8066 = vmatmul.mubr.f32.gmra.mrb[186].mxu1 %v7567_v56  ;;  %v21541_v56 = vld [vmem:[#allocation109_spill] sm:$0xff]  ;;  %v7575_v61 = vsel %vm7375_vm10, %v7570_v4, %v7574_v33 }
 0x845   : > { %11261 = vmatprep.mubr.msk.f32.mxu1 %vm5647_vm9, %v7573_v59  ;;  %v7580_v21 = vrot.slane %v21541_v56, 6  ;;  %v21543_v59 = vld [vmem:[#allocation110_spill] sm:$0xff]  ;;  %v21546_v56 = vld [vmem:[#allocation152_spill] sm:$0xff] }
 0x846   : > { %21535 = vst [vmem:[#allocation122_spill] sm:$0xff] %v18022_v60  ;;  %v7578_v45 = vrot.slane %v21543_v59, 6  ;;  %v18052_v54 = vadd.f32 %v17896_v37, %v21546_v56  ;;  %v21547_v59 = vld [vmem:[#allocation112_spill] sm:$0xff]  ;;  %v21550_v37 = vld [vmem:[#allocation153_spill] sm:$0xff] }
 0x847   : > { %v7275_v34 = vpop.f32.mrb[82].mxu1  ;;  %v7581_v1 = vsel %vm7375_vm10, %v7576_v13, %v7580_v21  ;;  %v18064_v56 = vadd.f32 %v17907_v25, %v21550_v37  ;;  %v21554_v37 = vld [vmem:[#allocation116_spill] sm:$0xff] }
 0x848   : > { %v18034_v26 = vadd.f32 %v7275_v34, %v21539_v14  ;;  %v7277_v27 = vpop.f32.mrb[83].mxu1  ;;  %8071 = vmatmul.mubr.f32.gmra.mrb[188].mxu1 %v7571_v10  ;;  %v21545_v10 = vld [vmem:[#allocation111_spill] sm:$0xff]  ;;  %v7579_v4 = vsel %vm7375_vm10, %v7574_v33, %v7578_v45 }
 0x849   : > { %11262 = vmatprep.mubr.msk.f32.mxu1 %vm5647_vm9, %v7577_v46  ;;  %v7584_v27 = vrot.slane %v21545_v10, 6  ;;  %v21549_v10 = vld [vmem:[#allocation114_spill] sm:$0xff] }
 0x84a   : > { %21540 = vst [vmem:[#allocation123_spill] sm:$0xff] %v18034_v26  ;;  %v7582_v26 = vrot.slane %v21547_v59, 6 }
 0x84b   : > { %v7280_v52 = vpop.f32.mrb[84].mxu1  ;;  %v7585_v13 = vsel %vm7375_vm10, %v7580_v21, %v7584_v27 }
 0x84c   : > { %v18046_v14 = vadd.f32 %v7280_v52, %v17526_v6  ;;  %v7282_v34 = vpop.f32.mrb[85].mxu1  ;;  %8076 = vmatmul.mubr.f32.gmra.mrb[190].mxu1 %v7575_v61  ;;  %v4945_v6 = vpop.permute.xlu0 %4944  ;;  %v21548_v52 = vld [vmem:[#allocation163_spill] sm:$0xff] }
 0x84d   : > { %11263 = vmatprep.mubr.msk.f32.mxu1 %vm5647_vm9, %v7581_v1  ;;  %v5002_v33 = vsel %vm4946_vm8, %v4943_v28, %v4945_v6  ;;  %v21551_v1 = vld [vmem:[#allocation39_spill] sm:$0xff] }
 0x84e   : > { %21544 = vst [vmem:[#allocation124_spill] sm:$0xff] %v18046_v14  ;;  %v7588_v14 = vrot.slane %v21549_v10, 6  ;;  %v18069_v59 = vmax.f32 %v21551_v1, %v4945_v6  ;;  %v7592_v10 = vrot.slane %v21554_v37, 6  ;;  %v21556_v6 = vld [vmem:[#allocation36_spill] sm:$0xff] }
 0x84f   : > { %v7285_v46 = vpop.f32.mrb[86].mxu1  ;;  %v18084_v1 = vmax.f32 %v21556_v6, %v5002_v33 }
 0x850   : > { %v18058_v34 = vadd.f32 %v7285_v46, %v21548_v52  ;;  %v7287_v61 = vpop.f32.mrb[87].mxu1  ;;  %8081 = vmatmul.mubr.f32.gmra.mrb[192].mxu1 %v7579_v4  ;;  %21552 = vst [vmem:[#allocation125_spill] sm:$0xff] %v18069_v59  ;;  %v7583_v46 = vsel %vm7375_vm10, %v7578_v45, %v7582_v26  ;;  %v21553_v52 = vld [vmem:[#allocation115_spill] sm:$0xff]  ;;  %v7589_v25 = vsel %vm7375_vm10, %v7584_v27, %v7588_v14 }
 0x851   : > { %11264 = vmatprep.mubr.msk.f32.mxu1 %vm5647_vm9, %v7585_v13  ;;  %v7586_v4 = vrot.slane %v21553_v52, 6  ;;  %v21555_v13 = vld [vmem:[#allocation154_spill] sm:$0xff]  ;;  %v7594_v33 = vrot.slane %v18084_v1, 6 }
 0x852   : > { %v18080_v28 = vadd.f32 %v17918_v38, %v21555_v13  ;;  %v7593_v38 = vsel %vm7375_vm10, %v7588_v14, %v7592_v10  ;;  %v21559_v13 = vld [vmem:[#allocation155_spill] sm:$0xff] }
 0x853   : > { %v7290_v60 = vpop.f32.mrb[88].mxu1  ;;  %v7587_v52 = vsel %vm7375_vm10, %v7582_v26, %v7586_v4 }
 0x854   : > { %v18074_v21 = vadd.f32 %v7290_v60, %v17549_v12  ;;  %v7292_v61 = vpop.f32.mrb[89].mxu1  ;;  %8086 = vmatmul.mubr.f32.gmra.mrb[194].mxu1 %v7583_v46  ;;  %v21557_v12 = vld [vmem:[#allocation117_spill] sm:$0xff]  ;;  %v7596_v46 = vrot.slane %v18069_v59, 6 }
 0x855   : > { %11265 = vmatprep.mubr.msk.f32.mxu1 %vm5647_vm9, %v7589_v25  ;;  %v7590_v60 = vrot.slane %v21557_v12, 6  ;;  %v21558_v61 = vld [vmem:[#allocation164_spill] sm:$0xff]  ;;  %v18095_v25 = vadd.f32 %v17929_v35, %v21559_v13  ;;  %v21560_v12 = vld [vmem:[#allocation165_spill] sm:$0xff] }
 0x857   : > { %v7295_v45 = vpop.f32.mrb[90].mxu1  ;;  %v7591_v6 = vsel %vm7375_vm10, %v7586_v4, %v7590_v60 }
 0x858   : > { %v18090_v27 = vadd.f32 %v7295_v45, %v21558_v61  ;;  %v7297_v37 = vpop.f32.mrb[91].mxu1  ;;  %8091 = vmatmul.mubr.f32.gmra.mrb[196].mxu1 %v7587_v52  ;;  %v7597_v52 = vsel %vm7375_vm10, %v7592_v10, %v7596_v46  ;;  %v7595_v61 = vsel %vm7375_vm10, %v7590_v60, %v7594_v33  ;;  %v21566_v60 = vld [vmem:[#allocation158_spill] sm:$0xff] }
 0x859   : > { %11266 = vmatprep.mubr.msk.f32.mxu1 %vm5647_vm9, %v7593_v38  ;;  %v21561_v37 = vld [vmem:[#allocation156_spill] sm:$0xff]  ;;  %v21567_v33 = vld [vmem:[#allocation54_spill] sm:$0xff] }
 0x85a   : > { %v18106_v14 = vadd.f32 %v17940_v58, %v21561_v37  ;;  %v21564_v58 = vld [vmem:[#allocation166_spill] sm:$0xff] }
 0x85b   : > { %v7832_v26 = vpop.f32.mrb[92].mxu1 }
 0x85c   : > { %v18101_v59 = vadd.f32 %v7832_v26, %v21560_v12  ;;  %v7834_v45 = vpop.f32.mrb[93].mxu1  ;;  %8096 = vmatmul.mubr.f32.gmra.mrb[198].mxu1 %v7591_v6  ;;  %v21562_v12 = vld [vmem:[#allocation157_spill] sm:$0xff]  ;;  %v21563_v26 = vld [vmem:[#allocation51_spill] sm:$0xff] }
 0x85d   : > { %11267 = vmatprep.mubr.msk.f32.mxu1 %vm5647_vm9, %v7597_v52  ;;  %v18115_v13 = vadd.f32 %v17951_v40, %v21562_v12  ;;  %v21565_v45 = vld [vmem:[#allocation53_spill] sm:$0xff] }
 0x85e   : > { %v21570_v12 = vld [vmem:[#allocation57_spill] sm:$0xff] }
 0x85f   : > { %v7837_v35 = vpop.f32.mrb[94].mxu1 }
 0x860   : > { %v18111_v38 = vadd.f32 %v7837_v35, %v17582_v50  ;;  %v7839_v4 = vpop.f32.mrb[95].mxu1  ;;  %8101 = vmatmul.mubr.f32.gmra.mrb[200].mxu1 %v7595_v61  ;;  %v18125_v50 = vadd.f32 %v17962_v11, %v21566_v60  ;;  %v21568_v35 = vld [vmem:[#allocation55_spill] sm:$0xff] }
 0x861   : > { %11287 = vmatprep.mubr.msk.f32.mxu1 %vm5647_vm9, %v21563_v26  ;;  %v21569_v61 = vld [vmem:[#allocation159_spill] sm:$0xff] }
 0x862   : > { %v18135_v4 = vadd.f32 %v17973_v39, %v21569_v61 }
 0x863   : > { %v7842_v10 = vpop.f32.mrb[96].mxu1 }
 0x864   : > { %v18120_v46 = vadd.f32 %v7842_v10, %v21564_v58  ;;  %v7844_v6 = vpop.f32.mrb[97].mxu1  ;;  %8250 = vmatmul.mubr.f32.vlgmr.msra.gmra.mrb[202].mxu1 %v21565_v45  ;;  %v21571_v58 = vld [vmem:[#allocation58_spill] sm:$0xff]  ;;  %v21573_v45 = vld [vmem:[#allocation59_spill] sm:$0xff] }
 0x865   : > { %11288 = vmatprep.mubr.msk.f32.mxu1 %vm5647_vm9, %v21567_v33  ;;  %v21572_v6 = vld [vmem:[#allocation160_spill] sm:$0xff] }
 0x867   : > { %v7847_v52 = vpop.f32.mrb[98].mxu1 }
 0x868   : > { %v18130_v40 = vadd.f32 %v7847_v52, %v17610_v63  ;;  %v7849_v37 = vpop.f32.mrb[99].mxu1  ;;  %8255 = vmatmul.mubr.f32.gmra.mrb[204].mxu1 %v21568_v35  ;;  %v18145_v63 = vadd.f32 %v17984_v47, %v21572_v6  ;;  %v21574_v52 = vld [vmem:[#allocation60_spill] sm:$0xff]  ;;  %v21576_v47 = vld [vmem:[#allocation62_spill] sm:$0xff] }
 0x869   : > { %11289 = vmatprep.mubr.msk.f32.mxu1 %vm5647_vm9, %v21570_v12  ;;  %v21575_v37 = vld [vmem:[#allocation61_spill] sm:$0xff]  ;;  %v21577_v12 = vld [vmem:[#allocation63_spill] sm:$0xff]  ;;  %v21579_v6 = vld [vmem:[#allocation64_spill] sm:$0xff] }
 0x86b   : > { %v7852_v26 = vpop.f32.mrb[100].mxu1 }
 0x86c   : > { %v18140_v11 = vadd.f32 %v7852_v26, %v17622_v2  ;;  %v7854_v10 = vpop.f32.mrb[101].mxu1  ;;  %8260 = vmatmul.mubr.f32.gmra.mrb[206].mxu1 %v21571_v58 }
 0x86d   : > { %11290 = vmatprep.mubr.msk.f32.mxu1 %vm5647_vm9, %v21573_v45  ;;  %v21578_v10 = vld [vmem:[#allocation167_spill] sm:$0xff]  ;;  %v21580_v45 = vld [vmem:[#allocation65_spill] sm:$0xff] }
 0x86f   : > { %v7857_v60 = vpop.f32.mrb[102].mxu1 }
 0x870   : > { %v18150_v39 = vadd.f32 %v7857_v60, %v17633_v30  ;;  %v7859_v33 = vpop.f32.mrb[103].mxu1  ;;  %8265 = vmatmul.mubr.f32.gmra.mrb[208].mxu1 %v21574_v52  ;;  %v21581_v52 = vld [vmem:[#allocation66_spill] sm:$0xff] }
 0x871   : > { %11291 = vmatprep.mubr.msk.f32.mxu1 %vm5647_vm9, %v21575_v37  ;;  %v21582_v37 = vld [vmem:[#allocation68_spill] sm:$0xff] }
 0x873   : > { %v7862_v2 = vpop.f32.mrb[104].mxu1 }
 0x874   : > { %v18156_v35 = vadd.f32 %v7862_v2, %v17650_v55  ;;  %v7864_v61 = vpop.f32.mrb[105].mxu1  ;;  %8270 = vmatmul.mubr.f32.gmra.mrb[210].mxu1 %v21576_v47 }
 0x875   : > { %11292 = vmatprep.mubr.msk.f32.mxu1 %vm5647_vm9, %v21577_v12  ;;  %v21583_v12 = vld [vmem:[#allocation69_spill] sm:$0xff] }
 0x877   : > { %v7867_v26 = vpop.f32.mrb[106].mxu1 }
 0x878   : > { %v18162_v30 = vadd.f32 %v7867_v26, %v21578_v10  ;;  %v7869_v58 = vpop.f32.mrb[107].mxu1  ;;  %8275 = vmatmul.mubr.f32.gmra.mrb[212].mxu1 %v21579_v6  ;;  %v21584_v26 = vld [vmem:[#allocation70_spill] sm:$0xff] }
 0x879   : > { %11293 = vmatprep.mubr.msk.f32.mxu1 %vm5647_vm9, %v21580_v45  ;;  %v21585_v58 = vld [vmem:[#allocation168_spill] sm:$0xff] }
 0x87a   : > { %v21586_v45 = vld [vmem:[#allocation72_spill] sm:$0xff] }
 0x87b   : > { %v7872_v60 = vpop.f32.mrb[108].mxu1 }
 0x87c   : > { %v18168_v55 = vadd.f32 %v7872_v60, %v17686_v53  ;;  %v7874_v33 = vpop.f32.mrb[109].mxu1  ;;  %8280 = vmatmul.mubr.f32.gmra.mrb[214].mxu1 %v21581_v52  ;;  %v21587_v60 = vld [vmem:[#allocation74_spill] sm:$0xff] }
 0x87d   : > { %11294 = vmatprep.mubr.msk.f32.mxu1 %vm5647_vm9, %v21582_v37  ;;  %v21588_v37 = vld [vmem:[#allocation73_spill] sm:$0xff] }
 0x87f   : > { %v7877_v2 = vpop.f32.mrb[110].mxu1 }
 0x880   : > { %v18174_v61 = vadd.f32 %v7877_v2, %v17704_v18  ;;  %v7879_v47 = vpop.f32.mrb[111].mxu1  ;;  %8285 = vmatmul.mubr.f32.gmra.mrb[216].mxu1 %v21583_v12  ;;  %v21589_v2 = vld [vmem:[#allocation75_spill] sm:$0xff] }
 0x881   : > { %11295 = vmatprep.mubr.msk.f32.mxu1 %vm5647_vm9, %v21584_v26 }
 0x883   : > { %v7882_v10 = vpop.f32.mrb[112].mxu1 }
 0x884   : > { %v18180_v53 = vadd.f32 %v7882_v10, %v21585_v58  ;;  %v7884_v6 = vpop.f32.mrb[113].mxu1  ;;  %8290 = vmatmul.mubr.f32.gmra.mrb[218].mxu1 %v21586_v45  ;;  %v21590_v10 = vld [vmem:[#allocation76_spill] sm:$0xff]  ;;  %v21591_v58 = vld [vmem:[#allocation77_spill] sm:$0xff] }
 0x885   : > { %11296 = vmatprep.mubr.msk.f32.mxu1 %vm5647_vm9, %v21587_v60  ;;  %v21592_v60 = vld [vmem:[#allocation78_spill] sm:$0xff] }
 0x887   : > { %v7887_v33 = vpop.f32.mrb[114].mxu1 }
 0x888   : > { %v18186_v18 = vadd.f32 %v7887_v33, %v17746_v36  ;;  %v7889_v52 = vpop.f32.mrb[115].mxu1  ;;  %8295 = vmatmul.mubr.f32.gmra.mrb[220].mxu1 %v21588_v37  ;;  %v21593_v33 = vld [vmem:[#allocation80_spill] sm:$0xff] }
 0x889   : > { %11297 = vmatprep.mubr.msk.f32.mxu1 %vm5647_vm9, %v21589_v2  ;;  %v21594_v2 = vld [vmem:[#allocation79_spill] sm:$0xff] }
 0x88b   : > { %v7892_v47 = vpop.f32.mrb[116].mxu1 }
 0x88c   : > { %v18192_v12 = vadd.f32 %v7892_v47, %v17758_v44  ;;  %v7894_v26 = vpop.f32.mrb[117].mxu1  ;;  %8300 = vmatmul.mubr.f32.gmra.mrb[222].mxu1 %v21590_v10  ;;  %v21595_v47 = vld [vmem:[#allocation83_spill] sm:$0xff] }
 0x88d   : > { %11298 = vmatprep.mubr.msk.f32.mxu1 %vm5647_vm9, %v21591_v58  ;;  %v21596_v58 = vld [vmem:[#allocation84_spill] sm:$0xff] }
 0x88f   : > { %v7897_v6 = vpop.f32.mrb[118].mxu1 }
 0x890   : > { %v18198_v36 = vadd.f32 %v7897_v6, %v17772_v5  ;;  %v7899_v45 = vpop.f32.mrb[119].mxu1  ;;  %8305 = vmatmul.mubr.f32.gmra.mrb[224].mxu1 %v21592_v60  ;;  %v21597_v6 = vld [vmem:[#allocation85_spill] sm:$0xff] }
 0x891   : > { %11299 = vmatprep.mubr.msk.f32.mxu1 %vm5647_vm9, %v21593_v33  ;;  %v21598_v33 = vld [vmem:[#allocation87_spill] sm:$0xff] }
 0x893   : > { %v7902_v52 = vpop.f32.mrb[120].mxu1 }
 0x894   : > { %v18204_v44 = vadd.f32 %v7902_v52, %v17783_v42  ;;  %v7904_v37 = vpop.f32.mrb[121].mxu1  ;;  %8310 = vmatmul.mubr.f32.gmra.mrb[226].mxu1 %v21594_v2  ;;  %v21599_v52 = vld [vmem:[#allocation8_spill] sm:$0xff] }
 0x895   : > { %11300 = vmatprep.mubr.msk.f32.mxu1 %vm5647_vm9, %v21595_v47  ;;  %v21600_v47 = vld [vmem:[#allocation6_spill] sm:$0xff] }
 0x897   : > { %v7907_v26 = vpop.f32.mrb[122].mxu1 }
 0x898   : > { %v18210_v5 = vadd.f32 %v7907_v26, %v17794_v22  ;;  %v7909_v10 = vpop.f32.mrb[123].mxu1  ;;  %8315 = vmatmul.mubr.f32.gmra.mrb[228].mxu1 %v21596_v58  ;;  %v21601_v26 = vld [vmem:[#allocation9_spill] sm:$0xff] }
 0x899   : > { %11301 = vmatprep.mubr.msk.f32.mxu1 %vm5647_vm9, %v21597_v6  ;;  %v21602_v6 = vld [vmem:[#allocation10_spill] sm:$0xff] }
 0x89b   : > { %v7912_v45 = vpop.f32.mrb[124].mxu1 }
 0x89c   : > { %v18216_v42 = vadd.f32 %v7912_v45, %v17805_v16  ;;  %v7914_v60 = vpop.f32.mrb[125].mxu1  ;;  %8320 = vmatmul.mubr.f32.gmra.mrb[230].mxu1 %v21598_v33  ;;  %v21603_v45 = vld [vmem:[#allocation13_spill] sm:$0xff] }
 0x89d   : > { %11302 = vmatprep.mubr.msk.f32.mxu1 %vm5647_vm9, %v21599_v52  ;;  %v21604_v52 = vld [vmem:[#allocation15_spill] sm:$0xff] }
 0x89f   : > { %v7917_v37 = vpop.f32.mrb[126].mxu1 }
 0x8a0   : > { %v18222_v22 = vadd.f32 %v7917_v37, %v17816_v20  ;;  %v7919_v2 = vpop.f32.mrb[127].mxu1  ;;  %8325 = vmatmul.mubr.f32.gmra.mrb[232].mxu1 %v21600_v47  ;;  %v21605_v37 = vld [vmem:[#allocation17_spill] sm:$0xff] }
 0x8a1   : > { %11303 = vmatprep.mubr.msk.f32.mxu1 %vm5647_vm9, %v21601_v26  ;;  %v21606_v26 = vld [vmem:[#allocation19_spill] sm:$0xff] }
 0x8a3   : > { %v7922_v10 = vpop.f32.mrb[128].mxu1 }
 0x8a4   : > { %v18228_v16 = vadd.f32 %v7922_v10, %v17827_v8  ;;  %v7924_v58 = vpop.f32.mrb[129].mxu1  ;;  %8330 = vmatmul.mubr.f32.gmra.mrb[234].mxu1 %v21602_v6  ;;  %v21607_v10 = vld [vmem:[#allocation21_spill] sm:$0xff] }
 0x8a5   : > { %11304 = vmatprep.mubr.msk.f32.mxu1 %vm5647_vm9, %v21603_v45  ;;  %v21608_v45 = vld [vmem:[#allocation24_spill] sm:$0xff] }
 0x8a7   : > { %v7927_v60 = vpop.f32.mrb[130].mxu1 }
 0x8a8   : > { %v18234_v20 = vadd.f32 %v7927_v60, %v17838_v62  ;;  %v7929_v33 = vpop.f32.mrb[131].mxu1  ;;  %8335 = vmatmul.mubr.f32.gmra.mrb[236].mxu1 %v21604_v52  ;;  %v21609_v60 = vld [vmem:[#allocation22_spill] sm:$0xff] }
 0x8a9   : > { %11305 = vmatprep.mubr.msk.f32.mxu1 %vm5647_vm9, %v21605_v37  ;;  %v21610_v37 = vld [vmem:[#allocation27_spill] sm:$0xff] }
 0x8ab   : > { %v7932_v2 = vpop.f32.mrb[132].mxu1 }
 0x8ac   : > { %v18240_v8 = vadd.f32 %v7932_v2, %v17849_v29  ;;  %v7934_v47 = vpop.f32.mrb[133].mxu1  ;;  %8340 = vmatmul.mubr.f32.gmra.mrb[238].mxu1 %v21606_v26  ;;  %v21611_v2 = vld [vmem:[#allocation28_spill] sm:$0xff] }
 0x8ad   : > { %11306 = vmatprep.mubr.msk.f32.mxu1 %vm5647_vm9, %v21607_v10  ;;  %v21612_v10 = vld [vmem:[#allocation25_spill] sm:$0xff] }
 0x8af   : > { %v7937_v58 = vpop.f32.mrb[134].mxu1 }
 0x8b0   : > { %v18246_v62 = vadd.f32 %v7937_v58, %v17860_v57  ;;  %v7939_v6 = vpop.f32.mrb[135].mxu1  ;;  %8345 = vmatmul.mubr.f32.gmra.mrb[240].mxu1 %v21608_v45  ;;  %v21613_v58 = vld [vmem:[#allocation30_spill] sm:$0xff] }
 0x8b1   : > { %11307 = vmatprep.mubr.msk.f32.mxu1 %vm5647_vm9, %v21609_v60  ;;  %v21614_v60 = vld [vmem:[#allocation31_spill] sm:$0xff] }
 0x8b3   : > { %v7942_v33 = vpop.f32.mrb[136].mxu1 }
 0x8b4   : > { %v18252_v29 = vadd.f32 %v7942_v33, %v17871_v48  ;;  %v7944_v52 = vpop.f32.mrb[137].mxu1  ;;  %8350 = vmatmul.mubr.f32.gmra.mrb[242].mxu1 %v21610_v37  ;;  %v21615_v33 = vld [vmem:[#allocation32_spill] sm:$0xff] }
 0x8b5   : > { %11308 = vmatprep.mubr.msk.f32.mxu1 %vm5647_vm9, %v21611_v2  ;;  %v21616_v2 = vld [vmem:[#allocation29_spill] sm:$0xff] }
 0x8b7   : > { %v7947_v47 = vpop.f32.mrb[138].mxu1 }
 0x8b8   : > { %v18258_v57 = vadd.f32 %v7947_v47, %v17882_v23  ;;  %v7949_v26 = vpop.f32.mrb[139].mxu1  ;;  %8355 = vmatmul.mubr.f32.gmra.mrb[244].mxu1 %v21612_v10  ;;  %v21617_v47 = vld [vmem:[#allocation35_spill] sm:$0xff] }
 0x8b9   : > { %11309 = vmatprep.mubr.msk.f32.mxu1 %vm5647_vm9, %v21613_v58 }
 0x8bb   : > { %v7952_v6 = vpop.f32.mrb[140].mxu1 }
 0x8bc   : > { %v18264_v48 = vadd.f32 %v7952_v6, %v17893_v17  ;;  %v7954_v45 = vpop.f32.mrb[141].mxu1  ;;  %8360 = vmatmul.mubr.f32.gmra.mrb[246].mxu1 %v21614_v60 }
 0x8bd   : > { %11310 = vmatprep.mubr.msk.f32.mxu1 %vm5647_vm9, %v21615_v33  ;;  %v21619_v33 = vld [vmem:[#allocation169_spill] sm:$0xff] }
 0x8bf   : > { %v7957_v52 = vpop.f32.mrb[142].mxu1 }
 0x8c0   : > { %v18270_v23 = vadd.f32 %v7957_v52, %v17904_v3  ;;  %v7959_v37 = vpop.f32.mrb[143].mxu1  ;;  %8365 = vmatmul.mubr.f32.gmra.mrb[248].mxu1 %v21616_v2  ;;  %v21622_v2 = vld [vmem:[#allocation113_spill] sm:$0xff] }
 0x8c1   : > { %11311 = vmatprep.mubr.msk.f32.mxu1 %vm5647_vm9, %v21617_v47  ;;  %v21620_v37 = vld [vmem:[#allocation40_spill] sm:$0xff] }
 0x8c3   : > { %v7962_v26 = vpop.f32.mrb[144].mxu1 }
 0x8c4   : > { %v18276_v17 = vadd.f32 %v7962_v26, %v17915_v7  ;;  %v7964_v10 = vpop.f32.mrb[145].mxu1  ;;  %8370 = vmatmul.mubr.f32.gmra.mrb[250].mxu1 %v21334_v15  ;;  %v21618_v15 = vld [vmem:[#allocation41_spill] sm:$0xff]  ;;  %v21623_v26 = vld [vmem:[#allocation42_spill] sm:$0xff] }
 0x8c5   : > { %11312 = vmatprep.mubr.msk.f32.mxu1 %vm5647_vm9, %v21202_v9 }
 0x8c7   : > { %v7967_v58 = vpop.f32.mrb[146].mxu1 }
 0x8c8   : > { %v18282_v3 = vadd.f32 %v7967_v58, %v17926_v41  ;;  %v7969_v6 = vpop.f32.mrb[147].mxu1  ;;  %8375 = vmatmul.mubr.f32.gmra.mrb[252].mxu1 %v21475_v49  ;;  %v21621_v49 = vld [vmem:[#allocation43_spill] sm:$0xff]  ;;  %v21625_v58 = vld [vmem:[#allocation170_spill] sm:$0xff] }
 0x8c9   : > { %11313 = vmatprep.mubr.msk.f32.mxu1 %vm5647_vm9, %v16180_v43 }
 0x8cb   : > { %v7972_v45 = vpop.f32.mrb[148].mxu1 }
 0x8cc   : > { %v18288_v7 = vadd.f32 %v7972_v45, %v17937_v24  ;;  %v7974_v60 = vpop.f32.mrb[149].mxu1  ;;  %8380 = vmatmul.mubr.f32.gmra.mrb[254].mxu1 %v21477_v19  ;;  %v21624_v19 = vld [vmem:[#allocation45_spill] sm:$0xff] }
 0x8cd   : > { %11314 = vmatprep.mubr.msk.f32.mxu1 %vm5647_vm9, %v21618_v15  ;;  %v21626_v60 = vld [vmem:[#allocation44_spill] sm:$0xff]  ;;  %v21627_v15 = vld [vmem:[#allocation47_spill] sm:$0xff] }
 0x8cf   : > { %v7977_v9 = vpop.f32.mrb[150].mxu1 }
 0x8d0   : > { %v18294_v41 = vadd.f32 %v7977_v9, %v21619_v33  ;;  %v7979_v52 = vpop.f32.mrb[151].mxu1  ;;  %8385 = vmatmul.mubr.f32.gmra.mrb[0].mxu1 %v21620_v37  ;;  %v21628_v33 = vld [vmem:[#allocation118_spill] sm:$0xff] }
 0x8d1   : > { %11315 = vmatprep.mubr.msk.f32.mxu1 %vm5647_vm9, %v21621_v49  ;;  %v21629_v49 = vld [vmem:[#allocation46_spill] sm:$0xff] }
 0x8d3   : > { %v7982_v43 = vpop.f32.mrb[152].mxu1 }
 0x8d4   : > { %v18300_v24 = vadd.f32 %v7982_v43, %v21622_v2  ;;  %v7984_v47 = vpop.f32.mrb[153].mxu1  ;;  %8390 = vmatmul.mubr.f32.gmra.mrb[2].mxu1 %v21623_v26  ;;  %v21630_v43 = vld [vmem:[#allocation50_spill] sm:$0xff] }
 0x8d5   : > { %11316 = vmatprep.mubr.msk.f32.mxu1 %vm5647_vm9, %v21624_v19  ;;  %v21631_v47 = vld [vmem:[#allocation119_spill] sm:$0xff] }
 0x8d7   : > { %v7987_v10 = vpop.f32.mrb[154].mxu1 }
 0x8d8   : > { %v18306_v6 = vadd.f32 %v7987_v10, %v21625_v58  ;;  %v7989_v45 = vpop.f32.mrb[155].mxu1  ;;  %8395 = vmatmul.mubr.f32.gmra.mrb[4].mxu1 %v21626_v60  ;;  %v21632_v10 = vld [vmem:[#allocation56_spill] sm:$0xff]  ;;  %v21633_v58 = vld [vmem:[#allocation49_spill] sm:$0xff] }
 0x8d9   : > { %11317 = vmatprep.mubr.msk.f32.mxu1 %vm5647_vm9, %v21627_v15 }
 0x8db   : > { %v7992_v9 = vpop.f32.mrb[156].mxu1 }
 0x8dc   : > { %v18312_v52 = vadd.f32 %v7992_v9, %v21628_v33  ;;  %v7994_v37 = vpop.f32.mrb[157].mxu1  ;;  %8400 = vmatmul.mubr.f32.gmra.mrb[6].mxu1 %v21629_v49  ;;  %v21634_v9 = vld [vmem:[#allocation90_spill] sm:$0xff]  ;;  %v21635_v33 = vld [vmem:[#allocation89_spill] sm:$0xff] }
 0x8dd   : > { %11318 = vmatprep.mubr.msk.f32.mxu1 %vm5647_vm9, %v21630_v43 }
 0x8df   : > { %v7997_v2 = vpop.f32.mrb[158].mxu1 }
 0x8e0   : > { %v18318_v26 = vadd.f32 %v7997_v2, %v21631_v47  ;;  %v7999_v19 = vpop.f32.mrb[159].mxu1  ;;  %8405 = vmatmul.mubr.f32.gmra.mrb[8].mxu1 %v21632_v10  ;;  %v21636_v2 = vld [vmem:[#allocation92_spill] sm:$0xff]  ;;  %v21637_v47 = vld [vmem:[#allocation91_spill] sm:$0xff] }
 0x8e1   : > { %11319 = vmatprep.mubr.msk.f32.mxu1 %vm5647_vm9, %v21633_v58  ;;  %v21638_v58 = vld [vmem:[#allocation94_spill] sm:$0xff] }
 0x8e3   : > { %v8002_v45 = vpop.f32.mrb[160].mxu1 }
 0x8e4   : > { %v18324_v60 = vadd.f32 %v8002_v45, %v18004_v31  ;;  %v8004_v15 = vpop.f32.mrb[161].mxu1  ;;  %8410 = vmatmul.mubr.f32.gmra.mrb[10].mxu1 %v21634_v9  ;;  %v21639_v45 = vld [vmem:[#allocation93_spill] sm:$0xff] }
 0x8e5   : > { %11320 = vmatprep.mubr.msk.f32.mxu1 %vm5647_vm9, %v21635_v33  ;;  %v21640_v33 = vld [vmem:[#allocation67_spill] sm:$0xff] }
 0x8e7   : > { %v8007_v37 = vpop.f32.mrb[162].mxu1 }
 0x8e8   : > { %v18330_v49 = vadd.f32 %v8007_v37, %v18016_v0  ;;  %v8009_v43 = vpop.f32.mrb[163].mxu1  ;;  %8415 = vmatmul.mubr.f32.gmra.mrb[12].mxu1 %v21636_v2  ;;  %v21641_v37 = vld [vmem:[#allocation95_spill] sm:$0xff] }
 0x8e9   : > { %11321 = vmatprep.mubr.msk.f32.mxu1 %vm5647_vm9, %v21637_v47  ;;  %v21643_v47 = vld [vmem:[#allocation97_spill] sm:$0xff] }
 0x8eb   : > { %v8012_v19 = vpop.f32.mrb[164].mxu1 }
 0x8ec   : > { %v18336_v31 = vadd.f32 %v8012_v19, %v18028_v51  ;;  %v8014_v10 = vpop.f32.mrb[165].mxu1  ;;  %8420 = vmatmul.mubr.f32.gmra.mrb[14].mxu1 %v21638_v58  ;;  %v21644_v19 = vld [vmem:[#allocation96_spill] sm:$0xff] }
 0x8ed   : > { %11322 = vmatprep.mubr.msk.f32.mxu1 %vm5647_vm9, %v21639_v45  ;;  %v21646_v45 = vld [vmem:[#allocation71_spill] sm:$0xff] }
 0x8ef   : > { %v8017_v15 = vpop.f32.mrb[166].mxu1 }
 0x8f0   : > { %v18342_v0 = vadd.f32 %v8017_v15, %v18040_v32  ;;  %v8019_v9 = vpop.f32.mrb[167].mxu1  ;;  %8425 = vmatmul.mubr.f32.gmra.mrb[16].mxu1 %v21640_v33  ;;  %v21647_v15 = vld [vmem:[#allocation98_spill] sm:$0xff] }
 0x8f1   : > { %11323 = vmatprep.mubr.msk.f32.mxu1 %vm5647_vm9, %v21641_v37  ;;  %v21649_v37 = vld [vmem:[#allocation100_spill] sm:$0xff] }
 0x8f3   : > { %v8022_v43 = vpop.f32.mrb[168].mxu1 }
 0x8f4   : > { %v18348_v51 = vadd.f32 %v8022_v43, %v18052_v54  ;;  %v8024_v2 = vpop.f32.mrb[169].mxu1  ;;  %8430 = vmatmul.mubr.f32.gmra.mrb[18].mxu1 %v21643_v47  ;;  %v21650_v43 = vld [vmem:[#allocation99_spill] sm:$0xff] }
 0x8f5   : > { %11324 = vmatprep.mubr.msk.f32.mxu1 %vm5647_vm9, %v21644_v19  ;;  %v21652_v19 = vld [vmem:[#allocation102_spill] sm:$0xff] }
 0x8f6   : > { %21642 = vst [vmem:[#allocation126_spill] sm:$0xff] %v18348_v51 }
 0x8f7   : > { %v8027_v10 = vpop.f32.mrb[170].mxu1 }
 0x8f8   : > { %v18354_v32 = vadd.f32 %v8027_v10, %v18064_v56  ;;  %v8029_v58 = vpop.f32.mrb[171].mxu1  ;;  %8435 = vmatmul.mubr.f32.gmra.mrb[20].mxu1 %v21646_v45  ;;  %v21653_v10 = vld [vmem:[#allocation101_spill] sm:$0xff] }
 0x8f9   : > { %11325 = vmatprep.mubr.msk.f32.mxu1 %vm5647_vm9, %v21647_v15  ;;  %v21655_v15 = vld [vmem:[#allocation103_spill] sm:$0xff] }
 0x8fa   : > { %21645 = vst [vmem:[#allocation127_spill] sm:$0xff] %v18354_v32 }
 0x8fb   : > { %v8032_v9 = vpop.f32.mrb[172].mxu1 }
 0x8fc   : > { %v18360_v54 = vadd.f32 %v8032_v9, %v18080_v28  ;;  %v8034_v33 = vpop.f32.mrb[173].mxu1  ;;  %8440 = vmatmul.mubr.f32.gmra.mrb[22].mxu1 %v21649_v37  ;;  %v21656_v9 = vld [vmem:[#allocation82_spill] sm:$0xff] }
 0x8fd   : > { %11326 = vmatprep.mubr.msk.f32.mxu1 %vm5647_vm9, %v21650_v43  ;;  %v21658_v43 = vld [vmem:[#allocation81_spill] sm:$0xff] }
 0x8fe   : > { %21648 = vst [vmem:[#allocation128_spill] sm:$0xff] %v18360_v54 }
 0x8ff   : > { %v8037_v2 = vpop.f32.mrb[174].mxu1 }
 0x900   : > { %v18366_v56 = vadd.f32 %v8037_v2, %v18095_v25  ;;  %v8039_v47 = vpop.f32.mrb[175].mxu1  ;;  %8445 = vmatmul.mubr.f32.gmra.mrb[24].mxu1 %v21652_v19  ;;  %v21659_v2 = vld [vmem:[#allocation104_spill] sm:$0xff] }
 0x901   : > { %11327 = vmatprep.mubr.msk.f32.mxu1 %vm5647_vm9, %v21653_v10  ;;  %v21661_v10 = vld [vmem:[#allocation105_spill] sm:$0xff] }
 0x902   : > { %21651 = vst [vmem:[#allocation37_spill] sm:$0xff] %v18366_v56 }
 0x903   : > { %v8042_v58 = vpop.f32.mrb[176].mxu1 }
 0x904   : > { %v18372_v28 = vadd.f32 %v8042_v58, %v18106_v14  ;;  %v8044_v45 = vpop.f32.mrb[177].mxu1  ;;  %8450 = vmatmul.mubr.f32.gmra.mrb[26].mxu1 %v21655_v15  ;;  %v21662_v58 = vld [vmem:[#allocation106_spill] sm:$0xff] }
 0x905   : > { %11328 = vmatprep.mubr.msk.f32.mxu1 %vm5647_vm9, %v21656_v9  ;;  %v21664_v9 = vld [vmem:[#allocation86_spill] sm:$0xff] }
 0x906   : > { %21654 = vst [vmem:[#allocation129_spill] sm:$0xff] %v18372_v28 }
 0x907   : > { %v8047_v33 = vpop.f32.mrb[178].mxu1 }
 0x908   : > { %v18378_v25 = vadd.f32 %v8047_v33, %v18115_v13  ;;  %v8049_v37 = vpop.f32.mrb[179].mxu1  ;;  %8455 = vmatmul.mubr.f32.gmra.mrb[28].mxu1 %v21658_v43  ;;  %v21665_v33 = vld [vmem:[#allocation7_spill] sm:$0xff] }
 0x909   : > { %11329 = vmatprep.mubr.msk.f32.mxu1 %vm5647_vm9, %v21659_v2  ;;  %v21667_v2 = vld [vmem:[#allocation88_spill] sm:$0xff] }
 0x90a   : > { %21657 = vst [vmem:[#allocation38_spill] sm:$0xff] %v18378_v25 }
 0x90b   : > { %v8052_v47 = vpop.f32.mrb[180].mxu1 }
 0x90c   : > { %v18384_v14 = vadd.f32 %v8052_v47, %v18125_v50  ;;  %v8054_v19 = vpop.f32.mrb[181].mxu1  ;;  %8460 = vmatmul.mubr.f32.gmra.mrb[30].mxu1 %v21661_v10  ;;  %v21668_v47 = vld [vmem:[#allocation11_spill] sm:$0xff]  ;;  %v21669_v10 = vld [vmem:[#allocation120_spill] sm:$0xff] }
 0x90d   : > { %11330 = vmatprep.mubr.msk.f32.mxu1 %vm5647_vm9, %v21662_v58 }
 0x90e   : > { %21660 = vst [vmem:[#allocation130_spill] sm:$0xff] %v18384_v14 }
 0x90f   : > { %v8057_v45 = vpop.f32.mrb[182].mxu1 }
 0x910   : > { %v18390_v13 = vadd.f32 %v8057_v45, %v18135_v4  ;;  %v8059_v15 = vpop.f32.mrb[183].mxu1  ;;  %8465 = vmatmul.mubr.f32.gmra.mrb[32].mxu1 %v21664_v9  ;;  %v21671_v45 = vld [vmem:[#allocation12_spill] sm:$0xff] }
 0x911   : > { %11331 = vmatprep.mubr.msk.f32.mxu1 %vm5647_vm9, %v21665_v33  ;;  %v21672_v15 = vld [vmem:[#allocation14_spill] sm:$0xff]  ;;  %v21673_v33 = vld [vmem:[#allocation121_spill] sm:$0xff] }
 0x912   : > { %21663 = vst [vmem:[#allocation131_spill] sm:$0xff] %v18390_v13 }
 0x913   : > { %v8062_v37 = vpop.f32.mrb[184].mxu1 }
 0x914   : > { %v18396_v50 = vadd.f32 %v8062_v37, %v18145_v63  ;;  %v8064_v43 = vpop.f32.mrb[185].mxu1  ;;  %8470 = vmatmul.mubr.f32.gmra.mrb[34].mxu1 %v21667_v2  ;;  %v21676_v2 = vld [vmem:[#allocation18_spill] sm:$0xff] }
 0x915   : > { %11332 = vmatprep.mubr.msk.f32.mxu1 %vm5647_vm9, %v21668_v47  ;;  %v21675_v43 = vld [vmem:[#allocation16_spill] sm:$0xff] }
 0x916   : > { %21666 = vst [vmem:[#allocation132_spill] sm:$0xff] %v18396_v50  ;;  %v21677_v50 = vld [vmem:[#allocation122_spill] sm:$0xff] }
 0x917   : > { %v8067_v19 = vpop.f32.mrb[186].mxu1 }
 0x918   : > { %v18402_v4 = vadd.f32 %v8067_v19, %v21669_v10  ;;  %v8069_v58 = vpop.f32.mrb[187].mxu1  ;;  %8475 = vmatmul.mubr.f32.gmra.mrb[36].mxu1 %v21671_v45  ;;  %v21680_v45 = vld [vmem:[#allocation107_spill] sm:$0xff] }
 0x919   : > { %11333 = vmatprep.mubr.msk.f32.mxu1 %vm5647_vm9, %v21672_v15  ;;  %v21679_v58 = vld [vmem:[#allocation20_spill] sm:$0xff] }
 0x91a   : > { %21670 = vst [vmem:[#allocation133_spill] sm:$0xff] %v18402_v4  ;;  %v21681_v4 = vld [vmem:[#allocation123_spill] sm:$0xff] }
 0x91b   : > { %v8072_v9 = vpop.f32.mrb[188].mxu1 }
 0x91c   : > { %v18408_v63 = vadd.f32 %v8072_v9, %v21673_v33  ;;  %v8074_v37 = vpop.f32.mrb[189].mxu1  ;;  %8480 = vmatmul.mubr.f32.gmra.mrb[38].mxu1 %v21675_v43  ;;  %v21684_v43 = vld [vmem:[#allocation108_spill] sm:$0xff] }
 0x91d   : > { %11334 = vmatprep.mubr.msk.f32.mxu1 %vm5647_vm9, %v21676_v2  ;;  %v21683_v37 = vld [vmem:[#allocation23_spill] sm:$0xff] }
 0x91e   : > { %21674 = vst [vmem:[#allocation134_spill] sm:$0xff] %v18408_v63  ;;  %v21685_v63 = vld [vmem:[#allocation124_spill] sm:$0xff] }
 0x91f   : > { %v8077_v47 = vpop.f32.mrb[190].mxu1 }
 0x920   : > { %v18414_v19 = vadd.f32 %v8077_v47, %v21677_v50  ;;  %v8079_v10 = vpop.f32.mrb[191].mxu1  ;;  %8485 = vmatmul.mubr.f32.gmra.mrb[40].mxu1 %v21679_v58  ;;  %v21688_v58 = vld [vmem:[#allocation109_spill] sm:$0xff] }
 0x921   : > { %11335 = vmatprep.mubr.msk.f32.mxu1 %vm5647_vm9, %v21680_v45  ;;  %v21687_v10 = vld [vmem:[#allocation26_spill] sm:$0xff] }
 0x922   : > { %21678 = vst [vmem:[#allocation135_spill] sm:$0xff] %v18414_v19 }
 0x923   : > { %v8082_v15 = vpop.f32.mrb[192].mxu1 }
 0x924   : > { %v18420_v9 = vadd.f32 %v8082_v15, %v21681_v4  ;;  %v8084_v33 = vpop.f32.mrb[193].mxu1  ;;  %8490 = vmatmul.mubr.f32.gmra.mrb[42].mxu1 %v21683_v37  ;;  %v21691_v37 = vld [vmem:[#allocation111_spill] sm:$0xff] }
 0x925   : > { %11336 = vmatprep.mubr.msk.f32.mxu1 %vm5647_vm9, %v21684_v43  ;;  %v21690_v33 = vld [vmem:[#allocation110_spill] sm:$0xff] }
 0x926   : > { %21682 = vst [vmem:[#allocation136_spill] sm:$0xff] %v18420_v9 }
 0x927   : > { %v8087_v2 = vpop.f32.mrb[194].mxu1 }
 0x928   : > { %v18426_v50 = vadd.f32 %v8087_v2, %v21685_v63  ;;  %v8089_v47 = vpop.f32.mrb[195].mxu1  ;;  %8495 = vmatmul.mubr.f32.gmra.mrb[44].mxu1 %v21687_v10  ;;  %v21694_v10 = vld [vmem:[#allocation114_spill] sm:$0xff] }
 0x929   : > { %11337 = vmatprep.mubr.msk.f32.mxu1 %vm5647_vm9, %v21688_v58  ;;  %v21693_v47 = vld [vmem:[#allocation112_spill] sm:$0xff] }
 0x92a   : > { %21686 = vst [vmem:[#allocation137_spill] sm:$0xff] %v18426_v50 }
 0x92b   : > { %v8092_v45 = vpop.f32.mrb[196].mxu1 }
 0x92c   : > { %v18432_v4 = vadd.f32 %v8092_v45, %v18058_v34  ;;  %v8094_v15 = vpop.f32.mrb[197].mxu1  ;;  %8500 = vmatmul.mubr.f32.gmra.mrb[46].mxu1 %v21690_v33  ;;  %v21697_v33 = vld [vmem:[#allocation116_spill] sm:$0xff] }
 0x92d   : > { %11338 = vmatprep.mubr.msk.f32.mxu1 %vm5647_vm9, %v21691_v37  ;;  %v21696_v15 = vld [vmem:[#allocation115_spill] sm:$0xff] }
 0x92e   : > { %21689 = vst [vmem:[#allocation138_spill] sm:$0xff] %v18432_v4 }
 0x92f   : > { %v8097_v43 = vpop.f32.mrb[198].mxu1 }
 0x930   : > { %v18438_v63 = vadd.f32 %v8097_v43, %v18074_v21  ;;  %v8099_v2 = vpop.f32.mrb[199].mxu1  ;;  %8505 = vmatmul.mubr.f32.gmra.mrb[48].mxu1 %v21693_v47  ;;  %v18452_v21 = vld [vmem:[%s20380_s4] ss:$0 sm:$0xff]  ;;  %v21698_v47 = vld [vmem:[#allocation117_spill] sm:$0xff] }
 0x931   : > { %11339 = vmatprep.mubr.msk.f32.mxu1 %vm5647_vm9, %v21694_v10  ;;  %v21699_v10 = vld [vmem:[#allocation125_spill] sm:$0xff] }
 0x932   : > { %21692 = vst [vmem:[#allocation139_spill] sm:$0xff] %v18438_v63 }
 0x933   : > { %v8102_v58 = vpop.f32.mrb[200].mxu1 }
 0x934   : > { %v18444_v34 = vadd.f32 %v8102_v58, %v18090_v27  ;;  %v8104_v45 = vpop.f32.mrb[201].mxu1  ;;  %8510 = vmatmul.mubr.f32.gmra.mrb[50].mxu1 %v21696_v15 }
 0x935   : > { %11340 = vmatprep.mubr.msk.f32.mxu1 %vm5647_vm9, %v21697_v33 }
 0x936   : > { %21695 = vst [vmem:[#allocation140_spill] sm:$0xff] %v18444_v34 }
 0x937   : > { %v8251_v37 = vpop.f32.mrb[202].mxu1 }
 0x938   : > { %v8525_v43 = vadd.f32 %v8251_v37, %v18101_v59  ;;  %v8253_v2 = vpop.f32.mrb[203].mxu1  ;;  %8515 = vmatmul.mubr.f32.gmra.mrb[52].mxu1 %v21698_v47 }
 0x939   : > { %11341 = vmatprep.mubr.msk.f32.mxu1 %vm5647_vm9, %v21699_v10 }
 0x93a   : > { %v18459_v27 = vadd.f32 %v18452_v21, %v8525_v43 }
 0x93b   : > { %v8256_v58 = vpop.f32.mrb[204].mxu1 }
 0x93c   : > { %v8526_v45 = vadd.f32 %v8256_v58, %v18111_v38  ;;  %v8258_v15 = vpop.f32.mrb[205].mxu1  ;;  %8520 = vmatmul.mubr.f32.gmra.mrb[54].mxu1 %v18084_v1  ;;  %v20692_v33 = vmax.f32 %v18459_v27, 0.0  ;;  %v21700_v56 = vmax.f32 %v18459_v27, 0.0 }
 0x93e   : > { %v18465_v34 = vadd.f32 %v18452_v21, %v8526_v45  ;;  %v8752_v43 = vrot.slane %v20692_v33, 2 }
 0x93f   : > { %v8261_v59 = vpop.f32.mrb[206].mxu1 }
 0x940   : > { %v20691_v37 = vmax.f32 %v18465_v34, 0.0  ;;  %v8527_v2 = vadd.f32 %v8261_v59, %v18120_v46  ;;  %v8263_v47 = vpop.f32.mrb[207].mxu1 }
 0x942   : > { %v8753_v38 = vrot.slane %v20691_v37, 2  ;;  %v18474_v10 = vadd.f32 %v18452_v21, %v8527_v2 }
 0x943   : > { %v8266_v1 = vpop.f32.mrb[208].mxu1 }
 0x944   : > { %v18477_v58 = vsel %vm1570_vm5, %v8752_v43, %v8753_v38  ;;  %v20693_v45 = vmax.f32 %v18474_v10, 0.0  ;;  %v8528_v15 = vadd.f32 %v8266_v1, %v18130_v40  ;;  %v8268_v63 = vpop.f32.mrb[209].mxu1 }
 0x946   : > { %v8755_v46 = vrot.slane %v20693_v45, 2  ;;  %v18484_v59 = vadd.f32 %v18452_v21, %v8528_v15 }
 0x947   : > { %v8271_v47 = vpop.f32.mrb[210].mxu1 }
 0x948   : > { %v8756_v37 = vsel %vm1570_vm5, %v8753_v38, %v8755_v46  ;;  %v20694_v2 = vmax.f32 %v18484_v59, 0.0  ;;  %v8529_v33 = vadd.f32 %v8271_v47, %v18140_v11  ;;  %v8273_v43 = vpop.f32.mrb[211].mxu1 }
 0x94a   : > { %v8757_v4 = vrot.slane %v20694_v2, 2  ;;  %v18492_v40 = vadd.f32 %v18452_v21, %v8529_v33 }
 0x94b   : > { %v8276_v63 = vpop.f32.mrb[212].mxu1 }
 0x94c   : > { %v18495_v1 = vsel %vm1570_vm5, %v8755_v46, %v8757_v4  ;;  %v20695_v15 = vmax.f32 %v18492_v40, 0.0  ;;  %v8530_v45 = vadd.f32 %v8276_v63, %v18150_v39  ;;  %v8278_v38 = vpop.f32.mrb[213].mxu1 }
 0x94e   : > { %v8759_v50 = vrot.slane %v20695_v15, 2  ;;  %v18502_v11 = vadd.f32 %v18452_v21, %v8530_v45 }
 0x94f   : > { %v8281_v47 = vpop.f32.mrb[214].mxu1 }
 0x950   : > { %v18505_v43 = vsel %vm1570_vm5, %v8757_v4, %v8759_v50  ;;  %v20696_v33 = vmax.f32 %v18502_v11, 0.0  ;;  %v8531_v46 = vadd.f32 %v8281_v47, %v18156_v35  ;;  %v8283_v2 = vpop.f32.mrb[215].mxu1 }
 0x952   : > { %v8761_v9 = vrot.slane %v20696_v33, 2  ;;  %v18512_v39 = vadd.f32 %v18452_v21, %v8531_v46 }
 0x953   : > { %v8286_v63 = vpop.f32.mrb[216].mxu1 }
 0x954   : > { %v18515_v38 = vsel %vm1570_vm5, %v8759_v50, %v8761_v9  ;;  %v20697_v45 = vmax.f32 %v18512_v39, 0.0  ;;  %v8532_v4 = vadd.f32 %v8286_v63, %v18162_v30  ;;  %v8288_v15 = vpop.f32.mrb[217].mxu1 }
 0x956   : > { %v8763_v19 = vrot.slane %v20697_v45, 2  ;;  %v18522_v35 = vadd.f32 %v18452_v21, %v8532_v4 }
 0x957   : > { %v8291_v2 = vpop.f32.mrb[218].mxu1 }
 0x958   : > { %v18525_v47 = vsel %vm1570_vm5, %v8761_v9, %v8763_v19  ;;  %v20698_v46 = vmax.f32 %v18522_v35, 0.0  ;;  %v8533_v50 = vadd.f32 %v8291_v2, %v18168_v55  ;;  %v8293_v33 = vpop.f32.mrb[219].mxu1 }
 0x95a   : > { %v8765_v13 = vrot.slane %v20698_v46, 2  ;;  %v18532_v30 = vadd.f32 %v18452_v21, %v8533_v50 }
 0x95b   : > { %v8296_v15 = vpop.f32.mrb[220].mxu1 }
 0x95c   : > { %v18535_v63 = vsel %vm1570_vm5, %v8763_v19, %v8765_v13  ;;  %v20699_v4 = vmax.f32 %v18532_v30, 0.0  ;;  %v8534_v9 = vadd.f32 %v8296_v15, %v18174_v61  ;;  %v8298_v45 = vpop.f32.mrb[221].mxu1 }
 0x95e   : > { %v8767_v14 = vrot.slane %v20699_v4, 2  ;;  %v18542_v55 = vadd.f32 %v18452_v21, %v8534_v9 }
 0x95f   : > { %v8301_v33 = vpop.f32.mrb[222].mxu1 }
 0x960   : > { %v18545_v2 = vsel %vm1570_vm5, %v8765_v13, %v8767_v14  ;;  %v20700_v50 = vmax.f32 %v18542_v55, 0.0  ;;  %v8535_v19 = vadd.f32 %v8301_v33, %v18180_v53  ;;  %v8303_v46 = vpop.f32.mrb[223].mxu1 }
 0x962   : > { %v8769_v25 = vrot.slane %v20700_v50, 2  ;;  %v18552_v61 = vadd.f32 %v18452_v21, %v8535_v19 }
 0x963   : > { %v8306_v45 = vpop.f32.mrb[224].mxu1 }
 0x964   : > { %v18555_v15 = vsel %vm1570_vm5, %v8767_v14, %v8769_v25  ;;  %v20701_v9 = vmax.f32 %v18552_v61, 0.0  ;;  %v8536_v13 = vadd.f32 %v8306_v45, %v18186_v18  ;;  %v8308_v4 = vpop.f32.mrb[225].mxu1  ;;  %v18572_v18 = vmax.f32 %v21700_v56, %v18477_v58 }
 0x965   : > { %v21702_v4 = vmax.f32 %v18465_v34, 0.0 }
 0x966   : > { %v8771_v28 = vrot.slane %v20701_v9, 2  ;;  %v18562_v53 = vadd.f32 %v18452_v21, %v8536_v13  ;;  %21701 = vst [vmem:[#allocation33_spill] sm:$0xff] %v18572_v18 }
 0x967   : > { %v8311_v46 = vpop.f32.mrb[226].mxu1  ;;  %v18576_v45 = vmax.f32 %v21702_v4, %v8756_v37 }
 0x968   : > { %v18565_v33 = vsel %vm1570_vm5, %v8769_v25, %v8771_v28  ;;  %v20703_v19 = vmax.f32 %v18562_v53, 0.0  ;;  %v8537_v14 = vadd.f32 %v8311_v46, %v18192_v12  ;;  %v8313_v50 = vpop.f32.mrb[227].mxu1 }
 0x969   : > { %21703 = vst [vmem:[#allocation141_spill] sm:$0xff] %v18576_v45 }
 0x96a   : > { %v8773_v13 = vrot.slane %v20703_v19, 2  ;;  %v18581_v25 = vadd.f32 %v18452_v21, %v8537_v14 }
 0x96b   : > { %v8316_v9 = vpop.f32.mrb[228].mxu1 }
 0x96c   : > { %v18584_v54 = vsel %vm1570_vm5, %v8771_v28, %v8773_v13  ;;  %v20702_v12 = vmax.f32 %v18581_v25, 0.0  ;;  %v8538_v27 = vadd.f32 %v8316_v9, %v18198_v36  ;;  %v8318_v56 = vpop.f32.mrb[229].mxu1 }
 0x96e   : > { %v8775_v34 = vrot.slane %v20702_v12, 2  ;;  %v18591_v37 = vadd.f32 %v18452_v21, %v8538_v27 }
 0x96f   : > { %v8321_v58 = vpop.f32.mrb[230].mxu1 }
 0x970   : > { %v18594_v50 = vsel %vm1570_vm5, %v8773_v13, %v8775_v34  ;;  %v20704_v46 = vmax.f32 %v18591_v37, 0.0  ;;  %v8539_v28 = vadd.f32 %v8321_v58, %v18204_v44  ;;  %v8323_v14 = vpop.f32.mrb[231].mxu1 }
 0x972   : > { %v8777_v4 = vrot.slane %v20704_v46, 2  ;;  %v18601_v36 = vadd.f32 %v18452_v21, %v8539_v28 }
 0x973   : > { %v8326_v9 = vpop.f32.mrb[232].mxu1 }
 0x974   : > { %v18604_v56 = vsel %vm1570_vm5, %v8775_v34, %v8777_v4  ;;  %v20706_v27 = vmax.f32 %v18601_v36, 0.0  ;;  %v8540_v13 = vadd.f32 %v8326_v9, %v18210_v5  ;;  %v8328_v12 = vpop.f32.mrb[233].mxu1 }
 0x976   : > { %v8779_v19 = vrot.slane %v20706_v27, 2  ;;  %v18611_v44 = vadd.f32 %v18452_v21, %v8540_v13 }
 0x977   : > { %v8331_v58 = vpop.f32.mrb[234].mxu1 }
 0x978   : > { %v18614_v14 = vsel %vm1570_vm5, %v8777_v4, %v8779_v19  ;;  %v20708_v28 = vmax.f32 %v18611_v44, 0.0  ;;  %v8541_v34 = vadd.f32 %v8331_v58, %v18216_v42  ;;  %v8333_v46 = vpop.f32.mrb[235].mxu1 }
 0x97a   : > { %v8781_v45 = vrot.slane %v20708_v28, 2  ;;  %v8603_v5 = vadd.f32 %v18452_v21, %v8541_v34  ;;  %v21704_v34 = vmax.f32 %v18474_v10, 0.0 }
 0x97b   : > { %v8336_v12 = vpop.f32.mrb[236].mxu1 }
 0x97c   : > { %v18622_v9 = vsel %vm1570_vm5, %v8779_v19, %v8781_v45  ;;  %v8658_v13 = vmax.f32 %v8603_v5, 0.0  ;;  %v8542_v27 = vadd.f32 %v8336_v12, %v18222_v22  ;;  %v8338_v18 = vpop.f32.mrb[237].mxu1  ;;  %v18633_v19 = vmax.f32 %v21704_v34, %v18495_v1 }
 0x97d   : > { %v21706_v22 = vmax.f32 %v18484_v59, 0.0 }
 0x97e   : > { %v8783_v4 = vrot.slane %v8658_v13, 2  ;;  %v8604_v32 = vadd.f32 %v18452_v21, %v8542_v27  ;;  %21705 = vst [vmem:[#allocation142_spill] sm:$0xff] %v18633_v19 }
 0x97f   : > { %v8341_v51 = vpop.f32.mrb[238].mxu1  ;;  %v18638_v18 = vmax.f32 %v21706_v22, %v18505_v43 }
 0x980   : > { %v18627_v42 = vsel %vm1570_vm5, %v8781_v45, %v8783_v4  ;;  %v8659_v46 = vmax.f32 %v8604_v32, 0.0  ;;  %v8543_v58 = vadd.f32 %v8341_v51, %v18228_v16  ;;  %v8343_v28 = vpop.f32.mrb[239].mxu1 }
 0x981   : > { %21707 = vst [vmem:[#allocation143_spill] sm:$0xff] %v18638_v18 }
 0x982   : > { %v8785_v5 = vrot.slane %v8659_v46, 2  ;;  %v8605_v27 = vadd.f32 %v18452_v21, %v8543_v58  ;;  %v21708_v58 = vmax.f32 %v18492_v40, 0.0 }
 0x983   : > { %v8346_v12 = vpop.f32.mrb[240].mxu1 }
 0x984   : > { %v8786_v45 = vsel %vm1570_vm5, %v8783_v4, %v8785_v5  ;;  %v8660_v32 = vmax.f32 %v8605_v27, 0.0  ;;  %v8544_v16 = vadd.f32 %v8346_v12, %v18234_v20  ;;  %v8348_v51 = vpop.f32.mrb[241].mxu1  ;;  %v18651_v4 = vmax.f32 %v21708_v58, %v18515_v38 }
 0x985   : > { %v18643_v28 = vmax.f32 %v8658_v13, %v8786_v45  ;;  %v21709_v20 = vmax.f32 %v18502_v11, 0.0 }
 0x986   : > { %v8787_v10 = vrot.slane %v8660_v32, 2  ;;  %v8606_v1 = vadd.f32 %v18452_v21, %v8544_v16 }
 0x987   : > { %v8351_v34 = vpop.f32.mrb[242].mxu1  ;;  %v18658_v13 = vmax.f32 %v21709_v20, %v18525_v47 }
 0x988   : > { %v8788_v59 = vsel %vm1570_vm5, %v8785_v5, %v8787_v10  ;;  %v8661_v43 = vmax.f32 %v8606_v1, 0.0  ;;  %v8545_v22 = vadd.f32 %v8351_v34, %v18240_v8  ;;  %v8353_v18 = vpop.f32.mrb[243].mxu1 }
 0x989   : > { %v18653_v27 = vmax.f32 %v8659_v46, %v8788_v59  ;;  %21710 = vst [vmem:[#allocation34_spill] sm:$0xff] %v18658_v13 }
 0x98a   : > { %v8789_v12 = vrot.slane %v8661_v43, 2  ;;  %v8607_v45 = vadd.f32 %v18452_v21, %v8545_v22 }
 0x98b   : > { %v8356_v5 = vpop.f32.mrb[244].mxu1 }
 0x98c   : > { %v8790_v16 = vsel %vm1570_vm5, %v8787_v10, %v8789_v12  ;;  %v8662_v8 = vmax.f32 %v8607_v45, 0.0  ;;  %v8546_v18 = vadd.f32 %v8356_v5, %v18246_v62  ;;  %v8358_v51 = vpop.f32.mrb[245].mxu1  ;;  %v21711_v10 = vmax.f32 %v18512_v39, 0.0 }
 0x98d   : > { %v18663_v40 = vmax.f32 %v8660_v32, %v8790_v16 }
 0x98e   : > { %v8791_v38 = vrot.slane %v8662_v8, 2  ;;  %v8608_v46 = vadd.f32 %v18452_v21, %v8546_v18  ;;  %v18673_v58 = vmax.f32 %v21711_v10, %v18535_v63 }
 0x98f   : > { %v8361_v1 = vpop.f32.mrb[246].mxu1 }
 0x990   : > { %v8792_v11 = vsel %vm1570_vm5, %v8789_v12, %v8791_v38  ;;  %v8663_v47 = vmax.f32 %v8608_v46, 0.0  ;;  %v8547_v34 = vadd.f32 %v8361_v1, %v18252_v29  ;;  %v8363_v59 = vpop.f32.mrb[247].mxu1  ;;  %v21713_v29 = vmax.f32 %v18522_v35, 0.0 }
 0x991   : > { %v18668_v22 = vmax.f32 %v8661_v43, %v8792_v11  ;;  %v21715_v35 = vmax.f32 %v18542_v55, 0.0  ;;  %v21716_v59 = vmax.f32 %v18552_v61, 0.0 }
 0x992   : > { %v8793_v62 = vrot.slane %v8663_v47, 2  ;;  %v8609_v32 = vadd.f32 %v18452_v21, %v8547_v34  ;;  %v18683_v43 = vmax.f32 %v21713_v29, %v18545_v2 }
 0x993   : > { %v8366_v20 = vpop.f32.mrb[248].mxu1  ;;  %v18698_v2 = vmax.f32 %v21715_v35, %v18565_v33  ;;  %v18703_v10 = vmax.f32 %v21716_v59, %v18584_v54  ;;  %v21718_v54 = vmax.f32 %v18581_v25, 0.0  ;;  %v21720_v25 = vmax.f32 %v18601_v36, 0.0 }
 0x994   : > { %v8794_v45 = vsel %vm1570_vm5, %v8791_v38, %v8793_v62  ;;  %v8664_v5 = vmax.f32 %v8609_v32, 0.0  ;;  %v8548_v12 = vadd.f32 %v8366_v20, %v18258_v57  ;;  %v8368_v16 = vpop.f32.mrb[249].mxu1  ;;  %v21714_v57 = vmax.f32 %v18532_v30, 0.0 }
 0x995   : > { %v18678_v18 = vmax.f32 %v8662_v8, %v8794_v45  ;;  %v18718_v61 = vmax.f32 %v21718_v54, %v18604_v56  ;;  %v18733_v56 = vmax.f32 %v21720_v25, %v18622_v9 }
 0x996   : > { %v8795_v39 = vrot.slane %v8664_v5, 2  ;;  %v8610_v63 = vadd.f32 %v18452_v21, %v8548_v12  ;;  %v18691_v8 = vmax.f32 %v21714_v57, %v18555_v15 }
 0x997   : > { %21712 = vst [vmem:[#allocation144_spill] sm:$0xff] %v18678_v18  ;;  %v8371_v51 = vpop.f32.mrb[250].mxu1  ;;  %21721 = vst [vmem:[#allocation145_spill] sm:$0xff] %v18733_v56 }
 0x998   : > { %v8796_v46 = vsel %vm1570_vm5, %v8793_v62, %v8795_v39  ;;  %v8665_v1 = vmax.f32 %v8610_v63, 0.0  ;;  %v8549_v38 = vadd.f32 %v8371_v51, %v18264_v48  ;;  %v8373_v11 = vpop.f32.mrb[251].mxu1  ;;  %v21717_v48 = vmax.f32 %v18562_v53, 0.0 }
 0x999   : > { %v18693_v34 = vmax.f32 %v8663_v47, %v8796_v46  ;;  %v21719_v53 = vmax.f32 %v18591_v37, 0.0  ;;  %v21722_v37 = vmax.f32 %v18611_v44, 0.0 }
 0x99a   : > { %v18708_v62 = vmax.f32 %v21717_v48, %v18594_v50  ;;  %v8797_v30 = vrot.slane %v8665_v1, 2  ;;  %v8611_v15 = vadd.f32 %v18452_v21, %v8549_v38 }
 0x99b   : > { %v8376_v47 = vpop.f32.mrb[252].mxu1  ;;  %v18723_v50 = vmax.f32 %v21719_v53, %v18614_v14  ;;  %v18738_v14 = vmax.f32 %v21722_v37, %v18627_v42 }
 0x99c   : > { %v8798_v32 = vsel %vm1570_vm5, %v8795_v39, %v8797_v30  ;;  %v8666_v20 = vmax.f32 %v8611_v15, 0.0  ;;  %v8550_v55 = vadd.f32 %v8376_v47, %v18270_v23  ;;  %v8378_v33 = vpop.f32.mrb[253].mxu1 }
 0x99d   : > { %v18713_v45 = vmax.f32 %v8664_v5, %v8798_v32 }
 0x99e   : > { %v8799_v12 = vrot.slane %v8666_v20, 2  ;;  %v8612_v16 = vadd.f32 %v18452_v21, %v8550_v55 }
 0x99f   : > { %v8381_v29 = vpop.f32.mrb[254].mxu1 }
 0x9a0   : > { %v8800_v39 = vsel %vm1570_vm5, %v8797_v30, %v8799_v12  ;;  %v8667_v23 = vmax.f32 %v8612_v16, 0.0  ;;  %v8551_v5 = vadd.f32 %v8381_v29, %v18276_v17  ;;  %v8383_v63 = vpop.f32.mrb[255].mxu1 }
 0x9a1   : > { %v18728_v51 = vmax.f32 %v8665_v1, %v8800_v39 }
 0x9a2   : > { %v8801_v46 = vrot.slane %v8667_v23, 2  ;;  %v8613_v38 = vadd.f32 %v18452_v21, %v8551_v5 }
 0x9a3   : > { %v8386_v11 = vpop.f32.mrb[0].mxu1 }
 0x9a4   : > { %v8802_v57 = vsel %vm1570_vm5, %v8799_v12, %v8801_v46  ;;  %v8668_v17 = vmax.f32 %v8613_v38, 0.0  ;;  %v8552_v1 = vadd.f32 %v8386_v11, %v18282_v3  ;;  %v8388_v35 = vpop.f32.mrb[1].mxu1 }
 0x9a5   : > { %v18743_v59 = vmax.f32 %v8666_v20, %v8802_v57 }
 0x9a6   : > { %v8803_v36 = vrot.slane %v8668_v17, 2  ;;  %v8614_v9 = vadd.f32 %v18452_v21, %v8552_v1 }
 0x9a7   : > { %v8391_v48 = vpop.f32.mrb[2].mxu1 }
 0x9a8   : > { %v8804_v44 = vsel %vm1570_vm5, %v8801_v46, %v8803_v36  ;;  %v8669_v42 = vmax.f32 %v8614_v9, 0.0  ;;  %v8553_v30 = vadd.f32 %v8391_v48, %v18288_v7  ;;  %v8393_v15 = vpop.f32.mrb[3].mxu1 }
 0x9a9   : > { %v18748_v47 = vmax.f32 %v8667_v23, %v8804_v44 }
 0x9aa   : > { %v8805_v32 = vrot.slane %v8669_v42, 2  ;;  %v8615_v55 = vadd.f32 %v18452_v21, %v8553_v30 }
 0x9ab   : > { %v8396_v33 = vpop.f32.mrb[4].mxu1 }
 0x9ac   : > { %v8806_v3 = vsel %vm1570_vm5, %v8803_v36, %v8805_v32  ;;  %v8670_v20 = vmax.f32 %v8615_v55, 0.0  ;;  %v8554_v54 = vadd.f32 %v8396_v33, %v18294_v41  ;;  %v8398_v53 = vpop.f32.mrb[5].mxu1 }
 0x9ad   : > { %v18753_v12 = vmax.f32 %v8668_v17, %v8806_v3 }
 0x9ae   : > { %v8807_v16 = vrot.slane %v8670_v20, 2  ;;  %v8616_v29 = vadd.f32 %v18452_v21, %v8554_v54 }
 0x9af   : > { %v8401_v39 = vpop.f32.mrb[6].mxu1 }
 0x9b0   : > { %v8808_v7 = vsel %vm1570_vm5, %v8805_v32, %v8807_v16  ;;  %v8671_v23 = vmax.f32 %v8616_v29, 0.0  ;;  %v8555_v5 = vadd.f32 %v8401_v39, %v18300_v24  ;;  %v8403_v63 = vpop.f32.mrb[7].mxu1 }
 0x9b1   : > { %v18758_v25 = vmax.f32 %v8669_v42, %v8808_v7 }
 0x9b2   : > { %v8809_v37 = vrot.slane %v8671_v23, 2  ;;  %v8617_v46 = vadd.f32 %v18452_v21, %v8555_v5 }
 0x9b3   : > { %v8406_v38 = vpop.f32.mrb[8].mxu1 }
 0x9b4   : > { %v8810_v41 = vsel %vm1570_vm5, %v8807_v16, %v8809_v37  ;;  %v8672_v11 = vmax.f32 %v8617_v46, 0.0  ;;  %v8556_v57 = vadd.f32 %v8406_v38, %v18306_v6  ;;  %v8408_v17 = vpop.f32.mrb[9].mxu1 }
 0x9b5   : > { %v18763_v1 = vmax.f32 %v8670_v20, %v8810_v41 }
 0x9b6   : > { %v8811_v35 = vrot.slane %v8672_v11, 2  ;;  %v8618_v36 = vadd.f32 %v18452_v21, %v8556_v57 }
 0x9b7   : > { %v8411_v9 = vpop.f32.mrb[10].mxu1 }
 0x9b8   : > { %v8812_v24 = vsel %vm1570_vm5, %v8809_v37, %v8811_v35  ;;  %v8673_v48 = vmax.f32 %v8618_v36, 0.0  ;;  %v8557_v44 = vadd.f32 %v8411_v9, %v18312_v52  ;;  %v8413_v42 = vpop.f32.mrb[11].mxu1 }
 0x9b9   : > { %v18768_v30 = vmax.f32 %v8671_v23, %v8812_v24 }
 0x9ba   : > { %v8813_v15 = vrot.slane %v8673_v48, 2  ;;  %v8619_v32 = vadd.f32 %v18452_v21, %v8557_v44 }
 0x9bb   : > { %v8416_v55 = vpop.f32.mrb[12].mxu1 }
 0x9bc   : > { %v8814_v6 = vsel %vm1570_vm5, %v8811_v35, %v8813_v15  ;;  %v8674_v33 = vmax.f32 %v8619_v32, 0.0  ;;  %v8558_v3 = vadd.f32 %v8416_v55, %v18318_v26  ;;  %v8418_v20 = vpop.f32.mrb[13].mxu1 }
 0x9bd   : > { %v18773_v54 = vmax.f32 %v8672_v11, %v8814_v6 }
 0x9be   : > { %v8815_v53 = vrot.slane %v8674_v33, 2  ;;  %v8620_v16 = vadd.f32 %v18452_v21, %v8558_v3 }
 0x9bf   : > { %21723 = vst [vmem:[#allocation146_spill] sm:$0xff] %v18773_v54  ;;  %v8421_v29 = vpop.f32.mrb[14].mxu1 }
 0x9c0   : > { %v8816_v52 = vsel %vm1570_vm5, %v8813_v15, %v8815_v53  ;;  %v8675_v39 = vmax.f32 %v8620_v16, 0.0  ;;  %v8559_v7 = vadd.f32 %v8421_v29, %v18324_v60  ;;  %v8423_v23 = vpop.f32.mrb[15].mxu1 }
 0x9c1   : > { %v18778_v5 = vmax.f32 %v8673_v48, %v8816_v52 }
 0x9c2   : > { %v8817_v63 = vrot.slane %v8675_v39, 2  ;;  %v8621_v37 = vadd.f32 %v18452_v21, %v8559_v7 }
 0x9c3   : > { %v8426_v46 = vpop.f32.mrb[16].mxu1 }
 0x9c4   : > { %v8818_v26 = vsel %vm1570_vm5, %v8815_v53, %v8817_v63  ;;  %v8676_v38 = vmax.f32 %v8621_v37, 0.0  ;;  %v8560_v41 = vadd.f32 %v8426_v46, %v18330_v49  ;;  %v8428_v11 = vpop.f32.mrb[17].mxu1 }
 0x9c5   : > { %v18783_v57 = vmax.f32 %v8674_v33, %v8818_v26  ;;  %v21725_v11 = vld [vmem:[#allocation127_spill] sm:$0xff] }
 0x9c6   : > { %v8819_v17 = vrot.slane %v8676_v38, 2  ;;  %v8622_v35 = vadd.f32 %v18452_v21, %v8560_v41 }
 0x9c7   : > { %v8431_v36 = vpop.f32.mrb[18].mxu1 }
 0x9c8   : > { %v8820_v60 = vsel %vm1570_vm5, %v8817_v63, %v8819_v17  ;;  %v8677_v9 = vmax.f32 %v8622_v35, 0.0  ;;  %v8561_v24 = vadd.f32 %v8431_v36, %v18336_v31  ;;  %v8433_v48 = vpop.f32.mrb[19].mxu1 }
 0x9c9   : > { %v18788_v44 = vmax.f32 %v8675_v39, %v8820_v60  ;;  %v21724_v39 = vld [vmem:[#allocation126_spill] sm:$0xff] }
 0x9ca   : > { %v8821_v42 = vrot.slane %v8677_v9, 2  ;;  %v8623_v15 = vadd.f32 %v18452_v21, %v8561_v24 }
 0x9cb   : > { %v8436_v32 = vpop.f32.mrb[20].mxu1  ;;  %v12715_v49 = vpack.i.bf16 %v18788_v44, %v18783_v57 }
 0x9cc   : > { %v8822_v55 = vsel %vm1570_vm5, %v8819_v17, %v8821_v42  ;;  %v8678_v6 = vmax.f32 %v8623_v15, 0.0  ;;  %v8562_v33 = vadd.f32 %v8436_v32, %v18342_v0  ;;  %v8438_v3 = vpop.f32.mrb[21].mxu1  ;;  %v21726_v15 = vld [vmem:[#allocation128_spill] sm:$0xff] }
 0x9cd   : > { %12716 = vrot.lane.b32.xlu1 %v12715_v49, %s12973_s14  ;;  %v18796_v20 = vmax.f32 %v8676_v38, %v8822_v55 }
 0x9ce   : > { %v8823_v31 = vrot.slane %v8678_v6, 2  ;;  %v8624_v53 = vadd.f32 %v18452_v21, %v8562_v33 }
 0x9cf   : > { %v8441_v16 = vpop.f32.mrb[22].mxu1 }
 0x9d0   : > { %v8824_v29 = vsel %vm1570_vm5, %v8821_v42, %v8823_v31  ;;  %v8679_v52 = vmax.f32 %v8624_v53, 0.0  ;;  %v8563_v7 = vadd.f32 %v8441_v16, %v21724_v39  ;;  %v8443_v23 = vpop.f32.mrb[23].mxu1 }
 0x9d1   : > { %v18801_v63 = vmax.f32 %v8677_v9, %v8824_v29  ;;  %v21727_v29 = vld [vmem:[#allocation37_spill] sm:$0xff] }
 0x9d2   : > { %v8825_v37 = vrot.slane %v8679_v52, 2  ;;  %v8625_v0 = vadd.f32 %v18452_v21, %v8563_v7 }
 0x9d3   : > { %v8446_v46 = vpop.f32.mrb[24].mxu1  ;;  %v12720_v26 = vpack.i.bf16 %v18801_v63, %v18796_v20 }
 0x9d4   : > { %v8826_v38 = vsel %vm1570_vm5, %v8823_v31, %v8825_v37  ;;  %v8680_v41 = vmax.f32 %v8625_v0, 0.0  ;;  %v8564_v17 = vadd.f32 %v8446_v46, %v21725_v11  ;;  %v8448_v35 = vpop.f32.mrb[25].mxu1  ;;  %v21728_v46 = vld [vmem:[#allocation33_spill] sm:$0xff] }
 0x9d5   : > { %12721 = vrot.lane.b32.xlu0 %v12720_v26, %s12973_s14  ;;  %v18809_v36 = vmax.f32 %v8678_v6, %v8826_v38  ;;  %v21729_v26 = vld [vmem:[#allocation141_spill] sm:$0xff] }
 0x9d6   : > { %v8827_v60 = vrot.slane %v8680_v41, 2  ;;  %v8626_v9 = vadd.f32 %v18452_v21, %v8564_v17  ;;  %v12740_v38 = vpack.i.bf16 %v21729_v26, %v21728_v46  ;;  %v21730_v35 = vld [vmem:[#allocation129_spill] sm:$0xff] }
 0x9d7   : > { %v8451_v24 = vpop.f32.mrb[26].mxu1 }
 0x9d8   : > { %v8828_v48 = vsel %vm1570_vm5, %v8825_v37, %v8827_v60  ;;  %v8681_v42 = vmax.f32 %v8626_v9, 0.0  ;;  %v8565_v32 = vadd.f32 %v8451_v24, %v21726_v15  ;;  %v8453_v49 = vpop.f32.mrb[27].mxu1 }
 0x9d9   : > { %v18814_v55 = vmax.f32 %v8679_v52, %v8828_v48 }
 0x9da   : > { %v8829_v33 = vrot.slane %v8681_v42, 2  ;;  %v8627_v3 = vadd.f32 %v18452_v21, %v8565_v32 }
 0x9db   : > { %v8456_v31 = vpop.f32.mrb[28].mxu1  ;;  %v12725_v6 = vpack.i.bf16 %v18814_v55, %v18809_v36 }
 0x9dc   : > { %v8830_v53 = vsel %vm1570_vm5, %v8827_v60, %v8829_v33  ;;  %v8682_v16 = vmax.f32 %v8627_v3, 0.0  ;;  %v8566_v39 = vadd.f32 %v8456_v31, %v21727_v29  ;;  %v8458_v7 = vpop.f32.mrb[29].mxu1  ;;  %v21731_v31 = vld [vmem:[#allocation38_spill] sm:$0xff] }
 0x9dd   : > { %12726 = vrot.lane.b32.xlu1 %v12725_v6, %s12973_s14  ;;  %v18822_v23 = vmax.f32 %v8680_v41, %v8830_v53  ;;  %v12735_v7 = vpack.i.bf16 %v18653_v27, %v18643_v28 }
 0x9de   : > { %v8831_v37 = vrot.slane %v8682_v16, 2  ;;  %v8628_v52 = vadd.f32 %v18452_v21, %v8566_v39 }
 0x9df   : > { %v8461_v0 = vpop.f32.mrb[30].mxu1 }
 0x9e0   : > { %v8832_v11 = vsel %vm1570_vm5, %v8829_v33, %v8831_v37  ;;  %v8683_v17 = vmax.f32 %v8628_v52, 0.0  ;;  %v8567_v60 = vadd.f32 %v8461_v0, %v21730_v35  ;;  %v8463_v9 = vpop.f32.mrb[31].mxu1 }
 0x9e1   : > { %12741 = vrot.lane.b32.xlu1 %v12740_v38, %s12973_s14  ;;  %v18830_v24 = vmax.f32 %v8681_v42, %v8832_v11  ;;  %v21732_v38 = vld [vmem:[#allocation130_spill] sm:$0xff] }
 0x9e2   : > { %v8833_v48 = vrot.slane %v8683_v17, 2  ;;  %v8629_v41 = vadd.f32 %v18452_v21, %v8567_v60 }
 0x9e3   : > { %v8466_v15 = vpop.f32.mrb[32].mxu1  ;;  %v12730_v32 = vpack.i.bf16 %v18830_v24, %v18822_v23 }
 0x9e4   : > { %v8834_v49 = vsel %vm1570_vm5, %v8831_v37, %v8833_v48  ;;  %v8684_v3 = vmax.f32 %v8629_v41, 0.0  ;;  %v8568_v33 = vadd.f32 %v8466_v15, %v21731_v31  ;;  %v8468_v6 = vpop.f32.mrb[33].mxu1 }
 0x9e5   : > { %12731 = vrot.lane.b32.xlu0 %v12730_v32, %s12973_s14  ;;  %v18838_v53 = vmax.f32 %v8682_v16, %v8834_v49  ;;  %v21733_v49 = vld [vmem:[#allocation131_spill] sm:$0xff] }
 0x9e6   : > { %v8835_v29 = vrot.slane %v8684_v3, 2  ;;  %v8630_v42 = vadd.f32 %v18452_v21, %v8568_v33 }
 0x9e7   : > { %v8471_v39 = vpop.f32.mrb[34].mxu1 }
 0x9e8   : > { %v8836_v52 = vsel %vm1570_vm5, %v8833_v48, %v8835_v29  ;;  %v8685_v0 = vmax.f32 %v8630_v42, 0.0  ;;  %v8569_v37 = vadd.f32 %v8471_v39, %v21732_v38  ;;  %v8473_v11 = vpop.f32.mrb[35].mxu1  ;;  %v12750_v39 = vpack.i.bf16 %v18668_v22, %v18663_v40  ;;  %v21735_v38 = vld [vmem:[#allocation132_spill] sm:$0xff] }
 0x9e9   : > { %12736 = vrot.lane.b32.xlu0 %v12735_v7, %s12973_s14  ;;  %v18846_v35 = vmax.f32 %v8683_v17, %v8836_v52 }
 0x9ea   : > { %v8837_v60 = vrot.slane %v8685_v0, 2  ;;  %v8631_v16 = vadd.f32 %v18452_v21, %v8569_v37 }
 0x9eb   : > { %v8476_v9 = vpop.f32.mrb[36].mxu1  ;;  %v12745_v41 = vpack.i.bf16 %v18846_v35, %v18838_v53 }
 0x9ec   : > { %v8838_v15 = vsel %vm1570_vm5, %v8835_v29, %v8837_v60  ;;  %v8686_v32 = vmax.f32 %v8631_v16, 0.0  ;;  %v8570_v48 = vadd.f32 %v8476_v9, %v21733_v49  ;;  %v8478_v31 = vpop.f32.mrb[37].mxu1 }
 0x9ed   : > { %12746 = vrot.lane.b32.xlu1 %v12745_v41, %s12973_s14  ;;  %v18854_v33 = vmax.f32 %v8684_v3, %v8838_v15 }
 0x9ee   : > { %v8839_v6 = vrot.slane %v8686_v32, 2  ;;  %v8632_v17 = vadd.f32 %v18452_v21, %v8570_v48  ;;  %v21736_v48 = vld [vmem:[#allocation133_spill] sm:$0xff] }
 0x9ef   : > { %21734 = vst [vmem:[#allocation147_spill] sm:$0xff] %v18854_v33  ;;  %v8481_v42 = vpop.f32.mrb[38].mxu1 }
 0x9f0   : > { %v8840_v7 = vsel %vm1570_vm5, %v8837_v60, %v8839_v6  ;;  %v8687_v52 = vmax.f32 %v8632_v17, 0.0  ;;  %v8571_v29 = vadd.f32 %v8481_v42, %v21735_v38  ;;  %v8483_v37 = vpop.f32.mrb[39].mxu1 }
 0x9f1   : > { %12751 = vrot.lane.b32.xlu1 %v12750_v39, %s12973_s14  ;;  %v18862_v11 = vmax.f32 %v8685_v0, %v8840_v7  ;;  %v21738_v7 = vld [vmem:[#allocation143_spill] sm:$0xff] }
 0x9f2   : > { %v8841_v16 = vrot.slane %v8687_v52, 2  ;;  %v8633_v3 = vadd.f32 %v18452_v21, %v8571_v29  ;;  %v12760_v38 = vpack.i.bf16 %v21738_v7, %v18633_v19  ;;  %v21740_v19 = vld [vmem:[#allocation135_spill] sm:$0xff] }
 0x9f3   : > { %v8486_v9 = vpop.f32.mrb[40].mxu1  ;;  %v12755_v41 = vpack.i.bf16 %v18862_v11, %v18854_v33  ;;  %v21739_v33 = vld [vmem:[#allocation134_spill] sm:$0xff] }
 0x9f4   : > { %v8842_v15 = vsel %vm1570_vm5, %v8839_v6, %v8841_v16  ;;  %v8688_v49 = vmax.f32 %v8633_v3, 0.0  ;;  %v8572_v60 = vadd.f32 %v8486_v9, %v21736_v48  ;;  %v8488_v31 = vpop.f32.mrb[41].mxu1 }
 0x9f5   : > { %12756 = vrot.lane.b32.xlu0 %v12755_v41, %s12973_s14  ;;  %v18870_v17 = vmax.f32 %v8686_v32, %v8842_v15 }
 0x9f6   : > { %v8843_v42 = vrot.slane %v8688_v49, 2  ;;  %v8634_v0 = vadd.f32 %v18452_v21, %v8572_v60 }
 0x9f7   : > { %21737 = vst [vmem:[#allocation161_spill] sm:$0xff] %v18870_v17  ;;  %v8491_v39 = vpop.f32.mrb[42].mxu1 }
 0x9f8   : > { %v8844_v29 = vsel %vm1570_vm5, %v8841_v16, %v8843_v42  ;;  %v8689_v37 = vmax.f32 %v8634_v0, 0.0  ;;  %v8573_v6 = vadd.f32 %v8491_v39, %v21739_v33  ;;  %v8493_v3 = vpop.f32.mrb[43].mxu1 }
 0x9f9   : > { %12761 = vrot.lane.b32.xlu0 %v12760_v38, %s12973_s14  ;;  %v18878_v9 = vmax.f32 %v8687_v52, %v8844_v29  ;;  %v12780_v29 = vpack.i.bf16 %v18658_v13, %v18651_v4  ;;  %v21743_v13 = vld [vmem:[#allocation137_spill] sm:$0xff] }
 0x9fa   : > { %v8845_v41 = vrot.slane %v8689_v37, 2  ;;  %v8635_v32 = vadd.f32 %v18452_v21, %v8573_v6 }
 0x9fb   : > { %v8496_v15 = vpop.f32.mrb[44].mxu1  ;;  %v12765_v48 = vpack.i.bf16 %v18878_v9, %v18870_v17  ;;  %v21742_v17 = vld [vmem:[#allocation136_spill] sm:$0xff] }
 0x9fc   : > { %v8846_v60 = vsel %vm1570_vm5, %v8843_v42, %v8845_v41  ;;  %v8690_v31 = vmax.f32 %v8635_v32, 0.0  ;;  %v8574_v16 = vadd.f32 %v8496_v15, %v21740_v19  ;;  %v8498_v0 = vpop.f32.mrb[45].mxu1 }
 0x9fd   : > { %12766 = vrot.lane.b32.xlu1 %v12765_v48, %s12973_s14  ;;  %v18886_v33 = vmax.f32 %v8688_v49, %v8846_v60 }
 0x9fe   : > { %v8847_v39 = vrot.slane %v8690_v31, 2  ;;  %v8636_v52 = vadd.f32 %v18452_v21, %v8574_v16 }
 0x9ff   : > { %21741 = vst [vmem:[#allocation148_spill] sm:$0xff] %v18886_v33  ;;  %v8501_v38 = vpop.f32.mrb[46].mxu1 }
 0xa00   : > { %v8848_v6 = vsel %vm1570_vm5, %v8845_v41, %v8847_v39  ;;  %v8691_v3 = vmax.f32 %v8636_v52, 0.0  ;;  %v8575_v42 = vadd.f32 %v8501_v38, %v21742_v17  ;;  %v8503_v32 = vpop.f32.mrb[47].mxu1 }
 0xa01   : > { %12781 = vrot.lane.b32.xlu1 %v12780_v29, %s12973_s14  ;;  %v18894_v19 = vmax.f32 %v8689_v37, %v8848_v6  ;;  %v12775_v6 = vpack.i.bf16 %v18693_v34, %v18678_v18  ;;  %v21746_v18 = vld [vmem:[#allocation139_spill] sm:$0xff] }
 0xa02   : > { %v8849_v15 = vrot.slane %v8691_v3, 2  ;;  %v8637_v49 = vadd.f32 %v18452_v21, %v8575_v42 }
 0xa03   : > { %v8506_v48 = vpop.f32.mrb[48].mxu1  ;;  %v12770_v60 = vpack.i.bf16 %v18894_v19, %v18886_v33  ;;  %v21745_v33 = vld [vmem:[#allocation138_spill] sm:$0xff] }
 0xa04   : > { %v8850_v16 = vsel %vm1570_vm5, %v8847_v39, %v8849_v15  ;;  %v8692_v0 = vmax.f32 %v8637_v49, 0.0  ;;  %v8576_v41 = vadd.f32 %v8506_v48, %v21743_v13  ;;  %v8508_v52 = vpop.f32.mrb[49].mxu1 }
 0xa05   : > { %12771 = vrot.lane.b32.xlu0 %v12770_v60, %s12973_s14  ;;  %v18902_v17 = vmax.f32 %v8690_v31, %v8850_v16 }
 0xa06   : > { %v8851_v38 = vrot.slane %v8692_v0, 2  ;;  %v8638_v37 = vadd.f32 %v18452_v21, %v8576_v41 }
 0xa07   : > { %21744 = vst [vmem:[#allocation48_spill] sm:$0xff] %v18902_v17  ;;  %v8511_v29 = vpop.f32.mrb[50].mxu1 }
 0xa08   : > { %v8852_v42 = vsel %vm1570_vm5, %v8849_v15, %v8851_v38  ;;  %v8693_v32 = vmax.f32 %v8638_v37, 0.0  ;;  %v8577_v39 = vadd.f32 %v8511_v29, %v21745_v33  ;;  %v8513_v49 = vpop.f32.mrb[51].mxu1 }
 0xa09   : > { %12776 = vrot.lane.b32.xlu0 %v12775_v6, %s12973_s14  ;;  %v18910_v13 = vmax.f32 %v8691_v3, %v8852_v42  ;;  %v12790_v42 = vpack.i.bf16 %v18728_v51, %v18713_v45 }
 0xa0a   : > { %v8853_v48 = vrot.slane %v8693_v32, 2  ;;  %v8639_v31 = vadd.f32 %v18452_v21, %v8577_v39 }
 0xa0b   : > { %v8516_v60 = vpop.f32.mrb[52].mxu1  ;;  %v12785_v16 = vpack.i.bf16 %v18910_v13, %v18902_v17  ;;  %v21747_v17 = vld [vmem:[#allocation140_spill] sm:$0xff] }
 0xa0c   : > { %v8854_v41 = vsel %vm1570_vm5, %v8851_v38, %v8853_v48  ;;  %v8694_v52 = vmax.f32 %v8639_v31, 0.0  ;;  %v8578_v15 = vadd.f32 %v8516_v60, %v21746_v18  ;;  %v8518_v37 = vpop.f32.mrb[53].mxu1 }
 0xa0d   : > { %12786 = vrot.lane.b32.xlu1 %v12785_v16, %s12973_s14  ;;  %v18918_v33 = vmax.f32 %v8692_v0, %v8854_v41  ;;  %v12805_v16 = vpack.i.bf16 %v18748_v47, %v18743_v59  ;;  %v12810_v37 = vpack.i.bf16 %v18698_v2, %v18691_v8 }
 0xa0e   : > { %v8855_v29 = vrot.slane %v8694_v52, 2  ;;  %v8640_v3 = vadd.f32 %v18452_v21, %v8578_v15 }
 0xa0f   : > { %v8521_v6 = vpop.f32.mrb[54].mxu1 }
 0xa10   : > { %v8856_v39 = vsel %vm1570_vm5, %v8853_v48, %v8855_v29  ;;  %v8695_v49 = vmax.f32 %v8640_v3, 0.0  ;;  %v8579_v38 = vadd.f32 %v8521_v6, %v21747_v17  ;;  %v8523_v31 = vpop.f32.mrb[55].mxu1  ;;  %v18937_v17 = vld [vmem:[%s20381_s5 + $0x18] sm:$0xff] }
 0xa11   : > { %12791 = vrot.lane.b32.xlu1 %v12790_v42, %s12973_s14  ;;  %v18926_v18 = vmax.f32 %v8693_v32, %v8856_v39  ;;  %11344 = vmatprep.mubr.msk.f32.mxu1 %vm9254_vm11, %v18937_v17  ;;  %v12830_v42 = vpack.i.bf16 %v18723_v50, %v18718_v61  ;;  %v12815_v39 = vpack.i.bf16 %v18758_v25, %v18753_v12  ;;  %v18974_v31 = vld [vmem:[%s20381_s5 + $0x8] sm:$0xff] }
 0xa12   : > { %v8857_v60 = vrot.slane %v8695_v49, 2  ;;  %v8641_v0 = vadd.f32 %v18452_v21, %v8579_v38  ;;  %v12825_v38 = vpack.i.bf16 %v18768_v30, %v18763_v1  ;;  %21749 = vst [vmem:[#allocation52_spill] sm:$0xff] %v18974_v31  ;;  %9328 = vmatprep.mubr.f32.mxu0 %v18974_v31 }
 0xa13   : > { %v12795_v41 = vpack.i.bf16 %v18926_v18, %v18918_v33 }
 0xa14   : > { %v8696_v15 = vmax.f32 %v8641_v0, 0.0  ;;  %v8858_v48 = vsel %vm1570_vm5, %v8855_v29, %v8857_v60  ;;  %v12800_v29 = vpack.i.bf16 %v18683_v43, %v18673_v58  ;;  %v12835_v0 = vpack.i.bf16 %v18778_v5, %v18773_v54 }
 0xa15   : > { %12806 = vrot.lane.b32.xlu1 %v12805_v16, %s12973_s14  ;;  %12796 = vrot.lane.b32.xlu0 %v12795_v41, %s12973_s14  ;;  %v18941_v21 = vmax.f32 %v8694_v52, %v8858_v48  ;;  %v12820_v52 = vpack.i.bf16 %v18708_v62, %v18703_v10 }
 0xa16   : > { %v8859_v32 = vrot.slane %v8696_v15, 2 }
 0xa18   : > { %v8860_v3 = vsel %vm1570_vm5, %v8857_v60, %v8859_v32  ;;  %v18976_v60 = vmax.f32 %v8696_v15, %v8859_v32 }
 0xa19   : > { %12811 = vrot.lane.b32.xlu1 %v12810_v37, %s12973_s14  ;;  %12801 = vrot.lane.b32.xlu0 %v12800_v29, %s12973_s14  ;;  %v18952_v6 = vmax.f32 %v8695_v49, %v8860_v3  ;;  %v12840_v49 = vpack.i.bf16 %v18738_v14, %v18733_v56  ;;  %v21753_v3 = vmov 0.0|0.0  }
 0xa1a   : > { %21750 = vst [vmem:[#allocation150_spill] sm:$0xff] %v18976_v60 }
 0xa1b   : > { %21748 = vst [vmem:[#allocation149_spill] sm:$0xff] %v18952_v6 }
 0xa1d   : > { %12821 = vrot.lane.b32.xlu1 %v12820_v52, %s12973_s14  ;;  %9130 = vrot.lane.b32.xlu0 %v18941_v21, %s12973_s14 }
 0xa21   : > { %12831 = vrot.lane.b32.xlu1 %v12830_v42, %s12973_s14  ;;  %12816 = vrot.lane.b32.xlu0 %v12815_v39, %s12973_s14 }
 0xa25   : > { %12841 = vrot.lane.b32.xlu1 %v12840_v49, %s12973_s14  ;;  %12826 = vrot.lane.b32.xlu0 %v12825_v38, %s12973_s14 }
 0xa29   : > { %12836 = vrot.lane.b32.xlu0 %v12835_v0, %s12973_s14  ;;  %9134 = vrot.lane.b32.xlu1 %v18976_v60, %s12973_s14 }
 0xa2d   : > { %9132 = vrot.lane.b32.xlu0 %v18952_v6, %s12973_s14  ;;  %s272_s14 = scalar_lea.vmem [#allocation2], %s10666_s21 }
 0xa2e   : > { %s10600_s22 = sshll.u32 %s272_s14, 4  ;;  %s20328_s22 = int_to_ptr.vmem [resolvable:$true] %s10600_s22 }
 0xa2f   : > { %s12906_s15 = scalar_lea.vmem %s20328_s22, 512  ;;  %p12913_p0 = scmp.lt.s32.totalorder %s20328_s22, %s12911_s16 }
 0xa30   : > { %p12907_p11 = scmp.ne.s32.totalorder %s20328_s22, %s12906_s15  ;;  %p12914_p1 = scmp.lt.s32.totalorder %s12912_s17, %s12906_s15 }
 0xa32   : > { %p12908_p12 = pnand %p12907_p11, %p13055_p5  ;;  %p12915_p2 = por %p12914_p1, %p12913_p0 }
 0xa34   : > { %p12909_p13 = pneg %p12908_p12 }
 0xa36   : > { %p12916_p3 = pnand %p12915_p2, %p12909_p13 }
 0xa3f   : > { %v12717_v16 = vpop.permute.xlu1 %12716 }
 0xa40   : > { %v12719_v41 = vunpack.i.h.bf16 %v12717_v16  ;;  %v12718_v48 = vunpack.i.l.bf16 %v12717_v16 }
 0xa42   : > { %v18987_v37 = vmax.f32 %v18788_v44, %v12719_v41  ;;  %v18990_v15 = vmax.f32 %v18783_v57, %v12718_v48 }
 0xa44   : > { %21751 = vst [vmem:[#allocation162_spill] sm:$0xff] %v18987_v37  ;;  %21752 = vst [vmem:[#allocation151_spill] sm:$0xff] %v18990_v15  ;;  %v11850_v32 = vpack.c.bf16 %v18987_v37, %v18990_v15  ;;  %v20717_v44 = vrot.slane %v18987_v37, 4  ;;  %v21793_v54 = vrot.slane %v18987_v37, 4 }
 0xa46   : > { %11851 = vmatpush1.bf16.msra.mxu1 %v11850_v32 }
 0xa47   : > { %v12722_v29 = vpop.permute.xlu0 %12721  ;;  %11852 = vmatprep.subr.bf16.mxu1 %v21753_v3 }
 0xa48   : > { %v12724_v52 = vunpack.i.h.bf16 %v12722_v29  ;;  %v12723_v42 = vunpack.i.l.bf16 %v12722_v29 }
 0xa4a   : > { %v18996_v39 = vmax.f32 %v18801_v63, %v12724_v52  ;;  %v18999_v49 = vmax.f32 %v18796_v20, %v12723_v42 }
 0xa4c   : > { %21754 = vst [vmem:[#allocation152_spill] sm:$0xff] %v18996_v39  ;;  %21755 = vst [vmem:[#allocation163_spill] sm:$0xff] %v18999_v49  ;;  %v9568_v57 = vrot.slane %v18996_v39, 4  ;;  %v9566_v38 = vrot.slane %v18999_v49, 4  ;;  %v11853_v0 = vpack.c.bf16 %v18996_v39, %v18999_v49  ;;  %v21784_v49 = vld [vmem:[#allocation148_spill] sm:$0xff] }
 0xa4e   : > { %11854 = vmatpush1.bf16.msra.mxu1 %v11853_v0  ;;  %v19009_v16 = vsel %vm634_vm0, %v20717_v44, %v9566_v38  ;;  %v19012_v63 = vsel %vm634_vm0, %v9566_v38, %v9568_v57 }
 0xa4f   : > { %21756 = vst [vmem:[#allocation153_spill] sm:$0xff] %v19009_v16  ;;  %21757 = vst [vmem:[#allocation39_spill] sm:$0xff] %v19012_v63  ;;  %v12727_v20 = vpop.permute.xlu1 %12726  ;;  %11855 = vmatprep.subr.bf16.mxu1 %v21753_v3 }
 0xa50   : > { %v12729_v41 = vunpack.i.h.bf16 %v12727_v20  ;;  %v12728_v48 = vunpack.i.l.bf16 %v12727_v20 }
 0xa52   : > { %v19016_v32 = vmax.f32 %v18814_v55, %v12729_v41  ;;  %v19019_v29 = vmax.f32 %v18809_v36, %v12728_v48 }
 0xa53   : > { %v12742_v52 = vpop.permute.xlu1 %12741 }
 0xa54   : > { %21758 = vst [vmem:[#allocation154_spill] sm:$0xff] %v19016_v32  ;;  %21759 = vst [vmem:[#allocation36_spill] sm:$0xff] %v19019_v29  ;;  %v20722_v42 = vrot.slane %v19016_v32, 4  ;;  %v9570_v0 = vrot.slane %v19019_v29, 4  ;;  %v12744_v44 = vunpack.i.h.bf16 %v12742_v52  ;;  %v12743_v60 = vunpack.i.l.bf16 %v12742_v52 }
 0xa55   : > { %v11856_v38 = vpack.c.bf16 %v19016_v32, %v19019_v29 }
 0xa56   : > { %v19026_v31 = vmax.f32 %v21729_v26, %v12744_v44  ;;  %v9191_v20 = vmax.f32 %v21728_v46, %v12743_v60  ;;  %v19030_v55 = vsel %vm634_vm0, %v9568_v57, %v9570_v0  ;;  %v19035_v36 = vsel %vm634_vm0, %v9570_v0, %v20722_v42 }
 0xa57   : > { %21761 = vst [vmem:[#allocation155_spill] sm:$0xff] %v19030_v55  ;;  %21762 = vst [vmem:[#allocation165_spill] sm:$0xff] %v19035_v36  ;;  %11857 = vmatpush1.bf16.msra.mxu1 %v11856_v38  ;;  %v12732_v41 = vpop.permute.xlu0 %12731 }
 0xa58   : > { %21760 = vst [vmem:[#allocation164_spill] sm:$0xff] %v19026_v31  ;;  %v20724_v48 = vrot.slane %v19026_v31, 4  ;;  %v9499_v52 = vrot.slane %v9191_v20, 4  ;;  %v12734_v6 = vunpack.i.h.bf16 %v12732_v41  ;;  %11858 = vmatprep.subr.bf16.mxu1 %v21753_v3  ;;  %v12733_v26 = vunpack.i.l.bf16 %v12732_v41 }
 0xa5a   : > { %v19040_v44 = vmax.f32 %v18830_v24, %v12734_v6  ;;  %v19045_v46 = vsel %vm634_vm0, %v9499_v52, %v20724_v48  ;;  %v19048_v60 = vmax.f32 %v18822_v23, %v12733_v26 }
 0xa5b   : > { %21764 = vst [vmem:[#allocation157_spill] sm:$0xff] %v19045_v46  ;;  %v12737_v57 = vpop.permute.xlu0 %12736 }
 0xa5c   : > { %21763 = vst [vmem:[#allocation156_spill] sm:$0xff] %v19040_v44  ;;  %21765 = vst [vmem:[#allocation51_spill] sm:$0xff] %v19048_v60  ;;  %v12739_v0 = vunpack.i.h.bf16 %v12737_v57  ;;  %v12738_v38 = vunpack.i.l.bf16 %v12737_v57  ;;  %v11859_v42 = vpack.c.bf16 %v19040_v44, %v19048_v60 }
 0xa5e   : > { %v19053_v56 = vmax.f32 %v18653_v27, %v12739_v0  ;;  %v19056_v24 = vmax.f32 %v18643_v28, %v12738_v38  ;;  %11860 = vmatpush1.bf16.msra.mxu1 %v11859_v42  ;;  %v11819_v27 = vpack.c.bf16 %v19026_v31, %v9191_v20 }
 0xa5f   : > { %v12747_v6 = vpop.permute.xlu1 %12746  ;;  %11861 = vmatprep.subr.bf16.mxu1 %v21753_v3 }
 0xa60   : > { %21766 = vst [vmem:[#allocation166_spill] sm:$0xff] %v19053_v56  ;;  %21767 = vst [vmem:[#allocation53_spill] sm:$0xff] %v19056_v24  ;;  %v12749_v52 = vunpack.i.h.bf16 %v12747_v6  ;;  %v12748_v23 = vunpack.i.l.bf16 %v12747_v6  ;;  %v11817_v26 = vpack.c.bf16 %v19053_v56, %v19056_v24 }
 0xa62   : > { %v19067_v28 = vmax.f32 %v18846_v35, %v12749_v52  ;;  %v19070_v42 = vmax.f32 %v18838_v53, %v12748_v23  ;;  %11818 = vmatprep.subr.bf16.mxu0 %v11817_v26 }
 0xa63   : > { %v12752_v0 = vpop.permute.xlu1 %12751  ;;  %11820 = vmatpush3.bf16.msra.mxu0 %v11819_v27  ;;  %v21776_v27 = vld [vmem:[#allocation142_spill] sm:$0xff] }
 0xa64   : > { %21768 = vst [vmem:[#allocation158_spill] sm:$0xff] %v19067_v28  ;;  %21769 = vst [vmem:[#allocation54_spill] sm:$0xff] %v19070_v42  ;;  %v12754_v38 = vunpack.i.h.bf16 %v12752_v0  ;;  %v12753_v6 = vunpack.i.l.bf16 %v12752_v0  ;;  %v11862_v41 = vpack.c.bf16 %v19067_v28, %v19070_v42 }
 0xa66   : > { %v19077_v57 = vmax.f32 %v18668_v22, %v12754_v38  ;;  %v19080_v35 = vmax.f32 %v18663_v40, %v12753_v6  ;;  %11863 = vmatpush1.bf16.msra.mxu1 %v11862_v41  ;;  %v21773_v40 = vld [vmem:[#allocation147_spill] sm:$0xff] }
 0xa67   : > { %v12757_v53 = vpop.permute.xlu0 %12756  ;;  %11864 = vmatprep.subr.bf16.mxu1 %v21753_v3 }
 0xa68   : > { %21770 = vst [vmem:[#allocation55_spill] sm:$0xff] %v19077_v57  ;;  %21771 = vst [vmem:[#allocation159_spill] sm:$0xff] %v19080_v35  ;;  %v12759_v20 = vunpack.i.h.bf16 %v12757_v53  ;;  %v12758_v52 = vunpack.i.l.bf16 %v12757_v53  ;;  %v11821_v23 = vpack.c.bf16 %v19077_v57, %v19080_v35 }
 0xa6a   : > { %v19090_v22 = vmax.f32 %v18862_v11, %v12759_v20  ;;  %v19093_v0 = vmax.f32 %v21773_v40, %v12758_v52  ;;  %11822 = vmatprep.subr.bf16.mxu0 %v11821_v23 }
 0xa6b   : > { %v12762_v41 = vpop.permute.xlu0 %12761 }
 0xa6c   : > { %21772 = vst [vmem:[#allocation57_spill] sm:$0xff] %v19090_v22  ;;  %21774 = vst [vmem:[#allocation58_spill] sm:$0xff] %v19093_v0  ;;  %v12764_v38 = vunpack.i.h.bf16 %v12762_v41  ;;  %v12763_v6 = vunpack.i.l.bf16 %v12762_v41  ;;  %v11865_v53 = vpack.c.bf16 %v19090_v22, %v19093_v0 }
 0xa6e   : > { %v19100_v26 = vmax.f32 %v21738_v7, %v12764_v38  ;;  %v19103_v39 = vmax.f32 %v21776_v27, %v12763_v6  ;;  %11866 = vmatpush1.bf16.msra.mxu1 %v11865_v53  ;;  %v21779_v38 = vld [vmem:[#allocation161_spill] sm:$0xff]  ;;  %v21781_v6 = vrot.slane %v19026_v31, 4 }
 0xa6f   : > { %v12767_v11 = vpop.permute.xlu1 %12766  ;;  %11867 = vmatprep.subr.bf16.mxu1 %v21753_v3 }
 0xa70   : > { %21775 = vst [vmem:[#allocation160_spill] sm:$0xff] %v19100_v26  ;;  %21777 = vst [vmem:[#allocation59_spill] sm:$0xff] %v19103_v39  ;;  %v20727_v20 = vrot.slane %v19103_v39, 4  ;;  %v12769_v52 = vunpack.i.h.bf16 %v12767_v11  ;;  %v12768_v23 = vunpack.i.l.bf16 %v12767_v11  ;;  %v11823_v40 = vpack.c.bf16 %v19100_v26, %v19103_v39 }
 0xa72   : > { %v19112_v7 = vmax.f32 %v18878_v9, %v12769_v52  ;;  %v19115_v27 = vmax.f32 %v21779_v38, %v12768_v23  ;;  %v19122_v53 = vsel %vm634_vm0, %v21781_v6, %v20727_v20  ;;  %11824 = vmatpush3.bf16.msra.mxu0 %v11823_v40 }
 0xa73   : > { %21782 = vst [vmem:[#allocation62_spill] sm:$0xff] %v19122_v53  ;;  %v12782_v11 = vpop.permute.xlu1 %12781  ;;  %v21785_v53 = vld [vmem:[#allocation34_spill] sm:$0xff] }
 0xa74   : > { %21778 = vst [vmem:[#allocation60_spill] sm:$0xff] %v19112_v7  ;;  %21780 = vst [vmem:[#allocation61_spill] sm:$0xff] %v19115_v27  ;;  %v12783_v29 = vunpack.i.l.bf16 %v12782_v11  ;;  %v11868_v9 = vpack.c.bf16 %v19112_v7, %v19115_v27  ;;  %v12784_v48 = vunpack.i.h.bf16 %v12782_v11 }
 0xa76   : > { %v19131_v23 = vmax.f32 %v18651_v4, %v12783_v29  ;;  %11869 = vmatpush1.bf16.msra.mxu1 %v11868_v9  ;;  %v19148_v40 = vmax.f32 %v21785_v53, %v12784_v48  ;;  %v9576_v9 = vrot.slane %v19040_v44, 4  ;;  %v9578_v44 = vrot.slane %v19070_v42, 4 }
 0xa77   : > { %v12772_v38 = vpop.permute.xlu0 %12771  ;;  %11870 = vmatprep.subr.bf16.mxu1 %v21753_v3 }
 0xa78   : > { %21783 = vst [vmem:[#allocation63_spill] sm:$0xff] %v19131_v23  ;;  %v12774_v41 = vunpack.i.h.bf16 %v12772_v38  ;;  %v12773_v6 = vunpack.i.l.bf16 %v12772_v38  ;;  %v9574_v38 = vrot.slane %v19048_v60, 4 }
 0xa7a   : > { %v19137_v20 = vmax.f32 %v18894_v19, %v12774_v41  ;;  %v19140_v31 = vmax.f32 %v21784_v49, %v12773_v6  ;;  %v21787_v41 = vld [vmem:[#allocation144_spill] sm:$0xff] }
 0xa7b   : > { %v12777_v52 = vpop.permute.xlu0 %12776 }
 0xa7c   : > { %v12779_v46 = vunpack.i.h.bf16 %v12777_v52  ;;  %v12778_v4 = vunpack.i.l.bf16 %v12777_v52  ;;  %v11871_v29 = vpack.c.bf16 %v19137_v20, %v19140_v31 }
 0xa7e   : > { %v19151_v19 = vmax.f32 %v18693_v34, %v12779_v46  ;;  %v19154_v49 = vmax.f32 %v21787_v41, %v12778_v4  ;;  %11872 = vmatpush1.bf16.msra.mxu1 %v11871_v29  ;;  %v21790_v34 = vld [vmem:[#allocation48_spill] sm:$0xff]  ;;  %v11827_v4 = vpack.c.bf16 %v19148_v40, %v19131_v23  ;;  %v21791_v29 = vrot.slane %v19016_v32, 4 }
 0xa7f   : > { %v12787_v11 = vpop.permute.xlu1 %12786  ;;  %11873 = vmatprep.subr.bf16.mxu1 %v21753_v3 }
 0xa80   : > { %21786 = vst [vmem:[#allocation167_spill] sm:$0xff] %v19151_v19  ;;  %21788 = vst [vmem:[#allocation64_spill] sm:$0xff] %v19154_v49  ;;  %v12789_v52 = vunpack.i.h.bf16 %v12787_v11  ;;  %v12788_v6 = vunpack.i.l.bf16 %v12787_v11  ;;  %v11825_v48 = vpack.c.bf16 %v19151_v19, %v19154_v49  ;;  %v19172_v41 = vsel %vm634_vm0, %v21791_v29, %v9574_v38 }
 0xa81   : > { %21792 = vst [vmem:[#allocation66_spill] sm:$0xff] %v19172_v41  ;;  %v9532_v11 = vrot.slane %v19053_v56, 4  ;;  %v9582_v29 = vrot.slane %v19093_v0, 4 }
 0xa82   : > { %v19162_v53 = vmax.f32 %v18910_v13, %v12789_v52  ;;  %v19165_v46 = vmax.f32 %v21790_v34, %v12788_v6  ;;  %11826 = vmatprep.subr.bf16.mxu0 %v11825_v48  ;;  %v9534_v34 = vrot.slane %v19080_v35, 4  ;;  %v21794_v48 = vrot.slane %v18990_v15, 4 }
 0xa83   : > { %v12792_v13 = vpop.permute.xlu1 %12791  ;;  %11828 = vmatpush3.bf16.msra.mxu0 %v11827_v4  ;;  %v9580_v6 = vrot.slane %v19067_v28, 4  ;;  %v19207_v52 = vsel %vm634_vm0, %v9574_v38, %v9576_v9 }
 0xa84   : > { %21789 = vst [vmem:[#allocation65_spill] sm:$0xff] %v19162_v53  ;;  %v12794_v32 = vunpack.i.h.bf16 %v12792_v13  ;;  %v12793_v60 = vunpack.i.l.bf16 %v12792_v13  ;;  %v11874_v56 = vpack.c.bf16 %v19162_v53, %v19165_v46  ;;  %v19189_v42 = vsel %vm634_vm0, %v21794_v48, %v21793_v54  ;;  %21797 = vst [vmem:[#allocation70_spill] sm:$0xff] %v19207_v52 }
 0xa85   : > { %21795 = vst [vmem:[#allocation68_spill] sm:$0xff] %v19189_v42  ;;  %v21802_v48 = vrot.slane %v19077_v57, 4  ;;  %v9504_v52 = vrot.slane %v19100_v26, 4 }
 0xa86   : > { %v19195_v4 = vmax.f32 %v18728_v51, %v12794_v32  ;;  %v19198_v13 = vmax.f32 %v18713_v45, %v12793_v60  ;;  %11875 = vmatpush1.bf16.msra.mxu1 %v11874_v56  ;;  %v19210_v51 = vsel %vm634_vm0, %v9576_v9, %v9578_v44  ;;  %v9584_v45 = vrot.slane %v19090_v22, 4 }
 0xa87   : > { %v12807_v37 = vpop.permute.xlu1 %12806  ;;  %v12797_v35 = vpop.permute.xlu0 %12796  ;;  %21798 = vst [vmem:[#allocation168_spill] sm:$0xff] %v19210_v51  ;;  %11876 = vmatprep.subr.bf16.mxu1 %v21753_v3  ;;  %v21799_v56 = vrot.slane %v19056_v24, 4  ;;  %v19220_v60 = vsel %vm634_vm0, %v9532_v11, %v9534_v34  ;;  %v19225_v38 = vsel %vm634_vm0, %v9534_v34, %v21802_v48  ;;  %v19230_v22 = vsel %vm634_vm0, %v9580_v6, %v9582_v29 }
 0xa88   : > { %21796 = vst [vmem:[#allocation69_spill] sm:$0xff] %v19198_v13  ;;  %21801 = vst [vmem:[#allocation74_spill] sm:$0xff] %v19220_v60  ;;  %v12799_v54 = vunpack.i.h.bf16 %v12797_v35  ;;  %v12798_v9 = vunpack.i.l.bf16 %v12797_v35  ;;  %v11829_v0 = vpack.c.bf16 %v19195_v4, %v19198_v13  ;;  %v12809_v28 = vunpack.i.h.bf16 %v12807_v37 }
 0xa89   : > { %v19217_v32 = vsel %vm634_vm0, %v21799_v56, %v9532_v11  ;;  %21803 = vst [vmem:[#allocation73_spill] sm:$0xff] %v19230_v22  ;;  %v12808_v15 = vunpack.i.l.bf16 %v12807_v37  ;;  %v19235_v11 = vsel %vm634_vm0, %v9578_v44, %v9580_v6  ;;  %v9586_v56 = vrot.slane %v19115_v27, 4 }
 0xa8a   : > { %21800 = vst [vmem:[#allocation72_spill] sm:$0xff] %v19217_v32  ;;  %21804 = vst [vmem:[#allocation75_spill] sm:$0xff] %v19235_v11  ;;  %v19238_v53 = vmax.f32 %v18926_v18, %v12799_v54  ;;  %v19241_v34 = vmax.f32 %v18918_v33, %v12798_v9  ;;  %11830 = vmatprep.subr.bf16.mxu0 %v11829_v0  ;;  %v9506_v44 = vrot.slane %v19131_v23, 4  ;;  %v9588_v18 = vrot.slane %v19112_v7, 4 }
 0xa8b   : > { %v12812_v35 = vpop.permute.xlu1 %12811  ;;  %v12802_v48 = vpop.permute.xlu0 %12801  ;;  %v19252_v6 = vsel %vm634_vm0, %v9582_v29, %v9584_v45  ;;  %v19256_v24 = vmax.f32 %v18748_v47, %v12809_v28  ;;  %v19259_v37 = vmax.f32 %v18743_v59, %v12808_v15  ;;  %v9538_v59 = vrot.slane %v19154_v49, 4 }
 0xa8c   : > { %21805 = vst [vmem:[#allocation76_spill] sm:$0xff] %v19252_v6  ;;  %v12814_v33 = vunpack.i.h.bf16 %v12812_v35  ;;  %v12813_v0 = vunpack.i.l.bf16 %v12812_v35  ;;  %v12804_v54 = vunpack.i.h.bf16 %v12802_v48  ;;  %v12803_v9 = vunpack.i.l.bf16 %v12802_v48 }
 0xa8d   : > { %21806 = vst [vmem:[#allocation77_spill] sm:$0xff] %v19256_v24  ;;  %v11877_v27 = vpack.c.bf16 %v19238_v53, %v19241_v34  ;;  %v19274_v15 = vsel %vm634_vm0, %v9584_v45, %v9586_v56  ;;  %v19277_v28 = vsel %vm634_vm0, %v9504_v52, %v9506_v44  ;;  %v11833_v47 = vpack.c.bf16 %v19256_v24, %v19259_v37 }
 0xa8e   : > { %v19266_v23 = vmax.f32 %v18683_v43, %v12804_v54  ;;  %v19269_v35 = vmax.f32 %v18673_v58, %v12803_v9  ;;  %21807 = vst [vmem:[#allocation78_spill] sm:$0xff] %v19274_v15  ;;  %21808 = vst [vmem:[#allocation80_spill] sm:$0xff] %v19277_v28  ;;  %v19280_v29 = vmax.f32 %v18698_v2, %v12814_v33  ;;  %v21811_v54 = vmov 0.0   ;;  %v19296_v2 = vld [vmem:[%s20381_s5 + $0x10] sm:$0xff] }
 0xa8f   : > { %v12822_v48 = vpop.permute.xlu1 %12821  ;;  %v9131_v26 = vpop.permute.xlu0 %9130  ;;  %11878 = vmatpush1.bf16.msra.mxu1 %v11877_v27  ;;  %v19283_v43 = vmax.f32 %v18691_v8, %v12813_v0  ;;  %21812 = vst [vmem:[#allocation84_spill] sm:$0xff] %v19296_v2  ;;  %v21813_v8 = vrot.slane %v19103_v39, 4  ;;  %v19308_v7 = vsel %vm634_vm0, %v9586_v56, %v9588_v18  ;;  %v21815_v49 = vrot.slane %v19148_v40, 4  ;;  %v19353_v39 = vld [vmem:[%s20381_s5 + $0x30] sm:$0xff] }
 0xa90   : > { %21809 = vst [vmem:[#allocation79_spill] sm:$0xff] %v19280_v29  ;;  %v19286_v58 = vmax.f32 %v18941_v21, %v9131_v26  ;;  %9379 = vmatprep.subr.mxu1 %v21811_v54  ;;  %v11831_v27 = vpack.c.bf16 %v19266_v23, %v19269_v35  ;;  %v12824_v9 = vunpack.i.h.bf16 %v12822_v48  ;;  %v12823_v45 = vunpack.i.l.bf16 %v12822_v48  ;;  %21814 = vst [vmem:[#allocation85_spill] sm:$0xff] %v19308_v7 }
 0xa91   : > { %v19301_v21 = vsel %vm634_vm0, %v21813_v8, %v9504_v52  ;;  %v19313_v54 = vsel %vm634_vm0, %v9506_v44, %v21815_v49  ;;  %v9540_v52 = vrot.slane %v19151_v19, 4  ;;  %v21817_v26 = vrot.slane %v19140_v31, 4 }
 0xa92   : > { %21810 = vst [vmem:[#allocation83_spill] sm:$0xff] %v19286_v58  ;;  %11832 = vmatpush3.bf16.msra.mxu0 %v11831_v27  ;;  %v21816_v27 = vrot.slane %v19077_v57, 4  ;;  %v9542_v49 = vrot.slane %v19198_v13, 4 }
 0xa93   : > { %v12832_v33 = vpop.permute.xlu1 %12831  ;;  %v12817_v0 = vpop.permute.xlu0 %12816  ;;  %11343 = vmatpush1.msk.msra.mxu1 %vm2322_vm6, %v19286_v58  ;;  %11834 = vmatprep.subr.bf16.mxu0 %v11833_v47  ;;  %v19328_v48 = vsel %vm634_vm0, %v9588_v18, %v21817_v26  ;;  %v11835_v47 = vpack.c.bf16 %v19280_v29, %v19283_v43  ;;  %v19342_v18 = vmax.f32 %v18708_v62, %v12824_v9 }
 0xa94   : > { %v19321_v8 = vsel %vm634_vm0, %v21816_v27, %v9538_v59  ;;  %21818 = vst [vmem:[#allocation87_spill] sm:$0xff] %v19328_v48  ;;  %11911 = vmatprep.subr.bf16.mxu1 %v21753_v3  ;;  %v12819_v44 = vunpack.i.h.bf16 %v12817_v0  ;;  %v12818_v19 = vunpack.i.l.bf16 %v12817_v0  ;;  %9404 = vmatmul.mubr.f32.vlgmr.msra.gmra.mrb[56].mxu1 %v19296_v2  ;;  %v19338_v27 = vld [vmem:[%s20381_s5 + $0x38] sm:$0xff]  ;;  %v19345_v26 = vmax.f32 %v18703_v10, %v12823_v45 }
 0xa95   : > { %21819 = vst [vmem:[#allocation8_spill] sm:$0xff] %v19342_v18  ;;  %v12834_v13 = vunpack.i.h.bf16 %v12832_v33  ;;  %v21821_v0 = vpack.c.bf16 %v19009_v16, %v19189_v42  ;;  %v12833_v57 = vunpack.i.l.bf16 %v12832_v33  ;;  %11345 = vmatprep.mubr.msk.f32.mxu1 %vm9254_vm11, %v19338_v27 }
 0xa96   : > { %21820 = vst [vmem:[#allocation6_spill] sm:$0xff] %v19345_v26  ;;  %v19356_v2 = vmax.f32 %v18758_v25, %v12819_v44  ;;  %v19359_v62 = vmax.f32 %v18753_v12, %v12818_v19  ;;  %11836 = vmatpush3.bf16.msra.mxu0 %v11835_v47  ;;  %v19368_v25 = vsel %vm634_vm0, %v9538_v59, %v9540_v52  ;;  %v9544_v12 = vrot.slane %v19195_v4, 4 }
 0xa97   : > { %11913 = vmatpush1.bf16.msra.mxu1 %v21821_v0  ;;  %v12842_v10 = vpop.permute.xlu1 %12841  ;;  %v12827_v9 = vpop.permute.xlu0 %12826  ;;  %v19374_v47 = vsel %vm634_vm0, %v9540_v52, %v9542_v49  ;;  %v19378_v45 = vmax.f32 %v18723_v50, %v12834_v13  ;;  %v21825_v59 = vpack.c.bf16 %v19030_v55, %v19012_v63  ;;  %v19391_v52 = vmax.f32 %v18718_v61, %v12833_v57 }
 0xa98   : > { %21822 = vst [vmem:[#allocation9_spill] sm:$0xff] %v19356_v2  ;;  %11914 = vmatprep.subr.bf16.mxu1 %v21753_v3  ;;  %v12844_v56 = vunpack.i.h.bf16 %v12842_v10  ;;  %v12829_v19 = vunpack.i.h.bf16 %v12827_v9  ;;  %v12828_v44 = vunpack.i.l.bf16 %v12827_v9  ;;  %21823 = vst [vmem:[#allocation10_spill] sm:$0xff] %v19374_v47  ;;  %9409 = vmatmul.mubr.f32.gmra.mrb[58].mxu1 %v19353_v39  ;;  %v11837_v0 = vpack.c.bf16 %v19356_v2, %v19359_v62 }
 0xa99   : > { %21824 = vst [vmem:[#allocation13_spill] sm:$0xff] %v19378_v45  ;;  %v11839_v9 = vpack.c.bf16 %v19342_v18, %v19345_v26  ;;  %21826 = vst [vmem:[#allocation15_spill] sm:$0xff] %v19391_v52  ;;  %v12843_v16 = vunpack.i.l.bf16 %v12842_v10  ;;  %11347 = vmatprep.mubr.msk.f32.mxu1 %vm9254_vm11, %v18937_v17  ;;  %v9548_v61 = vrot.slane %v19256_v24, 4  ;;  %v21828_v57 = vrot.slane %v19165_v46, 4  ;;  %v21831_v17 = vld [vmem:[#allocation146_spill] sm:$0xff] }
 0xa9a   : > { %v19381_v33 = vmax.f32 %v18738_v14, %v12844_v56  ;;  %v19394_v50 = vmax.f32 %v18768_v30, %v12829_v19  ;;  %v19397_v14 = vmax.f32 %v18763_v1, %v12828_v44  ;;  %v9546_v56 = vrot.slane %v19259_v37, 4  ;;  %11838 = vmatprep.subr.bf16.mxu0 %v11837_v0 }
 0xa9b   : > { %11916 = vmatpush1.bf16.msra.mxu1 %v21825_v59  ;;  %v12837_v13 = vpop.permute.xlu0 %12836  ;;  %11840 = vmatpush3.bf16.msra.mxu0 %v11839_v9  ;;  %v19408_v30 = vsel %vm634_vm0, %v9542_v49, %v9544_v12  ;;  %v21829_v10 = vrot.slane %v19137_v20, 4  ;;  %v21833_v9 = vpack.c.bf16 %v19172_v41, %v19035_v36  ;;  %v9510_v36 = vrot.slane %v19269_v35, 4 }
 0xa9c   : > { %21827 = vst [vmem:[#allocation17_spill] sm:$0xff] %v19394_v50  ;;  %11917 = vmatprep.subr.bf16.mxu1 %v21753_v3  ;;  %v20767_v59 = vrot.slane %v19381_v33, 4  ;;  %v12839_v55 = vunpack.i.h.bf16 %v12837_v13  ;;  %v12838_v63 = vunpack.i.l.bf16 %v12837_v13  ;;  %v11841_v1 = vpack.c.bf16 %v19394_v50, %v19397_v14  ;;  %v21834_v13 = vld [vmem:[#allocation53_spill] sm:$0xff] }
 0xa9d   : > { %v19415_v0 = vsel %vm634_vm0, %v21829_v10, %v21828_v57  ;;  %v21835_v49 = vrot.slane %v21834_v13, 4 }
 0xa9e   : > { %21830 = vst [vmem:[#allocation19_spill] sm:$0xff] %v19415_v0  ;;  %v19418_v19 = vmax.f32 %v18778_v5, %v12839_v55  ;;  %v19421_v44 = vmax.f32 %v21831_v17, %v12838_v63  ;;  %v21836_v55 = vld [vmem:[#allocation145_spill] sm:$0xff]  ;;  %11842 = vmatprep.subr.bf16.mxu0 %v11841_v1  ;;  %v11843_v63 = vpack.c.bf16 %v19378_v45, %v19391_v52  ;;  %v9516_v1 = vrot.slane %v19280_v29, 4 }
 0xa9f   : > { %11919 = vmatpush1.bf16.msra.mxu1 %v21833_v9  ;;  %v19431_v42 = vsel %vm634_vm0, %v20767_v59, %v21835_v49  ;;  %v19437_v10 = vmax.f32 %v21836_v55, %v12843_v16  ;;  %v9133_v17 = vpop.permute.xlu0 %9132  ;;  %v9602_v49 = vrot.slane %v19286_v58, 4  ;;  %v21838_v59 = vld [vmem:[#allocation149_spill] sm:$0xff]  ;;  %v19451_v16 = vsel %vm634_vm0, %v9544_v12, %v9546_v56  ;;  %v21841_v12 = vld [vmem:[#allocation70_spill] sm:$0xff] }
 0xaa0   : > { %21832 = vst [vmem:[#allocation21_spill] sm:$0xff] %v19421_v44  ;;  %11920 = vmatprep.subr.bf16.mxu1 %v21753_v3  ;;  %v19446_v41 = vmax.f32 %v21838_v59, %v9133_v17  ;;  %v11845_v57 = vpack.c.bf16 %v19418_v19, %v19421_v44  ;;  %21840 = vst [vmem:[#allocation27_spill] sm:$0xff] %v19451_v16  ;;  %v9514_v55 = vrot.slane %v19283_v43, 4  ;;  %v9512_v5 = vrot.slane %v19266_v23, 4 }
 0xaa1   : > { %21837 = vst [vmem:[#allocation24_spill] sm:$0xff] %v19437_v10  ;;  %11844 = vmatpush3.bf16.msra.mxu0 %v11843_v63  ;;  %v19457_v9 = vsel %vm634_vm0, %v9546_v56, %v9548_v61  ;;  %v9520_v59 = vrot.slane %v19342_v18, 4  ;;  %v9518_v17 = vrot.slane %v19345_v26, 4  ;;  %v21842_v13 = vpack.c.bf16 %v19210_v51, %v21841_v12 }
 0xaa2   : > { %21839 = vst [vmem:[#allocation22_spill] sm:$0xff] %v19446_v41  ;;  %11846 = vmatprep.subr.bf16.mxu0 %v11845_v57  ;;  %v9522_v29 = vrot.slane %v19391_v52, 4  ;;  %v9552_v63 = vrot.slane %v19356_v2, 4  ;;  %v9550_v56 = vrot.slane %v19359_v62, 4  ;;  %v11847_v24 = vpack.c.bf16 %v19381_v33, %v19437_v10 }
 0xaa3   : > { %11922 = vmatpush1.bf16.msra.mxu1 %v21842_v13  ;;  %v9556_v18 = vrot.slane %v19394_v50, 4  ;;  %v9554_v58 = vrot.slane %v19397_v14, 4  ;;  %v21843_v26 = vrot.slane %v19238_v53, 4  ;;  %v21845_v57 = vrot.slane %v19446_v41, 4  ;;  %v19490_v50 = vld [vmem:[%s20381_s5] sm:$0xff]  ;;  %v19515_v41 = vld [vmem:[%s20381_s5 + $0x28] sm:$0xff] }
 0xaa4   : > { %11923 = vmatprep.subr.bf16.mxu1 %v21753_v3  ;;  %v9524_v12 = vrot.slane %v19378_v45, 4  ;;  %v9526_v52 = vrot.slane %v19437_v10, 4  ;;  %v9558_v2 = vrot.slane %v19421_v44, 4  ;;  %v19507_v45 = vsel %vm634_vm0, %v9510_v36, %v9512_v5 }
 0xaa5   : > { %v19477_v13 = vsel %vm634_vm0, %v21843_v26, %v9602_v49  ;;  %v19482_v51 = vsel %vm634_vm0, %v9602_v49, %v21845_v57  ;;  %11848 = vmatpush3.bf16.msra.mxu0 %v11847_v24  ;;  %v21847_v49 = vpack.c.bf16 %v19220_v60, %v19217_v32  ;;  %v21848_v57 = vpack.c.bf16 %v19230_v22, %v19235_v11  ;;  %v21852_v11 = vld [vmem:[#allocation62_spill] sm:$0xff] }
 0xaa6   : > { %21844 = vst [vmem:[#allocation28_spill] sm:$0xff] %v19477_v13  ;;  %21846 = vst [vmem:[#allocation25_spill] sm:$0xff] %v19482_v51  ;;  %v21849_v24 = vrot.slane %v19148_v40, 4  ;;  %v19510_v26 = vsel %vm634_vm0, %v9512_v5, %v9514_v55  ;;  %v19532_v5 = vsel %vm634_vm0, %v9552_v63, %v9554_v58  ;;  %v19535_v22 = vsel %vm634_vm0, %v9518_v17, %v9520_v59 }
 0xaa7   : > { %11880 = vmatprep.subr.bf16.mxu0 %v21847_v49  ;;  %11925 = vmatpush1.bf16.msra.mxu1 %v21848_v57  ;;  %21851 = vst [vmem:[#allocation31_spill] sm:$0xff] %v19510_v26  ;;  %v19519_v49 = vsel %vm634_vm0, %v9548_v61, %v9550_v56  ;;  %v19522_v57 = vsel %vm634_vm0, %v9514_v55, %v9516_v1  ;;  %v9598_v44 = vrot.slane %v19241_v34, 4 }
 0xaa8   : > { %v19504_v10 = vsel %vm634_vm0, %v21849_v24, %v9510_v36  ;;  %11926 = vmatprep.subr.bf16.mxu1 %v21753_v3  ;;  %v19525_v24 = vsel %vm634_vm0, %v9516_v1, %v9518_v17  ;;  %v19528_v36 = vsel %vm634_vm0, %v9550_v56, %v9552_v63  ;;  %9329 = vmatmul.mubr.f32.vlgmr.msra.gmra.mrb[112].mxu0 %v19490_v50  ;;  %v21853_v1 = vld [vmem:[#allocation157_spill] sm:$0xff]  ;;  %v21859_v17 = vrot.slane %v19381_v33, 4 }
 0xaa9   : > { %21850 = vst [vmem:[#allocation30_spill] sm:$0xff] %v19504_v10  ;;  %v19538_v61 = vsel %vm634_vm0, %v9520_v59, %v9522_v29  ;;  %v19541_v55 = vsel %vm634_vm0, %v9554_v58, %v9556_v18  ;;  %v21854_v32 = vpack.c.bf16 %v21852_v11, %v21853_v1  ;;  %v19547_v56 = vsel %vm634_vm0, %v9556_v18, %v9558_v2  ;;  %v19559_v58 = vld [vmem:[%s20381_s5 + $0x20] sm:$0xff]  ;;  %v21860_v1 = vld [vmem:[#allocation65_spill] sm:$0xff] }
 0xaaa   : > { %v19550_v60 = vsel %vm634_vm0, %v9522_v29, %v9524_v12  ;;  %v19553_v63 = vsel %vm634_vm0, %v9524_v12, %v9526_v52  ;;  %9333 = vmatprep.mubr.f32.mxu0 %v19515_v41  ;;  %v21856_v59 = vpack.c.bf16 %v19321_v8, %v19225_v38  ;;  %v21858_v29 = vrot.slane %v19418_v19, 4 }
 0xaab   : > { %11882 = vmatpush3.bf16.msra.mxu0 %v21854_v32  ;;  %21855 = vst [vmem:[#allocation32_spill] sm:$0xff] %v19553_v63  ;;  %v21857_v32 = vpack.c.bf16 %v19274_v15, %v19252_v6  ;;  %v19575_v12 = vsel %vm634_vm0, %v9526_v52, %v21859_v17  ;;  %v21864_v6 = vpack.c.bf16 %v19328_v48, %v19308_v7  ;;  %v21885_v7 = vld [vmem:[#allocation69_spill] sm:$0xff] }
 0xaac   : > { %11884 = vmatprep.subr.bf16.mxu0 %v21856_v59  ;;  %v19570_v18 = vsel %vm634_vm0, %v9558_v2, %v21858_v29  ;;  %9334 = vmatmul.mubr.f32.gmra.mrb[114].mxu0 %v19559_v58  ;;  %v21861_v2 = vpack.c.bf16 %v19277_v28, %v19301_v21  ;;  %v21862_v29 = vld [vmem:[#allocation52_spill] sm:$0xff]  ;;  %v9596_v28 = vrot.slane %v21860_v1, 4  ;;  %v11889_v17 = vpack.c.bf16 %v19504_v10, %v19313_v54 }
 0xaad   : > { %11928 = vmatpush1.bf16.msra.mxu1 %v21857_v32  ;;  %9724 = vmatprep.mubr.f32.mxu0 %v21862_v29  ;;  %v21863_v32 = vpack.c.bf16 %v19374_v47, %v19368_v25  ;;  %v21865_v59 = vrot.slane %v19137_v20, 4  ;;  %v11893_v10 = vpack.c.bf16 %v19510_v26, %v19507_v45  ;;  %v11897_v26 = vpack.c.bf16 %v19525_v24, %v19522_v57 }
 0xaae   : > { %11929 = vmatprep.subr.bf16.mxu1 %v21753_v3 }
 0xaaf   : > { %11886 = vmatpush3.bf16.msra.mxu0 %v21861_v2  ;;  %v19634_v2 = vsel %vm634_vm0, %v9596_v28, %v9598_v44 }
 0xab0   : > { %11888 = vmatprep.subr.bf16.mxu0 %v21863_v32  ;;  %v21866_v32 = vrot.slane %v19140_v31, 4 }
 0xab1   : > { %11931 = vmatpush1.bf16.msra.mxu1 %v21864_v6  ;;  %v11891_v6 = vpack.c.bf16 %v19451_v16, %v19408_v30 }
 0xab2   : > { %11932 = vmatprep.subr.bf16.mxu1 %v21753_v3  ;;  %v19627_v47 = vsel %vm634_vm0, %v21866_v32, %v21865_v59  ;;  %v21868_v59 = vrot.slane %v19165_v46, 4 }
 0xab3   : > { %21867 = vst [vmem:[#allocation29_spill] sm:$0xff] %v19627_v47  ;;  %v11933_v52 = vpack.c.bf16 %v19415_v0, %v19627_v47  ;;  %11890 = vmatpush3.bf16.msra.mxu0 %v11889_v17  ;;  %v11899_v17 = vpack.c.bf16 %v19532_v5, %v19528_v36  ;;  %v21874_v47 = vrot.slane %v19418_v19, 4  ;;  %v21879_v0 = vld [vmem:[#allocation55_spill] sm:$0xff] }
 0xab4   : > { %11892 = vmatprep.subr.bf16.mxu0 %v11891_v6  ;;  %v19642_v32 = vsel %vm634_vm0, %v21868_v59, %v9596_v28  ;;  %v11895_v6 = vpack.c.bf16 %v19519_v49, %v19457_v9  ;;  %v21870_v28 = vrot.slane %v19238_v53, 4 }
 0xab5   : > { %11934 = vmatpush1.bf16.msra.mxu1 %v11933_v52  ;;  %21869 = vst [vmem:[#allocation35_spill] sm:$0xff] %v19642_v32  ;;  %v11936_v52 = vpack.c.bf16 %v19634_v2, %v19642_v32  ;;  %v21880_v32 = vld [vmem:[#allocation64_spill] sm:$0xff] }
 0xab6   : > { %11935 = vmatprep.subr.bf16.mxu1 %v21753_v3  ;;  %v19658_v59 = vsel %vm634_vm0, %v9598_v44, %v21870_v28  ;;  %v11903_v44 = vpack.c.bf16 %v19547_v56, %v19541_v55  ;;  %v21872_v28 = vld [vmem:[#allocation151_spill] sm:$0xff]  ;;  %v12013_v15 = vpack.c.bf16 %v21880_v32, %v21879_v0  ;;  %v11909_v32 = vpack.c.bf16 %v19431_v42, %v19575_v12 }
 0xab7   : > { %11894 = vmatpush3.bf16.msra.mxu0 %v11893_v10  ;;  %v11939_v16 = vpack.c.bf16 %v19477_v13, %v19658_v59  ;;  %v11901_v10 = vpack.c.bf16 %v19538_v61, %v19535_v22  ;;  %v21873_v48 = vrot.slane %v21872_v28, 4 }
 0xab8   : > { %11896 = vmatprep.subr.bf16.mxu0 %v11895_v6  ;;  %v21871_v6 = vmov 0.0  }
 0xab9   : > { %11937 = vmatpush1.bf16.msra.mxu1 %v11936_v52  ;;  %v21878_v52 = vld [vmem:[#allocation84_spill] sm:$0xff] }
 0xaba   : > { %11938 = vmatprep.subr.bf16.mxu1 %v21753_v3 }
 0xabb   : > { %11898 = vmatpush3.bf16.msra.mxu0 %v11897_v26  ;;  %v19676_v26 = vsel %vm634_vm0, %v21874_v47, %v21873_v48  ;;  %v11350_v48 = vld [vmem:[%s20382_s6 + $0x108] sm:$0xff]  ;;  %v11352_v47 = vld [vmem:[%s20382_s6 + $0x118] sm:$0xff] }
 0xabc   : > { %11900 = vmatprep.subr.bf16.mxu0 %v11899_v17  ;;  %v21876_v17 = vld [vmem:[#allocation166_spill] sm:$0xff]  ;;  %v11941_v0 = vpack.c.bf16 %v11352_v47, %v11350_v48  ;;  %v21887_v48 = vld [vmem:[#allocation160_spill] sm:$0xff] }
 0xabd   : > { %11940 = vmatpush1.bf16.msra.mxu1 %v11939_v16  ;;  %v21875_v16 = vld [vmem:[#allocation159_spill] sm:$0xff] }
 0xabe   : > { %9775 = vmatprep.subr.mxu1 %v21871_v6  ;;  %v21877_v13 = vpack.c.bf16 %v21875_v16, %v21876_v17  ;;  %v21884_v17 = vld [vmem:[#allocation167_spill] sm:$0xff] }
 0xabf   : > { %11902 = vmatpush3.bf16.msra.mxu0 %v11901_v10  ;;  %v11905_v10 = vpack.c.bf16 %v19553_v63, %v19550_v60  ;;  %v12017_v63 = vpack.c.bf16 %v21885_v7, %v21884_v17  ;;  %v11354_v7 = vld [vmem:[%s20382_s6 + $0x128] sm:$0xff] }
 0xac0   : > { %11904 = vmatprep.subr.bf16.mxu0 %v11903_v44  ;;  %v21881_v44 = vld [vmem:[#allocation59_spill] sm:$0xff] }
 0xac1   : > { %11346 = vmatpush1.msk.msra.mxu1 %vm2322_vm6, %v19482_v51  ;;  %v21882_v51 = vld [vmem:[#allocation164_spill] sm:$0xff] }
 0xac2   : > { %12010 = vmatprep.subr.bf16.mxu1 %v21877_v13  ;;  %9800 = vmatmul.mubr.f32.vlgmr.msra.gmra.mrb[60].mxu1 %v21878_v52  ;;  %v21883_v16 = vpack.c.bf16 %v21881_v44, %v21882_v51  ;;  %v11907_v13 = vpack.c.bf16 %v19676_v26, %v19570_v18  ;;  %v11349_v51 = vld [vmem:[%s20382_s6 + $0x100] sm:$0xff]  ;;  %v11351_v44 = vld [vmem:[%s20382_s6 + $0x110] sm:$0xff] }
 0xac3   : > { %11348 = vmatprep.mubr.msk.f32.mxu1 %vm9254_vm11, %v19338_v27  ;;  %11906 = vmatpush3.bf16.msra.mxu0 %v11905_v10  ;;  %v21886_v10 = vld [vmem:[#allocation63_spill] sm:$0xff]  ;;  %v11943_v17 = vpack.c.bf16 %v11351_v44, %v11349_v51  ;;  %v11357_v51 = vld [vmem:[%s20382_s6 + $0x140] sm:$0xff]  ;;  %v11359_v44 = vld [vmem:[%s20382_s6 + $0x150] sm:$0xff] }
 0xac4   : > { %12012 = vmatpush3.bf16.msra.mxu1 %v21883_v16  ;;  %11908 = vmatprep.subr.bf16.mxu0 %v11907_v13  ;;  %v21888_v47 = vpack.c.bf16 %v21886_v10, %v21887_v48  ;;  %v11356_v16 = vld [vmem:[%s20382_s6 + $0x138] sm:$0xff]  ;;  %v12019_v13 = vpack.c.bf16 %v19269_v35, %v19148_v40  ;;  %v12021_v10 = vpack.c.bf16 %v19259_v37, %v19195_v4  ;;  %v11358_v40 = vld [vmem:[%s20382_s6 + $0x148] sm:$0xff] }
 0xac5   : > { %12014 = vmatprep.subr.bf16.mxu1 %v12013_v15  ;;  %v12162_v15 = vpack.c.bf16 %v19658_v59, %v19634_v2  ;;  %v11945_v48 = vpack.c.bf16 %v11356_v16, %v11354_v7  ;;  %v11360_v4 = vld [vmem:[%s20382_s6 + $0x158] sm:$0xff]  ;;  %v12023_v37 = vpack.c.bf16 %v19283_v43, %v19266_v23  ;;  %v11362_v23 = vld [vmem:[%s20382_s6 + $0x168] sm:$0xff]  ;;  %v21891_v7 = vld [vmem:[#allocation6_spill] sm:$0xff] }
 0xac6   : > { %9805 = vmatmul.mubr.f32.gmra.mrb[62].mxu1 %v19353_v39  ;;  %v11364_v43 = vld [vmem:[%s20382_s6 + $0x178] sm:$0xff]  ;;  %v11433_v2 = vld [vmem:[%s20382_s6 + $0x310] sm:$0xff] }
 0xac7   : > { %10087 = vmatprep.mubr.f32.mxu1 %v21862_v29  ;;  %11910 = vmatpush3.bf16.msra.mxu0 %v11909_v32  ;;  %v11353_v29 = vld [vmem:[%s20382_s6 + $0x120] sm:$0xff]  ;;  %v11949_v32 = vpack.c.bf16 %v11360_v4, %v11358_v40  ;;  %v11366_v40 = vld [vmem:[%s20382_s6 + $0x188] sm:$0xff]  ;;  %v11368_v4 = vld [vmem:[%s20382_s6 + $0x198] sm:$0xff] }
 0xac8   : > { %12016 = vmatpush3.bf16.msra.mxu1 %v21888_v47  ;;  %11942 = vmatprep.subr.bf16.mxu0 %v11941_v0  ;;  %v11355_v47 = vld [vmem:[%s20382_s6 + $0x130] sm:$0xff]  ;;  %v21971_v59 = vld [vmem:[#allocation25_spill] sm:$0xff] }
 0xac9   : > { %12018 = vmatprep.subr.bf16.mxu1 %v12017_v63  ;;  %v11947_v35 = vpack.c.bf16 %v11355_v47, %v11353_v29  ;;  %v21889_v63 = vld [vmem:[#allocation77_spill] sm:$0xff]  ;;  %v11361_v29 = vld [vmem:[%s20382_s6 + $0x160] sm:$0xff]  ;;  %v11363_v47 = vld [vmem:[%s20382_s6 + $0x170] sm:$0xff] }
 0xaca   : > { %9725 = vmatmul.mubr.f32.vlgmr.msra.gmra.mrb[116].mxu0 %v19490_v50  ;;  %v12025_v0 = vpack.c.bf16 %v19359_v62, %v21889_v63  ;;  %v21890_v62 = vld [vmem:[#allocation79_spill] sm:$0xff]  ;;  %v11955_v63 = vpack.c.bf16 %v11363_v47, %v11361_v29  ;;  %v11369_v47 = vld [vmem:[%s20382_s6 + $0x1a0] sm:$0xff] }
 0xacb   : > { %9729 = vmatprep.mubr.f32.mxu0 %v19515_v41  ;;  %11944 = vmatpush1.bf16.msra.mxu0 %v11943_v17  ;;  %v12027_v16 = vpack.c.bf16 %v21891_v7, %v21890_v62  ;;  %v21892_v17 = vld [vmem:[#allocation9_spill] sm:$0xff]  ;;  %v11370_v62 = vld [vmem:[%s20382_s6 + $0x1a8] sm:$0xff] }
 0xacc   : > { %12020 = vmatpush3.bf16.msra.mxu1 %v12019_v13  ;;  %11946 = vmatprep.subr.bf16.mxu0 %v11945_v48  ;;  %v11951_v13 = vpack.c.bf16 %v11359_v44, %v11357_v51  ;;  %v11953_v48 = vpack.c.bf16 %v11364_v43, %v11362_v23  ;;  %v11957_v44 = vpack.c.bf16 %v11368_v4, %v11366_v40  ;;  %v11365_v23 = vld [vmem:[%s20382_s6 + $0x180] sm:$0xff]  ;;  %v11367_v43 = vld [vmem:[%s20382_s6 + $0x190] sm:$0xff]  ;;  %v11372_v7 = vld [vmem:[%s20382_s6 + $0x1b8] sm:$0xff] }
 0xacd   : > { %12022 = vmatprep.subr.bf16.mxu1 %v12021_v10  ;;  %v12029_v10 = vpack.c.bf16 %v19397_v14, %v21892_v17  ;;  %v21893_v14 = vld [vmem:[#allocation8_spill] sm:$0xff]  ;;  %v11961_v29 = vpack.c.bf16 %v11372_v7, %v11370_v62  ;;  %v21899_v4 = vld [vmem:[#allocation53_spill] sm:$0xff] }
 0xace   : > { %9730 = vmatmul.mubr.f32.gmra.mrb[118].mxu0 %v19559_v58  ;;  %v11371_v40 = vld [vmem:[%s20382_s6 + $0x1b0] sm:$0xff] }
 0xacf   : > { %9919 = vmatprep.mubr.f32.mxu0 %v21871_v6  ;;  %11948 = vmatpush1.bf16.msra.mxu0 %v11947_v35  ;;  %v21910_v62 = vld [vmem:[#allocation156_spill] sm:$0xff] }
 0xad0   : > { %12024 = vmatpush3.bf16.msra.mxu1 %v12023_v37  ;;  %11950 = vmatprep.subr.bf16.mxu0 %v11949_v32  ;;  %v21894_v37 = vld [vmem:[#allocation15_spill] sm:$0xff]  ;;  %v21896_v32 = vld [vmem:[#allocation21_spill] sm:$0xff] }
 0xad1   : > { %12026 = vmatprep.subr.bf16.mxu1 %v12025_v0  ;;  %v12031_v35 = vpack.c.bf16 %v21894_v37, %v21893_v14  ;;  %v21895_v0 = vld [vmem:[#allocation17_spill] sm:$0xff]  ;;  %v12039_v14 = vpack.c.bf16 %v21899_v4, %v19381_v33  ;;  %v11963_v37 = vpack.c.bf16 %v11371_v40, %v11369_v47  ;;  %v21903_v33 = vld [vmem:[#allocation36_spill] sm:$0xff]  ;;  %v21920_v4 = vpack.c.bf16 %v19165_v46, %v19137_v20 }
 0xad2   : > { %v12033_v51 = vpack.c.bf16 %v21896_v32, %v21895_v0  ;;  %v19818_v32 = vld [vmem:[%s20381_s5 + $0x18] sm:$0xff]  ;;  %v21918_v47 = vld [vmem:[#allocation60_spill] sm:$0xff]  ;;  %v21921_v46 = vpack.c.bf16 %v19241_v34, %v21860_v1  ;;  %v21927_v34 = vpack.c.bf16 %v19301_v21, %v21852_v11  ;;  %v21931_v11 = vld [vmem:[#allocation10_spill] sm:$0xff] }
 0xad3   : > { %11952 = vmatpush1.bf16.msra.mxu0 %v11951_v13  ;;  %v21898_v13 = vld [vmem:[#allocation24_spill] sm:$0xff]  ;;  %v21919_v40 = vpack.c.bf16 %v19140_v31, %v21918_v47  ;;  %v11373_v31 = vld [vmem:[%s20382_s6 + $0x1c0] sm:$0xff]  ;;  %v21932_v21 = vpack.c.bf16 %v19408_v30, %v21931_v11  ;;  %v21940_v30 = vpack.c.bf16 %v19535_v22, %v19525_v24  ;;  %v21942_v22 = vpack.c.bf16 %v19550_v60, %v19538_v61 }
 0xad4   : > { %12028 = vmatpush3.bf16.msra.mxu1 %v12027_v16  ;;  %11954 = vmatprep.subr.bf16.mxu0 %v11953_v48  ;;  %v21897_v16 = vld [vmem:[#allocation13_spill] sm:$0xff]  ;;  %v12037_v48 = vpack.c.bf16 %v21872_v28, %v19418_v19  ;;  %v21900_v19 = vld [vmem:[#allocation163_spill] sm:$0xff]  ;;  %v21901_v28 = vld [vmem:[#allocation162_spill] sm:$0xff] }
 0xad5   : > { %12030 = vmatprep.subr.bf16.mxu1 %v12029_v10  ;;  %v12035_v17 = vpack.c.bf16 %v21898_v13, %v21897_v16  ;;  %v11959_v10 = vpack.c.bf16 %v11367_v43, %v11365_v23  ;;  %v21909_v43 = vld [vmem:[#allocation54_spill] sm:$0xff]  ;;  %v11375_v20 = vld [vmem:[%s20382_s6 + $0x1d0] sm:$0xff] }
 0xad6   : > { %v21911_v7 = vpack.c.bf16 %v21909_v43, %v21910_v62  ;;  %v21912_v16 = vld [vmem:[#allocation58_spill] sm:$0xff]  ;;  %v21929_v1 = vld [vmem:[#allocation80_spill] sm:$0xff]  ;;  %v9415_v43 = vld [vmem:[%s20382_s6 + $0x8] sm:$0xff] }
 0xad7   : > { %11956 = vmatpush1.bf16.msra.mxu0 %v11955_v63  ;;  %v21904_v63 = vld [vmem:[#allocation152_spill] sm:$0xff]  ;;  %v21913_v13 = vld [vmem:[#allocation158_spill] sm:$0xff]  ;;  %v9417_v62 = vld [vmem:[%s20382_s6 + $0x18] sm:$0xff] }
 0xad8   : > { %12032 = vmatpush3.bf16.msra.mxu1 %v12031_v35  ;;  %11958 = vmatprep.subr.bf16.mxu0 %v11957_v44  ;;  %v21902_v35 = vpack.c.bf16 %v21900_v19, %v21901_v28  ;;  %v21905_v0 = vpack.c.bf16 %v21903_v33, %v21904_v63  ;;  %v21907_v44 = vld [vmem:[#allocation154_spill] sm:$0xff]  ;;  %v11967_v28 = vpack.c.bf16 %v11375_v20, %v11373_v31 }
 0xad9   : > { %12034 = vmatprep.subr.bf16.mxu1 %v12033_v51  ;;  %v21906_v51 = vld [vmem:[#allocation51_spill] sm:$0xff]  ;;  %v21924_v63 = vld [vmem:[#allocation22_spill] sm:$0xff]  ;;  %v11975_v61 = vpack.c.bf16 %v9417_v62, %v9415_v43 }
 0xada   : > { %v21908_v23 = vpack.c.bf16 %v21906_v51, %v21907_v44  ;;  %v21930_v44 = vpack.c.bf16 %v19313_v54, %v21929_v1  ;;  %v21937_v54 = vld [vmem:[#allocation31_spill] sm:$0xff]  ;;  %v9430_v62 = vld [vmem:[%s20382_s6 + $0x80] sm:$0xff] }
 0xadb   : > { %11960 = vmatpush1.bf16.msra.mxu0 %v11959_v10  ;;  %v21915_v10 = vld [vmem:[#allocation61_spill] sm:$0xff] }
 0xadc   : > { %12036 = vmatpush3.bf16.msra.mxu1 %v12035_v17  ;;  %11962 = vmatprep.subr.bf16.mxu0 %v11961_v29  ;;  %v21914_v17 = vpack.c.bf16 %v21912_v16, %v21913_v13  ;;  %v21948_v13 = vld [vmem:[#allocation72_spill] sm:$0xff] }
 0xadd   : > { %12038 = vmatprep.subr.bf16.mxu1 %v12037_v48  ;;  %v21916_v48 = vld [vmem:[#allocation57_spill] sm:$0xff] }
 0xade   : > { %v21917_v29 = vpack.c.bf16 %v21915_v10, %v21916_v48 }
 0xadf   : > { %11964 = vmatpush1.bf16.msra.mxu0 %v11963_v37  ;;  %v11376_v37 = vld [vmem:[%s20382_s6 + $0x1d8] sm:$0xff] }
 0xae0   : > { %12040 = vmatpush3.bf16.msra.mxu1 %v12039_v14  ;;  %v11374_v14 = vld [vmem:[%s20382_s6 + $0x1c8] sm:$0xff] }
 0xae1   : > { %12041 = vmatprep.subr.bf16.mxu1 %v21753_v3  ;;  %v11965_v19 = vpack.c.bf16 %v11376_v37, %v11374_v14 }
 0xae3   : > { %10088 = vmatmul.mubr.f32.vlgmr.msra.gmra.mrb[64].mxu1 %v19490_v50  ;;  %11966 = vmatprep.subr.bf16.mxu0 %v11965_v19 }
 0xae4   : > { %12043 = vmatpush1.bf16.msra.mxu1 %v21902_v35  ;;  %10092 = vmatprep.mubr.f32.mxu1 %v19515_v41  ;;  %v21922_v35 = vld [vmem:[#allocation83_spill] sm:$0xff] }
 0xae5   : > { %12044 = vmatprep.subr.bf16.mxu1 %v21753_v3  ;;  %11968 = vmatpush1.bf16.msra.mxu0 %v11967_v28  ;;  %v21923_v33 = vpack.c.bf16 %v21922_v35, %v19238_v53  ;;  %v21928_v53 = vpack.c.bf16 %v19368_v25, %v19321_v8  ;;  %v21935_v8 = vld [vmem:[#allocation27_spill] sm:$0xff]  ;;  %v21938_v25 = vpack.c.bf16 %v19522_v57, %v21937_v54  ;;  %v11380_v57 = vld [vmem:[%s20382_s6 + $0x1f8] sm:$0x7f]  ;;  %v9416_v28 = vld [vmem:[%s20382_s6 + $0x10] sm:$0xff] }
 0xae7   : > { %10093 = vmatmul.mubr.f32.gmra.mrb[66].mxu1 %v19559_v58 }
 0xae8   : > { %12046 = vmatpush1.bf16.msra.mxu1 %v21905_v0  ;;  %11390 = vmatprep.mubr.msk.f32.mxu1 %vm9254_vm11, %v19818_v32  ;;  %v21925_v0 = vld [vmem:[#allocation74_spill] sm:$0xff] }
 0xae9   : > { %12047 = vmatprep.subr.bf16.mxu1 %v21753_v3  ;;  %v21926_v51 = vpack.c.bf16 %v19225_v38, %v21925_v0  ;;  %v12902_v38 = vld [vmem:[%s20381_s5 + $0x8] sm:$0xff]  ;;  %v9421_v0 = vld [vmem:[%s20382_s6 + $0x38] sm:$0xff] }
 0xaec   : > { %12049 = vmatpush1.bf16.msra.mxu1 %v21908_v23  ;;  %v21939_v23 = vpack.c.bf16 %v19528_v36, %v19519_v49  ;;  %v11377_v49 = vld [vmem:[%s20382_s6 + $0x1e0] sm:$0xff]  ;;  %v11379_v36 = vld [vmem:[%s20382_s6 + $0x1f0] sm:$0x7f] }
 0xaed   : > { %12050 = vmatprep.subr.bf16.mxu1 %v21753_v3 }
 0xaf0   : > { %12052 = vmatpush1.bf16.msra.mxu1 %v21911_v7  ;;  %v21945_v7 = vld [vmem:[#allocation68_spill] sm:$0xff] }
 0xaf1   : > { %12053 = vmatprep.subr.bf16.mxu1 %v21753_v3  ;;  %v12133_v16 = vpack.c.bf16 %v21945_v7, %v19676_v26  ;;  %v9435_v7 = vld [vmem:[%s20382_s6 + $0xa8] sm:$0xff] }
 0xaf4   : > { %12055 = vmatpush1.bf16.msra.mxu1 %v21914_v17  ;;  %v21949_v17 = vpack.c.bf16 %v21948_v13, %v19431_v42  ;;  %v9434_v13 = vld [vmem:[%s20382_s6 + $0xa0] sm:$0xff] }
 0xaf5   : > { %12056 = vmatprep.subr.bf16.mxu1 %v21753_v3 }
 0xaf8   : > { %12058 = vmatpush1.bf16.msra.mxu1 %v21917_v29 }
 0xaf9   : > { %12059 = vmatprep.subr.bf16.mxu1 %v21753_v3 }
 0xafc   : > { %12061 = vmatpush1.bf16.msra.mxu1 %v21919_v40 }
 0xafd   : > { %12062 = vmatprep.subr.bf16.mxu1 %v21753_v3 }
 0xb00   : > { %12064 = vmatpush1.bf16.msra.mxu1 %v21920_v4 }
 0xb01   : > { %12065 = vmatprep.subr.bf16.mxu1 %v21753_v3 }
 0xb04   : > { %12067 = vmatpush1.bf16.msra.mxu1 %v21921_v46 }
 0xb05   : > { %12068 = vmatprep.subr.bf16.mxu1 %v21753_v3 }
 0xb08   : > { %12070 = vmatpush1.bf16.msra.mxu1 %v21923_v33  ;;  %v9419_v33 = vld [vmem:[%s20382_s6 + $0x28] sm:$0xff] }
 0xb09   : > { %10138 = vmatprep.subr.mxu1 %v21871_v6  ;;  %v11979_v1 = vpack.c.bf16 %v9421_v0, %v9419_v33  ;;  %v11395_v33 = vld [vmem:[%s20382_s6 + $0x218] sm:$0xff] }
 0xb0c   : > { %11389 = vmatpush1.msk.msra.mxu1 %vm2322_vm6, %v21924_v63 }
 0xb0d   : > { %12106 = vmatprep.subr.bf16.mxu1 %v21926_v51  ;;  %10163 = vmatmul.mubr.f32.vlgmr.msra.gmra.mrb[68].mxu1 %v21878_v52 }
 0xb0e   : > { %12108 = vmatpush3.bf16.msra.mxu1 %v21927_v34  ;;  %11391 = vmatprep.mubr.msk.f32.mxu1 %vm9254_vm11, %v19338_v27  ;;  %v21933_v27 = vld [vmem:[#allocation30_spill] sm:$0xff] }
 0xb0f   : > { %12110 = vmatprep.subr.bf16.mxu1 %v21928_v53  ;;  %v21934_v52 = vpack.c.bf16 %v19507_v45, %v21933_v27  ;;  %v21941_v45 = vpack.c.bf16 %v19541_v55, %v19532_v5  ;;  %v21943_v5 = vpack.c.bf16 %v19570_v18, %v19547_v56  ;;  %v11972_v55 = vpack.c.bf16 %v11379_v36, %v11377_v49  ;;  %v21946_v56 = vld [vmem:[#allocation32_spill] sm:$0xff]  ;;  %v9425_v27 = vld [vmem:[%s20382_s6 + $0x58] sm:$0xff]  ;;  %v9431_v36 = vld [vmem:[%s20382_s6 + $0x88] sm:$0xff] }
 0xb10   : > { %v21947_v18 = vpack.c.bf16 %v19575_v12, %v21946_v56 }
 0xb11   : > { %10168 = vmatmul.mubr.f32.gmra.mrb[70].mxu1 %v19353_v39  ;;  %v21936_v39 = vpack.c.bf16 %v19457_v9, %v21935_v8  ;;  %v11378_v9 = vld [vmem:[%s20382_s6 + $0x1e8] sm:$0xff] }
 0xb12   : > { %12112 = vmatpush3.bf16.msra.mxu1 %v21930_v44  ;;  %10369 = vmatprep.mubr.f32.mxu1 %v12902_v38  ;;  %v11969_v24 = vpack.c.bf16 %v11380_v57, %v11378_v9  ;;  %v9418_v44 = vld [vmem:[%s20382_s6 + $0x20] sm:$0xff]  ;;  %v9420_v38 = vld [vmem:[%s20382_s6 + $0x30] sm:$0xff]  ;;  %v9429_v9 = vld [vmem:[%s20382_s6 + $0x78] sm:$0xff] }
 0xb13   : > { %12114 = vmatprep.subr.bf16.mxu1 %v21932_v21  ;;  %v9423_v21 = vld [vmem:[%s20382_s6 + $0x48] sm:$0xff] }
 0xb14   : > { %11971 = vmatprep.subr.msk.bf16.mxu0 %vm14692_vm7, %v11969_v24  ;;  %v11983_v54 = vpack.c.bf16 %v9425_v27, %v9423_v21  ;;  %v9428_v24 = vld [vmem:[%s20382_s6 + $0x70] sm:$0xff]  ;;  %v11396_v27 = vld [vmem:[%s20382_s6 + $0x220] sm:$0xff] }
 0xb15   : > { %11974 = vmatpush1.bf16.msk.msra.mxu0 %vm14692_vm7, %v11972_v55 }
 0xb16   : > { %12116 = vmatpush3.bf16.msra.mxu1 %v21934_v52  ;;  %11976 = vmatprep.subr.bf16.mxu0 %v11975_v61  ;;  %v9432_v61 = vld [vmem:[%s20382_s6 + $0x90] sm:$0xff] }
 0xb17   : > { %12118 = vmatprep.subr.bf16.mxu1 %v21936_v39  ;;  %v11981_v39 = vpack.c.bf16 %v9420_v38, %v9418_v44  ;;  %v11993_v56 = vpack.c.bf16 %v9432_v61, %v9430_v62  ;;  %v11397_v44 = vld [vmem:[%s20382_s6 + $0x228] sm:$0xff]  ;;  %v11399_v38 = vld [vmem:[%s20382_s6 + $0x238] sm:$0xff] }
 0xb18   : > { %v12075_v21 = vpack.c.bf16 %v11399_v38, %v11397_v44  ;;  %v11413_v62 = vld [vmem:[%s20382_s6 + $0x2a8] sm:$0xff]  ;;  %v11415_v61 = vld [vmem:[%s20382_s6 + $0x2b8] sm:$0xff]  ;;  %v21956_v44 = vld [vmem:[#allocation70_spill] sm:$0xff] }
 0xb1a   : > { %12120 = vmatpush3.bf16.msra.mxu1 %v21938_v25  ;;  %v9422_v25 = vld [vmem:[%s20382_s6 + $0x40] sm:$0xff] }
 0xb1b   : > { %12122 = vmatprep.subr.bf16.mxu1 %v21939_v23  ;;  %v9424_v23 = vld [vmem:[%s20382_s6 + $0x50] sm:$0xff] }
 0xb1c   : > { %v11985_v57 = vpack.c.bf16 %v9424_v23, %v9422_v25  ;;  %v11400_v23 = vld [vmem:[%s20382_s6 + $0x240] sm:$0xff] }
 0xb1e   : > { %12124 = vmatpush3.bf16.msra.mxu1 %v21940_v30 }
 0xb1f   : > { %12126 = vmatprep.subr.bf16.mxu1 %v21941_v45  ;;  %v9427_v45 = vld [vmem:[%s20382_s6 + $0x68] sm:$0xff] }
 0xb20   : > { %v11987_v49 = vpack.c.bf16 %v9429_v9, %v9427_v45  ;;  %v11405_v45 = vld [vmem:[%s20382_s6 + $0x268] sm:$0xff] }
 0xb22   : > { %12128 = vmatpush3.bf16.msra.mxu1 %v21942_v22  ;;  %v9426_v22 = vld [vmem:[%s20382_s6 + $0x60] sm:$0xff] }
 0xb23   : > { %12130 = vmatprep.subr.bf16.mxu1 %v21943_v5  ;;  %v9433_v5 = vld [vmem:[%s20382_s6 + $0x98] sm:$0xff]  ;;  %v11989_v55 = vpack.c.bf16 %v9428_v24, %v9426_v22  ;;  %v11406_v22 = vld [vmem:[%s20382_s6 + $0x270] sm:$0xff]  ;;  %v11409_v24 = vld [vmem:[%s20382_s6 + $0x288] sm:$0xff] }
 0xb24   : > { %v11991_v43 = vpack.c.bf16 %v9433_v5, %v9431_v36 }
 0xb26   : > { %12132 = vmatpush3.bf16.msra.mxu1 %v21947_v18 }
 0xb27   : > { %12134 = vmatprep.subr.bf16.mxu1 %v12133_v16  ;;  %v9437_v16 = vld [vmem:[%s20382_s6 + $0xb8] sm:$0xff] }
 0xb28   : > { %v11995_v18 = vpack.c.bf16 %v9437_v16, %v9435_v7  ;;  %v12091_v16 = vpack.c.bf16 %v11415_v61, %v11413_v62  ;;  %v11431_v62 = vld [vmem:[%s20382_s6 + $0x300] sm:$0xff] }
 0xb2a   : > { %12136 = vmatpush3.bf16.msra.mxu1 %v21949_v17  ;;  %v9436_v17 = vld [vmem:[%s20382_s6 + $0xb0] sm:$0xff] }
 0xb2d   : > { %10370 = vmatmul.mubr.f32.vlgmr.msra.gmra.mrb[72].mxu1 %v19490_v50 }
 0xb2e   : > { %10374 = vmatprep.mubr.f32.mxu1 %v19515_v41 }
 0xb31   : > { %10375 = vmatmul.mubr.f32.gmra.mrb[74].mxu1 %v19559_v58  ;;  %v9414_v58 = vld [vmem:[%s20382_s6] sm:$0xff] }
 0xb32   : > { %v11977_v34 = vpack.c.bf16 %v9416_v28, %v9414_v58  ;;  %v9444_v58 = vld [vmem:[%s20382_s6 + $0xf0] sm:$0x7f] }
 0xb67   : > { %v9405_v26 = vpop.f32.mrb[56].mxu1 }
 0xb68   : > { %v9407_v10 = vpop.f32.mrb[57].mxu1 }
 0xb69   : > { %v9441_v10 = vld [vmem:[%s20382_s6 + $0xd8] sm:$0xff] }
 0xb6b   : > { %v9410_v48 = vpop.f32.mrb[58].mxu1 }
 0xb6c   : > { %v9412_v29 = vpop.f32.mrb[59].mxu1 }
 0xb7b   : > { %v11507_v47 = vpop.f32.mrb[112].mxu0 }
 0xb7c   : > { %v11508_v40 = vpop.f32.mrb[113].mxu0 }
 0xb7d   : > { %v11509_v12 = vadd.f32 %v11508_v40, %v11507_v47  ;;  %v9438_v40 = vld [vmem:[%s20382_s6 + $0xc0] sm:$0xff] }
 0xb7f   : > { %v11510_v4 = vpop.f32.mrb[114].mxu0  ;;  %v19948_v14 = vadd.f32 %v11509_v12, %v9405_v26  ;;  %v9439_v26 = vld [vmem:[%s20382_s6 + $0xc8] sm:$0xff]  ;;  %v9440_v12 = vld [vmem:[%s20382_s6 + $0xd0] sm:$0xff] }
 0xb80   : > { %v11511_v37 = vpop.f32.mrb[115].mxu0  ;;  %v11999_v47 = vpack.c.bf16 %v9441_v10, %v9439_v26 }
 0xb81   : > { %v11512_v19 = vadd.f32 %v11511_v37, %v11510_v4  ;;  %v9443_v37 = vld [vmem:[%s20382_s6 + $0xe8] sm:$0xff] }
 0xb83   : > { %v19950_v42 = vadd.f32 %v11512_v19, %v9410_v48  ;;  %v11997_v48 = vpack.c.bf16 %v9436_v17, %v9434_v13  ;;  %v9445_v19 = vld [vmem:[%s20382_s6 + $0xf8] sm:$0x7f]  ;;  %v11417_v13 = vld [vmem:[%s20382_s6 + $0x2c8] sm:$0xff] }
 0xb84   : > { %v11419_v17 = vld [vmem:[%s20382_s6 + $0x2d8] sm:$0xff] }
 0xb85   : > { %v12095_v10 = vpack.c.bf16 %v11419_v17, %v11417_v13  ;;  %v21974_v13 = vrot.slane %v21924_v63, 4  ;;  %v11442_v63 = vld [vmem:[%s20382_s6 + $0x358] sm:$0xff] }
 0xb95   : > { %v9801_v31 = vpop.f32.mrb[60].mxu1 }
 0xb96   : > { %v9803_v50 = vpop.f32.mrb[61].mxu1 }
 0xb97   : > { %v12001_v50 = vpack.c.bf16 %v9440_v12, %v9438_v40  ;;  %v11423_v40 = vld [vmem:[%s20382_s6 + $0x2f8] sm:$0x7f] }
 0xb99   : > { %v9806_v20 = vpop.f32.mrb[62].mxu1 }
 0xb9a   : > { %v9808_v41 = vpop.f32.mrb[63].mxu1 }
 0xb9b   : > { %v12003_v41 = vpack.c.bf16 %v9445_v19, %v9443_v37  ;;  %v11420_v37 = vld [vmem:[%s20382_s6 + $0x2e0] sm:$0xff]  ;;  %v11422_v19 = vld [vmem:[%s20382_s6 + $0x2f0] sm:$0x7f] }
 0xb9d   : > { %v11545_v46 = vpop.f32.mrb[116].mxu0 }
 0xb9e   : > { %v11546_v35 = vpop.f32.mrb[117].mxu0 }
 0xb9f   : > { %v11547_v51 = vadd.f32 %v11546_v35, %v11545_v46  ;;  %v9442_v46 = vld [vmem:[%s20382_s6 + $0xe0] sm:$0xff]  ;;  %v11393_v35 = vld [vmem:[%s20382_s6 + $0x208] sm:$0xff] }
 0xba1   : > { %v9802_v53 = vadd.f32 %v11547_v51, %v9801_v31  ;;  %v11548_v11 = vpop.f32.mrb[118].mxu0  ;;  %v12006_v51 = vpack.c.bf16 %v9444_v58, %v9442_v46 }
 0xba2   : > { %v11549_v52 = vpop.f32.mrb[119].mxu0 }
 0xba3   : > { %11383 = vmatmul.mubr.msk.f32.vlgmr.msra.gmra.mrb[120].mxu0 %vm4946_vm8, %v9802_v53  ;;  %v11550_v8 = vadd.f32 %v11549_v52, %v11548_v11  ;;  %v11392_v53 = vld [vmem:[%s20382_s6 + $0x200] sm:$0xff]  ;;  %v11398_v52 = vld [vmem:[%s20382_s6 + $0x230] sm:$0xff] }
 0xba4   : > { %11978 = vmatpush1.bf16.msra.mxu0 %v11977_v34  ;;  %9925 = vmatprep.mubr.f32.mxu0 %v21871_v6  ;;  %v12071_v34 = vpack.c.bf16 %v11395_v33, %v11393_v35  ;;  %v21950_v33 = vld [vmem:[#allocation39_spill] sm:$0xff] }
 0xba5   : > { %11980 = vmatprep.subr.bf16.mxu0 %v11979_v1  ;;  %v9807_v30 = vadd.f32 %v11550_v8, %v9806_v20  ;;  %v11394_v1 = vld [vmem:[%s20382_s6 + $0x210] sm:$0xff]  ;;  %v11401_v8 = vld [vmem:[%s20382_s6 + $0x248] sm:$0xff] }
 0xba6   : > { %v12073_v11 = vpack.c.bf16 %v11394_v1, %v11392_v53  ;;  %v21954_v53 = vld [vmem:[#allocation165_spill] sm:$0xff] }
 0xba7   : > { %11384 = vmatmul.mubr.msk.f32.gmra.mrb[122].mxu0 %vm4946_vm8, %v9807_v30  ;;  %v11402_v30 = vld [vmem:[%s20382_s6 + $0x250] sm:$0xff] }
 0xba8   : > { %11982 = vmatpush1.bf16.msra.mxu0 %v11981_v39  ;;  %10008 = vmatprep.mubr.f32.mxu0 %v21871_v6  ;;  %v11403_v39 = vld [vmem:[%s20382_s6 + $0x258] sm:$0xff]  ;;  %v12081_v9 = vpack.c.bf16 %v11402_v30, %v11400_v23  ;;  %v21965_v30 = vld [vmem:[#allocation87_spill] sm:$0xff] }
 0xba9   : > { %11984 = vmatprep.subr.bf16.mxu0 %v11983_v54  ;;  %v12077_v54 = vpack.c.bf16 %v11398_v52, %v11396_v27  ;;  %v12079_v25 = vpack.c.bf16 %v11403_v39, %v11401_v8  ;;  %v21959_v52 = vld [vmem:[#allocation73_spill] sm:$0xff]  ;;  %v21960_v8 = vld [vmem:[#allocation76_spill] sm:$0xff] }
 0xbaa   : > { %v12150_v39 = vpack.c.bf16 %v21960_v8, %v21959_v52  ;;  %v21964_v23 = vld [vmem:[#allocation29_spill] sm:$0xff]  ;;  %v11456_v52 = vld [vmem:[%s20382_s6 + $0x3c8] sm:$0xff] }
 0xbab   : > { %v11458_v8 = vld [vmem:[%s20382_s6 + $0x3d8] sm:$0xff] }
 0xbac   : > { %11986 = vmatpush1.bf16.msra.mxu0 %v11985_v57 }
 0xbad   : > { %11988 = vmatprep.subr.bf16.mxu0 %v11987_v49  ;;  %v11404_v49 = vld [vmem:[%s20382_s6 + $0x260] sm:$0xff] }
 0xbae   : > { %v12085_v36 = vpack.c.bf16 %v11406_v22, %v11404_v49  ;;  %v21968_v49 = vld [vmem:[#allocation19_spill] sm:$0xff] }
 0xbb0   : > { %11990 = vmatpush1.bf16.msra.mxu0 %v11989_v55  ;;  %v11408_v55 = vld [vmem:[%s20382_s6 + $0x280] sm:$0xff] }
 0xbb1   : > { %11992 = vmatprep.subr.bf16.mxu0 %v11991_v43  ;;  %v11410_v43 = vld [vmem:[%s20382_s6 + $0x290] sm:$0xff] }
 0xbb2   : > { %v12089_v7 = vpack.c.bf16 %v11410_v43, %v11408_v55  ;;  %v11432_v55 = vld [vmem:[%s20382_s6 + $0x308] sm:$0xff]  ;;  %v11434_v43 = vld [vmem:[%s20382_s6 + $0x318] sm:$0xff] }
 0xbb4   : > { %11994 = vmatpush1.bf16.msra.mxu0 %v11993_v56  ;;  %v11412_v56 = vld [vmem:[%s20382_s6 + $0x2a0] sm:$0xff] }
 0xbb5   : > { %11996 = vmatprep.subr.bf16.mxu0 %v11995_v18  ;;  %v11414_v18 = vld [vmem:[%s20382_s6 + $0x2b0] sm:$0xff] }
 0xbb6   : > { %v11583_v29 = vpop.f32.mrb[64].mxu1  ;;  %v12093_v26 = vpack.c.bf16 %v11414_v18, %v11412_v56  ;;  %v12167_v56 = vpack.c.bf16 %v11434_v43, %v11432_v55  ;;  %v12169_v18 = vpack.c.bf16 %v11433_v2, %v11431_v62 }
 0xbb7   : > { %v11584_v4 = vpop.f32.mrb[65].mxu1 }
 0xbb8   : > { %v20040_v31 = vadd.f32 %v11584_v4, %v11583_v29  ;;  %11998 = vmatpush1.bf16.msra.mxu0 %v11997_v48  ;;  %v11416_v48 = vld [vmem:[%s20382_s6 + $0x2c0] sm:$0xff]  ;;  %v11418_v29 = vld [vmem:[%s20382_s6 + $0x2d0] sm:$0xff] }
 0xbb9   : > { %12000 = vmatprep.subr.bf16.mxu0 %v11999_v47  ;;  %v11421_v47 = vld [vmem:[%s20382_s6 + $0x2e8] sm:$0xff]  ;;  %v12097_v12 = vpack.c.bf16 %v11418_v29, %v11416_v48  ;;  %v11437_v48 = vld [vmem:[%s20382_s6 + $0x330] sm:$0xff] }
 0xbba   : > { %v11586_v20 = vpop.f32.mrb[66].mxu1  ;;  %v12099_v4 = vpack.c.bf16 %v11423_v40, %v11421_v47  ;;  %v11440_v29 = vld [vmem:[%s20382_s6 + $0x348] sm:$0xff]  ;;  %v12903_v47 = vld [vmem:[%s20381_s5 + $0x10] sm:$0xff]  ;;  %v12904_v40 = vld [vmem:[%s20381_s5 + $0x38] sm:$0xff] }
 0xbbb   : > { %v11587_v28 = vpop.f32.mrb[67].mxu1 }
 0xbbc   : > { %v20054_v0 = vadd.f32 %v11587_v28, %v11586_v20  ;;  %12002 = vmatpush1.bf16.msra.mxu0 %v12001_v50  ;;  %v12102_v50 = vpack.c.bf16 %v11422_v19, %v11420_v37  ;;  %v11439_v37 = vld [vmem:[%s20382_s6 + $0x340] sm:$0xff]  ;;  %v11441_v19 = vld [vmem:[%s20382_s6 + $0x350] sm:$0xff] }
 0xbbd   : > { %12005 = vmatprep.subr.msk.bf16.mxu0 %vm14692_vm7, %v12003_v41 }
 0xbc0   : > { %12008 = vmatpush1.bf16.msk.msra.mxu0 %vm14692_vm7, %v12006_v51  ;;  %v21951_v51 = vld [vmem:[#allocation153_spill] sm:$0xff] }
 0xbc1   : > { %12072 = vmatprep.subr.bf16.mxu0 %v12071_v34  ;;  %v21952_v34 = vpack.c.bf16 %v21950_v33, %v21951_v51  ;;  %v11448_v33 = vld [vmem:[%s20382_s6 + $0x388] sm:$0xff]  ;;  %v11450_v51 = vld [vmem:[%s20382_s6 + $0x398] sm:$0xff] }
 0xbc3   : > { %11387 = vmatmul.mubr.msk.f32.vlgmr.msra.gmra.mrb[120].mxu0 %vm4946_vm8, %v19948_v14  ;;  %v11407_v14 = vld [vmem:[%s20382_s6 + $0x278] sm:$0xff] }
 0xbc4   : > { %12074 = vmatpush1.bf16.msra.mxu0 %v12073_v11  ;;  %10014 = vmatprep.mubr.f32.mxu0 %v21871_v6  ;;  %v12083_v57 = vpack.c.bf16 %v11407_v14, %v11405_v45  ;;  %v21957_v11 = vld [vmem:[#allocation168_spill] sm:$0xff]  ;;  %v21966_v45 = vpack.c.bf16 %v21964_v23, %v21965_v30  ;;  %v11460_v23 = vld [vmem:[%s20382_s6 + $0x3e8] sm:$0xff]  ;;  %v11462_v30 = vld [vmem:[%s20382_s6 + $0x3f8] sm:$0x7f] }
 0xbc5   : > { %12076 = vmatprep.subr.bf16.mxu0 %v12075_v21  ;;  %v21958_v21 = vld [vmem:[#allocation75_spill] sm:$0xff] }
 0xbc6   : > { %v12147_v27 = vpack.c.bf16 %v21958_v21, %v21957_v11  ;;  %v11451_v21 = vld [vmem:[%s20382_s6 + $0x3a0] sm:$0xff] }
 0xbc7   : > { %11388 = vmatmul.mubr.msk.f32.gmra.mrb[122].mxu0 %vm4946_vm8, %v19950_v42  ;;  %v11411_v42 = vld [vmem:[%s20382_s6 + $0x298] sm:$0xff] }
 0xbc8   : > { %12078 = vmatpush1.bf16.msra.mxu0 %v12077_v54  ;;  %10282 = vmatprep.mubr.f32.mxu0 %v21871_v6  ;;  %v12087_v5 = vpack.c.bf16 %v11411_v42, %v11409_v24  ;;  %v21962_v54 = vld [vmem:[#allocation78_spill] sm:$0xff]  ;;  %v9135_v42 = vpop.permute.xlu1 %9134 }
 0xbc9   : > { %12080 = vmatprep.subr.bf16.mxu0 %v12079_v25 }
 0xbcc   : > { %12082 = vmatpush1.bf16.msra.mxu0 %v12081_v9 }
 0xbcd   : > { %12084 = vmatprep.subr.bf16.mxu0 %v12083_v57  ;;  %v21967_v57 = vld [vmem:[#allocation35_spill] sm:$0xff] }
 0xbce   : > { %v21969_v22 = vpack.c.bf16 %v21967_v57, %v21968_v49  ;;  %v11461_v57 = vld [vmem:[%s20382_s6 + $0x3f0] sm:$0x7f] }
 0xbd0   : > { %12086 = vmatpush1.bf16.msra.mxu0 %v12085_v36  ;;  %v21970_v36 = vld [vmem:[#allocation150_spill] sm:$0xff] }
 0xbd1   : > { %12088 = vmatprep.subr.bf16.mxu0 %v12087_v5  ;;  %v9245_v5 = vmax.f32 %v21970_v36, %v9135_v42 }
 0xbd4   : > { %12090 = vmatpush1.bf16.msra.mxu0 %v12089_v7  ;;  %v11438_v7 = vld [vmem:[%s20382_s6 + $0x338] sm:$0xff] }
 0xbd5   : > { %12092 = vmatprep.subr.bf16.mxu0 %v12091_v16  ;;  %v10300_v16 = vrot.slane %v9245_v5, 4 }
 0xbd7   : > { %v10301_v17 = vsel %vm634_vm0, %v21974_v13, %v10300_v16 }
 0xbd8   : > { %12094 = vmatpush1.bf16.msra.mxu0 %v12093_v26 }
 0xbd9   : > { %12096 = vmatprep.subr.bf16.mxu0 %v12095_v10  ;;  %v11435_v10 = vld [vmem:[%s20382_s6 + $0x320] sm:$0xff] }
 0xbdc   : > { %12098 = vmatpush1.bf16.msra.mxu0 %v12097_v12  ;;  %v12173_v12 = vpack.c.bf16 %v11437_v48, %v11435_v10 }
 0xbdd   : > { %12101 = vmatprep.subr.msk.bf16.mxu0 %vm14692_vm7, %v12099_v4  ;;  %v12175_v4 = vpack.c.bf16 %v11442_v63, %v11440_v29 }
 0xbe0   : > { %v10164_v20 = vpop.f32.mrb[68].mxu1  ;;  %12104 = vmatpush1.bf16.msk.msra.mxu0 %vm14692_vm7, %v12102_v50  ;;  %v11444_v50 = vld [vmem:[%s20382_s6 + $0x368] sm:$0xff] }
 0xbe1   : > { %v10165_v41 = vadd.f32 %v20040_v31, %v10164_v20  ;;  %v10166_v46 = vpop.f32.mrb[69].mxu1  ;;  %12137 = vmatprep.subr.bf16.mxu0 %v21753_v3  ;;  %v21953_v31 = vld [vmem:[#allocation155_spill] sm:$0xff]  ;;  %v11446_v20 = vld [vmem:[%s20382_s6 + $0x378] sm:$0xff] }
 0xbe2   : > { %v12141_v1 = vpack.c.bf16 %v21954_v53, %v21953_v31  ;;  %v12177_v46 = vpack.c.bf16 %v11441_v19, %v11439_v37  ;;  %v12183_v31 = vpack.c.bf16 %v11450_v51, %v11448_v33  ;;  %v11447_v53 = vld [vmem:[%s20382_s6 + $0x380] sm:$0xff] }
 0xbe3   : > { %11426 = vmatmul.mubr.msk.f32.vlgmr.msra.gmra.mrb[120].mxu0 %vm4946_vm8, %v10165_v41  ;;  %v12905_v41 = vld [vmem:[%s20381_s5 + $0x30] sm:$0xff] }
 0xbe4   : > { %v10169_v58 = vpop.f32.mrb[70].mxu1  ;;  %12139 = vmatpush1.bf16.msra.mxu0 %v21952_v34  ;;  %10288 = vmatprep.mubr.f32.mxu0 %v21871_v6 }
 0xbe5   : > { %v10170_v28 = vadd.f32 %v20054_v0, %v10169_v58  ;;  %v10171_v35 = vpop.f32.mrb[71].mxu1  ;;  %12140 = vmatprep.subr.bf16.mxu0 %v21753_v3  ;;  %v21955_v0 = vld [vmem:[#allocation66_spill] sm:$0xff]  ;;  %v12179_v58 = vpack.c.bf16 %v11446_v20, %v11444_v50 }
 0xbe6   : > { %v12144_v38 = vpack.c.bf16 %v21956_v44, %v21955_v0  ;;  %v11445_v35 = vld [vmem:[%s20382_s6 + $0x370] sm:$0xff]  ;;  %v11452_v0 = vld [vmem:[%s20382_s6 + $0x3a8] sm:$0xff]  ;;  %v11454_v44 = vld [vmem:[%s20382_s6 + $0x3b8] sm:$0xff] }
 0xbe7   : > { %11427 = vmatmul.mubr.msk.f32.gmra.mrb[122].mxu0 %vm4946_vm8, %v10170_v28  ;;  %v11443_v28 = vld [vmem:[%s20382_s6 + $0x360] sm:$0xff]  ;;  %v12187_v11 = vpack.c.bf16 %v11454_v44, %v11452_v0 }
 0xbe8   : > { %12142 = vmatpush1.bf16.msra.mxu0 %v12141_v1  ;;  %11429 = vmatprep.mubr.msk.f32.mxu0 %vm9254_vm11, %v19818_v32  ;;  %v21961_v32 = vld [vmem:[#allocation85_spill] sm:$0xff]  ;;  %v12181_v34 = vpack.c.bf16 %v11445_v35, %v11443_v28  ;;  %v11449_v1 = vld [vmem:[%s20382_s6 + $0x390] sm:$0xff] }
 0xbe9   : > { %12143 = vmatprep.subr.bf16.mxu0 %v21753_v3  ;;  %v21963_v25 = vpack.c.bf16 %v21961_v32, %v21962_v54  ;;  %v12191_v32 = vpack.c.bf16 %v11458_v8, %v11456_v52  ;;  %v11455_v54 = vld [vmem:[%s20382_s6 + $0x3c0] sm:$0xff] }
 0xbec   : > { %12145 = vmatpush1.bf16.msra.mxu0 %v12144_v38  ;;  %v12185_v38 = vpack.c.bf16 %v11449_v1, %v11447_v53 }
 0xbed   : > { %12146 = vmatprep.subr.bf16.mxu0 %v21753_v3 }
 0xbf0   : > { %12148 = vmatpush1.bf16.msra.mxu0 %v12147_v27  ;;  %v11453_v27 = vld [vmem:[%s20382_s6 + $0x3b0] sm:$0xff] }
 0xbf1   : > { %12149 = vmatprep.subr.bf16.mxu0 %v21753_v3 }
 0xbf4   : > { %12151 = vmatpush1.bf16.msra.mxu0 %v12150_v39  ;;  %v12189_v39 = vpack.c.bf16 %v11453_v27, %v11451_v21 }
 0xbf5   : > { %12152 = vmatprep.subr.bf16.mxu0 %v21753_v3 }
 0xbf8   : > { %12154 = vmatpush1.bf16.msra.mxu0 %v21963_v25  ;;  %v11457_v25 = vld [vmem:[%s20382_s6 + $0x3d0] sm:$0xff] }
 0xbf9   : > { %12155 = vmatprep.subr.bf16.mxu0 %v21753_v3 }
 0xbfc   : > { %12157 = vmatpush1.bf16.msra.mxu0 %v21966_v45  ;;  %v12193_v45 = vpack.c.bf16 %v11457_v25, %v11455_v54 }
 0xbfd   : > { %12158 = vmatprep.subr.bf16.mxu0 %v21753_v3 }
 0xc00   : > { %v11621_v14 = vpop.f32.mrb[72].mxu1  ;;  %12160 = vmatpush1.bf16.msra.mxu0 %v21969_v22 }
 0xc01   : > { %v11622_v9 = vpop.f32.mrb[73].mxu1  ;;  %12161 = vmatprep.subr.bf16.mxu0 %v21753_v3 }
 0xc02   : > { %v20195_v24 = vadd.f32 %v11622_v9, %v11621_v14  ;;  %v12195_v14 = vpack.c.bf16 %v11462_v30, %v11460_v23  ;;  %v11459_v9 = vld [vmem:[%s20382_s6 + $0x3e0] sm:$0xff] }
 0xc03   : > { %v12198_v22 = vpack.c.bf16 %v11461_v57, %v11459_v9 }
 0xc04   : > { %12163 = vmatpush1.bf16.msra.mxu0 %v12162_v15  ;;  %v21972_v15 = vld [vmem:[#allocation28_spill] sm:$0xff]  ;;  %v11624_v49 = vpop.f32.mrb[74].mxu1 }
 0xc05   : > { %12164 = vmatprep.subr.bf16.mxu0 %v21753_v3  ;;  %v21973_v61 = vpack.c.bf16 %v21971_v59, %v21972_v15  ;;  %v11436_v3 = vld [vmem:[%s20382_s6 + $0x328] sm:$0xff]  ;;  %v11625_v42 = vpop.f32.mrb[75].mxu1 }
 0xc06   : > { %v12171_v26 = vpack.c.bf16 %v11438_v7, %v11436_v3  ;;  %v11626_v36 = vadd.f32 %v11625_v42, %v11624_v49 }
 0xc08   : > { %12166 = vmatpush1.bf16.msra.mxu0 %v21973_v61 }
 0xc09   : > { %10420 = vmatprep.subr.mxu0 %v21871_v6 }
 0xc0c   : > { %11428 = vmatpush1.msk.msra.mxu0 %vm2322_vm6, %v10301_v17 }
 0xc0d   : > { %10445 = vmatmul.mubr.f32.vlgmr.msra.gmra.mrb[124].mxu0 %v12903_v47  ;;  %12168 = vmatprep.subr.bf16.mxu0 %v12167_v56 }
 0xc0e   : > { %11430 = vmatprep.mubr.msk.f32.mxu0 %vm9254_vm11, %v12904_v40  ;;  %12170 = vmatpush1.bf16.msra.mxu0 %v12169_v18 }
 0xc0f   : > { %12172 = vmatprep.subr.bf16.mxu0 %v12171_v26 }
 0xc11   : > { %10450 = vmatmul.mubr.f32.gmra.mrb[126].mxu0 %v12905_v41 }
 0xc12   : > { %12174 = vmatpush1.bf16.msra.mxu0 %v12173_v12  ;;  %10564 = vmatprep.mubr.f32.mxu0 %v21871_v6 }
 0xc13   : > { %12176 = vmatprep.subr.bf16.mxu0 %v12175_v4 }
 0xc16   : > { %12178 = vmatpush1.bf16.msra.mxu0 %v12177_v46 }
 0xc17   : > { %12180 = vmatprep.subr.bf16.mxu0 %v12179_v58 }
 0xc1a   : > { %12182 = vmatpush1.bf16.msra.mxu0 %v12181_v34 }
 0xc1b   : > { %12184 = vmatprep.subr.bf16.mxu0 %v12183_v31 }
 0xc1e   : > { %12186 = vmatpush1.bf16.msra.mxu0 %v12185_v38 }
 0xc1f   : > { %12188 = vmatprep.subr.bf16.mxu0 %v12187_v11 }
 0xc22   : > { %12190 = vmatpush1.bf16.msra.mxu0 %v12189_v39 }
 0xc23   : > { %12192 = vmatprep.subr.bf16.mxu0 %v12191_v32 }
 0xc26   : > { %12194 = vmatpush1.bf16.msra.mxu0 %v12193_v45 }
 0xc27   : > { %12197 = vmatprep.subr.msk.bf16.mxu0 %vm14692_vm7, %v12195_v14 }
 0xc2a   : > { %12200 = vmatpush1.bf16.msk.msra.mxu0 %vm14692_vm7, %v12198_v22 }
 0xce0   : > { %v10446_v5 = vpop.f32.mrb[124].mxu0 }
 0xce1   : > { %v10447_v55 = vadd.f32 %v20195_v24, %v10446_v5  ;;  %v10448_v43 = vpop.f32.mrb[125].mxu0 }
 0xce3   : > { %11465 = vmatmul.mubr.msk.f32.vlgmr.msra.gmra.mrb[120].mxu0 %vm4946_vm8, %v10447_v55 }
 0xce4   : > { %v10451_v62 = vpop.f32.mrb[126].mxu0  ;;  %10570 = vmatprep.mubr.f32.mxu0 %v21871_v6 }
 0xce5   : > { %v10452_v2 = vadd.f32 %v11626_v36, %v10451_v62  ;;  %v10453_v59 = vpop.f32.mrb[127].mxu0 }
 0xce7   : > { %11466 = vmatmul.mubr.msk.f32.gmra.mrb[122].mxu0 %vm4946_vm8, %v10452_v2 }
 0xdb6   : > { %v10566_v15 = vpop.f32.mrb[120].mxu0 }
 0xdb7   : > { %10581 = vst [vmem:[%s272_s14] sm:$0xff] %v10566_v15  ;;  %v10568_v60 = vpop.f32.mrb[121].mxu0 }
 0xdb8   : > { %10582 = vst [vmem:[%s272_s14 + $0x8] sm:$0xff] %v10568_v60 }
 0xdba   : > { %v10572_v6 = vpop.f32.mrb[122].mxu0 }
 0xdbb   : > { %10583 = vst [vmem:[%s272_s14 + $0x10] sm:$0xff] %v10572_v6  ;;  %v10574_v24 = vpop.f32.mrb[123].mxu0 }
 0xdbc   : > { %10584 = vst [vmem:[%s272_s14 + $0x18] sm:$0xff] %v10574_v24 }
 0xdbd   : > { %12919 = shalt.err (!%p12916_p3)
}
 0xdbe   : > { %s12920_s19 = scalar_lea.hbm %s20333_s9, 512  ;;  %s12924_s21 = scalar_lea.hbm %s20383_s7, 1024 }
 0xdbf   : > { %p12921_p4 = scmp.ne.s32.totalorder %s20333_s9, %s12920_s19  ;;  %p12925_p9 = scmp.lt.u32.totalorder %s20333_s9, %s20383_s7 }
 0xdc0   : > { %p12926_p10 = scmp.lt.u32.totalorder %s12924_s21, %s12920_s19  ;;  %p12928_p12 = scmp.lt.u32.totalorder %s12920_s19, %s20333_s9 }
 0xdc1   : > { %p12922_p7 = pnand %p12921_p4, %p13055_p5 }
 0xdc2   : > { %p12927_p11 = por %p12926_p10, %p12925_p9 }
 0xdc3   : > { %p12923_p8 = pneg %p12922_p7 }
 0xdc4   : > { %p12929_p13 = por %p12928_p12, %p12927_p11 }
 0xdc6   : > { %p12930_p0 = pnand %p12929_p13, %p12923_p8 }
 0xdc8   : > { %12933 = shalt.err (!%p12930_p0)
}
 0xdc9   : > { %s12975_s29 = smov 256   ;;  %s12976_s8 = smov 16  }
 0xdca   : > { %12665 = dma.vmem_to_hbm [thread:$0]  (%p13055_p5), %s20328_s22, 512, %s20333_s9, %s20335_s13, %s12975_s29, %s12975_s29, %s12976_s8  }
 0xdcb PF: > { %p12671_p1 = scmp.ge.s32.totalorder %s12968_s27, 2  ;;  %s10615_s15 = sand.u32 1, %s12956_s24  }
 0xdcc   : > { %s10616_s28 = scalar_lea.sflag [#allocation3], %s10615_s15 }
 0xdcd   : > { %p12668_p2 = pnand %p12671_p1, %p13059_p6 }
 0xdcf   : > { %12951 = dma.done.wait (!%p12668_p2), %s10616_s28, 512  }
 0xdd0   : > { %12953 = vsyncadd (!%p12668_p2), %s10616_s28, 4294966784  ;;  %p17_p3 = scmp.ge.s32.totalorder %s13042_s30, 4   ;;  %s21975_s24 = smov %s12960_s25 }
 0xdd1   : > { %s21976_s25 = smov %s12964_s26  ;;  %s21977_s26 = smov %s13053_s10 }
 0xdd2   : > { %s21978_s27 = smov %s13042_s30  ;;  %19 = sbr.rel (!%p17_p3) target bundleno = 3 (0x3), region = 94 }
 0xdd9   :  { %10621 = vsyncpa [#allocation3], 1 }
 0xdda   :  { %10623 = vsyncpa [#allocation3 + $0x1], 1 }

</bundles_post_ra>
